<compile_context>
chip_gen: v5e
topology: v5e:2x2
jax: 0.10.0
libtpu: 0.0.40
codegen_flags: <defaults>
</compile_context>

<pallas_src>
import jax
import jax.numpy as jnp
from jax import lax
from jax.experimental import pallas as pl
from jax.experimental.pallas import tpu as pltpu


def _conv_tile(xb, xh, w, TB, Wb):
    """Polyphase ConvTranspose on one (TB+1)-row input window.

    xb: (TB, W+2, Cin) bf16 body rows (1-col zero halo each side)
    xh: (1,  W+2, Cin) bf16 halo row below the body
    w : (4*Cin, L)     bf16 folded weights, rows ordered (dy,dx)-major
    returns (TB, Wb, L) f32 pre-BN conv output, lanes ordered (u, v, co).
    """
    xt = jnp.maximum(jnp.concatenate([xb, xh], axis=0), 0)       # ReLU, (TB+1, W+2, Cin)
    # Fold the 2x2 window offsets into the contraction axis (K = 4*Cin).
    x4 = jnp.concatenate(
        [xt[dy:dy + TB, dx:dx + Wb, :]
         for dy, dx in ((0, 0), (0, 1), (1, 0), (1, 1))], axis=-1)   # (TB, Wb, 4*Cin)
    return lax.dot_general(x4, w, (((2,), (0,)), ((), ())),
                           preferred_element_type=jnp.float32)       # (TB, Wb, L)


def _make_stats_kernel(TB, Wb, H, W):
    """Pass 1: recompute-free BN partial statistics (masked sum / sum-of-squares)."""

    def kernel(xb_ref, xh_ref, w_ref, u_ref, v_ref, s1_ref, s2_ref):
        acc = _conv_tile(xb_ref[0], xh_ref[0], w_ref[...], TB, Wb)   # (TB, Wb, L) f32

        # Mask the 1-pixel halo ring / overhang rows so BN statistics only see
        # the valid (N, 2H, 2W) region. Extended row/col = 2*block + phase.
        b0 = pl.program_id(1) * TB
        gr = b0 + lax.broadcasted_iota(jnp.int32, (TB, 1, 1), 0)
        er = 2 * gr + u_ref[...]                                     # (TB, 1, L)
        ci = lax.broadcasted_iota(jnp.int32, (1, Wb, 1), 1)
        ec = 2 * ci + v_ref[...]                                     # (1, Wb, L)
        mask = (er >= 1) & (er <= 2 * H) & (ec >= 1) & (ec <= 2 * W)
        am = jnp.where(mask, acc, 0.0)

        s1_ref[0] = jnp.sum(am, axis=0).sum(axis=0, keepdims=True)          # (1, L)
        s2_ref[0] = jnp.sum(am * am, axis=0).sum(axis=0, keepdims=True)     # (1, L)

    return kernel


def _make_apply_kernel(TB, Wb, Cout):
    """Pass 2: recompute conv, apply BN affine, write pixel-shuffle-friendly tiles."""

    def kernel(xb_ref, xh_ref, w_ref, sc_ref, sh_ref, o_ref):
        acc = _conv_tile(xb_ref[0], xh_ref[0], w_ref[...], TB, Wb)   # (TB, Wb, L) f32
        y = acc * sc_ref[...] + sh_ref[...]                          # BN affine, f32
        # Lanes are ordered (u, v, co); split the row phase u into a major output
        # dim so the wrapper's phase interleave is a free contiguous reshape.
        o_ref[:, 0, :, :] = y[:, :, :2 * Cout]                       # u = 0 rows
        o_ref[:, 1, :, :] = y[:, :, 2 * Cout:]                       # u = 1 rows

    return kernel


@jax.jit
def deconv_block_forward(x_nchw, w_t, bias, gamma, beta):
    """DeconvBlock forward (batch_norm=True, dropout=False).

    x_nchw : (N, Cin, H, W)
    w_t    : (Cin, Cout, 4, 4)   PyTorch ConvTranspose2d weight layout
    bias   : (Cout,)             deconv bias (cancelled exactly by training-mode BN)
    gamma  : (Cout,)             BN weight
    beta   : (Cout,)             BN bias
    returns: (N, Cout, 2H, 2W)
    """
    # TODO(synk): dropout branch (p=0.5) not implemented; module default is dropout=False.
    del bias  # a per-channel constant before BN is cancelled by the mean subtraction
    N, Cin, H, W = x_nchw.shape
    Cout = w_t.shape[1]
    L = 4 * Cout                     # 4 output phases folded into the lane axis
    Wb = W + 1                       # block-columns (each block = 2x2 output pixels)
    HB = H + 1                       # block-rows needed to cover the output

    # Tile-row selection: full image per batch element when it fits; otherwise
    # pick TB so the f32 conv/output tile is ~2 MiB (good HBM utilisation, well
    # inside a 32 MiB scoped-VMEM budget double-buffered, v7x-safe).
    TB = max(1, min(HB, (2 * 1024 * 1024) // max(Wb * L * 4, 1)))
    T = -(-HB // TB)
    TB = -(-HB // T)
    RT = T * TB                      # block-rows actually covered (>= HB)

    # ---- layout & weight prep (no zero-upsampling, no per-tile input copies) ----
    x = jnp.transpose(x_nchw, (0, 2, 3, 1)).astype(jnp.bfloat16)     # NHWC bf16
    xp = jnp.pad(x, ((0, 0), (1, RT - H), (1, 1), (0, 0)))           # (N, RT+1, W+2, Cin)

    # Fold the 4x4 ConvTranspose taps: window offset (dy,dx) in the 2x2 input
    # neighbourhood uses tap (ky,kx) = (2+u-2*dy, 2+v-2*dx) for output phase (u,v).
    parts = []
    for dy in range(2):
        for dx in range(2):
            sub = w_t[:, :, 2 - 2 * dy:4 - 2 * dy, 2 - 2 * dx:4 - 2 * dx]  # (Cin,Cout,u,v)
            parts.append(jnp.transpose(sub, (0, 2, 3, 1)).reshape(Cin, L))
    w_fold = jnp.concatenate(parts, axis=0).astype(jnp.bfloat16)           # (4*Cin, L)

    # Phase-of-lane constants (avoid per-grid-step integer div/mod in the kernel).
    lane = jnp.arange(L, dtype=jnp.int32)
    u_lane = (lane // (2 * Cout)).reshape(1, 1, L)
    v_lane = ((lane % (2 * Cout)) // Cout).reshape(1, 1, L)

    vmem_lim = 32 * 1024 * 1024
    body_spec = pl.BlockSpec((1, TB, W + 2, Cin), lambda n, t: (n, t, 0, 0))
    halo_spec = pl.BlockSpec((1, 1, W + 2, Cin), lambda n, t: (n, (t + 1) * TB, 0, 0))
    w_spec = pl.BlockSpec((4 * Cin, L), lambda n, t: (0, 0))
    lane_spec = pl.BlockSpec((1, 1, L), lambda n, t: (0, 0, 0))

    # ---- pass 1: per-tile masked BN partial statistics (no conv output stored) ----
    s1, s2 = pl.pallas_call(
        _make_stats_kernel(TB, Wb, H, W),
        out_shape=(jax.ShapeDtypeStruct((N * T, 1, L), jnp.float32),
                   jax.ShapeDtypeStruct((N * T, 1, L), jnp.float32)),
        grid=(N, T),
        in_specs=[body_spec, halo_spec, w_spec, lane_spec, lane_spec],
        out_specs=(pl.BlockSpec((1, 1, L), lambda n, t: (n * T + t, 0, 0)),
                   pl.BlockSpec((1, 1, L), lambda n, t: (n * T + t, 0, 0))),
        compiler_params=pltpu.CompilerParams(
            dimension_semantics=("parallel", "parallel"),
            vmem_limit_bytes=vmem_lim),
    )(xp, xp, w_fold, u_lane, v_lane)

    # ---- reduce BN statistics (tiny) and build per-channel scale / shift ----
    cnt = float(N * 2 * H * 2 * W)
    st1 = s1.sum(axis=(0, 1)).reshape(4, Cout).sum(axis=0)
    st2 = s2.sum(axis=(0, 1)).reshape(4, Cout).sum(axis=0)
    mean = st1 / cnt
    var = jnp.maximum(st2 / cnt - mean * mean, 0.0)      # clamp E[x^2]-m^2
    inv = lax.rsqrt(var + 1e-5)
    scale_c = gamma.astype(jnp.float32) * inv
    shift_c = beta.astype(jnp.float32) - mean * scale_c
    scale4 = jnp.tile(scale_c, 4).reshape(1, 1, L)
    shift4 = jnp.tile(shift_c, 4).reshape(1, 1, L)

    # ---- pass 2: recompute conv, fuse BN affine + phase-split, write final tiles ----
    yext = pl.pallas_call(
        _make_apply_kernel(TB, Wb, Cout),
        out_shape=jax.ShapeDtypeStruct((N * RT, 2, Wb, 2 * Cout), jnp.float32),
        grid=(N, T),
        in_specs=[body_spec, halo_spec, w_spec, lane_spec, lane_spec],
        out_specs=pl.BlockSpec((TB, 2, Wb, 2 * Cout),
                               lambda n, t: (n * T + t, 0, 0, 0)),
        compiler_params=pltpu.CompilerParams(
            dimension_semantics=("parallel", "parallel"),
            vmem_limit_bytes=vmem_lim),
    )(xp, xp, w_fold, scale4, shift4)

    # ---- free reshape (pixel shuffle), then the one unavoidable crop+NCHW pass ----
    ext = yext.reshape(N, 2 * RT, 2 * Wb, Cout)          # contiguous merges only
    out = ext[:, 1:2 * H + 1, 1:2 * W + 1, :]            # drop the halo ring
    return jnp.transpose(out, (0, 3, 1, 2))


def _reference(x_nchw, w_t, bias, gamma, beta):
    """Pure-JAX reference (XLA dilated conv) with the same bf16 input/weight quantization."""
    x = jnp.maximum(x_nchw.astype(jnp.float32), 0.0)
    x = jnp.transpose(x, (0, 2, 3, 1)).astype(jnp.bfloat16).astype(jnp.float32)
    w_conv = jnp.transpose(jnp.flip(w_t, axis=(2, 3)), (2, 3, 0, 1))
    w_conv = w_conv.astype(jnp.bfloat16).astype(jnp.float32)
    y = lax.conv_general_dilated(
        x, w_conv, window_strides=(1, 1), padding=((2, 2), (2, 2)),
        lhs_dilation=(2, 2), rhs_dilation=(1, 1),
        dimension_numbers=("NHWC", "HWIO", "NHWC"),
        precision=lax.Precision.HIGHEST)
    y = y + bias.reshape(1, 1, 1, -1)
    mean = jnp.mean(y, axis=(0, 1, 2), keepdims=True)
    var = jnp.var(y, axis=(0, 1, 2), keepdims=True)      # biased, as in BN training
    y = (y - mean) * lax.rsqrt(var + 1e-5) * gamma.reshape(1, 1, 1, -1) \
        + beta.reshape(1, 1, 1, -1)
    return jnp.transpose(y, (0, 3, 1, 2))


if __name__ == "__main__":
    key = jax.random.PRNGKey(0)
    k_x, k_w, k_b, k_g, k_be = jax.random.split(key, 5)

    N, in_ch, out_ch, H, W = 2, 4, 8, 16, 16

    x = jax.random.normal(k_x, (N, in_ch, H, W), jnp.float32)
    # ConvTranspose2d weight: (in_ch, out_ch, 4, 4); bias: (out_ch,)
    w_t = 0.1 * jax.random.normal(k_w, (in_ch, out_ch, 4, 4), jnp.float32)
    bias = 0.1 * jax.random.normal(k_b, (out_ch,), jnp.float32)
    gamma = 1.0 + 0.1 * jax.random.normal(k_g, (out_ch,), jnp.float32)
    beta = 0.1 * jax.random.normal(k_be, (out_ch,), jnp.float32)

    out = deconv_block_forward(x, w_t, bias, gamma, beta)
    out = jax.block_until_ready(out)

    ref = _reference(x, w_t, bias, gamma, beta)
    assert out.shape == (N, out_ch, 2 * H, 2 * W), out.shape
    max_err = float(jnp.max(jnp.abs(out - ref)))
    assert jnp.allclose(out, ref, atol=5e-3, rtol=5e-3), max_err

    print("KERNEL_OK")
</pallas_src>

<mosaic_0001>
module attributes {stable_mosaic.version = 11 : i64} {
  func.func @kernel(%arg0: i32, %arg1: i32, %arg2: memref<1x17x18x4xbf16, #tpu.memory_space<vmem>>, %arg3: memref<1x1x18x4xbf16, #tpu.memory_space<vmem>>, %arg4: memref<16x32xbf16, #tpu.memory_space<vmem>>, %arg5: memref<1x1x32xi32, #tpu.memory_space<vmem>>, %arg6: memref<1x1x32xi32, #tpu.memory_space<vmem>>, %arg7: memref<1x1x32xf32, #tpu.memory_space<vmem>>, %arg8: memref<1x1x32xf32, #tpu.memory_space<vmem>>) attributes {dimension_semantics = [#tpu.dimension_semantics<parallel>, #tpu.dimension_semantics<parallel>], iteration_bounds = array<i64: 2, 1>, scalar_prefetch = 0 : i64, scratch_operands = 0 : i64, tpu.core_type = #tpu.core_type<tc>, window_params = [{transform_indices = @transform_0, window_bounds = array<i64: 1, 17, 18, 4>}, {transform_indices = @transform_1, window_bounds = array<i64: 1, 1, 18, 4>}, {pipeline_mode = #tpu.pipeline_mode<synchronous>, transform_indices = @transform_2, window_bounds = array<i64: 16, 32>}, {pipeline_mode = #tpu.pipeline_mode<synchronous>, transform_indices = @transform_3, window_bounds = array<i64: 1, 1, 32>}, {pipeline_mode = #tpu.pipeline_mode<synchronous>, transform_indices = @transform_4, window_bounds = array<i64: 1, 1, 32>}, {transform_indices = @transform_5, window_bounds = array<i64: 1, 1, 32>}, {transform_indices = @transform_6, window_bounds = array<i64: 1, 1, 32>}]} {
    %c0 = arith.constant 0 : index
    %c0_0 = arith.constant 0 : index
    %c0_1 = arith.constant 0 : index
    %c0_2 = arith.constant 0 : index
    %0 = vector.load %arg2[%c0, %c0_0, %c0_1, %c0_2] : memref<1x17x18x4xbf16, #tpu.memory_space<vmem>>, vector<1x17x18x4xbf16>
    %1 = vector.shape_cast %0 : vector<1x17x18x4xbf16> to vector<17x18x4xbf16>
    %c0_3 = arith.constant 0 : index
    %c0_4 = arith.constant 0 : index
    %c0_5 = arith.constant 0 : index
    %c0_6 = arith.constant 0 : index
    %2 = vector.load %arg3[%c0_3, %c0_4, %c0_5, %c0_6] : memref<1x1x18x4xbf16, #tpu.memory_space<vmem>>, vector<1x1x18x4xbf16>
    %3 = vector.shape_cast %2 : vector<1x1x18x4xbf16> to vector<1x18x4xbf16>
    %c0_7 = arith.constant 0 : index
    %c0_8 = arith.constant 0 : index
    %4 = vector.load %arg4[%c0_7, %c0_8] : memref<16x32xbf16, #tpu.memory_space<vmem>>, vector<16x32xbf16>
    %5 = tpu.concatenate %1, %3 in 0 : vector<17x18x4xbf16>, vector<1x18x4xbf16> -> vector<18x18x4xbf16>
    %cst = arith.constant 0.000000e+00 : bf16
    %6 = vector.broadcast %cst : bf16 to vector<18x18x4xbf16>
    %7 = arith.maximumf %5, %6 : vector<18x18x4xbf16>
    %8 = vector.extract_strided_slice %7 {offsets = [0, 0, 0], sizes = [17, 17, 4], strides = [1, 1, 1]} : vector<18x18x4xbf16> to vector<17x17x4xbf16>
    %9 = vector.extract_strided_slice %7 {offsets = [0, 1, 0], sizes = [17, 17, 4], strides = [1, 1, 1]} : vector<18x18x4xbf16> to vector<17x17x4xbf16>
    %10 = vector.extract_strided_slice %7 {offsets = [1, 0, 0], sizes = [17, 17, 4], strides = [1, 1, 1]} : vector<18x18x4xbf16> to vector<17x17x4xbf16>
    %11 = vector.extract_strided_slice %7 {offsets = [1, 1, 0], sizes = [17, 17, 4], strides = [1, 1, 1]} : vector<18x18x4xbf16> to vector<17x17x4xbf16>
    %12 = tpu.concatenate %8, %9, %10, %11 in 2 : vector<17x17x4xbf16>, vector<17x17x4xbf16>, vector<17x17x4xbf16>, vector<17x17x4xbf16> -> vector<17x17x16xbf16>
    %cst_9 = arith.constant dense<0.000000e+00> : vector<17x17x32xf32>
    %13 = tpu.matmul %12, %4, %cst_9 {dimension_numbers = #tpu.dot_dimension_numbers<[2], [0], [0, 1], [1], [0, 0, 0, 1, 1, 1], [], []>} : vector<17x17x16xbf16>, vector<16x32xbf16>, vector<17x17x32xf32> -> vector<17x17x32xf32>
    %c17_i32 = arith.constant 17 : i32
    %14 = arith.muli %arg1, %c17_i32 : i32
    %15 = tpu.iota {dimensions = array<i32: 0>} : vector<17x1x1xi32>
    %16 = vector.broadcast %14 : i32 to vector<17x1x1xi32>
    %17 = arith.addi %16, %15 : vector<17x1x1xi32>
    %c2_i32 = arith.constant 2 : i32
    %18 = vector.broadcast %c2_i32 : i32 to vector<17x1x1xi32>
    %19 = arith.muli %18, %17 : vector<17x1x1xi32>
    %c0_10 = arith.constant 0 : index
    %c0_11 = arith.constant 0 : index
    %c0_12 = arith.constant 0 : index
    %20 = vector.load %arg5[%c0_10, %c0_11, %c0_12] : memref<1x1x32xi32, #tpu.memory_space<vmem>>, vector<1x1x32xi32>
    %21 = vector.broadcast %19 : vector<17x1x1xi32> to vector<17x1x32xi32>
    %22 = vector.broadcast %20 : vector<1x1x32xi32> to vector<17x1x32xi32>
    %23 = arith.addi %21, %22 : vector<17x1x32xi32>
    %24 = tpu.iota {dimensions = array<i32: 1>} : vector<1x17x1xi32>
    %c2_i32_13 = arith.constant 2 : i32
    %25 = vector.broadcast %c2_i32_13 : i32 to vector<1x17x1xi32>
    %26 = arith.muli %25, %24 : vector<1x17x1xi32>
    %c0_14 = arith.constant 0 : index
    %c0_15 = arith.constant 0 : index
    %c0_16 = arith.constant 0 : index
    %27 = vector.load %arg6[%c0_14, %c0_15, %c0_16] : memref<1x1x32xi32, #tpu.memory_space<vmem>>, vector<1x1x32xi32>
    %28 = vector.broadcast %26 : vector<1x17x1xi32> to vector<1x17x32xi32>
    %29 = vector.broadcast %27 : vector<1x1x32xi32> to vector<1x17x32xi32>
    %30 = arith.addi %28, %29 : vector<1x17x32xi32>
    %c1_i32 = arith.constant 1 : i32
    %31 = vector.broadcast %c1_i32 : i32 to vector<17x1x32xi32>
    %32 = arith.cmpi sge, %23, %31 : vector<17x1x32xi32>
    %c32_i32 = arith.constant 32 : i32
    %33 = vector.broadcast %c32_i32 : i32 to vector<17x1x32xi32>
    %34 = arith.cmpi sle, %23, %33 : vector<17x1x32xi32>
    %35 = arith.andi %32, %34 : vector<17x1x32xi1>
    %c1_i32_17 = arith.constant 1 : i32
    %36 = vector.broadcast %c1_i32_17 : i32 to vector<1x17x32xi32>
    %37 = arith.cmpi sge, %30, %36 : vector<1x17x32xi32>
    %38 = vector.broadcast %35 : vector<17x1x32xi1> to vector<17x17x32xi1>
    %39 = vector.broadcast %37 : vector<1x17x32xi1> to vector<17x17x32xi1>
    %40 = arith.andi %38, %39 : vector<17x17x32xi1>
    %c32_i32_18 = arith.constant 32 : i32
    %41 = vector.broadcast %c32_i32_18 : i32 to vector<1x17x32xi32>
    %42 = arith.cmpi sle, %30, %41 : vector<1x17x32xi32>
    %43 = vector.broadcast %42 : vector<1x17x32xi1> to vector<17x17x32xi1>
    %44 = arith.andi %40, %43 : vector<17x17x32xi1>
    %cst_19 = arith.constant 0.000000e+00 : f32
    %45 = vector.broadcast %cst_19 : f32 to vector<17x17x32xf32>
    %46 = arith.select %44, %13, %45 : vector<17x17x32xi1>, vector<17x17x32xf32>
    %cst_20 = arith.constant dense<0.000000e+00> : vector<17x32xf32>
    %47 = vector.multi_reduction <add>, %46, %cst_20 [0] : vector<17x17x32xf32> to vector<17x32xf32>
    %cst_21 = arith.constant dense<0.000000e+00> : vector<32xf32>
    %48 = vector.multi_reduction <add>, %47, %cst_21 [0] : vector<17x32xf32> to vector<32xf32>
    %49 = vector.shape_cast %48 : vector<32xf32> to vector<1x32xf32>
    %c0_22 = arith.constant 0 : index
    %c0_23 = arith.constant 0 : index
    %c0_24 = arith.constant 0 : index
    %50 = vector.load %arg7[%c0_22, %c0_23, %c0_24] : memref<1x1x32xf32, #tpu.memory_space<vmem>>, vector<1x1x32xf32>
    %51 = vector.shape_cast %50 : vector<1x1x32xf32> to vector<1x32xf32>
    %52 = vector.shape_cast %49 : vector<1x32xf32> to vector<1x1x32xf32>
    tpu.vector_store %arg7[%c0_22, %c0_23, %c0_24], %52 {strides = array<i32>} : memref<1x1x32xf32, #tpu.memory_space<vmem>>, vector<1x1x32xf32>,
    %53 = arith.mulf %46, %46 : vector<17x17x32xf32>
    %cst_25 = arith.constant dense<0.000000e+00> : vector<17x32xf32>
    %54 = vector.multi_reduction <add>, %53, %cst_25 [0] : vector<17x17x32xf32> to vector<17x32xf32>
    %cst_26 = arith.constant dense<0.000000e+00> : vector<32xf32>
    %55 = vector.multi_reduction <add>, %54, %cst_26 [0] : vector<17x32xf32> to vector<32xf32>
    %56 = vector.shape_cast %55 : vector<32xf32> to vector<1x32xf32>
    %c0_27 = arith.constant 0 : index
    %c0_28 = arith.constant 0 : index
    %c0_29 = arith.constant 0 : index
    %57 = vector.load %arg8[%c0_27, %c0_28, %c0_29] : memref<1x1x32xf32, #tpu.memory_space<vmem>>, vector<1x1x32xf32>
    %58 = vector.shape_cast %57 : vector<1x1x32xf32> to vector<1x32xf32>
    %59 = vector.shape_cast %56 : vector<1x32xf32> to vector<1x1x32xf32>
    tpu.vector_store %arg8[%c0_27, %c0_28, %c0_29], %59 {strides = array<i32>} : memref<1x1x32xf32, #tpu.memory_space<vmem>>, vector<1x1x32xf32>,
    return
  }
  func.func @transform_0(%arg0: i32, %arg1: i32) -> (i32, i32, i32, i32) {
    %c0_i32 = arith.constant 0 : i32
    %c0_i32_0 = arith.constant 0 : i32
    %c0_i32_1 = arith.constant 0 : i32
    return %arg0, %arg1, %c0_i32, %c0_i32_0 : i32, i32, i32, i32
  }
  func.func @transform_1(%arg0: i32, %arg1: i32) -> (i32, i32, i32, i32) {
    %c1_i32 = arith.constant 1 : i32
    %0 = arith.addi %arg1, %c1_i32 : i32
    %c17_i32 = arith.constant 17 : i32
    %1 = arith.muli %0, %c17_i32 : i32
    %c0_i32 = arith.constant 0 : i32
    %c0_i32_0 = arith.constant 0 : i32
    %c0_i32_1 = arith.constant 0 : i32
    return %arg0, %1, %c0_i32, %c0_i32_0 : i32, i32, i32, i32
  }
  func.func @transform_2(%arg0: i32, %arg1: i32) -> (i32, i32) {
    %c0_i32 = arith.constant 0 : i32
    %c0_i32_0 = arith.constant 0 : i32
    %c0_i32_1 = arith.constant 0 : i32
    return %c0_i32, %c0_i32_0 : i32, i32
  }
  func.func @transform_3(%arg0: i32, %arg1: i32) -> (i32, i32, i32) {
    %c0_i32 = arith.constant 0 : i32
    %c0_i32_0 = arith.constant 0 : i32
    %c0_i32_1 = arith.constant 0 : i32
    %c0_i32_2 = arith.constant 0 : i32
    return %c0_i32, %c0_i32_0, %c0_i32_1 : i32, i32, i32
  }
  func.func @transform_4(%arg0: i32, %arg1: i32) -> (i32, i32, i32) {
    %c0_i32 = arith.constant 0 : i32
    %c0_i32_0 = arith.constant 0 : i32
    %c0_i32_1 = arith.constant 0 : i32
    %c0_i32_2 = arith.constant 0 : i32
    return %c0_i32, %c0_i32_0, %c0_i32_1 : i32, i32, i32
  }
  func.func @transform_5(%arg0: i32, %arg1: i32) -> (i32, i32, i32) {
    %c1_i32 = arith.constant 1 : i32
    %0 = arith.muli %arg0, %c1_i32 : i32
    %1 = arith.addi %0, %arg1 : i32
    %c0_i32 = arith.constant 0 : i32
    %c0_i32_0 = arith.constant 0 : i32
    %c0_i32_1 = arith.constant 0 : i32
    return %1, %c0_i32, %c0_i32_0 : i32, i32, i32
  }
  func.func @transform_6(%arg0: i32, %arg1: i32) -> (i32, i32, i32) {
    %c1_i32 = arith.constant 1 : i32
    %0 = arith.muli %arg0, %c1_i32 : i32
    %1 = arith.addi %0, %arg1 : i32
    %c0_i32 = arith.constant 0 : i32
    %c0_i32_0 = arith.constant 0 : i32
    %c0_i32_1 = arith.constant 0 : i32
    return %1, %c0_i32, %c0_i32_0 : i32, i32, i32
  }
}

module attributes {stable_mosaic.version = 11 : i64} {
  func.func @kernel(%arg0: i32, %arg1: i32, %arg2: memref<1x17x18x4xbf16, #tpu.memory_space<vmem>>, %arg3: memref<1x1x18x4xbf16, #tpu.memory_space<vmem>>, %arg4: memref<16x32xbf16, #tpu.memory_space<vmem>>, %arg5: memref<1x1x32xf32, #tpu.memory_space<vmem>>, %arg6: memref<1x1x32xf32, #tpu.memory_space<vmem>>, %arg7: memref<17x2x17x16xf32, #tpu.memory_space<vmem>>) attributes {dimension_semantics = [#tpu.dimension_semantics<parallel>, #tpu.dimension_semantics<parallel>], iteration_bounds = array<i64: 2, 1>, scalar_prefetch = 0 : i64, scratch_operands = 0 : i64, tpu.core_type = #tpu.core_type<tc>, window_params = [{transform_indices = @transform_0, window_bounds = array<i64: 1, 17, 18, 4>}, {transform_indices = @transform_1, window_bounds = array<i64: 1, 1, 18, 4>}, {pipeline_mode = #tpu.pipeline_mode<synchronous>, transform_indices = @transform_2, window_bounds = array<i64: 16, 32>}, {pipeline_mode = #tpu.pipeline_mode<synchronous>, transform_indices = @transform_3, window_bounds = array<i64: 1, 1, 32>}, {pipeline_mode = #tpu.pipeline_mode<synchronous>, transform_indices = @transform_4, window_bounds = array<i64: 1, 1, 32>}, {transform_indices = @transform_5, window_bounds = array<i64: 17, 2, 17, 16>}]} {
    %c0 = arith.constant 0 : index
    %c0_0 = arith.constant 0 : index
    %c0_1 = arith.constant 0 : index
    %c0_2 = arith.constant 0 : index
    %0 = vector.load %arg2[%c0, %c0_0, %c0_1, %c0_2] : memref<1x17x18x4xbf16, #tpu.memory_space<vmem>>, vector<1x17x18x4xbf16>
    %1 = vector.shape_cast %0 : vector<1x17x18x4xbf16> to vector<17x18x4xbf16>
    %c0_3 = arith.constant 0 : index
    %c0_4 = arith.constant 0 : index
    %c0_5 = arith.constant 0 : index
    %c0_6 = arith.constant 0 : index
    %2 = vector.load %arg3[%c0_3, %c0_4, %c0_5, %c0_6] : memref<1x1x18x4xbf16, #tpu.memory_space<vmem>>, vector<1x1x18x4xbf16>
    %3 = vector.shape_cast %2 : vector<1x1x18x4xbf16> to vector<1x18x4xbf16>
    %c0_7 = arith.constant 0 : index
    %c0_8 = arith.constant 0 : index
    %4 = vector.load %arg4[%c0_7, %c0_8] : memref<16x32xbf16, #tpu.memory_space<vmem>>, vector<16x32xbf16>
    %5 = tpu.concatenate %1, %3 in 0 : vector<17x18x4xbf16>, vector<1x18x4xbf16> -> vector<18x18x4xbf16>
    %cst = arith.constant 0.000000e+00 : bf16
    %6 = vector.broadcast %cst : bf16 to vector<18x18x4xbf16>
    %7 = arith.maximumf %5, %6 : vector<18x18x4xbf16>
    %8 = vector.extract_strided_slice %7 {offsets = [0, 0, 0], sizes = [17, 17, 4], strides = [1, 1, 1]} : vector<18x18x4xbf16> to vector<17x17x4xbf16>
    %9 = vector.extract_strided_slice %7 {offsets = [0, 1, 0], sizes = [17, 17, 4], strides = [1, 1, 1]} : vector<18x18x4xbf16> to vector<17x17x4xbf16>
    %10 = vector.extract_strided_slice %7 {offsets = [1, 0, 0], sizes = [17, 17, 4], strides = [1, 1, 1]} : vector<18x18x4xbf16> to vector<17x17x4xbf16>
    %11 = vector.extract_strided_slice %7 {offsets = [1, 1, 0], sizes = [17, 17, 4], strides = [1, 1, 1]} : vector<18x18x4xbf16> to vector<17x17x4xbf16>
    %12 = tpu.concatenate %8, %9, %10, %11 in 2 : vector<17x17x4xbf16>, vector<17x17x4xbf16>, vector<17x17x4xbf16>, vector<17x17x4xbf16> -> vector<17x17x16xbf16>
    %cst_9 = arith.constant dense<0.000000e+00> : vector<17x17x32xf32>
    %13 = tpu.matmul %12, %4, %cst_9 {dimension_numbers = #tpu.dot_dimension_numbers<[2], [0], [0, 1], [1], [0, 0, 0, 1, 1, 1], [], []>} : vector<17x17x16xbf16>, vector<16x32xbf16>, vector<17x17x32xf32> -> vector<17x17x32xf32>
    %c0_10 = arith.constant 0 : index
    %c0_11 = arith.constant 0 : index
    %c0_12 = arith.constant 0 : index
    %14 = vector.load %arg5[%c0_10, %c0_11, %c0_12] : memref<1x1x32xf32, #tpu.memory_space<vmem>>, vector<1x1x32xf32>
    %15 = vector.broadcast %14 : vector<1x1x32xf32> to vector<17x17x32xf32>
    %16 = arith.mulf %13, %15 : vector<17x17x32xf32>
    %c0_13 = arith.constant 0 : index
    %c0_14 = arith.constant 0 : index
    %c0_15 = arith.constant 0 : index
    %17 = vector.load %arg6[%c0_13, %c0_14, %c0_15] : memref<1x1x32xf32, #tpu.memory_space<vmem>>, vector<1x1x32xf32>
    %18 = vector.broadcast %17 : vector<1x1x32xf32> to vector<17x17x32xf32>
    %19 = arith.addf %16, %18 : vector<17x17x32xf32>
    %20 = vector.extract_strided_slice %19 {offsets = [0, 0, 0], sizes = [17, 17, 16], strides = [1, 1, 1]} : vector<17x17x32xf32> to vector<17x17x16xf32>
    %c0_16 = arith.constant 0 : index
    %c0_17 = arith.constant 0 : index
    %c0_18 = arith.constant 0 : index
    %c0_19 = arith.constant 0 : index
    %21 = vector.load %arg7[%c0_16, %c0_17, %c0_18, %c0_19] : memref<17x2x17x16xf32, #tpu.memory_space<vmem>>, vector<17x1x17x16xf32>
    %22 = vector.shape_cast %21 : vector<17x1x17x16xf32> to vector<17x17x16xf32>
    %23 = vector.shape_cast %20 : vector<17x17x16xf32> to vector<17x1x17x16xf32>
    tpu.vector_store %arg7[%c0_16, %c0_17, %c0_18, %c0_19], %23 {strides = array<i32>} : memref<17x2x17x16xf32, #tpu.memory_space<vmem>>, vector<17x1x17x16xf32>,
    %24 = vector.extract_strided_slice %19 {offsets = [0, 0, 16], sizes = [17, 17, 16], strides = [1, 1, 1]} : vector<17x17x32xf32> to vector<17x17x16xf32>
    %c0_20 = arith.constant 0 : index
    %c1 = arith.constant 1 : index
    %c0_21 = arith.constant 0 : index
    %c0_22 = arith.constant 0 : index
    %25 = vector.load %arg7[%c0_20, %c1, %c0_21, %c0_22] : memref<17x2x17x16xf32, #tpu.memory_space<vmem>>, vector<17x1x17x16xf32>
    %26 = vector.shape_cast %25 : vector<17x1x17x16xf32> to vector<17x17x16xf32>
    %27 = vector.shape_cast %24 : vector<17x17x16xf32> to vector<17x1x17x16xf32>
    tpu.vector_store %arg7[%c0_20, %c1, %c0_21, %c0_22], %27 {strides = array<i32>} : memref<17x2x17x16xf32, #tpu.memory_space<vmem>>, vector<17x1x17x16xf32>,
    return
  }
  func.func @transform_0(%arg0: i32, %arg1: i32) -> (i32, i32, i32, i32) {
    %c0_i32 = arith.constant 0 : i32
    %c0_i32_0 = arith.constant 0 : i32
    %c0_i32_1 = arith.constant 0 : i32
    return %arg0, %arg1, %c0_i32, %c0_i32_0 : i32, i32, i32, i32
  }
  func.func @transform_1(%arg0: i32, %arg1: i32) -> (i32, i32, i32, i32) {
    %c1_i32 = arith.constant 1 : i32
    %0 = arith.addi %arg1, %c1_i32 : i32
    %c17_i32 = arith.constant 17 : i32
    %1 = arith.muli %0, %c17_i32 : i32
    %c0_i32 = arith.constant 0 : i32
    %c0_i32_0 = arith.constant 0 : i32
    %c0_i32_1 = arith.constant 0 : i32
    return %arg0, %1, %c0_i32, %c0_i32_0 : i32, i32, i32, i32
  }
  func.func @transform_2(%arg0: i32, %arg1: i32) -> (i32, i32) {
    %c0_i32 = arith.constant 0 : i32
    %c0_i32_0 = arith.constant 0 : i32
    %c0_i32_1 = arith.constant 0 : i32
    return %c0_i32, %c0_i32_0 : i32, i32
  }
  func.func @transform_3(%arg0: i32, %arg1: i32) -> (i32, i32, i32) {
    %c0_i32 = arith.constant 0 : i32
    %c0_i32_0 = arith.constant 0 : i32
    %c0_i32_1 = arith.constant 0 : i32
    %c0_i32_2 = arith.constant 0 : i32
    return %c0_i32, %c0_i32_0, %c0_i32_1 : i32, i32, i32
  }
  func.func @transform_4(%arg0: i32, %arg1: i32) -> (i32, i32, i32) {
    %c0_i32 = arith.constant 0 : i32
    %c0_i32_0 = arith.constant 0 : i32
    %c0_i32_1 = arith.constant 0 : i32
    %c0_i32_2 = arith.constant 0 : i32
    return %c0_i32, %c0_i32_0, %c0_i32_1 : i32, i32, i32
  }
  func.func @transform_5(%arg0: i32, %arg1: i32) -> (i32, i32, i32, i32) {
    %c1_i32 = arith.constant 1 : i32
    %0 = arith.muli %arg0, %c1_i32 : i32
    %1 = arith.addi %0, %arg1 : i32
    %c0_i32 = arith.constant 0 : i32
    %c0_i32_0 = arith.constant 0 : i32
    %c0_i32_1 = arith.constant 0 : i32
    %c0_i32_2 = arith.constant 0 : i32
    return %1, %c0_i32, %c0_i32_0, %c0_i32_1 : i32, i32, i32, i32
  }
}

</mosaic_0001>

<bundles_post_ra>
// kernel: tile.18
= control target key start
LH: loop header
LB: loop body
LE: loop exit
PB: predicated region body
PF: predicated region fallthrough
CT: control target
= control target key end

     0   :  { %s22_s0 = inlined_call_operand.vmem [shape: f32[8], index: 0, kind: input, shape index: {}]   ;;  %s23_s1 = inlined_call_operand.vmem [shape: f32[4,8], index: 1, kind: output, shape index: {}]  }
   0x1   :  { %v4_v0 = vld [vmem:[%s22_s0] ss:$0 sm:$0xff] }
   0x2   :  { %5 = vst [vmem:[%s23_s1] sm:$0xf] %v4_v0 }

// kernel: tile.19
= control target key start
LH: loop header
LB: loop body
LE: loop exit
PB: predicated region body
PF: predicated region fallthrough
CT: control target
= control target key end

     0   :  { %s37_s8 = smov 8   ;;  %s38_s9 = smov 16   ;;  %vm7_vm0 = vcmask 64512   ;;  %vm13_vm1 = vcmask 261312   ;;  %vm19_vm2 = vcmask 195712   ;;  %vm25_vm3 = vcmask 130112   ;;  %s55_s0 = inlined_call_operand.vmem [shape: f32[4,8], index: 0, kind: input, shape index: {}]   ;;  %s56_s1 = inlined_call_operand.vmem [shape: f32[1,1,32], index: 1, kind: output, shape index: {}]  }
   0x1   :  { %v4_v0 = vld [vmem:[%s55_s0] sm:$0xf]  ;;  %s36_s0 = smov 24  }
   0x2   :  { %5 = vst [vmem:[#allocation1] sm:$0xf] %v4_v0 }
   0x9   :  { %v10_v1 = vld [vmem:[#allocation1 + $0x3] sm:$0x1]   ;;  %v22_v2 = vld [vmem:[#allocation1 + $0x1] sm:$0x1]   ;;  %v16_v3 = vld [vmem:[#allocation1 + $0x2] sm:$0x1]  }
   0xa   :  { %11 = vrot.lane.b32.xlu0 %v10_v1, %s36_s0  ;;  %23 = vrot.lane.b32.xlu1 %v22_v2, %s37_s8  ;;  %v6_v4 = vld [vmem:[#allocation1] sm:$0x1]  }
   0xb   :  { %8 = vst.msk [vmem:[#allocation0] sm:$0x1] %vm7_vm0, %v6_v4  }
  0x12   :  { %17 = vrot.lane.b32.xlu0 %v16_v3, %s38_s9 }
  0x7c   :  { %v12_v5 = vpop.permute.xlu0 %11   ;;  %v24_v6 = vpop.permute.xlu1 %23  }
  0x7d   :  { %14 = vst.msk [vmem:[#allocation0] sm:$0x1] %vm13_vm1, %v12_v5  }
  0x84   :  { %v18_v7 = vpop.permute.xlu0 %17  }
  0x85   :  { %20 = vst.msk [vmem:[#allocation0] sm:$0x1] %vm19_vm2, %v18_v7  }
  0x86   :  { %26 = vst.msk [vmem:[#allocation0] sm:$0x1] %vm25_vm3, %v24_v6  }
  0x8d   :  { %v29_v8 = vld [vmem:[#allocation0] sm:$0x1] }
  0x8e   :  { %32 = vst [vmem:[%s56_s1] sm:$0x1] %v29_v8 }

// kernel: deconv_block_forward.2
= control target key start
LH: loop header
LB: loop body
LE: loop exit
PB: predicated region body
PF: predicated region fallthrough
CT: control target
= control target key end

     0   :  { %s4119_s21 = smov 0   ;;  %s4121_s22 = smov 0   ;;  %s6323_s0 = inlined_call_operand.vmem [shape: bf16[2,18,18,4], index: 0, kind: input, shape index: {}, may-alias: {0,1}]   ;;  %s6324_s1 = inlined_call_operand.vmem [shape: bf16[2,18,18,4], index: 1, kind: input, shape index: {}, may-alias: {0,1}]   ;;  %s6325_s2 = inlined_call_operand.vmem [shape: bf16[16,32], index: 2, kind: input, shape index: {}]   ;;  %s6326_s3 = inlined_call_operand.vmem [shape: s32[1,1,32], index: 3, kind: input, shape index: {}]   ;;  %s6327_s4 = inlined_call_operand.vmem [shape: s32[1,1,32], index: 4, kind: input, shape index: {}]   ;;  %s6328_s5 = inlined_call_operand.vmem [shape: f32[2,1,32], index: 5, kind: output, shape index: {0}]   ;;  %s6329_s6 = inlined_call_operand.vmem [shape: f32[2,1,32], index: 6, kind: output, shape index: {1}]  }
   0x1   :  { %s4123_s23 = smov 0  }
   0x2 LB: > { %s29_s24 = sadd.s32 1, %s4074_s22  ;;  %p3870_p0 = scmp.ge.s32.totalorder %s4078_s23, 1  ;;  %s4078_s23 = sphi %s4123_s23, %s17_s23   ;;  %s4074_s22 = sphi %s4121_s22, %s6759_s22   ;;  %s4070_s21 = sphi %s4119_s21, %s6758_s21  }
   0x3   : > { %p31_p1 = scmp.ge.s32.totalorder %s29_s24, 2  ;;  %p273_p2 = scmp.lt.s32.totalorder %s4078_s23, 3 }
   0x5   : > { %s6761_s24 = smov (%p31_p1, %s29_s24), 0  ;;  %p274_p3 = pnand %p3870_p0, %p273_p2 }
   0x7   : > { %277 = sbr.rel (%p274_p3) target bundleno = 1175 (0x497), region = 40 }
   0xc   : > { %p333_p4 = scmp.lt.s32.totalorder %s4070_s21, 1  ;;  %s4080_s29 = smov 8   ;;  %vm726_vm0 = vsmask.f32 7424  ;;  %vm1191_vm1 = vcmask 31744   ;;  %vm1260_vm2 = vcmask 64512  }
   0xd   : > { %s4081_s30 = smov 12   ;;  %s4082_s7 = smov 4   ;;  %vm1329_vm3 = vcmask 97280   ;;  %vm2307_vm4 = vcmask 130048  }
   0xe   : > { %s6763_s21 = smov (!%p333_p4, %s4070_s21), 1 }
   0xf   : > { %s4024_s25 = smul.u32 216, %s6763_s21  ;;  %s364_s20 = scalar_lea.vmem %s6328_s5, %s6763_s21 }
  0x10   : > { %s369_s27 = scalar_lea.vmem %s6329_s6, %s6763_s21 }
  0x11   : > { %s4145_s28 = scalar_lea.vmem %s6323_s0, %s4024_s25  ;;  %s3971_s10 = sadd.s32 204, %s4024_s25 }
  0x12   : > { %v377_v0 = vld [vmem:[%s4145_s28 + $0x14] sm:$0x1]  ;;  %v375_v1 = vld [vmem:[%s4145_s28 + $0xc] sm:$0xff]   ;;  %v374_v2 = vld [vmem:[%s4145_s28 + $0x8] sm:$0x1]  ;;  %s4706_s13 = scalar_lea.vmem %s6324_s1, %s3971_s10 }
  0x13   : > { %v433_v3 = vunpack.c.l.bf16 %v377_v0  ;;  %v431_v4 = vunpack.c.l.bf16 %v375_v1  ;;  %v432_v5 = vunpack.c.h.bf16 %v375_v1  ;;  %v430_v6 = vunpack.c.l.bf16 %v374_v2  ;;  %v4013_v7 = vld [vmem:[%s4145_s28 + $0x18] sm:$0xff]   ;;  %v380_v8 = vld [vmem:[%s4145_s28 + $0x20] sm:$0x1]  ;;  %v381_v36 = vld [vmem:[%s4145_s28 + $0x24] sm:$0xff]  }
  0x14   : > { %v3974_v9 = vld [vmem:[%s4145_s28] sm:$0xff]   ;;  %v3979_v10 = vunpack.c.l.bf16 %v4013_v7  ;;  %v3980_v11 = vunpack.c.h.bf16 %v4013_v7  ;;  %v436_v12 = vunpack.c.l.bf16 %v380_v8  ;;  %v437_v47 = vunpack.c.l.bf16 %v381_v36  ;;  %v383_v58 = vld [vmem:[%s4145_s28 + $0x2c] sm:$0x1]  ;;  %v4014_v61 = vld [vmem:[%s4145_s28 + $0x30] sm:$0xff]  }
  0x15   : > { %v3975_v13 = vunpack.c.l.bf16 %v3974_v9  ;;  %v487_v14 = vmax.f32 %v433_v3, 0.0  ;;  %v485_v15 = vmax.f32 %v431_v4, 0.0  ;;  %v486_v16 = vmax.f32 %v432_v5, 0.0  ;;  %v386_v7 = vld [vmem:[%s4145_s28 + $0x38] sm:$0x1] }
  0x16   : > { %v484_v17 = vmax.f32 %v430_v6, 0.0  ;;  %v488_v18 = vmax.f32 %v3979_v10, 0.0  ;;  %v489_v19 = vmax.f32 %v3980_v11, 0.0  ;;  %v3976_v20 = vunpack.c.h.bf16 %v3974_v9 }
  0x17   : > { %v541_v21 = vpack.c.bf16 %v487_v14, %v487_v14  ;;  %v539_v22 = vpack.c.bf16 %v485_v15, %v485_v15  ;;  %v540_v23 = vpack.c.bf16 %v486_v16, %v486_v16  ;;  %v490_v27 = vmax.f32 %v436_v12, 0.0 }
  0x18   : > { %v538_v24 = vpack.c.bf16 %v484_v17, %v484_v17  ;;  %v542_v25 = vpack.c.bf16 %v488_v18, %v488_v18  ;;  %v543_v26 = vpack.c.bf16 %v489_v19, %v489_v19  ;;  %v482_v28 = vmax.f32 %v3975_v13, 0.0 }
  0x19   : > { %v646_v29 = vunpack.c.l.b16 %v541_v21  ;;  %v644_v30 = vunpack.c.l.b16 %v539_v22  ;;  %v645_v31 = vunpack.c.l.b16 %v540_v23  ;;  %v483_v35 = vmax.f32 %v3976_v20, 0.0 }
  0x1a   : > { %v643_v32 = vunpack.c.l.b16 %v538_v24  ;;  %v647_v33 = vunpack.c.l.b16 %v542_v25  ;;  %v648_v34 = vunpack.c.l.b16 %v543_v26  ;;  %v536_v39 = vpack.c.bf16 %v482_v28, %v482_v28 }
  0x1b   : > { %v4154_v37 = vpack.c.b16 %v646_v29, %v646_v29  ;;  %v4156_v38 = vpack.c.b16 %v645_v31, %v644_v30  ;;  %v544_v42 = vpack.c.bf16 %v490_v27, %v490_v27  ;;  %v537_v43 = vpack.c.bf16 %v483_v35, %v483_v35 }
  0x1c   : > { %v4158_v40 = vpack.c.b16 %v643_v32, %v643_v32  ;;  %v4160_v41 = vpack.c.b16 %v648_v34, %v647_v33  ;;  %v641_v50 = vunpack.c.l.b16 %v536_v39  ;;  %v438_v55 = vunpack.c.h.bf16 %v381_v36 }
  0x1d   : > { %1043 = vrot.lane.b32.xlu1 %v4154_v37, %s4080_s29  ;;  %1041 = vrot.lane.b32.xlu0 %v4156_v38, %s4080_s29  ;;  %v742_v44 = vshrl.u32 %v4156_v38, 16  ;;  %v744_v45 = vshll.u32 %v4156_v38, 16  ;;  %v749_v46 = vshll.u32 %v4154_v37, 16  ;;  %v642_v51 = vunpack.c.l.b16 %v537_v43 }
  0x1e   : > { %1045 = vrot.lane.b32.xlu2 %v4160_v41, %s4080_s29  ;;  %v649_v52 = vunpack.c.l.b16 %v544_v42  ;;  %v739_v54 = vshrl.u32 %v4158_v40, 16  ;;  %v491_v56 = vmax.f32 %v437_v47, 0.0  ;;  %v492_v60 = vmax.f32 %v438_v55, 0.0 }
  0x1f   : > { %v746_v48 = vrot.slane %v744_v45, 1  ;;  %v751_v49 = vrot.slane %v749_v46, 1  ;;  %v4172_v57 = vpack.c.b16 %v642_v51, %v641_v50  ;;  %v753_v62 = vshrl.u32 %v4154_v37, 16  ;;  %v387_v51 = vld [vmem:[%s4145_s28 + $0x3c] sm:$0xff]  }
  0x20   : > { %v4178_v63 = vpack.c.b16 %v649_v52, %v649_v52  ;;  %v758_v0 = vshll.u32 %v4160_v41, 16  ;;  %v545_v1 = vpack.c.bf16 %v491_v56, %v491_v56  ;;  %v546_v2 = vpack.c.bf16 %v492_v60, %v492_v60 }
  0x21   : > { %v747_v53 = vor.u32 %v746_v48, %v742_v44  ;;  %v439_v3 = vunpack.c.l.bf16 %v383_v58  ;;  %v730_v4 = vshll.u32 %v4172_v57, 16  ;;  %v3983_v5 = vunpack.c.l.bf16 %v4014_v61 }
  0x22   : > { %v3984_v6 = vunpack.c.h.bf16 %v4014_v61  ;;  %v756_v9 = vshrl.u32 %v4160_v41, 16  ;;  %v760_v10 = vrot.slane %v758_v0, 1  ;;  %v763_v11 = vshll.u32 %v4178_v63, 16 }
  0x23   : > { %v752_v59 = vsel %vm726_vm0, %v747_v53, %v751_v49  ;;  %v493_v8 = vmax.f32 %v439_v3, 0.0  ;;  %v735_v12 = vshll.u32 %v4158_v40, 16  ;;  %v650_v13 = vunpack.c.l.b16 %v545_v1 }
  0x24   : > { %v651_v14 = vunpack.c.l.b16 %v546_v2  ;;  %v442_v16 = vunpack.c.l.bf16 %v386_v7  ;;  %v728_v17 = vshrl.u32 %v4172_v57, 16  ;;  %v732_v18 = vrot.slane %v730_v4, 1  ;;  %v4015_v2 = vld [vmem:[%s4145_s28 + $0x48] sm:$0xff]  }
  0x25   : > { %1123 = vrot.lane.b32.xlu1 %v752_v59, %s4081_s30  ;;  %967 = vrot.lane.b32.xlu0 %v739_v54, %s4082_s7  ;;  %v547_v15 = vpack.c.bf16 %v493_v8, %v493_v8  ;;  %v494_v19 = vmax.f32 %v3983_v5, 0.0  ;;  %v495_v20 = vmax.f32 %v3984_v6, 0.0  ;;  %v765_v21 = vrot.slane %v763_v11, 1 }
  0x26   : > { %1125 = vrot.lane.b32.xlu2 %v753_v62, %s4081_s30  ;;  %v761_v22 = vor.u32 %v760_v10, %v756_v9  ;;  %v4192_v23 = vpack.c.b16 %v651_v14, %v650_v13  ;;  %v496_v25 = vmax.f32 %v442_v16, 0.0  ;;  %v733_v26 = vor.u32 %v732_v18, %v728_v17  ;;  %v392_v9 = vld [vmem:[%s4145_s28 + $0x50] sm:$0x1] }
  0x27   : > { %v652_v24 = vunpack.c.l.b16 %v547_v15  ;;  %v737_v27 = vrot.slane %v735_v12, 1  ;;  %v548_v28 = vpack.c.bf16 %v494_v19, %v494_v19  ;;  %v549_v29 = vpack.c.bf16 %v495_v20, %v495_v20 }
  0x28   : > { %v772_v31 = vshll.u32 %v4192_v23, 16  ;;  %v550_v32 = vpack.c.bf16 %v496_v25, %v496_v25  ;;  %v766_v33 = vsel %vm726_vm0, %v761_v22, %v765_v21  ;;  %v770_v39 = vshrl.u32 %v4192_v23, 16 }
  0x29   : > { %v4196_v30 = vpack.c.b16 %v652_v24, %v652_v24  ;;  %v738_v34 = vsel %vm726_vm0, %v733_v26, %v737_v27  ;;  %v653_v35 = vunpack.c.l.b16 %v548_v28  ;;  %v654_v36 = vunpack.c.l.b16 %v549_v29 }
  0x2a   : > { %v774_v42 = vrot.slane %v772_v31, 1  ;;  %v655_v44 = vunpack.c.l.b16 %v550_v32  ;;  %v767_v47 = vshrl.u32 %v4178_v63, 16  ;;  %v443_v56 = vunpack.c.l.bf16 %v387_v51 }
  0x2b   : > { %v777_v43 = vshll.u32 %v4196_v30, 16  ;;  %v4205_v45 = vpack.c.b16 %v654_v36, %v653_v35  ;;  %v444_v58 = vunpack.c.h.bf16 %v387_v51  ;;  %v3987_v7 = vunpack.c.l.bf16 %v4015_v2 }
  0x2c   : > { %v775_v48 = vor.u32 %v774_v42, %v770_v39  ;;  %v4210_v50 = vpack.c.b16 %v655_v44, %v655_v44  ;;  %v3988_v8 = vunpack.c.h.bf16 %v4015_v2  ;;  %v448_v13 = vunpack.c.l.bf16 %v392_v9 }
  0x2d   : > { %969 = vrot.lane.b32.xlu1 %v752_v59, %s4082_s7  ;;  %971 = vrot.lane.b32.xlu0 %v753_v62, %s4082_s7  ;;  %v786_v46 = vshll.u32 %v4205_v45, 16  ;;  %v779_v49 = vrot.slane %v777_v43, 1  ;;  %v784_v52 = vshrl.u32 %v4205_v45, 16  ;;  %v389_v59 = vld [vmem:[%s4145_s28 + $0x44] sm:$0x1]  ;;  %v497_v62 = vmax.f32 %v443_v56, 0.0 }
  0x2e   : > { %1047 = vrot.lane.b32.xlu2 %v4178_v63, %s4080_s29  ;;  %v791_v55 = vshll.u32 %v4210_v50, 16  ;;  %v498_v0 = vmax.f32 %v444_v58, 0.0  ;;  %v445_v1 = vunpack.c.l.bf16 %v389_v59  ;;  %v500_v14 = vmax.f32 %v3987_v7, 0.0  ;;  %v393_v43 = vld [vmem:[%s4145_s28 + $0x54] sm:$0xff]   ;;  %v4016_v59 = vld [vmem:[%s4145_s28 + $0x60] sm:$0xff]  }
  0x2f   : > { %v788_v53 = vrot.slane %v786_v46, 1  ;;  %v780_v54 = vsel %vm726_vm0, %v775_v48, %v779_v49  ;;  %v551_v4 = vpack.c.bf16 %v497_v62, %v497_v62  ;;  %v501_v15 = vmax.f32 %v3988_v8, 0.0 }
  0x30   : > { %v793_v61 = vrot.slane %v791_v55, 1  ;;  %v552_v5 = vpack.c.bf16 %v498_v0, %v498_v0  ;;  %v499_v6 = vmax.f32 %v445_v1, 0.0  ;;  %v781_v16 = vshrl.u32 %v4196_v30, 16 }
  0x31   : > { %v789_v60 = vor.u32 %v788_v53, %v784_v52  ;;  %v656_v10 = vunpack.c.l.b16 %v551_v4  ;;  %v502_v19 = vmax.f32 %v448_v13, 0.0  ;;  %v554_v20 = vpack.c.bf16 %v500_v14, %v500_v14  ;;  %v395_v52 = vld [vmem:[%s4145_s28 + $0x5c] sm:$0x1] }
  0x32   : > { %v657_v11 = vunpack.c.l.b16 %v552_v5  ;;  %v553_v12 = vpack.c.bf16 %v499_v6, %v499_v6  ;;  %v555_v21 = vpack.c.bf16 %v501_v15, %v501_v15  ;;  %v795_v35 = vshrl.u32 %v4210_v50, 16 }
  0x33   : > { %v794_v3 = vsel %vm726_vm0, %v789_v60, %v793_v61  ;;  %v556_v25 = vpack.c.bf16 %v502_v19, %v502_v19  ;;  %v659_v26 = vunpack.c.l.b16 %v554_v20  ;;  %v449_v49 = vunpack.c.l.bf16 %v393_v43 }
  0x34   : > { %v4232_v17 = vpack.c.b16 %v657_v11, %v656_v10  ;;  %v658_v18 = vunpack.c.l.b16 %v553_v12  ;;  %v660_v27 = vunpack.c.l.b16 %v555_v21  ;;  %v450_v51 = vunpack.c.h.bf16 %v393_v43 }
  0x35   : > { %973 = vrot.lane.b32.xlu1 %v766_v33, %s4082_s7  ;;  %965 = vrot.lane.b32.xlu0 %v738_v34, %s4082_s7  ;;  %v661_v32 = vunpack.c.l.b16 %v556_v25  ;;  %v503_v55 = vmax.f32 %v449_v49, 0.0  ;;  %v451_v58 = vunpack.c.l.bf16 %v395_v52  ;;  %v3991_v1 = vunpack.c.l.bf16 %v4016_v59 }
  0x36   : > { %1127 = vrot.lane.b32.xlu2 %v766_v33, %s4081_s30  ;;  %v4235_v22 = vpack.c.b16 %v658_v18, %v658_v18  ;;  %v800_v24 = vshll.u32 %v4232_v17, 16  ;;  %v798_v28 = vshrl.u32 %v4232_v17, 16  ;;  %v4242_v33 = vpack.c.b16 %v660_v27, %v659_v26 }
  0x37   : > { %v4248_v42 = vpack.c.b16 %v661_v32, %v661_v32  ;;  %v504_v56 = vmax.f32 %v450_v51, 0.0  ;;  %v557_v61 = vpack.c.bf16 %v503_v55, %v503_v55  ;;  %v505_v0 = vmax.f32 %v451_v58, 0.0  ;;  %v401_v51 = vld [vmem:[%s4145_s28 + $0x74] sm:$0x1] }
  0x38   : > { %v802_v29 = vrot.slane %v800_v24, 1  ;;  %v805_v31 = vshll.u32 %v4235_v22, 16  ;;  %v814_v34 = vshll.u32 %v4242_v33, 16  ;;  %v812_v44 = vshrl.u32 %v4242_v33, 16 }
  0x39   : > { %v819_v48 = vshll.u32 %v4248_v42, 16  ;;  %v558_v62 = vpack.c.bf16 %v504_v56, %v504_v56  ;;  %v3992_v2 = vunpack.c.h.bf16 %v4016_v59  ;;  %v662_v4 = vunpack.c.l.b16 %v557_v61 }
  0x3a   : > { %v803_v36 = vor.u32 %v802_v29, %v798_v28  ;;  %v807_v39 = vrot.slane %v805_v31, 1  ;;  %v816_v46 = vrot.slane %v814_v34, 1  ;;  %v559_v6 = vpack.c.bf16 %v505_v0, %v505_v0 }
  0x3b   : > { %v663_v5 = vunpack.c.l.b16 %v558_v62  ;;  %v506_v8 = vmax.f32 %v3991_v1, 0.0  ;;  %v507_v9 = vmax.f32 %v3992_v2, 0.0  ;;  %v809_v10 = vshrl.u32 %v4235_v22, 16 }
  0x3c   : > { %v817_v53 = vor.u32 %v816_v46, %v812_v44  ;;  %v664_v12 = vunpack.c.l.b16 %v559_v6  ;;  %v823_v31 = vshrl.u32 %v4248_v42, 16  ;;  %v457_v56 = vunpack.c.l.bf16 %v401_v51 }
  0x3d   : > { %1129 = vrot.lane.b32.xlu1 %v767_v47, %s4081_s30  ;;  %1049 = vrot.lane.b32.xlu0 %v4192_v23, %s4080_s29  ;;  %v4270_v11 = vpack.c.b16 %v663_v5, %v662_v4  ;;  %v560_v14 = vpack.c.bf16 %v506_v8, %v506_v8  ;;  %v561_v15 = vpack.c.bf16 %v507_v9, %v507_v9  ;;  %v4017_v5 = vld [vmem:[%s4145_s28 + $0x78] sm:$0xff]  }
  0x3e   : > { %1131 = vrot.lane.b32.xlu2 %v780_v54, %s4081_s30  ;;  %v511_v61 = vmax.f32 %v457_v56, 0.0  ;;  %v3995_v9 = vunpack.c.l.bf16 %v4017_v5  ;;  %v3972_v56 = vld [vmem:[%s6325_s2] sm:$0xff] }
  0x3f   : > { %v828_v18 = vshll.u32 %v4270_v11, 16  ;;  %v665_v20 = vunpack.c.l.b16 %v560_v14  ;;  %v666_v21 = vunpack.c.l.b16 %v561_v15  ;;  %v826_v24 = vshrl.u32 %v4270_v11, 16  ;;  %2353 = vmatpush.bf16.msra.mxu0 %v3972_v56  ;;  %4021 = vmatpush.bf16.msra.mxu1 %v3972_v56 }
  0x40   : > { %v565_v2 = vpack.c.bf16 %v511_v61, %v511_v61  ;;  %v512_v15 = vmax.f32 %v3995_v9, 0.0  ;;  %4022 = vmatpush.bf16.msra.mxu2 %v3972_v56  ;;  %4023 = vmatpush.bf16.msra.mxu3 %v3972_v56 }
  0x41   : > { %v830_v25 = vrot.slane %v828_v18, 1  ;;  %v4280_v28 = vpack.c.b16 %v666_v21, %v665_v20 }
  0x42   : > { %v670_v6 = vunpack.c.l.b16 %v565_v2 }
  0x43   : > { %v842_v29 = vshll.u32 %v4280_v28, 16  ;;  %v831_v32 = vor.u32 %v830_v25, %v826_v24 }
  0x45   : > { %1053 = vrot.lane.b32.xlu1 %v4205_v45, %s4080_s29  ;;  %977 = vrot.lane.b32.xlu0 %v780_v54, %s4082_s7  ;;  %v821_v54 = vrot.slane %v819_v48, 1  ;;  %v844_v43 = vrot.slane %v842_v29, 1 }
  0x46   : > { %1135 = vrot.lane.b32.xlu2 %v794_v3, %s4081_s30 }
  0x47   : > { %v822_v60 = vsel %vm726_vm0, %v817_v53, %v821_v54 }
  0x4d   : > { %1051 = vrot.lane.b32.xlu1 %v4196_v30, %s4080_s29  ;;  %975 = vrot.lane.b32.xlu0 %v767_v47, %s4082_s7  ;;  %v808_v47 = vsel %vm726_vm0, %v803_v36, %v807_v39  ;;  %v399_v36 = vld [vmem:[%s4145_s28 + $0x6c] sm:$0xff]   ;;  %v840_v39 = vshrl.u32 %v4280_v28, 16 }
  0x4e   : > { %1133 = vrot.lane.b32.xlu2 %v781_v16, %s4081_s30  ;;  %v456_v48 = vunpack.c.h.bf16 %v399_v36 }
  0x4f   : > { %v845_v52 = vor.u32 %v844_v43, %v840_v39 }
  0x50   : > { %v510_v55 = vmax.f32 %v456_v48, 0.0 }
  0x55   : > { %981 = vrot.lane.b32.xlu1 %v794_v3, %s4082_s7  ;;  %979 = vrot.lane.b32.xlu0 %v781_v16, %s4082_s7  ;;  %v398_v3 = vld [vmem:[%s4145_s28 + $0x68] sm:$0x1]  ;;  %v4273_v16 = vpack.c.b16 %v664_v12, %v664_v12  ;;  %v4316_v12 = vpack.c.b16 %v670_v6, %v670_v6 }
  0x56   : > { %1055 = vrot.lane.b32.xlu2 %v4210_v50, %s4080_s29  ;;  %v454_v7 = vunpack.c.l.bf16 %v398_v3 }
  0x57   : > { %v833_v26 = vshll.u32 %v4273_v16, 16  ;;  %v837_v3 = vshrl.u32 %v4273_v16, 16  ;;  %v861_v21 = vshll.u32 %v4316_v12, 16 }
  0x58   : > { %v508_v13 = vmax.f32 %v454_v7, 0.0 }
  0x59   : > { %v835_v34 = vrot.slane %v833_v26, 1 }
  0x5a   : > { %v562_v19 = vpack.c.bf16 %v508_v13, %v508_v13 }
  0x5b   : > { %v836_v44 = vsel %vm726_vm0, %v831_v32, %v835_v34  ;;  %v863_v32 = vrot.slane %v861_v21, 1  ;;  %v404_v34 = vld [vmem:[%s4145_s28 + $0x80] sm:$0x1] }
  0x5c   : > { %v667_v27 = vunpack.c.l.b16 %v562_v19 }
  0x5d   : > { %1137 = vrot.lane.b32.xlu1 %v795_v35, %s4081_s30  ;;  %1057 = vrot.lane.b32.xlu0 %v4232_v17, %s4080_s29 }
  0x5e   : > { %1139 = vrot.lane.b32.xlu2 %v808_v47, %s4081_s30 }
  0x65   : > { %1061 = vrot.lane.b32.xlu1 %v4242_v33, %s4080_s29  ;;  %985 = vrot.lane.b32.xlu0 %v808_v47, %s4082_s7  ;;  %v455_v47 = vunpack.c.l.bf16 %v399_v36  ;;  %v460_v36 = vunpack.c.l.bf16 %v404_v34 }
  0x66   : > { %1143 = vrot.lane.b32.xlu2 %v822_v60, %s4081_s30 }
  0x67   : > { %v509_v54 = vmax.f32 %v455_v47, 0.0  ;;  %v514_v43 = vmax.f32 %v460_v36, 0.0 }
  0x69   : > { %v563_v59 = vpack.c.bf16 %v509_v54, %v509_v54  ;;  %v568_v48 = vpack.c.bf16 %v514_v43, %v514_v43 }
  0x6b   : > { %v668_v0 = vunpack.c.l.b16 %v563_v59  ;;  %v673_v54 = vunpack.c.l.b16 %v568_v48  ;;  %v865_v48 = vshrl.u32 %v4316_v12, 16 }
  0x6d   : > { %1059 = vrot.lane.b32.xlu1 %v4235_v22, %s4080_s29  ;;  %983 = vrot.lane.b32.xlu0 %v795_v35, %s4082_s7  ;;  %v4286_v35 = vpack.c.b16 %v667_v27, %v667_v27  ;;  %v566_v27 = vpack.c.bf16 %v512_v15, %v512_v15  ;;  %v4349_v59 = vpack.c.b16 %v673_v54, %v673_v54 }
  0x6e   : > { %1141 = vrot.lane.b32.xlu2 %v809_v10, %s4081_s30 }
  0x6f   : > { %v847_v46 = vshll.u32 %v4286_v35, 16  ;;  %v851_v26 = vshrl.u32 %v4286_v35, 16  ;;  %v875_v9 = vshll.u32 %v4349_v59, 16 }
  0x71   : > { %v849_v53 = vrot.slane %v847_v46, 1 }
  0x73   : > { %v850_v58 = vsel %vm726_vm0, %v845_v52, %v849_v53 }
  0x75   : > { %989 = vrot.lane.b32.xlu1 %v822_v60, %s4082_s7  ;;  %987 = vrot.lane.b32.xlu0 %v809_v10, %s4082_s7  ;;  %v564_v60 = vpack.c.bf16 %v510_v55, %v510_v55  ;;  %v3996_v10 = vunpack.c.h.bf16 %v4017_v5 }
  0x76   : > { %1063 = vrot.lane.b32.xlu2 %v4248_v42, %s4080_s29 }
  0x77   : > { %v669_v1 = vunpack.c.l.b16 %v564_v60  ;;  %v513_v18 = vmax.f32 %v3996_v10, 0.0  ;;  %v405_v10 = vld [vmem:[%s4145_s28 + $0x84] sm:$0xff]  }
  0x78   : > { %v4295_v49 = vpop.permute.xlu2 %1045  ;;  %v461_v21 = vunpack.c.l.bf16 %v405_v10 }
  0x79   : > { %v4310_v4 = vpack.c.b16 %v669_v1, %v668_v0  ;;  %v567_v29 = vpack.c.bf16 %v513_v18, %v513_v18 }
  0x7b   : > { %v856_v13 = vshll.u32 %v4310_v4, 16  ;;  %v854_v19 = vshrl.u32 %v4310_v4, 16  ;;  %v672_v46 = vunpack.c.l.b16 %v567_v29 }
  0x7d   : > { %1145 = vrot.lane.b32.xlu1 %v823_v31, %s4081_s30  ;;  %1065 = vrot.lane.b32.xlu0 %v4270_v11, %s4080_s29  ;;  %v858_v20 = vrot.slane %v856_v13, 1 }
  0x7e   : > { %1147 = vrot.lane.b32.xlu2 %v836_v44, %s4081_s30 }
  0x80   : > { %v4304_v62 = vpop.permute.xlu2 %1125 }
  0x85   : > { %1069 = vrot.lane.b32.xlu1 %v4280_v28, %s4080_s29  ;;  %993 = vrot.lane.b32.xlu0 %v836_v44, %s4082_s7  ;;  %v671_v44 = vunpack.c.l.b16 %v566_v27 }
  0x86   : > { %1151 = vrot.lane.b32.xlu2 %v850_v58, %s4081_s30 }
  0x87   : > { %v4338_v53 = vpack.c.b16 %v672_v46, %v671_v44 }
  0x88   : > { %v4319_v14 = vpop.permute.xlu2 %1047 }
  0x8d   : > { %1067 = vrot.lane.b32.xlu1 %v4273_v16, %s4080_s29  ;;  %991 = vrot.lane.b32.xlu0 %v823_v31, %s4082_s7  ;;  %v859_v31 = vor.u32 %v858_v20, %v854_v19 }
  0x8e   : > { %1149 = vrot.lane.b32.xlu2 %v837_v3, %s4081_s30 }
  0x8f   : > { %v4314_v7 = vpop.permute.xlu1 %1043  ;;  %v1042_v8 = vpop.permute.xlu0 %1041  ;;  %v864_v47 = vsel %vm726_vm0, %v859_v31, %v863_v32  ;;  %v407_v31 = vld [vmem:[%s4145_s28 + $0x8c] sm:$0x1] }
  0x90   : > { %v1128_v39 = vpop.permute.xlu2 %1127  ;;  %v463_v46 = vunpack.c.l.bf16 %v407_v31 }
  0x95   : > { %997 = vrot.lane.b32.xlu1 %v850_v58, %s4082_s7  ;;  %995 = vrot.lane.b32.xlu0 %v837_v3, %s4082_s7  ;;  %v870_v58 = vshll.u32 %v4338_v53, 16  ;;  %v868_v3 = vshrl.u32 %v4338_v53, 16 }
  0x96   : > { %1071 = vrot.lane.b32.xlu2 %v4286_v35, %s4080_s29 }
  0x97   : > { %v1124_v24 = vpop.permute.xlu1 %1123  ;;  %v4327_v25 = vpop.permute.xlu0 %967  ;;  %v872_v5 = vrot.slane %v870_v58, 1 }
  0x98   : > { %v4340_v55 = vpop.permute.xlu2 %1131 }
  0x99   : > { %v873_v19 = vor.u32 %v872_v5, %v868_v3 }
  0x9d   : > { %1153 = vrot.lane.b32.xlu1 %v851_v26, %s4081_s30  ;;  %1073 = vrot.lane.b32.xlu0 %v4310_v4, %s4080_s29 }
  0x9e   : > { %1155 = vrot.lane.b32.xlu2 %v864_v47, %s4081_s30 }
  0x9f   : > { %v970_v51 = vpop.permute.xlu1 %969  ;;  %v4336_v52 = vpop.permute.xlu0 %971 }
  0xa0   : > { %v1197_v0 = vsel %vm1191_vm1, %v4156_v38, %v970_v51  ;;  %v4370_v29 = vpop.permute.xlu2 %1135 }
  0xa1   : > { %v1266_v13 = vsel %vm1260_vm2, %v1197_v0, %v4295_v49 }
  0xa2   : > { %v4368_v27 = vsel %vm1329_vm3, %v1266_v13, %v1128_v39  ;;  %v1195_v39 = vsel %vm1191_vm1, %v4158_v40, %v4327_v25 }
  0xa3   : > { %v1440_v56 = vrot.slane %v4368_v27, 2  ;;  %v1264_v58 = vsel %vm1260_vm2, %v1195_v39, %v4314_v7  ;;  %v1441_v40 = vrot.slane %v4368_v27, 3  ;;  %v1442_v25 = vrot.slane %v4368_v27, 4 }
  0xa4   : > { %v1569_v3 = vunpack.i.h.s16 %v4368_v27  ;;  %v1443_v7 = vrot.slane %v4368_v27, 5 }
  0xa5   : > { %1077 = vrot.lane.b32.xlu1 %v4338_v53, %s4080_s29  ;;  %1001 = vrot.lane.b32.xlu0 %v864_v47, %s4082_s7  ;;  %v1439_v47 = vrot.slane %v4368_v27, 1 }
  0xa7   : > { %v4351_v60 = vpop.permute.xlu1 %973  ;;  %v966_v61 = vpop.permute.xlu0 %965  ;;  %v1571_v5 = vunpack.i.h.s16 %v1439_v47 }
  0xa8   : > { %v1193_v1 = vsel %vm1191_vm1, %v4172_v57, %v966_v61 }
  0xa9   : > { %v1262_v2 = vsel %vm1260_vm2, %v1193_v1, %v1042_v8  ;;  %v877_v8 = vrot.slane %v875_v9, 1  ;;  %v4018_v1 = vld [vmem:[%s4145_s28 + $0x90] sm:$0xff]  }
  0xaa   : > { %v1331_v6 = vsel %vm1329_vm3, %v1262_v2, %v1124_v24  ;;  %v462_v24 = vunpack.c.h.bf16 %v405_v10  ;;  %v517_v2 = vmax.f32 %v463_v46, 0.0  ;;  %v4000_v9 = vunpack.c.h.bf16 %v4018_v1 }
  0xab   : > { %v1432_v15 = vrot.slane %v1331_v6, 1  ;;  %v1433_v38 = vrot.slane %v1331_v6, 2  ;;  %v1434_v18 = vrot.slane %v1331_v6, 3  ;;  %1986 = vst [vmem:[#allocation1] ss:$9 sm:$0xff] %v1331_v6  ;;  %v1435_v57 = vrot.slane %v1331_v6, 4 }
  0xac   : > { %v1436_v20 = vrot.slane %v1331_v6, 5  ;;  %v1437_v49 = vrot.slane %v1331_v6, 6  ;;  %v1438_v32 = vrot.slane %v1331_v6, 7  ;;  %v878_v43 = vsel %vm726_vm0, %v873_v19, %v877_v8 }
  0xad   : > { %1989 = vst [vmem:[#allocation1 + $0x1] ss:$9 sm:$0xff] %v1432_v15  ;;  %1075 = vrot.lane.b32.xlu1 %v4316_v12, %s4080_s29  ;;  %999 = vrot.lane.b32.xlu0 %v851_v26, %s4082_s7  ;;  %v515_v26 = vmax.f32 %v461_v21, 0.0  ;;  %v516_v44 = vmax.f32 %v462_v24, 0.0  ;;  %v3999_v6 = vunpack.c.l.bf16 %v4018_v1  ;;  %v1573_v10 = vunpack.i.h.s16 %v1440_v56  ;;  %v4399_v24 = vpop.permute.xlu2 %1133 }
  0xae   : > { %1992 = vst [vmem:[#allocation1 + $0x2] ss:$9 sm:$0xff] %v1433_v38  ;;  %1159 = vrot.lane.b32.xlu2 %v878_v43, %s4081_s30  ;;  %v571_v15 = vpack.c.bf16 %v517_v2, %v517_v2  ;;  %v1575_v38 = vunpack.i.h.s16 %v1441_v40  ;;  %v519_v8 = vmax.f32 %v4000_v9, 0.0  ;;  %v1577_v21 = vunpack.i.h.s16 %v1442_v25 }
  0xaf   : > { %1995 = vst [vmem:[#allocation1 + $0x3] ss:$9 sm:$0xff] %v1434_v18  ;;  %v4373_v34 = vpop.permute.xlu1 %1129  ;;  %v4375_v36 = vpop.permute.xlu0 %1049  ;;  %v569_v51 = vpack.c.bf16 %v515_v26, %v515_v26  ;;  %v570_v54 = vpack.c.bf16 %v516_v44, %v516_v44  ;;  %v1444_v18 = vrot.slane %v4368_v27, 6  ;;  %v3876_v39 = vpack.i.b16 %v1441_v40, %v1573_v10 }
  0xb0   : > { %1998 = vst [vmem:[#allocation1 + $0x4] ss:$9 sm:$0xff] %v1435_v57  ;;  %v573_v44 = vpack.c.bf16 %v519_v8, %v519_v8  ;;  %v1579_v1 = vunpack.i.h.s16 %v1443_v7 }
  0xb1   : > { %2001 = vst [vmem:[#allocation1 + $0x5] ss:$9 sm:$0xff] %v1436_v20  ;;  %v674_v61 = vunpack.c.l.b16 %v569_v51  ;;  %v675_v0 = vunpack.c.l.b16 %v570_v54  ;;  %v518_v20 = vmax.f32 %v3999_v6, 0.0  ;;  %v1581_v2 = vunpack.i.h.s16 %v1444_v18 }
  0xb2   : > { %2004 = vst [vmem:[#allocation1 + $0x6] ss:$9 sm:$0xff] %v1437_v49  ;;  %v676_v49 = vunpack.c.l.b16 %v571_v15 }
  0xb3   : > { %2007 = vst [vmem:[#allocation1 + $0x7] ss:$9 sm:$0xff] %v1438_v32  ;;  %v4394_v13 = vpack.c.b16 %v675_v0, %v674_v61  ;;  %v3875_v32 = vpack.i.b16 %v1440_v56, %v1571_v5  ;;  %v572_v26 = vpack.c.bf16 %v518_v20, %v518_v20  ;;  %v3877_v0 = vpack.i.b16 %v1442_v25, %v1575_v38 }
  0xb4   : > { %v4404_v51 = vpack.c.b16 %v676_v49, %v676_v49  ;;  %v3874_v56 = vpack.i.b16 %v1439_v47, %v1569_v3  ;;  %v678_v5 = vunpack.c.l.b16 %v573_v44  ;;  %v3878_v47 = vpack.i.b16 %v1443_v7, %v1577_v21 }
  0xb5   : > { %1005 = vrot.lane.b32.xlu1 %v878_v43, %s4082_s7  ;;  %1003 = vrot.lane.b32.xlu0 %v865_v48, %s4082_s7  ;;  %v884_v31 = vshll.u32 %v4394_v13, 16  ;;  %v879_v43 = vshrl.u32 %v4349_v59, 16  ;;  %v882_v54 = vshrl.u32 %v4394_v13, 16  ;;  %v677_v25 = vunpack.c.l.b16 %v572_v26  ;;  %v4422_v20 = vpop.permute.xlu2 %1055 }
  0xb6   : > { %1157 = vrot.lane.b32.xlu2 %v865_v48, %s4081_s30  ;;  %v1333_v48 = vsel %vm1329_vm3, %v1264_v58, %v4304_v62  ;;  %v889_v6 = vshll.u32 %v4404_v51, 16  ;;  %v1445_v62 = vrot.slane %v4368_v27, 7  ;;  %v3879_v3 = vpack.i.b16 %v1444_v18, %v1579_v1  ;;  %v410_v18 = vld [vmem:[%s4145_s28 + $0x98] sm:$0x1] }
  0xb7   : > { %v4397_v57 = vpop.permute.xlu1 %1053  ;;  %v978_v19 = vpop.permute.xlu0 %977  ;;  %v886_v61 = vrot.slane %v884_v31, 1  ;;  %v3873_v40 = vpack.i.b16 %v4368_v27, %v1333_v48  ;;  %v1199_v27 = vsel %vm1191_vm1, %v4154_v37, %v4336_v52  ;;  %v4429_v7 = vpack.c.b16 %v678_v5, %v677_v25 }
  0xb8   : > { %v891_v15 = vrot.slane %v889_v6, 1  ;;  %v3880_v38 = vpack.i.b16 %v1445_v62, %v1581_v2  ;;  %v1201_v21 = vsel %vm1191_vm1, %v4160_v41, %v4351_v60  ;;  %v466_v49 = vunpack.c.l.bf16 %v410_v18  ;;  %v411_v6 = vld [vmem:[%s4145_s28 + $0x9c] sm:$0xff]  }
  0xb9   : > { %v887_v58 = vor.u32 %v886_v61, %v882_v54  ;;  %v1268_v31 = vsel %vm1260_vm2, %v1199_v27, %v4319_v14  ;;  %v1583_v26 = vunpack.i.h.s16 %v1445_v62  ;;  %v1205_v41 = vsel %vm1191_vm1, %v4192_v23, %v978_v19 }
  0xba   : > { %v2008_v46 = vld [vmem:[#allocation1] sm:$0xff]  ;;  %v1337_v37 = vsel %vm1329_vm3, %v1268_v31, %v4373_v34  ;;  %v520_v52 = vmax.f32 %v466_v49, 0.0  ;;  %v896_v48 = vshrl.u32 %v4429_v7, 16 }
  0xbb   : > { %2014 = vst [vmem:[#allocation1 + $0x2] ss:$9 sm:$0xff] %v3875_v32  ;;  %3949 = vmatmul.msk.bf16.vlgmr.msra.gmra.mxu0 %vm2307_vm4, %v2008_v46  ;;  %v892_v8 = vsel %vm726_vm0, %v887_v58, %v891_v15  ;;  %v1270_v32 = vsel %vm1260_vm2, %v1201_v21, %v4375_v36  ;;  %v3881_v34 = vpack.i.b16 %v1337_v37, %v1583_v26  ;;  %v467_v15 = vunpack.c.l.bf16 %v411_v6  ;;  %v413_v49 = vld [vmem:[%s4145_s28 + $0xa4] sm:$0x1] }
  0xbc   : > { %2016 = vst [vmem:[#allocation1 + $0x3] ss:$9 sm:$0xff] %v3876_v39  ;;  %v4449_v60 = vsel %vm1329_vm3, %v1270_v32, %v4340_v55  ;;  %v574_v44 = vpack.c.bf16 %v520_v52, %v520_v52  ;;  %v1274_v46 = vsel %vm1260_vm2, %v1205_v41, %v4397_v57  ;;  %v898_v55 = vshll.u32 %v4429_v7, 16 }
  0xbd   : > { %2018 = vst [vmem:[#allocation1 + $0x4] ss:$9 sm:$0xff] %v3877_v0  ;;  %1161 = vrot.lane.b32.xlu1 %v879_v43, %s4081_s30  ;;  %1081 = vrot.lane.b32.xlu0 %v4394_v13, %s4080_s29  ;;  %v1446_v23 = vrot.slane %v4449_v60, 1  ;;  %v4459_v19 = vpop.permute.xlu2 %1139  ;;  %v1447_v61 = vrot.slane %v4449_v60, 2  ;;  %v1448_v1 = vrot.slane %v4449_v60, 3  ;;  %v4470_v57 = vsel %vm1329_vm3, %v1274_v46, %v4370_v29 }
  0xbe   : > { %2012 = vst [vmem:[#allocation1 + $0x1] ss:$9 sm:$0xff] %v3874_v56  ;;  %1079 = vrot.lane.b32.xlu2 %v4349_v59, %s4080_s29  ;;  %v679_v54 = vunpack.c.l.b16 %v574_v44  ;;  %v900_v56 = vrot.slane %v898_v55, 1  ;;  %v1449_v2 = vrot.slane %v4449_v60, 4  ;;  %v1450_v25 = vrot.slane %v4449_v60, 5 }
  0xbf   : > { %2010 = vst [vmem:[#allocation1] ss:$9 sm:$0xff] %v3873_v40  ;;  %v4418_v9 = vpop.permute.xlu1 %1051  ;;  %v4420_v10 = vpop.permute.xlu0 %975  ;;  %v1451_v29 = vrot.slane %v4449_v60, 6  ;;  %v1453_v62 = vrot.slane %v4470_v57, 1  ;;  %v521_v21 = vmax.f32 %v467_v15, 0.0  ;;  %v1455_v31 = vrot.slane %v4470_v57, 3 }
  0xc0   : > { %2020 = vst [vmem:[#allocation1 + $0x5] ss:$9 sm:$0xff] %v3878_v47  ;;  %v4465_v0 = vpack.c.b16 %v679_v54, %v679_v54  ;;  %v901_v5 = vor.u32 %v900_v56, %v896_v48  ;;  %v1203_v27 = vsel %vm1191_vm1, %v4178_v63, %v4420_v10  ;;  %v1456_v32 = vrot.slane %v4470_v57, 4 }
  0xc1   : > { %2022 = vst [vmem:[#allocation1 + $0x6] ss:$9 sm:$0xff] %v3879_v3  ;;  %v1605_v37 = vunpack.i.h.s16 %v1453_v62  ;;  %v1272_v41 = vsel %vm1260_vm2, %v1203_v27, %v4418_v9  ;;  %v575_v10 = vpack.c.bf16 %v521_v21, %v521_v21  ;;  %v469_v44 = vunpack.c.l.bf16 %v413_v49 }
  0xc2   : > { %2024 = vst [vmem:[#allocation1 + $0x7] ss:$9 sm:$0xff] %v3880_v38  ;;  %v903_v40 = vshll.u32 %v4465_v0, 16  ;;  %v1454_v38 = vrot.slane %v4470_v57, 2  ;;  %v1609_v54 = vunpack.i.h.s16 %v1455_v31  ;;  %v1341_v9 = vsel %vm1329_vm3, %v1272_v41, %v4399_v24  ;;  %v416_v41 = vld [vmem:[%s4145_s28 + $0xb0] sm:$0x1] }
  0xc3   : > { %v680_v55 = vunpack.c.l.b16 %v575_v10  ;;  %v907_v15 = vshrl.u32 %v4465_v0, 16  ;;  %v3882_v21 = vpack.i.b16 %v4470_v57, %v1341_v9 }
  0xc4   : > { %v905_v3 = vrot.slane %v903_v40, 1  ;;  %v1607_v26 = vunpack.i.h.s16 %v1454_v38 }
  0xc5   : > { %1085 = vrot.lane.b32.xlu1 %v4429_v7, %s4080_s29  ;;  %1009 = vrot.lane.b32.xlu0 %v892_v8, %s4082_s7  ;;  %v4500_v63 = vpop.permute.xlu2 %1143 }
  0xc6   : > { %1163 = vrot.lane.b32.xlu2 %v892_v8, %s4081_s30  ;;  %v906_v18 = vsel %vm726_vm0, %v901_v5, %v905_v3  ;;  %v893_v8 = vshrl.u32 %v4404_v51, 16  ;;  %v3885_v5 = vpack.i.b16 %v1455_v31, %v1607_v26  ;;  %v1458_v31 = vrot.slane %v4470_v57, 6 }
  0xc7   : > { %v4451_v14 = vpop.permute.xlu1 %981  ;;  %v4453_v36 = vpop.permute.xlu0 %979 }
  0xc9   : > { %v2025_v39 = vld [vmem:[#allocation1] sm:$0xff] }
  0xca   : > { %2027 = vst [vmem:[#allocation1] ss:$9 sm:$0xff] %v3881_v34  ;;  %v1452_v34 = vrot.slane %v4449_v60, 7 }
  0xcb   : > { %2029 = vst [vmem:[#allocation1 + $0x1] ss:$9 sm:$0xff] %v4449_v60  ;;  %3950 = vmatmul.msk.bf16.gmra.mxu0 %vm2307_vm4, %v2025_v39  ;;  %v1603_v39 = vunpack.i.h.s16 %v4470_v57 }
  0xcc   : > { %2031 = vst [vmem:[#allocation1 + $0x2] ss:$9 sm:$0xff] %v1446_v23  ;;  %v1457_v23 = vrot.slane %v4470_v57, 5 }
  0xcd   : > { %2033 = vst [vmem:[#allocation1 + $0x3] ss:$9 sm:$0xff] %v1447_v61  ;;  %1083 = vrot.lane.b32.xlu1 %v4404_v51, %s4080_s29  ;;  %1007 = vrot.lane.b32.xlu0 %v879_v43, %s4082_s7  ;;  %v468_v43 = vunpack.c.h.bf16 %v411_v6  ;;  %v4019_v61 = vld [vmem:[%s4145_s28 + $0xa8] sm:$0xff]   ;;  %v1611_v6 = vunpack.i.h.s16 %v1456_v32 }
  0xce   : > { %2035 = vst [vmem:[#allocation1 + $0x4] ss:$9 sm:$0xff] %v1448_v1  ;;  %1167 = vrot.lane.b32.xlu2 %v906_v18, %s4081_s30  ;;  %v523_v1 = vmax.f32 %v469_v44, 0.0  ;;  %v4004_v40 = vunpack.c.h.bf16 %v4019_v61  ;;  %v1613_v49 = vunpack.i.h.s16 %v1457_v23  ;;  %v1459_v44 = vrot.slane %v4470_v57, 7 }
  0xcf   : > { %2037 = vst [vmem:[#allocation1 + $0x5] ss:$9 sm:$0xff] %v1449_v2  ;;  %v4484_v47 = vpop.permute.xlu1 %1137  ;;  %v4486_v58 = vpop.permute.xlu0 %1057  ;;  %v522_v52 = vmax.f32 %v468_v43, 0.0  ;;  %v4003_v2 = vunpack.c.l.bf16 %v4019_v61 }
  0xd0   : > { %2039 = vst [vmem:[#allocation1 + $0x6] ss:$9 sm:$0xff] %v1450_v25  ;;  %v577_v3 = vpack.c.bf16 %v523_v1, %v523_v1  ;;  %v525_v24 = vmax.f32 %v4004_v40, 0.0  ;;  %v1617_v40 = vunpack.i.h.s16 %v1459_v44 }
  0xd1   : > { %2041 = vst [vmem:[#allocation1 + $0x7] ss:$9 sm:$0xff] %v1451_v29  ;;  %v576_v46 = vpack.c.bf16 %v522_v52, %v522_v52  ;;  %v3884_v29 = vpack.i.b16 %v1454_v38, %v1605_v37  ;;  %v524_v27 = vmax.f32 %v4003_v2, 0.0  ;;  %v3883_v38 = vpack.i.b16 %v1453_v62, %v1603_v39  ;;  %v4522_v37 = vpop.permute.xlu2 %1141 }
  0xd2   : > { %v682_v52 = vunpack.c.l.b16 %v577_v3  ;;  %v579_v10 = vpack.c.bf16 %v525_v24, %v525_v24  ;;  %v472_v62 = vunpack.c.l.bf16 %v416_v41  ;;  %v1615_v2 = vunpack.i.h.s16 %v1458_v31 }
  0xd3   : > { %v681_v60 = vunpack.c.l.b16 %v576_v46  ;;  %v578_v26 = vpack.c.bf16 %v524_v27, %v524_v27 }
  0xd4   : > { %v684_v46 = vunpack.c.l.b16 %v579_v10 }
  0xd5   : > { %1013 = vrot.lane.b32.xlu1 %v906_v18, %s4082_s7  ;;  %1011 = vrot.lane.b32.xlu0 %v893_v8, %s4082_s7  ;;  %v4515_v43 = vpack.c.b16 %v681_v60, %v680_v55  ;;  %v3886_v18 = vpack.i.b16 %v1456_v32, %v1609_v54  ;;  %v1207_v32 = vsel %vm1191_vm1, %v4196_v30, %v4453_v36  ;;  %v683_v39 = vunpack.c.l.b16 %v578_v26 }
  0xd6   : > { %1165 = vrot.lane.b32.xlu2 %v893_v8, %s4081_s30  ;;  %v3887_v8 = vpack.i.b16 %v1457_v23, %v1611_v6  ;;  %v4533_v54 = vpack.c.b16 %v682_v52, %v682_v52  ;;  %v1209_v30 = vsel %vm1191_vm1, %v4205_v45, %v4451_v14  ;;  %v1276_v23 = vsel %vm1260_vm2, %v1207_v32, %v4422_v20 }
  0xd7   : > { %v4510_v48 = vpop.permute.xlu1 %1061  ;;  %v4512_v56 = vpop.permute.xlu0 %985  ;;  %v4544_v55 = vpack.c.b16 %v684_v46, %v683_v39  ;;  %v910_v61 = vshrl.u32 %v4515_v43, 16  ;;  %v912_v1 = vshll.u32 %v4515_v43, 16  ;;  %v1345_v9 = vsel %vm1329_vm3, %v1276_v23, %v4484_v47  ;;  %v417_v23 = vld [vmem:[%s4145_s28 + $0xb4] sm:$0xff]  }
  0xd8   : > { %v2042_v25 = vld [vmem:[#allocation1] sm:$0xff]  ;;  %v1278_v45 = vsel %vm1260_vm2, %v1209_v30, %v4486_v58  ;;  %v917_v14 = vshll.u32 %v4533_v54, 16  ;;  %v526_v60 = vmax.f32 %v472_v62, 0.0  ;;  %v3890_v6 = vpack.i.b16 %v1345_v9, %v1617_v40 }
  0xd9   : > { %2044 = vst [vmem:[#allocation1] ss:$9 sm:$0xff] %v1452_v34  ;;  %v3888_v34 = vpack.i.b16 %v1458_v31, %v1613_v49  ;;  %v926_v20 = vshll.u32 %v4544_v55, 16  ;;  %v4558_v47 = vsel %vm1329_vm3, %v1278_v45, %v4459_v19  ;;  %v4560_v58 = vpop.permute.xlu2 %1063  ;;  %v1213_v27 = vsel %vm1191_vm1, %v4232_v17, %v4512_v56 }
  0xda   : > { %2050 = vst [vmem:[#allocation1 + $0x3] ss:$9 sm:$0xff] %v3884_v29  ;;  %v919_v29 = vrot.slane %v917_v14, 1  ;;  %v3889_v49 = vpack.i.b16 %v1459_v44, %v1615_v2  ;;  %v1460_v19 = vrot.slane %v4558_v47, 1  ;;  %v1461_v56 = vrot.slane %v4558_v47, 2 }
  0xdb   : > { %2052 = vst [vmem:[#allocation1 + $0x4] ss:$9 sm:$0xff] %v3885_v5  ;;  %3951 = vmatmul.msk.bf16.gmra.mxu0 %vm2307_vm4, %v2042_v25  ;;  %v914_v25 = vrot.slane %v912_v1, 1  ;;  %v580_v5 = vpack.c.bf16 %v526_v60, %v526_v60  ;;  %v1282_v26 = vsel %vm1260_vm2, %v1213_v27, %v4510_v48  ;;  %v1462_v10 = vrot.slane %v4558_v47, 3 }
  0xdc   : > { %2054 = vst [vmem:[#allocation1 + $0x5] ss:$9 sm:$0xff] %v3886_v18  ;;  %v924_v18 = vshrl.u32 %v4544_v55, 16  ;;  %v1464_v62 = vrot.slane %v4558_v47, 5  ;;  %v473_v9 = vunpack.c.l.bf16 %v417_v23  ;;  %v474_v45 = vunpack.c.h.bf16 %v417_v23 }
  0xdd   : > { %2048 = vst [vmem:[#allocation1 + $0x2] ss:$9 sm:$0xff] %v3883_v38  ;;  %1169 = vrot.lane.b32.xlu1 %v907_v15, %s4081_s30  ;;  %1089 = vrot.lane.b32.xlu0 %v4515_v43, %s4080_s29  ;;  %v915_v3 = vor.u32 %v914_v25, %v910_v61  ;;  %v685_v24 = vunpack.c.l.b16 %v580_v5 }
  0xde   : > { %2046 = vst [vmem:[#allocation1 + $0x1] ss:$9 sm:$0xff] %v3882_v21  ;;  %1087 = vrot.lane.b32.xlu2 %v4465_v0, %s4080_s29  ;;  %v928_v21 = vrot.slane %v926_v20, 1  ;;  %v527_v25 = vmax.f32 %v473_v9, 0.0  ;;  %v528_v20 = vmax.f32 %v474_v45, 0.0 }
  0xdf   : > { %2056 = vst [vmem:[#allocation1 + $0x6] ss:$9 sm:$0xff] %v3887_v8  ;;  %v4538_v36 = vpop.permute.xlu1 %1059  ;;  %v4540_v57 = vpop.permute.xlu0 %983  ;;  %v920_v52 = vsel %vm726_vm0, %v915_v3, %v919_v29  ;;  %v4575_v17 = vpack.c.b16 %v685_v24, %v685_v24  ;;  %v1463_v8 = vrot.slane %v4558_v47, 4  ;;  %v419_v29 = vld [vmem:[%s4145_s28 + $0xbc] sm:$0x1]  ;;  %v921_v3 = vshrl.u32 %v4533_v54, 16 }
  0xe0   : > { %2058 = vst [vmem:[#allocation1 + $0x7] ss:$9 sm:$0xff] %v3888_v34  ;;  %v929_v32 = vor.u32 %v928_v21, %v924_v18  ;;  %v4588_v34 = vsel %vm1329_vm3, %v1282_v26, %v4500_v63  ;;  %v1211_v40 = vsel %vm1191_vm1, %v4210_v50, %v4540_v57  ;;  %v581_v27 = vpack.c.bf16 %v527_v25, %v527_v25 }
  0xe1   : > { %v931_v44 = vshll.u32 %v4575_v17, 16  ;;  %v4591_v39 = vpop.permute.xlu2 %1147  ;;  %v1467_v30 = vrot.slane %v4588_v34, 1  ;;  %v1468_v63 = vrot.slane %v4588_v34, 2  ;;  %v1469_v14 = vrot.slane %v4588_v34, 3 }
  0xe2   : > { %v1470_v60 = vrot.slane %v4588_v34, 4  ;;  %v1637_v2 = vunpack.i.h.s16 %v4588_v34  ;;  %v1280_v18 = vsel %vm1260_vm2, %v1211_v40, %v4538_v36  ;;  %v475_v50 = vunpack.c.l.bf16 %v419_v29 }
  0xe3   : > { %v933_v48 = vrot.slane %v931_v44, 1  ;;  %v1639_v5 = vunpack.i.h.s16 %v1467_v30  ;;  %v1643_v24 = vunpack.i.h.s16 %v1469_v14  ;;  %v1465_v57 = vrot.slane %v4558_v47, 6 }
  0xe4   : > { %v1471_v36 = vrot.slane %v4588_v34, 5  ;;  %v1472_v29 = vrot.slane %v4588_v34, 6 }
  0xe5   : > { %1093 = vrot.lane.b32.xlu1 %v4544_v55, %s4080_s29  ;;  %1017 = vrot.lane.b32.xlu0 %v920_v52, %s4082_s7  ;;  %v4596_v46 = vsel %vm726_vm0, %v929_v32, %v933_v48  ;;  %v3893_v26 = vpack.i.b16 %v1468_v63, %v1639_v5  ;;  %v529_v32 = vmax.f32 %v475_v50, 0.0  ;;  %v1473_v5 = vrot.slane %v4588_v34, 7 }
  0xe6   : > { %1171 = vrot.lane.b32.xlu2 %v920_v52, %s4081_s30  ;;  %v1645_v52 = vunpack.i.h.s16 %v1470_v60 }
  0xe7   : > { %v2059_v41 = vld [vmem:[#allocation1] sm:$0xff]  ;;  %v4571_v38 = vpop.permute.xlu1 %989  ;;  %v4573_v31 = vpop.permute.xlu0 %987 }
  0xe8   : > { %2061 = vst [vmem:[#allocation1] ss:$9 sm:$0xff] %v3889_v49  ;;  %v582_v49 = vpack.c.bf16 %v528_v20, %v528_v20  ;;  %v1215_v20 = vsel %vm1191_vm1, %v4235_v22, %v4573_v31 }
  0xe9   : > { %2063 = vst [vmem:[#allocation1 + $0x1] ss:$9 sm:$0xff] %v3890_v6  ;;  %v1641_v6 = vunpack.i.h.s16 %v1468_v63  ;;  %v4620_v21 = vpop.permute.xlu2 %1151  ;;  %v3896_v63 = vpack.i.b16 %v1471_v36, %v1645_v52  ;;  %v1284_v50 = vsel %vm1260_vm2, %v1215_v20, %v4560_v58 }
  0xea   : > { %2065 = vst [vmem:[#allocation1 + $0x2] ss:$9 sm:$0xff] %v4558_v47 }
  0xeb   : > { %2067 = vst [vmem:[#allocation1 + $0x3] ss:$9 sm:$0xff] %v1460_v19  ;;  %3952 = vmatmul.msk.bf16.gmra.mxu0 %vm2307_vm4, %v2059_v41  ;;  %v3892_v41 = vpack.i.b16 %v1467_v30, %v1637_v2  ;;  %v1466_v19 = vrot.slane %v4558_v47, 7  ;;  %v3894_v44 = vpack.i.b16 %v1469_v14, %v1641_v6  ;;  %v3895_v30 = vpack.i.b16 %v1470_v60, %v1643_v24 }
  0xec   : > { %2069 = vst [vmem:[#allocation1 + $0x4] ss:$9 sm:$0xff] %v1461_v56  ;;  %v583_v47 = vpack.c.bf16 %v529_v32, %v529_v32  ;;  %v1217_v24 = vsel %vm1191_vm1, %v4242_v33, %v4571_v38  ;;  %v1651_v38 = vunpack.i.h.s16 %v1473_v5 }
  0xed   : > { %2071 = vst [vmem:[#allocation1 + $0x5] ss:$9 sm:$0xff] %v1462_v10  ;;  %1091 = vrot.lane.b32.xlu1 %v4533_v54, %s4080_s29  ;;  %1175 = vrot.lane.b32.xlu0 %v4596_v46, %s4081_s30  ;;  %v687_v10 = vunpack.c.l.b16 %v582_v49 }
  0xee   : > { %2073 = vst [vmem:[#allocation1 + $0x6] ss:$9 sm:$0xff] %v1463_v8  ;;  %1015 = vrot.lane.b32.xlu2 %v907_v15, %s4082_s7  ;;  %v686_v15 = vunpack.c.l.b16 %v581_v27  ;;  %v1349_v8 = vsel %vm1329_vm3, %v1280_v18, %v4522_v37  ;;  %v688_v45 = vunpack.c.l.b16 %v583_v47  ;;  %v935_v37 = vshrl.u32 %v4575_v17, 16  ;;  %v4020_v27 = vld [vmem:[%s4145_s28 + $0xc0] sm:$0xff]  }
  0xef   : > { %2075 = vst [vmem:[#allocation1 + $0x7] ss:$9 sm:$0xff] %v1464_v62  ;;  %v4603_v61 = vpop.permute.xlu1 %1145  ;;  %v4605_v1 = vpop.permute.xlu0 %1065  ;;  %v3891_v9 = vpack.i.b16 %v4588_v34, %v1349_v8  ;;  %v1647_v18 = vunpack.i.h.s16 %v1471_v36  ;;  %v4007_v49 = vunpack.c.l.bf16 %v4020_v27  ;;  %v4008_v52 = vunpack.c.h.bf16 %v4020_v27 }
  0xf0   : > { %v4632_v23 = vpack.c.b16 %v687_v10, %v686_v15  ;;  %v4641_v2 = vpack.c.b16 %v688_v45, %v688_v45  ;;  %v1286_v34 = vsel %vm1260_vm2, %v1217_v24, %v4605_v1  ;;  %v1649_v15 = vunpack.i.h.s16 %v1472_v29 }
  0xf1   : > { %v4639_v60 = vpop.permute.xlu2 %1149  ;;  %v530_v33 = vmax.f32 %v4007_v49, 0.0  ;;  %v4670_v58 = vsel %vm1329_vm3, %v1286_v34, %v4591_v39  ;;  %v3897_v1 = vpack.i.b16 %v1472_v29, %v1647_v18  ;;  %v4010_v34 = vld [vmem:[%s4706_s13] sm:$0xff]  }
  0xf2   : > { %v940_v14 = vshll.u32 %v4632_v23, 16  ;;  %v938_v40 = vshrl.u32 %v4632_v23, 16  ;;  %v3898_v8 = vpack.i.b16 %v1473_v5, %v1649_v15  ;;  %v1474_v39 = vrot.slane %v4670_v58, 1 }
  0xf3   : > { %v1476_v45 = vrot.slane %v4670_v58, 3  ;;  %v4012_v15 = vunpack.c.h.bf16 %v4010_v34 }
  0xf4   : > { %v942_v25 = vrot.slane %v940_v14, 1 }
  0xf5   : > { %1095 = vrot.lane.b32.xlu1 %v4575_v17, %s4080_s29  ;;  %1019 = vrot.lane.b32.xlu0 %v921_v3, %s4082_s7 }
  0xf6   : > { %v2076_v56 = vld [vmem:[#allocation1] sm:$0xff]  ;;  %1173 = vrot.lane.b32.xlu2 %v921_v3, %s4081_s30  ;;  %v943_v6 = vor.u32 %v942_v25, %v938_v40  ;;  %v945_v3 = vshll.u32 %v4641_v2, 16  ;;  %v1477_v40 = vrot.slane %v4670_v58, 4  ;;  %v949_v25 = vshrl.u32 %v4641_v2, 16 }
  0xf7   : > { %2078 = vst [vmem:[#allocation1] ss:$9 sm:$0xff] %v1465_v57  ;;  %v4630_v62 = vpop.permute.xlu1 %1069  ;;  %v994_v48 = vpop.permute.xlu0 %993 }
  0xf8   : > { %2080 = vst [vmem:[#allocation1 + $0x1] ss:$9 sm:$0xff] %v1466_v19  ;;  %v947_v57 = vrot.slane %v945_v3, 1  ;;  %v1221_v32 = vsel %vm1191_vm1, %v4270_v11, %v994_v48 }
  0xf9   : > { %2084 = vst [vmem:[#allocation1 + $0x3] ss:$9 sm:$0xff] %v3892_v41  ;;  %v1353_v41 = vsel %vm1329_vm3, %v1284_v50, %v4603_v61  ;;  %v4674_v61 = vpop.permute.xlu2 %1071  ;;  %v1290_v11 = vsel %vm1260_vm2, %v1221_v32, %v4630_v62 }
  0xfa   : > { %2086 = vst [vmem:[#allocation1 + $0x4] ss:$9 sm:$0xff] %v3893_v26  ;;  %v948_v19 = vsel %vm726_vm0, %v943_v6, %v947_v57  ;;  %v584_v26 = vpack.c.bf16 %v530_v33, %v530_v33  ;;  %v3899_v10 = vpack.i.b16 %v1353_v41, %v1651_v38  ;;  %v4696_v62 = vsel %vm1329_vm3, %v1290_v11, %v4620_v21 }
  0xfb   : > { %2088 = vst [vmem:[#allocation1 + $0x5] ss:$9 sm:$0xff] %v3894_v44  ;;  %3953 = vmatmul.msk.bf16.gmra.mxu0 %vm2307_vm4, %v2076_v56  ;;  %v531_v56 = vmax.f32 %v4008_v52, 0.0  ;;  %v1481_v21 = vrot.slane %v4696_v62, 1  ;;  %v1482_v6 = vrot.slane %v4696_v62, 2  ;;  %v1483_v27 = vrot.slane %v4696_v62, 3 }
  0xfc   : > { %2090 = vst [vmem:[#allocation1 + $0x6] ss:$9 sm:$0xff] %v3895_v30  ;;  %v689_v47 = vunpack.c.l.b16 %v584_v26  ;;  %v1671_v24 = vunpack.i.h.s16 %v4696_v62  ;;  %v4011_v57 = vunpack.c.l.bf16 %v4010_v34  ;;  %v1478_v33 = vrot.slane %v4670_v58, 5 }
  0xfd   : > { %2092 = vst [vmem:[#allocation1 + $0x7] ss:$9 sm:$0xff] %v3896_v63  ;;  %1097 = vrot.lane.b32.xlu1 %v4632_v23, %s4080_s29  ;;  %1177 = vrot.lane.b32.xlu0 %v935_v37, %s4081_s30  ;;  %v585_v36 = vpack.c.bf16 %v531_v56, %v531_v56  ;;  %v1673_v52 = vunpack.i.h.s16 %v1481_v21  ;;  %v1479_v38 = vrot.slane %v4670_v58, 6  ;;  %v1677_v56 = vunpack.i.h.s16 %v1483_v27 }
  0xfe   : > { %2082 = vst [vmem:[#allocation1 + $0x2] ss:$9 sm:$0xff] %v3891_v9  ;;  %1021 = vrot.lane.b32.xlu2 %v4596_v46, %s4082_s7  ;;  %v1475_v46 = vrot.slane %v4670_v58, 2  ;;  %v422_v9 = vld [vmem:[%s4145_s28 + $0xc8] sm:$0x1]  ;;  %v3901_v26 = vpack.i.b16 %v1481_v21, %v1671_v24 }
  0xff   : > { %v4657_v22 = vpop.permute.xlu1 %1067  ;;  %v992_v31 = vpop.permute.xlu0 %991  ;;  %v690_v63 = vunpack.c.l.b16 %v585_v36  ;;  %v478_v14 = vunpack.c.l.bf16 %v422_v9  ;;  %v425_v21 = vld [vmem:[%s4706_s13 + $0x8] sm:$0x1] }
 0x100   : > { %v1219_v18 = vsel %vm1191_vm1, %v4248_v42, %v992_v31  ;;  %v1480_v31 = vrot.slane %v4670_v58, 7  ;;  %v481_v24 = vunpack.c.l.bf16 %v425_v21 }
 0x101   : > { %v4699_v20 = vpack.c.b16 %v690_v63, %v689_v47  ;;  %v4701_v29 = vpop.permute.xlu2 %1155  ;;  %v1288_v42 = vsel %vm1260_vm2, %v1219_v18, %v4657_v22  ;;  %v1484_v22 = vrot.slane %v4696_v62, 4 }
 0x102   : > { %v535_v34 = vmax.f32 %v481_v24, 0.0 }
 0x103   : > { %v952_v36 = vshrl.u32 %v4699_v20, 16 }
 0x105   : > { %v2093_v44 = vld [vmem:[#allocation1] sm:$0xff]  ;;  %1025 = vrot.lane.b32.xlu1 %v948_v19, %s4082_s7  ;;  %1023 = vrot.lane.b32.xlu0 %v935_v37, %s4082_s7  ;;  %v532_v37 = vmax.f32 %v478_v14, 0.0  ;;  %v3904_v14 = vpack.i.b16 %v1484_v22, %v1677_v56 }
 0x106   : > { %3954 = vmatmul.msk.bf16.vlgmr.msra.gmra.mxu1 %vm2307_vm4, %v2093_v44  ;;  %2095 = vst [vmem:[#allocation1] ss:$9 sm:$0xff] %v3897_v1  ;;  %1179 = vrot.lane.b32.xlu2 %v948_v19, %s4081_s30  ;;  %v1675_v19 = vunpack.i.h.s16 %v1482_v6  ;;  %v954_v1 = vshll.u32 %v4699_v20, 16 }
 0x107   : > { %2097 = vst [vmem:[#allocation1 + $0x1] ss:$9 sm:$0xff] %v3898_v8  ;;  %v4683_v48 = vpop.permute.xlu1 %997  ;;  %v4685_v30 = vpop.permute.xlu0 %995  ;;  %v586_v5 = vpack.c.bf16 %v532_v37, %v532_v37  ;;  %v533_v8 = vmax.f32 %v4011_v57, 0.0 }
 0x108   : > { %2099 = vst [vmem:[#allocation1 + $0x2] ss:$9 sm:$0xff] %v3899_v10  ;;  %v956_v11 = vrot.slane %v954_v1, 1  ;;  %v3903_v47 = vpack.i.b16 %v1483_v27, %v1675_v19  ;;  %v1223_v57 = vsel %vm1191_vm1, %v4273_v16, %v4685_v30  ;;  %v1225_v19 = vsel %vm1191_vm1, %v4280_v28, %v4683_v48 }
 0x109   : > { %2101 = vst [vmem:[#allocation1 + $0x3] ss:$9 sm:$0xff] %v4670_v58  ;;  %v691_v3 = vunpack.c.l.b16 %v586_v5  ;;  %v4732_v32 = vpop.permute.xlu2 %1159  ;;  %v1357_v58 = vsel %vm1329_vm3, %v1288_v42, %v4639_v60  ;;  %v587_v9 = vpack.c.bf16 %v533_v8, %v533_v8  ;;  %v1679_v42 = vunpack.i.h.s16 %v1484_v22 }
 0x10a   : > { %2103 = vst [vmem:[#allocation1 + $0x4] ss:$9 sm:$0xff] %v1474_v39  ;;  %v534_v39 = vmax.f32 %v4012_v15, 0.0  ;;  %v957_v5 = vor.u32 %v956_v11, %v952_v36  ;;  %v3900_v60 = vpack.i.b16 %v4696_v62, %v1357_v58  ;;  %v1292_v56 = vsel %vm1260_vm2, %v1223_v57, %v4674_v61 }
 0x10b   : > { %2105 = vst [vmem:[#allocation1 + $0x5] ss:$9 sm:$0xff] %v1475_v46  ;;  %v4722_v41 = vpack.c.b16 %v691_v3, %v691_v3  ;;  %v3902_v46 = vpack.i.b16 %v1482_v6, %v1673_v52  ;;  %v1036_v6 = vunpack.c.l.b16 %v587_v9  ;;  %v1486_v52 = vrot.slane %v4696_v62, 6 }
 0x10c   : > { %2107 = vst [vmem:[#allocation1 + $0x6] ss:$9 sm:$0xff] %v1476_v45  ;;  %v588_v45 = vpack.c.bf16 %v534_v39, %v534_v39 }
 0x10d   : > { %2109 = vst [vmem:[#allocation1 + $0x7] ss:$9 sm:$0xff] %v1477_v40  ;;  %1181 = vrot.lane.b32.xlu1 %v949_v25, %s4081_s30  ;;  %1101 = vrot.lane.b32.xlu0 %v4699_v20, %s4080_s29  ;;  %v959_v44 = vshll.u32 %v4722_v41, 16  ;;  %v963_v36 = vshrl.u32 %v4722_v41, 16 }
 0x10e   : > { %1099 = vrot.lane.b32.xlu2 %v4641_v2, %s4080_s29  ;;  %v1037_v3 = vunpack.c.l.b16 %v588_v45 }
 0x10f   : > { %v4717_v49 = vpop.permute.xlu1 %1153  ;;  %v4719_v50 = vpop.permute.xlu0 %1073  ;;  %v961_v63 = vrot.slane %v959_v44, 1 }
 0x110   : > { %v4746_v18 = vpack.c.b16 %v1037_v3, %v1036_v6  ;;  %v1294_v30 = vsel %vm1260_vm2, %v1225_v19, %v4719_v50  ;;  %v1361_v1 = vsel %vm1329_vm3, %v1292_v56, %v4717_v49 }
 0x111   : > { %v962_v27 = vsel %vm726_vm0, %v957_v5, %v961_v63  ;;  %v4754_v15 = vpop.permute.xlu2 %1157  ;;  %v1363_v61 = vsel %vm1329_vm3, %v1294_v30, %v4701_v29 }
 0x112   : > { %v1488_v58 = vrot.slane %v1363_v61, 1  ;;  %v1489_v29 = vrot.slane %v1363_v61, 2  ;;  %v1112_v45 = vshll.u32 %v4746_v18, 16  ;;  %v1110_v21 = vshrl.u32 %v4746_v18, 16 }
 0x113   : > { %v1493_v19 = vrot.slane %v1363_v61, 6 }
 0x114   : > { %v2110_v10 = vld [vmem:[#allocation1] sm:$0xff] }
 0x115   : > { %2112 = vst [vmem:[#allocation1] ss:$9 sm:$0xff] %v1478_v33  ;;  %1103 = vrot.lane.b32.xlu1 %v4722_v41, %s4080_s29  ;;  %1027 = vrot.lane.b32.xlu0 %v949_v25, %s4082_s7  ;;  %v1485_v25 = vrot.slane %v4696_v62, 5  ;;  %v589_v33 = vpack.c.bf16 %v535_v34, %v535_v34 }
 0x116   : > { %2114 = vst [vmem:[#allocation1 + $0x1] ss:$9 sm:$0xff] %v1479_v38  ;;  %3955 = vmatmul.msk.bf16.gmra.mxu1 %vm2307_vm4, %v2110_v10  ;;  %1183 = vrot.lane.b32.xlu2 %v962_v27, %s4081_s30  ;;  %v1487_v38 = vrot.slane %v4696_v62, 7  ;;  %v1683_v10 = vunpack.i.h.s16 %v1486_v52 }
 0x117   : > { %2116 = vst [vmem:[#allocation1 + $0x2] ss:$9 sm:$0xff] %v1480_v31  ;;  %v1078_v40 = vpop.permute.xlu1 %1077  ;;  %v1002_v37 = vpop.permute.xlu0 %1001  ;;  %v1038_v31 = vunpack.c.l.b16 %v589_v33  ;;  %v1681_v16 = vunpack.i.h.s16 %v1485_v25  ;;  %v3905_v44 = vpack.i.b16 %v1485_v25, %v1679_v42 }
 0x118   : > { %2120 = vst [vmem:[#allocation1 + $0x4] ss:$9 sm:$0xff] %v3901_v26  ;;  %v1685_v28 = vunpack.i.h.s16 %v1487_v38  ;;  %v1229_v22 = vsel %vm1191_vm1, %v4310_v4, %v1002_v37 }
 0x119   : > { %2122 = vst [vmem:[#allocation1 + $0x5] ss:$9 sm:$0xff] %v3902_v46  ;;  %v4770_v48 = vpack.c.b16 %v1038_v31, %v1038_v31  ;;  %v3906_v8 = vpack.i.b16 %v1486_v52, %v1681_v16  ;;  %v3907_v46 = vpack.i.b16 %v1487_v38, %v1683_v10  ;;  %v4777_v49 = vpop.permute.xlu2 %1079  ;;  %v1298_v11 = vsel %vm1260_vm2, %v1229_v22, %v1078_v40 }
 0x11a   : > { %2124 = vst [vmem:[#allocation1 + $0x6] ss:$9 sm:$0xff] %v3903_v47  ;;  %v3908_v39 = vpack.i.b16 %v1361_v1, %v1685_v28  ;;  %v1490_v47 = vrot.slane %v1363_v61, 3  ;;  %v4786_v9 = vsel %vm1329_vm3, %v1298_v11, %v4732_v32  ;;  %v1491_v52 = vrot.slane %v1363_v61, 4 }
 0x11b   : > { %2126 = vst [vmem:[#allocation1 + $0x7] ss:$9 sm:$0xff] %v3904_v14  ;;  %v1495_v14 = vrot.slane %v4786_v9, 1  ;;  %v1496_v40 = vrot.slane %v4786_v9, 2  ;;  %v1117_v6 = vshll.u32 %v4770_v48, 16  ;;  %v1705_v32 = vunpack.i.h.s16 %v4786_v9 }
 0x11c   : > { %2118 = vst [vmem:[#allocation1 + $0x3] ss:$9 sm:$0xff] %v3900_v60  ;;  %v1114_v60 = vrot.slane %v1112_v45, 1  ;;  %v1492_v38 = vrot.slane %v1363_v61, 5  ;;  %v1494_v16 = vrot.slane %v1363_v61, 7  ;;  %v1498_v28 = vrot.slane %v4786_v9, 4 }
 0x11d   : > { %1105 = vrot.lane.b32.xlu1 %v4746_v18, %s4080_s29  ;;  %1029 = vrot.lane.b32.xlu0 %v962_v27, %s4082_s7  ;;  %v1707_v27 = vunpack.i.h.s16 %v1495_v14  ;;  %v1119_v57 = vrot.slane %v1117_v6, 1  ;;  %v1709_v33 = vunpack.i.h.s16 %v1496_v40  ;;  %v3910_v18 = vpack.i.b16 %v1495_v14, %v1705_v32 }
 0x11e   : > { %1185 = vrot.lane.b32.xlu2 %v963_v36, %s4081_s30  ;;  %v1115_v25 = vor.u32 %v1114_v60, %v1110_v21 }
 0x11f   : > { %v1076_v26 = vpop.permute.xlu1 %1075  ;;  %v1000_v62 = vpop.permute.xlu0 %999  ;;  %v3911_v30 = vpack.i.b16 %v1496_v40, %v1707_v27 }
 0x120   : > { %v1227_v5 = vsel %vm1191_vm1, %v4286_v35, %v1000_v62  ;;  %v1497_v35 = vrot.slane %v4786_v9, 3  ;;  %v1120_v56 = vsel %vm726_vm0, %v1115_v25, %v1119_v57 }
 0x121   : > { %v1164_v37 = vpop.permute.xlu2 %1163  ;;  %v1296_v34 = vsel %vm1260_vm2, %v1227_v5, %v1076_v26 }
 0x122   : > { %v1365_v31 = vsel %vm1329_vm3, %v1296_v34, %v4754_v15  ;;  %v3912_v62 = vpack.i.b16 %v1497_v35, %v1709_v33  ;;  %v1121_v15 = vshrl.u32 %v4770_v48, 16 }
 0x123   : > { %v2127_v50 = vld [vmem:[#allocation1] sm:$0xff]  ;;  %v3909_v1 = vpack.i.b16 %v4786_v9, %v1365_v31 }
 0x124   : > { %2129 = vst [vmem:[#allocation1] ss:$9 sm:$0xff] %v3905_v44  ;;  %v1499_v44 = vrot.slane %v4786_v9, 5 }
 0x125   : > { %2131 = vst [vmem:[#allocation1 + $0x1] ss:$9 sm:$0xff] %v3906_v8  ;;  %1107 = vrot.lane.b32.xlu1 %v4770_v48, %s4080_s29  ;;  %1031 = vrot.lane.b32.xlu0 %v963_v36, %s4082_s7  ;;  %v1711_v8 = vunpack.i.h.s16 %v1497_v35 }
 0x126   : > { %3956 = vmatmul.msk.bf16.gmra.mxu1 %vm2307_vm4, %v2127_v50  ;;  %2133 = vst [vmem:[#allocation1 + $0x2] ss:$9 sm:$0xff] %v3907_v46  ;;  %1187 = vrot.lane.b32.xlu2 %v1120_v56, %s4081_s30  ;;  %v1500_v50 = vrot.slane %v4786_v9, 6  ;;  %v1713_v46 = vunpack.i.h.s16 %v1498_v28 }
 0x127   : > { %2135 = vst [vmem:[#allocation1 + $0x3] ss:$9 sm:$0xff] %v3908_v39  ;;  %v1006_v4 = vpop.permute.xlu1 %1005  ;;  %v1004_v63 = vpop.permute.xlu0 %1003  ;;  %v1501_v39 = vrot.slane %v4786_v9, 7  ;;  %v3913_v14 = vpack.i.b16 %v1498_v28, %v1711_v8 }
 0x128   : > { %2137 = vst [vmem:[#allocation1 + $0x4] ss:$9 sm:$0xff] %v1363_v61  ;;  %v1231_v61 = vsel %vm1191_vm1, %v4316_v12, %v1004_v63  ;;  %v1233_v48 = vsel %vm1191_vm1, %v4338_v53, %v1006_v4  ;;  %v3914_v5 = vpack.i.b16 %v1499_v44, %v1713_v46 }
 0x129   : > { %2139 = vst [vmem:[#allocation1 + $0x5] ss:$9 sm:$0xff] %v1488_v58  ;;  %v1168_v26 = vpop.permute.xlu2 %1167  ;;  %v1300_v58 = vsel %vm1260_vm2, %v1231_v61, %v4777_v49  ;;  %v1719_v9 = vunpack.i.h.s16 %v1501_v39 }
 0x12a   : > { %2141 = vst [vmem:[#allocation1 + $0x6] ss:$9 sm:$0xff] %v1489_v29  ;;  %v1715_v29 = vunpack.i.h.s16 %v1499_v44 }
 0x12b   : > { %2143 = vst [vmem:[#allocation1 + $0x7] ss:$9 sm:$0xff] %v1490_v47  ;;  %v1717_v47 = vunpack.i.h.s16 %v1500_v50 }
 0x12c   : > { %v3915_v53 = vpack.i.b16 %v1500_v50, %v1715_v29 }
 0x12d   : > { %v3916_v60 = vpack.i.b16 %v1501_v39, %v1717_v47 }
 0x12e   : > { %1189 = vrot.lane.b32.xlu2 %v1121_v15, %s4081_s30 }
 0x12f   : > { %v1162_v3 = vpop.permute.xlu1 %1161  ;;  %v1082_v24 = vpop.permute.xlu0 %1081 }
 0x130   : > { %v1302_v11 = vsel %vm1260_vm2, %v1233_v48, %v1082_v24  ;;  %v1369_v12 = vsel %vm1329_vm3, %v1300_v58, %v1162_v3 }
 0x131   : > { %v1166_v22 = vpop.permute.xlu2 %1165  ;;  %v1371_v21 = vsel %vm1329_vm3, %v1302_v11, %v1164_v37  ;;  %v3917_v4 = vpack.i.b16 %v1369_v12, %v1719_v9 }
 0x132   : > { %v2144_v42 = vld [vmem:[#allocation1] sm:$0xff]  ;;  %v1502_v6 = vrot.slane %v1371_v21, 1  ;;  %v1503_v3 = vrot.slane %v1371_v21, 2  ;;  %v1506_v56 = vrot.slane %v1371_v21, 5 }
 0x133   : > { %2146 = vst [vmem:[#allocation1] ss:$9 sm:$0xff] %v1491_v52 }
 0x134   : > { %2148 = vst [vmem:[#allocation1 + $0x1] ss:$9 sm:$0xff] %v1492_v38  ;;  %v1504_v38 = vrot.slane %v1371_v21, 3 }
 0x135   : > { %2150 = vst [vmem:[#allocation1 + $0x2] ss:$9 sm:$0xff] %v1493_v19 }
 0x136   : > { %2152 = vst [vmem:[#allocation1 + $0x3] ss:$9 sm:$0xff] %v1494_v16  ;;  %3957 = vmatmul.msk.bf16.gmra.mxu1 %vm2307_vm4, %v2144_v42 }
 0x137   : > { %2156 = vst [vmem:[#allocation1 + $0x5] ss:$9 sm:$0xff] %v3910_v18  ;;  %v1086_v10 = vpop.permute.xlu1 %1085  ;;  %v1010_v36 = vpop.permute.xlu0 %1009  ;;  %v1505_v18 = vrot.slane %v1371_v21, 4 }
 0x138   : > { %2158 = vst [vmem:[#allocation1 + $0x6] ss:$9 sm:$0xff] %v3911_v30  ;;  %v1237_v49 = vsel %vm1191_vm1, %v4394_v13, %v1010_v36 }
 0x139   : > { %2160 = vst [vmem:[#allocation1 + $0x7] ss:$9 sm:$0xff] %v3912_v62  ;;  %v1088_v32 = vpop.permute.xlu2 %1087  ;;  %v1306_v24 = vsel %vm1260_vm2, %v1237_v49, %v1086_v10  ;;  %v1508_v62 = vrot.slane %v1371_v21, 7 }
 0x13a   : > { %2154 = vst [vmem:[#allocation1 + $0x4] ss:$9 sm:$0xff] %v3909_v1  ;;  %v1375_v34 = vsel %vm1329_vm3, %v1306_v24, %v1168_v26  ;;  %v1507_v26 = vrot.slane %v1371_v21, 6 }
 0x13b   : > { %v1509_v13 = vrot.slane %v1375_v34, 1  ;;  %v1739_v57 = vunpack.i.h.s16 %v1375_v34  ;;  %v1510_v16 = vrot.slane %v1375_v34, 2  ;;  %v1511_v36 = vrot.slane %v1375_v34, 3 }
 0x13c   : > { %v1512_v15 = vrot.slane %v1375_v34, 4  ;;  %v1513_v61 = vrot.slane %v1375_v34, 5  ;;  %v1515_v46 = vrot.slane %v1375_v34, 7 }
 0x13d   : > { %v1741_v19 = vunpack.i.h.s16 %v1509_v13  ;;  %v1743_v8 = vunpack.i.h.s16 %v1510_v16  ;;  %v1745_v48 = vunpack.i.h.s16 %v1511_v36 }
 0x13e   : > { %v1747_v29 = vunpack.i.h.s16 %v1512_v15  ;;  %v1749_v12 = vunpack.i.h.s16 %v1513_v61 }
 0x13f   : > { %v1084_v63 = vpop.permute.xlu1 %1083  ;;  %v1008_v45 = vpop.permute.xlu0 %1007  ;;  %v3920_v1 = vpack.i.b16 %v1510_v16, %v1741_v19  ;;  %v3922_v9 = vpack.i.b16 %v1512_v15, %v1745_v48 }
 0x140   : > { %v1235_v25 = vsel %vm1191_vm1, %v4349_v59, %v1008_v45  ;;  %v3919_v59 = vpack.i.b16 %v1509_v13, %v1739_v57 }
 0x141   : > { %v2161_v40 = vld [vmem:[#allocation1] sm:$0xff]  ;;  %v1304_v52 = vsel %vm1260_vm2, %v1235_v25, %v1084_v63  ;;  %v1172_v33 = vpop.permute.xlu2 %1171  ;;  %v3921_v63 = vpack.i.b16 %v1511_v36, %v1743_v8 }
 0x142   : > { %2163 = vst [vmem:[#allocation1] ss:$9 sm:$0xff] %v3913_v14  ;;  %v1373_v30 = vsel %vm1329_vm3, %v1304_v52, %v1166_v22  ;;  %v1514_v22 = vrot.slane %v1375_v34, 6 }
 0x143   : > { %2165 = vst [vmem:[#allocation1 + $0x1] ss:$9 sm:$0xff] %v3914_v5  ;;  %v3918_v10 = vpack.i.b16 %v1375_v34, %v1373_v30  ;;  %v1753_v5 = vunpack.i.h.s16 %v1515_v46 }
 0x144   : > { %2167 = vst [vmem:[#allocation1 + $0x2] ss:$9 sm:$0xff] %v3915_v53  ;;  %v1751_v14 = vunpack.i.h.s16 %v1514_v22 }
 0x145   : > { %2169 = vst [vmem:[#allocation1 + $0x3] ss:$9 sm:$0xff] %v3916_v60 }
 0x146   : > { %3958 = vmatmul.msk.bf16.gmra.mxu1 %vm2307_vm4, %v2161_v40  ;;  %2171 = vst [vmem:[#allocation1 + $0x4] ss:$9 sm:$0xff] %v3917_v4  ;;  %v3925_v49 = vpack.i.b16 %v1515_v46, %v1751_v14 }
 0x147   : > { %2173 = vst [vmem:[#allocation1 + $0x5] ss:$9 sm:$0xff] %v1371_v21  ;;  %v1014_v37 = vpop.permute.xlu1 %1013  ;;  %v1012_v27 = vpop.permute.xlu0 %1011 }
 0x148   : > { %2175 = vst [vmem:[#allocation1 + $0x6] ss:$9 sm:$0xff] %v1502_v6  ;;  %v1239_v39 = vsel %vm1191_vm1, %v4404_v51, %v1012_v27  ;;  %v1241_v58 = vsel %vm1191_vm1, %v4429_v7, %v1014_v37  ;;  %v3923_v51 = vpack.i.b16 %v1513_v61, %v1747_v29  ;;  %v3924_v7 = vpack.i.b16 %v1514_v22, %v1749_v12 }
 0x149   : > { %2177 = vst [vmem:[#allocation1 + $0x7] ss:$9 sm:$0xff] %v1503_v3  ;;  %v1016_v44 = vpop.permute.xlu2 %1015  ;;  %v1308_v11 = vsel %vm1260_vm2, %v1239_v39, %v1088_v32 }
 0x14a   : > { %v1243_v34 = vsel %vm1191_vm1, %v4465_v0, %v1016_v44 }
 0x14f   : > { %v1170_v42 = vpop.permute.xlu1 %1169  ;;  %v1090_v35 = vpop.permute.xlu0 %1089 }
 0x150   : > { %v2178_v31 = vld [vmem:[#allocation1] sm:$0xff]  ;;  %v1310_v47 = vsel %vm1260_vm2, %v1241_v58, %v1090_v35  ;;  %v1377_v45 = vsel %vm1329_vm3, %v1308_v11, %v1170_v42 }
 0x151   : > { %2180 = vst [vmem:[#allocation1] ss:$9 sm:$0xff] %v1504_v38  ;;  %3959 = vmatmul.msk.bf16.vlgmr.msra.gmra.mxu2 %vm2307_vm4, %v2178_v31  ;;  %v1379_v21 = vsel %vm1329_vm3, %v1310_v47, %v1172_v33  ;;  %v3926_v53 = vpack.i.b16 %v1377_v45, %v1753_v5  ;;  %v1174_v6 = vpop.permute.xlu2 %1173 }
 0x152   : > { %2182 = vst [vmem:[#allocation1 + $0x1] ss:$9 sm:$0xff] %v1505_v18  ;;  %v1516_v32 = vrot.slane %v1379_v21, 1  ;;  %v1517_v52 = vrot.slane %v1379_v21, 2  ;;  %v1518_v19 = vrot.slane %v1379_v21, 3  ;;  %v1519_v35 = vrot.slane %v1379_v21, 4 }
 0x153   : > { %2184 = vst [vmem:[#allocation1 + $0x2] ss:$9 sm:$0xff] %v1506_v56  ;;  %v1520_v18 = vrot.slane %v1379_v21, 5  ;;  %v1521_v31 = vrot.slane %v1379_v21, 6  ;;  %v1522_v56 = vrot.slane %v1379_v21, 7 }
 0x154   : > { %2186 = vst [vmem:[#allocation1 + $0x3] ss:$9 sm:$0xff] %v1507_v26 }
 0x155   : > { %2188 = vst [vmem:[#allocation1 + $0x4] ss:$9 sm:$0xff] %v1508_v62 }
 0x156   : > { %2192 = vst [vmem:[#allocation1 + $0x6] ss:$9 sm:$0xff] %v3919_v59 }
 0x157   : > { %2194 = vst [vmem:[#allocation1 + $0x7] ss:$9 sm:$0xff] %v3920_v1  ;;  %v1094_v28 = vpop.permute.xlu1 %1093  ;;  %v1018_v50 = vpop.permute.xlu0 %1017 }
 0x158   : > { %2190 = vst [vmem:[#allocation1 + $0x5] ss:$9 sm:$0xff] %v3918_v10  ;;  %v1245_v3 = vsel %vm1191_vm1, %v4515_v43, %v1018_v50 }
 0x159   : > { %v1314_v24 = vsel %vm1260_vm2, %v1245_v3, %v1094_v28  ;;  %v1022_v57 = vpop.permute.xlu2 %1021 }
 0x15a   : > { %v1249_v45 = vsel %vm1191_vm1, %v4544_v55, %v1022_v57 }
 0x15f   : > { %v2195_v40 = vld [vmem:[#allocation1] sm:$0xff]  ;;  %v1176_v4 = vpop.permute.xlu0 %1175  ;;  %v1092_v60 = vpop.permute.xlu1 %1091 }
 0x160   : > { %2197 = vst [vmem:[#allocation1] ss:$9 sm:$0xff] %v3921_v63  ;;  %v1383_v27 = vsel %vm1329_vm3, %v1314_v24, %v1176_v4  ;;  %v1312_v13 = vsel %vm1260_vm2, %v1243_v34, %v1092_v60 }
 0x161   : > { %2199 = vst [vmem:[#allocation1 + $0x1] ss:$9 sm:$0xff] %v3922_v9  ;;  %3960 = vmatmul.msk.bf16.gmra.mxu2 %vm2307_vm4, %v2195_v40  ;;  %v1523_v33 = vrot.slane %v1383_v27, 1  ;;  %v1773_v38 = vunpack.i.h.s16 %v1383_v27  ;;  %v1381_v43 = vsel %vm1329_vm3, %v1312_v13, %v1174_v6  ;;  %v1524_v26 = vrot.slane %v1383_v27, 2  ;;  %v1180_v1 = vpop.permute.xlu2 %1179 }
 0x162   : > { %2201 = vst [vmem:[#allocation1 + $0x2] ss:$9 sm:$0xff] %v3923_v51  ;;  %v3927_v16 = vpack.i.b16 %v1383_v27, %v1381_v43  ;;  %v1525_v59 = vrot.slane %v1383_v27, 3  ;;  %v1526_v10 = vrot.slane %v1383_v27, 4  ;;  %v1527_v15 = vrot.slane %v1383_v27, 5 }
 0x163   : > { %2203 = vst [vmem:[#allocation1 + $0x3] ss:$9 sm:$0xff] %v3924_v7  ;;  %v3928_v0 = vpack.i.b16 %v1523_v33, %v1773_v38  ;;  %v1775_v36 = vunpack.i.h.s16 %v1523_v33  ;;  %v1777_v28 = vunpack.i.h.s16 %v1524_v26  ;;  %v1528_v61 = vrot.slane %v1383_v27, 6 }
 0x164   : > { %2205 = vst [vmem:[#allocation1 + $0x4] ss:$9 sm:$0xff] %v3925_v49  ;;  %v1779_v50 = vunpack.i.h.s16 %v1525_v59  ;;  %v1529_v8 = vrot.slane %v1383_v27, 7  ;;  %v1781_v39 = vunpack.i.h.s16 %v1526_v10  ;;  %v1783_v46 = vunpack.i.h.s16 %v1527_v15 }
 0x165   : > { %2207 = vst [vmem:[#allocation1 + $0x5] ss:$9 sm:$0xff] %v3926_v53  ;;  %v3929_v22 = vpack.i.b16 %v1524_v26, %v1775_v36  ;;  %v3930_v58 = vpack.i.b16 %v1525_v59, %v1777_v28  ;;  %v1785_v11 = vunpack.i.h.s16 %v1528_v61 }
 0x166   : > { %2209 = vst [vmem:[#allocation1 + $0x6] ss:$9 sm:$0xff] %v1379_v21  ;;  %v3931_v63 = vpack.i.b16 %v1526_v10, %v1779_v50  ;;  %v3932_v9 = vpack.i.b16 %v1527_v15, %v1781_v39  ;;  %v3933_v40 = vpack.i.b16 %v1528_v61, %v1783_v46 }
 0x167   : > { %2211 = vst [vmem:[#allocation1 + $0x7] ss:$9 sm:$0xff] %v1516_v32  ;;  %v1020_v37 = vpop.permute.xlu0 %1019  ;;  %v1096_v25 = vpop.permute.xlu1 %1095  ;;  %v3934_v7 = vpack.i.b16 %v1529_v8, %v1785_v11 }
 0x168   : > { %v1247_v44 = vsel %vm1191_vm1, %v4533_v54, %v1020_v37  ;;  %v1787_v54 = vunpack.i.h.s16 %v1529_v8 }
 0x169   : > { %v1316_v48 = vsel %vm1260_vm2, %v1247_v44, %v1096_v25  ;;  %v1100_v21 = vpop.permute.xlu2 %1099 }
 0x16e   : > { %v2212_v42 = vld [vmem:[#allocation1] sm:$0xff] }
 0x16f   : > { %2214 = vst [vmem:[#allocation1] ss:$9 sm:$0xff] %v1517_v52  ;;  %v1178_v30 = vpop.permute.xlu0 %1177  ;;  %v1098_v62 = vpop.permute.xlu1 %1097 }
 0x170   : > { %2216 = vst [vmem:[#allocation1 + $0x1] ss:$9 sm:$0xff] %v1518_v19  ;;  %v1385_v12 = vsel %vm1329_vm3, %v1316_v48, %v1178_v30  ;;  %v1318_v14 = vsel %vm1260_vm2, %v1249_v45, %v1098_v62 }
 0x171   : > { %2218 = vst [vmem:[#allocation1 + $0x2] ss:$9 sm:$0xff] %v1519_v35  ;;  %3961 = vmatmul.msk.bf16.gmra.mxu2 %vm2307_vm4, %v2212_v42  ;;  %v3935_v5 = vpack.i.b16 %v1385_v12, %v1787_v54  ;;  %v1387_v53 = vsel %vm1329_vm3, %v1318_v14, %v1180_v1  ;;  %v1184_v32 = vpop.permute.xlu2 %1183 }
 0x172   : > { %2220 = vst [vmem:[#allocation1 + $0x3] ss:$9 sm:$0xff] %v1520_v18  ;;  %v1530_v3 = vrot.slane %v1387_v53, 1  ;;  %v1531_v24 = vrot.slane %v1387_v53, 2  ;;  %v1532_v34 = vrot.slane %v1387_v53, 3  ;;  %v1533_v57 = vrot.slane %v1387_v53, 4 }
 0x173   : > { %2222 = vst [vmem:[#allocation1 + $0x4] ss:$9 sm:$0xff] %v1521_v31  ;;  %v1536_v33 = vrot.slane %v1387_v53, 7 }
 0x174   : > { %2224 = vst [vmem:[#allocation1 + $0x5] ss:$9 sm:$0xff] %v1522_v56 }
 0x175   : > { %2228 = vst [vmem:[#allocation1 + $0x7] ss:$9 sm:$0xff] %v3928_v0 }
 0x176   : > { %2226 = vst [vmem:[#allocation1 + $0x6] ss:$9 sm:$0xff] %v3927_v16 }
 0x177   : > { %v1024_v47 = vpop.permute.xlu0 %1023  ;;  %v1026_v51 = vpop.permute.xlu1 %1025 }
 0x178   : > { %v1253_v4 = vsel %vm1191_vm1, %v4632_v23, %v1026_v51  ;;  %v1251_v49 = vsel %vm1191_vm1, %v4575_v17, %v1024_v47  ;;  %v1534_v23 = vrot.slane %v1387_v53, 5  ;;  %v1535_v17 = vrot.slane %v1387_v53, 6 }
 0x179   : > { %v1320_v27 = vsel %vm1260_vm2, %v1251_v49, %v1100_v21  ;;  %v1186_v26 = vpop.permute.xlu2 %1185 }
 0x17d   : > { %v2229_v29 = vld [vmem:[#allocation1] sm:$0xff] }
 0x17e   : > { %2231 = vst [vmem:[#allocation1] ss:$9 sm:$0xff] %v3929_v22 }
 0x17f   : > { %2233 = vst [vmem:[#allocation1 + $0x1] ss:$9 sm:$0xff] %v3930_v58  ;;  %v1102_v55 = vpop.permute.xlu0 %1101  ;;  %v1182_v60 = vpop.permute.xlu1 %1181 }
 0x180   : > { %2235 = vst [vmem:[#allocation1 + $0x2] ss:$9 sm:$0xff] %v3931_v63  ;;  %v1322_v6 = vsel %vm1260_vm2, %v1253_v4, %v1102_v55  ;;  %v1389_v13 = vsel %vm1329_vm3, %v1320_v27, %v1182_v60 }
 0x181   : > { %3962 = vmatmul.msk.bf16.gmra.mxu2 %vm2307_vm4, %v2229_v29  ;;  %2237 = vst [vmem:[#allocation1 + $0x3] ss:$9 sm:$0xff] %v3932_v9  ;;  %v1391_v25 = vsel %vm1329_vm3, %v1322_v6, %v1184_v32  ;;  %v1188_v45 = vpop.permute.xlu2 %1187 }
 0x182   : > { %2239 = vst [vmem:[#allocation1 + $0x4] ss:$9 sm:$0xff] %v3933_v40  ;;  %v3936_v52 = vpack.i.b16 %v1391_v25, %v1389_v13  ;;  %v1537_v38 = vrot.slane %v1391_v25, 1  ;;  %v1538_v42 = vrot.slane %v1391_v25, 2  ;;  %v1539_v35 = vrot.slane %v1391_v25, 3 }
 0x183   : > { %2241 = vst [vmem:[#allocation1 + $0x5] ss:$9 sm:$0xff] %v3934_v7  ;;  %v1540_v18 = vrot.slane %v1391_v25, 4  ;;  %v1541_v16 = vrot.slane %v1391_v25, 5  ;;  %v1542_v59 = vrot.slane %v1391_v25, 6  ;;  %v1807_v62 = vunpack.i.h.s16 %v1391_v25 }
 0x184   : > { %2243 = vst [vmem:[#allocation1 + $0x6] ss:$9 sm:$0xff] %v3935_v5  ;;  %v1809_v31 = vunpack.i.h.s16 %v1537_v38  ;;  %v1811_v56 = vunpack.i.h.s16 %v1538_v42  ;;  %v1813_v30 = vunpack.i.h.s16 %v1539_v35  ;;  %v1543_v10 = vrot.slane %v1391_v25, 7 }
 0x185   : > { %2245 = vst [vmem:[#allocation1 + $0x7] ss:$9 sm:$0xff] %v1387_v53  ;;  %v1815_v15 = vunpack.i.h.s16 %v1540_v18  ;;  %v1817_v61 = vunpack.i.h.s16 %v1541_v16  ;;  %v1819_v39 = vunpack.i.h.s16 %v1542_v59  ;;  %v3937_v22 = vpack.i.b16 %v1537_v38, %v1807_v62 }
 0x186   : > { %v3938_v36 = vpack.i.b16 %v1538_v42, %v1809_v31  ;;  %v3939_v28 = vpack.i.b16 %v1539_v35, %v1811_v56  ;;  %v3940_v50 = vpack.i.b16 %v1540_v18, %v1813_v30  ;;  %v1821_v48 = vunpack.i.h.s16 %v1543_v10 }
 0x187   : > { %v1028_v19 = vpop.permute.xlu0 %1027  ;;  %v1104_v43 = vpop.permute.xlu1 %1103  ;;  %v3941_v46 = vpack.i.b16 %v1541_v16, %v1815_v15  ;;  %v3942_v58 = vpack.i.b16 %v1542_v59, %v1817_v61  ;;  %v3943_v47 = vpack.i.b16 %v1543_v10, %v1819_v39 }
 0x188   : > { %v1255_v0 = vsel %vm1191_vm1, %v4641_v2, %v1028_v19 }
 0x189   : > { %v1324_v1 = vsel %vm1260_vm2, %v1255_v0, %v1104_v43  ;;  %v1190_v60 = vpop.permute.xlu2 %1189 }
 0x18a   : > { %v1393_v8 = vsel %vm1329_vm3, %v1324_v1, %v1186_v26 }
 0x18b   : > { %v3944_v29 = vpack.i.b16 %v1393_v8, %v1821_v48 }
 0x18c   : > { %v2246_v37 = vld [vmem:[#allocation1] sm:$0xff] }
 0x18d   : > { %2248 = vst [vmem:[#allocation1] ss:$9 sm:$0xff] %v1530_v3 }
 0x18e   : > { %2250 = vst [vmem:[#allocation1 + $0x1] ss:$9 sm:$0xff] %v1531_v24  ;;  %v2355_v24 = vpop.f32.mrf.mxu0 }
 0x18f   : > { %2252 = vst [vmem:[#allocation1 + $0x2] ss:$9 sm:$0xff] %v1532_v34  ;;  %v1030_v2 = vpop.permute.xlu0 %1029  ;;  %v1106_v12 = vpop.permute.xlu1 %1105  ;;  %v2487_v27 = vrot.slane %v2355_v24, 2  ;;  %v2488_v34 = vrot.slane %v2355_v24, 3  ;;  %v2489_v13 = vrot.slane %v2355_v24, 4  ;;  %v2490_v25 = vrot.slane %v2355_v24, 5 }
 0x190   : > { %2254 = vst [vmem:[#allocation1 + $0x3] ss:$9 sm:$0xff] %v1533_v57  ;;  %v1257_v11 = vsel %vm1191_vm1, %v4699_v20, %v1030_v2  ;;  %v2491_v57 = vrot.slane %v2355_v24, 6 }
 0x191   : > { %2256 = vst [vmem:[#allocation1 + $0x4] ss:$9 sm:$0xff] %v1534_v23  ;;  %3963 = vmatmul.msk.bf16.gmra.mxu2 %vm2307_vm4, %v2246_v37  ;;  %v1326_v63 = vsel %vm1260_vm2, %v1257_v11, %v1106_v12  ;;  %v2486_v37 = vrot.slane %v2355_v24, 1  ;;  %v2492_v23 = vrot.slane %v2355_v24, 7 }
 0x192   : > { %2258 = vst [vmem:[#allocation1 + $0x5] ss:$9 sm:$0xff] %v1535_v17  ;;  %v1395_v54 = vsel %vm1329_vm3, %v1326_v63, %v1188_v45 }
 0x193   : > { %2260 = vst [vmem:[#allocation1 + $0x6] ss:$9 sm:$0xff] %v1536_v33  ;;  %v1544_v14 = vrot.slane %v1395_v54, 1  ;;  %v1545_v9 = vrot.slane %v1395_v54, 2  ;;  %v1546_v40 = vrot.slane %v1395_v54, 3  ;;  %v1547_v21 = vrot.slane %v1395_v54, 4 }
 0x194   : > { %2262 = vst [vmem:[#allocation1 + $0x7] ss:$9 sm:$0xff] %v3936_v52  ;;  %v1548_v7 = vrot.slane %v1395_v54, 5  ;;  %v1549_v20 = vrot.slane %v1395_v54, 6  ;;  %v1550_v4 = vrot.slane %v1395_v54, 7 }
 0x196   : > { %v2357_v17 = vpop.f32.mrf.mxu0 }
 0x197   : > { %v1032_v51 = vpop.permute.xlu0 %1031  ;;  %v1108_v55 = vpop.permute.xlu1 %1107  ;;  %v2493_v52 = vrot.slane %v2357_v17, 1  ;;  %v2494_v38 = vrot.slane %v2357_v17, 2  ;;  %v2495_v19 = vrot.slane %v2357_v17, 3  ;;  %v2496_v42 = vrot.slane %v2357_v17, 4 }
 0x198   : > { %v1259_v53 = vsel %vm1191_vm1, %v4722_v41, %v1032_v51  ;;  %v2497_v35 = vrot.slane %v2357_v17, 5  ;;  %v2498_v43 = vrot.slane %v2357_v17, 6  ;;  %v2499_v18 = vrot.slane %v2357_v17, 7 }
 0x199   : > { %v1328_v49 = vsel %vm1260_vm2, %v1259_v53, %v1108_v55 }
 0x19a   : > { %v1397_v6 = vsel %vm1329_vm3, %v1328_v49, %v1190_v60 }
 0x19b   : > { %v2263_v44 = vld [vmem:[#allocation1] sm:$0xff]  ;;  %v1839_v32 = vunpack.i.l.s16 %v1397_v6 }
 0x19c   : > { %2267 = vst [vmem:[#allocation1 + $0x1] ss:$9 sm:$0xff] %v3938_v36  ;;  %3964 = vmatmul.msk.bf16.vlgmr.msra.gmra.mxu3 %vm2307_vm4, %v2263_v44 }
 0x19d   : > { %2269 = vst [vmem:[#allocation1 + $0x2] ss:$9 sm:$0xff] %v3939_v28 }
 0x19e   : > { %2271 = vst [vmem:[#allocation1 + $0x3] ss:$9 sm:$0xff] %v3940_v50  ;;  %v2360_v31 = vpop.f32.mrf.mxu0 }
 0x19f   : > { %2265 = vst [vmem:[#allocation1] ss:$9 sm:$0xff] %v3937_v22  ;;  %v2500_v56 = vrot.slane %v2360_v31, 1  ;;  %v2501_v16 = vrot.slane %v2360_v31, 2  ;;  %v2502_v26 = vrot.slane %v2360_v31, 3  ;;  %v2503_v59 = vrot.slane %v2360_v31, 4 }
 0x1a0   : > { %2273 = vst [vmem:[#allocation1 + $0x4] ss:$9 sm:$0xff] %v3941_v46  ;;  %v2504_v62 = vrot.slane %v2360_v31, 5  ;;  %v2505_v1 = vrot.slane %v2360_v31, 6  ;;  %v2506_v10 = vrot.slane %v2360_v31, 7 }
 0x1a1   : > { %2275 = vst [vmem:[#allocation1 + $0x5] ss:$9 sm:$0xff] %v3942_v58 }
 0x1a2   : > { %2277 = vst [vmem:[#allocation1 + $0x6] ss:$9 sm:$0xff] %v3943_v47 }
 0x1a3   : > { %2279 = vst [vmem:[#allocation1 + $0x7] ss:$9 sm:$0xff] %v3944_v29 }
 0x1a6   : > { %v2362_v36 = vpop.f32.mrf.mxu0 }
 0x1a7   : > { %v2507_v15 = vrot.slane %v2362_v36, 1  ;;  %v2508_v28 = vrot.slane %v2362_v36, 2  ;;  %v2509_v61 = vrot.slane %v2362_v36, 3  ;;  %v2510_v50 = vrot.slane %v2362_v36, 4 }
 0x1a8   : > { %v2511_v8 = vrot.slane %v2362_v36, 5  ;;  %v2512_v39 = vrot.slane %v2362_v36, 6  ;;  %v2513_v2 = vrot.slane %v2362_v36, 7 }
 0x1aa   : > { %v2280_v5 = vld [vmem:[#allocation1] sm:$0xff] }
 0x1ab   : > { %2282 = vst [vmem:[#allocation1] ss:$9 sm:$0xff] %v1395_v54 }
 0x1ac   : > { %2284 = vst [vmem:[#allocation1 + $0x1] ss:$9 sm:$0xff] %v1544_v14  ;;  %3965 = vmatmul.msk.bf16.gmra.mxu3 %vm2307_vm4, %v2280_v5 }
 0x1ad   : > { %2286 = vst [vmem:[#allocation1 + $0x2] ss:$9 sm:$0xff] %v1545_v9 }
 0x1ae   : > { %2288 = vst [vmem:[#allocation1 + $0x3] ss:$9 sm:$0xff] %v1546_v40  ;;  %v2365_v22 = vpop.f32.mrf.mxu0 }
 0x1af   : > { %2290 = vst [vmem:[#allocation1 + $0x4] ss:$9 sm:$0xff] %v1547_v21  ;;  %v2514_v48 = vrot.slane %v2365_v22, 1  ;;  %v2515_v58 = vrot.slane %v2365_v22, 2  ;;  %v2516_v29 = vrot.slane %v2365_v22, 3  ;;  %v2517_v12 = vrot.slane %v2365_v22, 4 }
 0x1b0   : > { %2292 = vst [vmem:[#allocation1 + $0x5] ss:$9 sm:$0xff] %v1548_v7  ;;  %v2518_v47 = vrot.slane %v2365_v22, 5  ;;  %v2519_v63 = vrot.slane %v2365_v22, 6  ;;  %v2520_v54 = vrot.slane %v2365_v22, 7 }
 0x1b1   : > { %2294 = vst [vmem:[#allocation1 + $0x6] ss:$9 sm:$0xff] %v1549_v20 }
 0x1b2   : > { %2296 = vst [vmem:[#allocation1 + $0x7] ss:$9 sm:$0xff] %v1550_v4 }
 0x1b6   : > { %v2367_v45 = vpop.f32.mrf.mxu0 }
 0x1b7   : > { %v2521_v14 = vrot.slane %v2367_v45, 1  ;;  %v2522_v9 = vrot.slane %v2367_v45, 2  ;;  %v2523_v40 = vrot.slane %v2367_v45, 3  ;;  %v2524_v51 = vrot.slane %v2367_v45, 4 }
 0x1b8   : > { %v2525_v21 = vrot.slane %v2367_v45, 5  ;;  %v2526_v7 = vrot.slane %v2367_v45, 6  ;;  %v2527_v53 = vrot.slane %v2367_v45, 7 }
 0x1b9   : > { %v2297_v3 = vld [vmem:[#allocation1] sm:$0xff] }
 0x1ba   : > { %2299 = vst [vmem:[#allocation1] ss:$9 sm:$0xff] %v1839_v32 }
 0x1bc   : > { %3966 = vmatmul.msk.bf16.gmra.mxu3 %vm2307_vm4, %v2297_v3 }
 0x1be   : > { %v2370_v20 = vpop.f32.mrf.mxu0 }
 0x1bf   : > { %v2528_v55 = vrot.slane %v2370_v20, 1  ;;  %v2529_v4 = vrot.slane %v2370_v20, 2  ;;  %v2530_v60 = vrot.slane %v2370_v20, 3  ;;  %v2531_v6 = vrot.slane %v2370_v20, 4 }
 0x1c0   : > { %v2532_v3 = vrot.slane %v2370_v20, 5 }
 0x1c1   : > { %v2300_v41 = vld [vmem:[#allocation1] sm:$0xff] }
 0x1c2   : > { %3025 = vst [vmem:[#allocation1] ss:$9 sm:$0xff] %v2355_v24  ;;  %v2533_v24 = vrot.slane %v2370_v20, 6 }
 0x1c3   : > { %3027 = vst [vmem:[#allocation1 + $0x1] ss:$9 sm:$0xff] %v2486_v37 }
 0x1c4   : > { %3029 = vst [vmem:[#allocation1 + $0x2] ss:$9 sm:$0xff] %v2487_v27 }
 0x1c5   : > { %3031 = vst [vmem:[#allocation1 + $0x3] ss:$9 sm:$0xff] %v2488_v34 }
 0x1c6   : > { %3033 = vst [vmem:[#allocation1 + $0x4] ss:$9 sm:$0xff] %v2489_v13  ;;  %v2372_v37 = vpop.f32.mrf.mxu0 }
 0x1c7   : > { %3035 = vst [vmem:[#allocation1 + $0x5] ss:$9 sm:$0xff] %v2490_v25  ;;  %v2535_v27 = vrot.slane %v2372_v37, 1  ;;  %v2536_v34 = vrot.slane %v2372_v37, 2  ;;  %v2537_v13 = vrot.slane %v2372_v37, 3  ;;  %v2538_v25 = vrot.slane %v2372_v37, 4 }
 0x1c8   : > { %3037 = vst [vmem:[#allocation1 + $0x6] ss:$9 sm:$0xff] %v2491_v57 }
 0x1c9   : > { %3039 = vst [vmem:[#allocation1 + $0x7] ss:$9 sm:$0xff] %v2492_v23  ;;  %v2539_v23 = vrot.slane %v2372_v37, 5 }
 0x1cc   : > { %3967 = vmatmul.msk.bf16.gmra.mxu3 %vm2307_vm4, %v2300_v41  ;;  %v2534_v41 = vrot.slane %v2370_v20, 7 }
 0x1d0   : > { %v4881_v33 = vld [vmem:[#allocation1] sm:$0xff] }
 0x1d1   : > { %3041 = vst [vmem:[#allocation1] ss:$9 sm:$0xff] %v2357_v17  ;;  %v2540_v17 = vrot.slane %v2372_v37, 6 }
 0x1d2   : > { %3042 = vst [vmem:[#allocation1 + $0x1] ss:$9 sm:$0xff] %v2493_v52  ;;  %v2375_v52 = vpop.f32.mrf.mxu0 }
 0x1d3   : > { %3043 = vst [vmem:[#allocation1 + $0x2] ss:$9 sm:$0xff] %v2494_v38  ;;  %v2541_v38 = vrot.slane %v2372_v37, 7 }
 0x1d4   : > { %3044 = vst [vmem:[#allocation1 + $0x3] ss:$9 sm:$0xff] %v2495_v19  ;;  %v2542_v19 = vrot.slane %v2375_v52, 1 }
 0x1d5   : > { %3045 = vst [vmem:[#allocation1 + $0x4] ss:$9 sm:$0xff] %v2496_v42  ;;  %v2543_v42 = vrot.slane %v2375_v52, 2 }
 0x1d6   : > { %3046 = vst [vmem:[#allocation1 + $0x5] ss:$9 sm:$0xff] %v2497_v35  ;;  %v2544_v35 = vrot.slane %v2375_v52, 3 }
 0x1d7   : > { %3047 = vst [vmem:[#allocation1 + $0x6] ss:$9 sm:$0xff] %v2498_v43 }
 0x1d8   : > { %3048 = vst [vmem:[#allocation1 + $0x7] ss:$9 sm:$0xff] %v2499_v18  ;;  %v2545_v18 = vrot.slane %v2375_v52, 4 }
 0x1df   : > { %v4883_v0 = vld [vmem:[#allocation1] sm:$0xff] }
 0x1e0   : > { %3050 = vst [vmem:[#allocation1] ss:$9 sm:$0xff] %v2360_v31  ;;  %v2546_v31 = vrot.slane %v2375_v52, 5 }
 0x1e7   : > { %v4885_v30 = vld [vmem:[#allocation1] sm:$0xff] }
 0x1e8   : > { %3052 = vst [vmem:[#allocation1] ss:$9 sm:$0xff] %v2500_v56 }
 0x1e9   : > { %3053 = vst [vmem:[#allocation1 + $0x1] ss:$9 sm:$0xff] %v2501_v16  ;;  %v2547_v16 = vrot.slane %v2375_v52, 6 }
 0x1ea   : > { %3054 = vst [vmem:[#allocation1 + $0x2] ss:$9 sm:$0xff] %v2502_v26  ;;  %v2377_v26 = vpop.f32.mrf.mxu0 }
 0x1eb   : > { %3055 = vst [vmem:[#allocation1 + $0x3] ss:$9 sm:$0xff] %v2503_v59  ;;  %v2548_v59 = vrot.slane %v2375_v52, 7 }
 0x1ec   : > { %3056 = vst [vmem:[#allocation1 + $0x4] ss:$9 sm:$0xff] %v2504_v62  ;;  %v2549_v62 = vrot.slane %v2377_v26, 1 }
 0x1ed   : > { %3057 = vst [vmem:[#allocation1 + $0x5] ss:$9 sm:$0xff] %v2505_v1  ;;  %v2550_v1 = vrot.slane %v2377_v26, 2 }
 0x1ee   : > { %3058 = vst [vmem:[#allocation1 + $0x6] ss:$9 sm:$0xff] %v2506_v10  ;;  %v2551_v10 = vrot.slane %v2377_v26, 3 }
 0x1ef   : > { %3059 = vst [vmem:[#allocation1 + $0x7] ss:$9 sm:$0xff] %v2362_v36  ;;  %v2552_v36 = vrot.slane %v2377_v26, 4 }
 0x1f6   : > { %v4887_v44 = vld [vmem:[#allocation1] sm:$0xff] }
 0x1f7   : > { %3061 = vst [vmem:[#allocation1] ss:$9 sm:$0xff] %v2507_v15  ;;  %v2553_v15 = vrot.slane %v2377_v26, 5 }
 0x1f8   : > { %3062 = vst [vmem:[#allocation1 + $0x1] ss:$9 sm:$0xff] %v2508_v28 }
 0x1f9   : > { %3063 = vst [vmem:[#allocation1 + $0x2] ss:$9 sm:$0xff] %v2509_v61  ;;  %v2380_v61 = vpop.f32.mrf.mxu1 }
 0x1fa   : > { %3064 = vst [vmem:[#allocation1 + $0x3] ss:$9 sm:$0xff] %v2510_v50  ;;  %v2554_v50 = vrot.slane %v2377_v26, 6 }
 0x1fb   : > { %3065 = vst [vmem:[#allocation1 + $0x4] ss:$9 sm:$0xff] %v2511_v8  ;;  %v2555_v8 = vrot.slane %v2377_v26, 7 }
 0x1fc   : > { %3066 = vst [vmem:[#allocation1 + $0x5] ss:$9 sm:$0xff] %v2512_v39  ;;  %v2556_v39 = vrot.slane %v2380_v61, 1 }
 0x1fd   : > { %3067 = vst [vmem:[#allocation1 + $0x6] ss:$9 sm:$0xff] %v2513_v2  ;;  %v2557_v2 = vrot.slane %v2380_v61, 2 }
 0x1fe   : > { %3068 = vst [vmem:[#allocation1 + $0x7] ss:$9 sm:$0xff] %v2365_v22  ;;  %v2558_v22 = vrot.slane %v2380_v61, 3 }
 0x205   : > { %v4889_v46 = vld [vmem:[#allocation1] sm:$0xff] }
 0x206   : > { %3070 = vst [vmem:[#allocation1] ss:$9 sm:$0xff] %v2514_v48  ;;  %v2559_v48 = vrot.slane %v2380_v61, 4 }
 0x20d   : > { %v4891_v11 = vld [vmem:[#allocation1] sm:$0xff] }
 0x20e   : > { %3072 = vst [vmem:[#allocation1] ss:$9 sm:$0xff] %v2515_v58 }
 0x20f   : > { %3073 = vst [vmem:[#allocation1 + $0x1] ss:$9 sm:$0xff] %v2516_v29  ;;  %v2560_v29 = vrot.slane %v2380_v61, 5 }
 0x210   : > { %3074 = vst [vmem:[#allocation1 + $0x2] ss:$9 sm:$0xff] %v2517_v12  ;;  %v2561_v12 = vrot.slane %v2380_v61, 6 }
 0x211   : > { %3075 = vst [vmem:[#allocation1 + $0x3] ss:$9 sm:$0xff] %v2518_v47  ;;  %v2382_v47 = vpop.f32.mrf.mxu1 }
 0x212   : > { %3076 = vst [vmem:[#allocation1 + $0x4] ss:$9 sm:$0xff] %v2519_v63 }
 0x213   : > { %3077 = vst [vmem:[#allocation1 + $0x5] ss:$9 sm:$0xff] %v2520_v54  ;;  %v2563_v54 = vrot.slane %v2382_v47, 1 }
 0x214   : > { %3078 = vst [vmem:[#allocation1 + $0x6] ss:$9 sm:$0xff] %v2367_v45  ;;  %v2562_v45 = vrot.slane %v2380_v61, 7 }
 0x215   : > { %3079 = vst [vmem:[#allocation1 + $0x7] ss:$9 sm:$0xff] %v2521_v14  ;;  %v2564_v14 = vrot.slane %v2382_v47, 2 }
 0x21c   : > { %v4893_v5 = vld [vmem:[#allocation1] sm:$0xff] }
 0x21d   : > { %3081 = vst [vmem:[#allocation1] ss:$9 sm:$0xff] %v2522_v9  ;;  %v2565_v9 = vrot.slane %v2382_v47, 3 }
 0x21e   : > { %3082 = vst [vmem:[#allocation1 + $0x1] ss:$9 sm:$0xff] %v2523_v40  ;;  %v2566_v40 = vrot.slane %v2382_v47, 4 }
 0x21f   : > { %3083 = vst [vmem:[#allocation1 + $0x2] ss:$9 sm:$0xff] %v2524_v51  ;;  %v2567_v51 = vrot.slane %v2382_v47, 5 }
 0x220   : > { %3084 = vst [vmem:[#allocation1 + $0x3] ss:$9 sm:$0xff] %v2525_v21  ;;  %v2568_v21 = vrot.slane %v2382_v47, 6 }
 0x221   : > { %3085 = vst [vmem:[#allocation1 + $0x4] ss:$9 sm:$0xff] %v2526_v7  ;;  %v2385_v7 = vpop.f32.mrf.mxu1 }
 0x222   : > { %3086 = vst [vmem:[#allocation1 + $0x5] ss:$9 sm:$0xff] %v2527_v53  ;;  %v2569_v53 = vrot.slane %v2382_v47, 7 }
 0x223   : > { %3087 = vst [vmem:[#allocation1 + $0x6] ss:$9 sm:$0xff] %v2370_v20 }
 0x224   : > { %3088 = vst [vmem:[#allocation1 + $0x7] ss:$9 sm:$0xff] %v2528_v55  ;;  %v2570_v55 = vrot.slane %v2385_v7, 1 }
 0x22b   : > { %v4895_v49 = vld [vmem:[#allocation1] sm:$0xff] }
 0x22c   : > { %3090 = vst [vmem:[#allocation1] ss:$9 sm:$0xff] %v2529_v4  ;;  %v2571_v4 = vrot.slane %v2385_v7, 2 }
 0x233   : > { %v4897_v32 = vld [vmem:[#allocation1] sm:$0xff] }
 0x234   : > { %3092 = vst [vmem:[#allocation1] ss:$9 sm:$0xff] %v2530_v60  ;;  %v2572_v60 = vrot.slane %v2385_v7, 3 }
 0x235   : > { %3093 = vst [vmem:[#allocation1 + $0x1] ss:$9 sm:$0xff] %v2531_v6  ;;  %v2573_v6 = vrot.slane %v2385_v7, 4 }
 0x236   : > { %3094 = vst [vmem:[#allocation1 + $0x2] ss:$9 sm:$0xff] %v2532_v3  ;;  %v2574_v3 = vrot.slane %v2385_v7, 5 }
 0x237   : > { %3095 = vst [vmem:[#allocation1 + $0x3] ss:$9 sm:$0xff] %v2533_v24 }
 0x238   : > { %3096 = vst [vmem:[#allocation1 + $0x4] ss:$9 sm:$0xff] %v2534_v41  ;;  %v2387_v41 = vpop.f32.mrf.mxu1 }
 0x239   : > { %3097 = vst [vmem:[#allocation1 + $0x5] ss:$9 sm:$0xff] %v2372_v37  ;;  %v2575_v37 = vrot.slane %v2385_v7, 6 }
 0x23a   : > { %3098 = vst [vmem:[#allocation1 + $0x6] ss:$9 sm:$0xff] %v2535_v27  ;;  %v2576_v27 = vrot.slane %v2385_v7, 7 }
 0x23b   : > { %3099 = vst [vmem:[#allocation1 + $0x7] ss:$9 sm:$0xff] %v2536_v34 }
 0x242   : > { %v4899_v57 = vld [vmem:[#allocation1] sm:$0xff] }
 0x243   : > { %3101 = vst [vmem:[#allocation1] ss:$9 sm:$0xff] %v2537_v13  ;;  %v2577_v13 = vrot.slane %v2387_v41, 1 }
 0x244   : > { %3102 = vst [vmem:[#allocation1 + $0x1] ss:$9 sm:$0xff] %v2538_v25  ;;  %v2578_v25 = vrot.slane %v2387_v41, 2 }
 0x245   : > { %3103 = vst [vmem:[#allocation1 + $0x2] ss:$9 sm:$0xff] %v2539_v23  ;;  %v2579_v23 = vrot.slane %v2387_v41, 3 }
 0x246   : > { %3104 = vst [vmem:[#allocation1 + $0x3] ss:$9 sm:$0xff] %v2540_v17  ;;  %v2580_v17 = vrot.slane %v2387_v41, 4 }
 0x247   : > { %3105 = vst [vmem:[#allocation1 + $0x4] ss:$9 sm:$0xff] %v2541_v38  ;;  %v2582_v38 = vrot.slane %v2387_v41, 6 }
 0x248   : > { %3106 = vst [vmem:[#allocation1 + $0x5] ss:$9 sm:$0xff] %v2375_v52  ;;  %v2581_v52 = vrot.slane %v2387_v41, 5 }
 0x249   : > { %3107 = vst [vmem:[#allocation1 + $0x6] ss:$9 sm:$0xff] %v2542_v19  ;;  %v2390_v19 = vpop.f32.mrf.mxu1 }
 0x24a   : > { %3108 = vst [vmem:[#allocation1 + $0x7] ss:$9 sm:$0xff] %v2543_v42  ;;  %v2583_v42 = vrot.slane %v2387_v41, 7 }
 0x251   : > { %v4901_v43 = vld [vmem:[#allocation1] sm:$0xff] }
 0x252   : > { %3110 = vst [vmem:[#allocation1] ss:$9 sm:$0xff] %v2544_v35 }
 0x259   : > { %v4903_v56 = vld [vmem:[#allocation1] sm:$0xff] }
 0x25a   : > { %3112 = vst [vmem:[#allocation1] ss:$9 sm:$0xff] %v2545_v18  ;;  %v2584_v18 = vrot.slane %v2390_v19, 1 }
 0x25b   : > { %3113 = vst [vmem:[#allocation1 + $0x1] ss:$9 sm:$0xff] %v2546_v31  ;;  %v2585_v31 = vrot.slane %v2390_v19, 2 }
 0x25c   : > { %3114 = vst [vmem:[#allocation1 + $0x2] ss:$9 sm:$0xff] %v2547_v16  ;;  %v2586_v16 = vrot.slane %v2390_v19, 3 }
 0x25d   : > { %3115 = vst [vmem:[#allocation1 + $0x3] ss:$9 sm:$0xff] %v2548_v59  ;;  %v2588_v59 = vrot.slane %v2390_v19, 5 }
 0x25e   : > { %3116 = vst [vmem:[#allocation1 + $0x4] ss:$9 sm:$0xff] %v2377_v26  ;;  %v2587_v26 = vrot.slane %v2390_v19, 4 }
 0x25f   : > { %3117 = vst [vmem:[#allocation1 + $0x5] ss:$9 sm:$0xff] %v2549_v62  ;;  %v2589_v62 = vrot.slane %v2390_v19, 6 }
 0x260   : > { %3118 = vst [vmem:[#allocation1 + $0x6] ss:$9 sm:$0xff] %v2550_v1 }
 0x261   : > { %3119 = vst [vmem:[#allocation1 + $0x7] ss:$9 sm:$0xff] %v2551_v10  ;;  %v2392_v10 = vpop.f32.mrf.mxu1 }
 0x268   : > { %v4905_v28 = vld [vmem:[#allocation1] sm:$0xff] }
 0x269   : > { %3121 = vst [vmem:[#allocation1] ss:$9 sm:$0xff] %v2552_v36  ;;  %v2590_v36 = vrot.slane %v2390_v19, 7 }
 0x26a   : > { %3122 = vst [vmem:[#allocation1 + $0x1] ss:$9 sm:$0xff] %v2553_v15 }
 0x26b   : > { %3123 = vst [vmem:[#allocation1 + $0x2] ss:$9 sm:$0xff] %v2554_v50  ;;  %v2592_v50 = vrot.slane %v2392_v10, 2 }
 0x26c   : > { %3124 = vst [vmem:[#allocation1 + $0x3] ss:$9 sm:$0xff] %v2555_v8  ;;  %v2593_v8 = vrot.slane %v2392_v10, 3 }
 0x26d   : > { %3125 = vst [vmem:[#allocation1 + $0x4] ss:$9 sm:$0xff] %v2380_v61  ;;  %v2591_v61 = vrot.slane %v2392_v10, 1 }
 0x26e   : > { %3126 = vst [vmem:[#allocation1 + $0x5] ss:$9 sm:$0xff] %v2556_v39  ;;  %v2594_v39 = vrot.slane %v2392_v10, 4 }
 0x26f   : > { %3127 = vst [vmem:[#allocation1 + $0x6] ss:$9 sm:$0xff] %v2557_v2  ;;  %v2595_v2 = vrot.slane %v2392_v10, 5 }
 0x270   : > { %3128 = vst [vmem:[#allocation1 + $0x7] ss:$9 sm:$0xff] %v2558_v22  ;;  %v2596_v22 = vrot.slane %v2392_v10, 6 }
 0x277   : > { %v4907_v58 = vld [vmem:[#allocation1] sm:$0xff] }
 0x278   : > { %3130 = vst [vmem:[#allocation1] ss:$9 sm:$0xff] %v2559_v48  ;;  %v2395_v48 = vpop.f32.mrf.mxu1 }
 0x27f   : > { %v4909_v63 = vld [vmem:[#allocation1] sm:$0xff] }
 0x280   : > { %3132 = vst [vmem:[#allocation1] ss:$9 sm:$0xff] %v2560_v29  ;;  %v2597_v29 = vrot.slane %v2392_v10, 7 }
 0x281   : > { %3133 = vst [vmem:[#allocation1 + $0x1] ss:$9 sm:$0xff] %v2561_v12 }
 0x282   : > { %3134 = vst [vmem:[#allocation1 + $0x2] ss:$9 sm:$0xff] %v2562_v45  ;;  %v2599_v45 = vrot.slane %v2395_v48, 2 }
 0x283   : > { %3135 = vst [vmem:[#allocation1 + $0x3] ss:$9 sm:$0xff] %v2382_v47  ;;  %v2598_v47 = vrot.slane %v2395_v48, 1 }
 0x284   : > { %3136 = vst [vmem:[#allocation1 + $0x4] ss:$9 sm:$0xff] %v2563_v54  ;;  %v2600_v54 = vrot.slane %v2395_v48, 3 }
 0x285   : > { %3137 = vst [vmem:[#allocation1 + $0x5] ss:$9 sm:$0xff] %v2564_v14  ;;  %v2601_v14 = vrot.slane %v2395_v48, 4 }
 0x286   : > { %3138 = vst [vmem:[#allocation1 + $0x6] ss:$9 sm:$0xff] %v2565_v9  ;;  %v2602_v9 = vrot.slane %v2395_v48, 5 }
 0x287   : > { %3139 = vst [vmem:[#allocation1 + $0x7] ss:$9 sm:$0xff] %v2566_v40  ;;  %v2603_v40 = vrot.slane %v2395_v48, 6 }
 0x28e   : > { %v4911_v20 = vld [vmem:[#allocation1] sm:$0xff] }
 0x28f   : > { %3141 = vst [vmem:[#allocation1] ss:$9 sm:$0xff] %v2567_v51  ;;  %v2604_v51 = vrot.slane %v2395_v48, 7 }
 0x290   : > { %3142 = vst [vmem:[#allocation1 + $0x1] ss:$9 sm:$0xff] %v2568_v21 }
 0x291   : > { %3143 = vst [vmem:[#allocation1 + $0x2] ss:$9 sm:$0xff] %v2569_v53  ;;  %v4927_v53 = vpop.f32.mrf.mxu3 }
 0x292   : > { %3144 = vst [vmem:[#allocation1 + $0x3] ss:$9 sm:$0xff] %v2385_v7  ;;  %v2397_v7 = vpop.f32.mrf.mxu1 }
 0x293   : > { %3145 = vst [vmem:[#allocation1 + $0x4] ss:$9 sm:$0xff] %v2570_v55 }
 0x294   : > { %3146 = vst [vmem:[#allocation1 + $0x5] ss:$9 sm:$0xff] %v2571_v4  ;;  %v2605_v4 = vrot.slane %v2397_v7, 1 }
 0x295   : > { %3147 = vst [vmem:[#allocation1 + $0x6] ss:$9 sm:$0xff] %v2572_v60  ;;  %v2606_v60 = vrot.slane %v2397_v7, 2 }
 0x296   : > { %3148 = vst [vmem:[#allocation1 + $0x7] ss:$9 sm:$0xff] %v2573_v6  ;;  %v2607_v6 = vrot.slane %v2397_v7, 3 }
 0x29d   : > { %v4913_v24 = vld [vmem:[#allocation1] sm:$0xff] }
 0x29e   : > { %3150 = vst [vmem:[#allocation1] ss:$9 sm:$0xff] %v2574_v3  ;;  %v2608_v3 = vrot.slane %v2397_v7, 4 }
 0x2a5   : > { %v4915_v34 = vld [vmem:[#allocation1] sm:$0xff] }
 0x2a6   : > { %3152 = vst [vmem:[#allocation1] ss:$9 sm:$0xff] %v2575_v37  ;;  %v2609_v37 = vrot.slane %v2397_v7, 5 }
 0x2a7   : > { %3153 = vst [vmem:[#allocation1 + $0x1] ss:$9 sm:$0xff] %v2576_v27  ;;  %v2611_v27 = vrot.slane %v2397_v7, 7 }
 0x2a8   : > { %3154 = vst [vmem:[#allocation1 + $0x2] ss:$9 sm:$0xff] %v2387_v41  ;;  %v2610_v41 = vrot.slane %v2397_v7, 6 }
 0x2a9   : > { %3155 = vst [vmem:[#allocation1 + $0x3] ss:$9 sm:$0xff] %v2577_v13  ;;  %v4931_v13 = vpop.f32.mrf.mxu3 }
 0x2aa   : > { %3156 = vst [vmem:[#allocation1 + $0x4] ss:$9 sm:$0xff] %v2578_v25  ;;  %v2400_v25 = vpop.f32.mrf.mxu1 }
 0x2ab   : > { %3157 = vst [vmem:[#allocation1 + $0x5] ss:$9 sm:$0xff] %v2579_v23 }
 0x2ac   : > { %3158 = vst [vmem:[#allocation1 + $0x6] ss:$9 sm:$0xff] %v2580_v17  ;;  %v2612_v17 = vrot.slane %v2400_v25, 1 }
 0x2ad   : > { %3159 = vst [vmem:[#allocation1 + $0x7] ss:$9 sm:$0xff] %v2581_v52  ;;  %v2613_v52 = vrot.slane %v2400_v25, 2 }
 0x2b4   : > { %v4917_v35 = vld [vmem:[#allocation1] sm:$0xff] }
 0x2b5   : > { %3161 = vst [vmem:[#allocation1] ss:$9 sm:$0xff] %v2582_v38  ;;  %v2614_v38 = vrot.slane %v2400_v25, 3 }
 0x2b6   : > { %3162 = vst [vmem:[#allocation1 + $0x1] ss:$9 sm:$0xff] %v2583_v42  ;;  %v2615_v42 = vrot.slane %v2400_v25, 4 }
 0x2b7   : > { %3163 = vst [vmem:[#allocation1 + $0x2] ss:$9 sm:$0xff] %v2390_v19  ;;  %v4935_v19 = vpop.f32.mrf.mxu3 }
 0x2b8   : > { %3164 = vst [vmem:[#allocation1 + $0x3] ss:$9 sm:$0xff] %v2584_v18  ;;  %v2616_v18 = vrot.slane %v2400_v25, 5 }
 0x2b9   : > { %3165 = vst [vmem:[#allocation1 + $0x4] ss:$9 sm:$0xff] %v2585_v31  ;;  %v2617_v31 = vrot.slane %v2400_v25, 6 }
 0x2ba   : > { %3166 = vst [vmem:[#allocation1 + $0x5] ss:$9 sm:$0xff] %v2586_v16  ;;  %v2618_v16 = vrot.slane %v2400_v25, 7 }
 0x2bb   : > { %3167 = vst [vmem:[#allocation1 + $0x6] ss:$9 sm:$0xff] %v2587_v26 }
 0x2bc   : > { %3168 = vst [vmem:[#allocation1 + $0x7] ss:$9 sm:$0xff] %v2588_v59 }
 0x2bf   : > { %v4937_v26 = vpop.f32.mrf.mxu3 }
 0x2c3   : > { %v4919_v1 = vld [vmem:[#allocation1] sm:$0xff] }
 0x2c4   : > { %3170 = vst [vmem:[#allocation1] ss:$9 sm:$0xff] %v2589_v62  ;;  %v2402_v62 = vpop.f32.mrf.mxu1 }
 0x2cb   : > { %v4921_v15 = vld [vmem:[#allocation1] sm:$0xff] }
 0x2cc   : > { %3172 = vst [vmem:[#allocation1] ss:$9 sm:$0xff] %v2590_v36  ;;  %v4941_v36 = vpop.f32.mrf.mxu3 }
 0x2cd   : > { %3173 = vst [vmem:[#allocation1 + $0x1] ss:$9 sm:$0xff] %v2392_v10  ;;  %v2619_v10 = vrot.slane %v2402_v62, 1 }
 0x2ce   : > { %3174 = vst [vmem:[#allocation1 + $0x2] ss:$9 sm:$0xff] %v2591_v61  ;;  %v2620_v61 = vrot.slane %v2402_v62, 2 }
 0x2cf   : > { %3175 = vst [vmem:[#allocation1 + $0x3] ss:$9 sm:$0xff] %v2592_v50 }
 0x2d0   : > { %3176 = vst [vmem:[#allocation1 + $0x4] ss:$9 sm:$0xff] %v2593_v8  ;;  %v2621_v8 = vrot.slane %v2402_v62, 3 }
 0x2d1   : > { %3177 = vst [vmem:[#allocation1 + $0x5] ss:$9 sm:$0xff] %v2594_v39  ;;  %v2622_v39 = vrot.slane %v2402_v62, 4 }
 0x2d2   : > { %3178 = vst [vmem:[#allocation1 + $0x6] ss:$9 sm:$0xff] %v2595_v2  ;;  %v2623_v2 = vrot.slane %v2402_v62, 5 }
 0x2d3   : > { %3179 = vst [vmem:[#allocation1 + $0x7] ss:$9 sm:$0xff] %v2596_v22  ;;  %v2624_v22 = vrot.slane %v2402_v62, 6 }
 0x2da   : > { %v4923_v12 = vld [vmem:[#allocation1] sm:$0xff] }
 0x2db   : > { %3181 = vst [vmem:[#allocation1] ss:$9 sm:$0xff] %v2597_v29  ;;  %v2405_v29 = vpop.f32.mrf.mxu2 }
 0x2dc   : > { %3182 = vst [vmem:[#allocation1 + $0x1] ss:$9 sm:$0xff] %v2395_v48  ;;  %v2625_v48 = vrot.slane %v2402_v62, 7 }
 0x2dd   : > { %3183 = vst [vmem:[#allocation1 + $0x2] ss:$9 sm:$0xff] %v2598_v47  ;;  %v4945_v47 = vpop.f32.mrf.mxu3 }
 0x2de   : > { %3184 = vst [vmem:[#allocation1 + $0x3] ss:$9 sm:$0xff] %v2599_v45  ;;  %v2626_v45 = vrot.slane %v2405_v29, 1 }
 0x2df   : > { %3185 = vst [vmem:[#allocation1 + $0x4] ss:$9 sm:$0xff] %v2600_v54  ;;  %v2627_v54 = vrot.slane %v2405_v29, 2 }
 0x2e0   : > { %3186 = vst [vmem:[#allocation1 + $0x5] ss:$9 sm:$0xff] %v2601_v14 }
 0x2e1   : > { %3187 = vst [vmem:[#allocation1 + $0x6] ss:$9 sm:$0xff] %v2602_v9  ;;  %v2628_v9 = vrot.slane %v2405_v29, 3 }
 0x2e2   : > { %3188 = vst [vmem:[#allocation1 + $0x7] ss:$9 sm:$0xff] %v2603_v40  ;;  %v2629_v40 = vrot.slane %v2405_v29, 4 }
 0x2e9   : > { %v4925_v21 = vld [vmem:[#allocation1] sm:$0xff] }
 0x2ea   : > { %3190 = vst [vmem:[#allocation1] ss:$9 sm:$0xff] %v2604_v51  ;;  %v2630_v51 = vrot.slane %v2405_v29, 5 }
 0x2f1   : > { %v4929_v55 = vld [vmem:[#allocation1] sm:$0xff] }
 0x2f2   : > { %3192 = vst [vmem:[#allocation1] ss:$9 sm:$0xff] %v2397_v7  ;;  %v2631_v7 = vrot.slane %v2405_v29, 6 }
 0x2f3   : > { %3193 = vst [vmem:[#allocation1 + $0x1] ss:$9 sm:$0xff] %v2605_v4  ;;  %v4949_v4 = vpop.f32.mrf.mxu3 }
 0x2f4   : > { %3194 = vst [vmem:[#allocation1 + $0x2] ss:$9 sm:$0xff] %v2606_v60  ;;  %v2632_v60 = vrot.slane %v2405_v29, 7 }
 0x2f5   : > { %3195 = vst [vmem:[#allocation1 + $0x3] ss:$9 sm:$0xff] %v2607_v6  ;;  %v2407_v6 = vpop.f32.mrf.mxu2 }
 0x2f6   : > { %3196 = vst [vmem:[#allocation1 + $0x4] ss:$9 sm:$0xff] %v2608_v3 }
 0x2f7   : > { %3197 = vst [vmem:[#allocation1 + $0x5] ss:$9 sm:$0xff] %v2609_v37  ;;  %v2633_v37 = vrot.slane %v2407_v6, 1 }
 0x2f8   : > { %3198 = vst [vmem:[#allocation1 + $0x6] ss:$9 sm:$0xff] %v2610_v41 }
 0x2f9   : > { %3199 = vst [vmem:[#allocation1 + $0x7] ss:$9 sm:$0xff] %v2611_v27  ;;  %v2634_v27 = vrot.slane %v2407_v6, 2 }
 0x2fa   : > { %6340 = vst [vmem:[#allocation2_spill] sm:$0xff] %v4949_v4 }
 0x2fb   : > { %v2447_v3 = vpop.f32.mrf.mxu3 }
 0x300   : > { %v4933_v23 = vld [vmem:[#allocation1] sm:$0xff] }
 0x301   : > { %3201 = vst [vmem:[#allocation1] ss:$9 sm:$0xff] %v2400_v25  ;;  %v2635_v25 = vrot.slane %v2407_v6, 3 }
 0x302   : > { %3202 = vst [vmem:[#allocation1 + $0x1] ss:$9 sm:$0xff] %v2612_v17 }
 0x303   : > { %3203 = vst [vmem:[#allocation1 + $0x2] ss:$9 sm:$0xff] %v2613_v52  ;;  %v2636_v52 = vrot.slane %v2407_v6, 4 }
 0x304   : > { %3204 = vst [vmem:[#allocation1 + $0x3] ss:$9 sm:$0xff] %v2614_v38  ;;  %v2637_v38 = vrot.slane %v2407_v6, 5 }
 0x305   : > { %3205 = vst [vmem:[#allocation1 + $0x4] ss:$9 sm:$0xff] %v2615_v42  ;;  %v2638_v42 = vrot.slane %v2407_v6, 6 }
 0x306   : > { %3206 = vst [vmem:[#allocation1 + $0x5] ss:$9 sm:$0xff] %v2616_v18  ;;  %v2410_v18 = vpop.f32.mrf.mxu2 }
 0x307   : > { %3207 = vst [vmem:[#allocation1 + $0x6] ss:$9 sm:$0xff] %v2617_v31  ;;  %v2639_v31 = vrot.slane %v2407_v6, 7 }
 0x308   : > { %3208 = vst [vmem:[#allocation1 + $0x7] ss:$9 sm:$0xff] %v2618_v16  ;;  %v2640_v16 = vrot.slane %v2410_v18, 1 }
 0x30f   : > { %v4939_v59 = vld [vmem:[#allocation1] sm:$0xff] }
 0x310   : > { %3210 = vst [vmem:[#allocation1] ss:$9 sm:$0xff] %v2402_v62  ;;  %v2641_v62 = vrot.slane %v2410_v18, 2 }
 0x317   : > { %v4943_v50 = vld [vmem:[#allocation1] sm:$0xff] }
 0x318   : > { %3212 = vst [vmem:[#allocation1] ss:$9 sm:$0xff] %v2619_v10  ;;  %v2642_v10 = vrot.slane %v2410_v18, 3 }
 0x319   : > { %3213 = vst [vmem:[#allocation1 + $0x1] ss:$9 sm:$0xff] %v2620_v61 }
 0x31a   : > { %3214 = vst [vmem:[#allocation1 + $0x2] ss:$9 sm:$0xff] %v2621_v8  ;;  %v2643_v8 = vrot.slane %v2410_v18, 4 }
 0x31b   : > { %3215 = vst [vmem:[#allocation1 + $0x3] ss:$9 sm:$0xff] %v2622_v39  ;;  %v2644_v39 = vrot.slane %v2410_v18, 5 }
 0x31c   : > { %3216 = vst [vmem:[#allocation1 + $0x4] ss:$9 sm:$0xff] %v2623_v2  ;;  %v2645_v2 = vrot.slane %v2410_v18, 6 }
 0x31d   : > { %3217 = vst [vmem:[#allocation1 + $0x5] ss:$9 sm:$0xff] %v2624_v22  ;;  %v2412_v22 = vpop.f32.mrf.mxu2 }
 0x31e   : > { %3218 = vst [vmem:[#allocation1 + $0x6] ss:$9 sm:$0xff] %v2625_v48  ;;  %v2646_v48 = vrot.slane %v2410_v18, 7  ;;  %v2653_v3 = vrot.slane %v2412_v22, 7 }
 0x31f   : > { %3219 = vst [vmem:[#allocation1 + $0x7] ss:$9 sm:$0xff] %v2405_v29  ;;  %v2647_v29 = vrot.slane %v2412_v22, 1 }
 0x326   : > { %v4947_v14 = vld [vmem:[#allocation1] sm:$0xff] }
 0x327   : > { %3221 = vst [vmem:[#allocation1] ss:$9 sm:$0xff] %v2626_v45  ;;  %v2648_v45 = vrot.slane %v2412_v22, 2 }
 0x328   : > { %3222 = vst [vmem:[#allocation1 + $0x1] ss:$9 sm:$0xff] %v2627_v54 }
 0x329   : > { %3223 = vst [vmem:[#allocation1 + $0x2] ss:$9 sm:$0xff] %v2628_v9  ;;  %v2649_v9 = vrot.slane %v2412_v22, 3 }
 0x32a   : > { %3224 = vst [vmem:[#allocation1 + $0x3] ss:$9 sm:$0xff] %v2629_v40  ;;  %v2650_v40 = vrot.slane %v2412_v22, 4 }
 0x32b   : > { %3225 = vst [vmem:[#allocation1 + $0x4] ss:$9 sm:$0xff] %v2630_v51 }
 0x32c   : > { %3226 = vst [vmem:[#allocation1 + $0x5] ss:$9 sm:$0xff] %v2631_v7  ;;  %v2651_v7 = vrot.slane %v2412_v22, 5 }
 0x32d   : > { %3227 = vst [vmem:[#allocation1 + $0x6] ss:$9 sm:$0xff] %v2632_v60  ;;  %v2652_v60 = vrot.slane %v2412_v22, 6 }
 0x32e   : > { %3228 = vst [vmem:[#allocation1 + $0x7] ss:$9 sm:$0xff] %v2407_v6  ;;  %v2415_v6 = vpop.f32.mrf.mxu2 }
 0x335   : > { %v4951_v41 = vld [vmem:[#allocation1] sm:$0xff] }
 0x336   : > { %6341 = vst [vmem:[#allocation3_spill] sm:$0xff] %v4951_v41 }
 0x337   : > { %3230 = vst [vmem:[#allocation1] ss:$9 sm:$0xff] %v2633_v37  ;;  %v2654_v37 = vrot.slane %v2415_v6, 1 }
 0x33e   : > { %v4953_v17 = vld [vmem:[#allocation1] sm:$0xff] }
 0x33f   : > { %6342 = vst [vmem:[#allocation4_spill] sm:$0xff] %v4953_v17 }
 0x340   : > { %3232 = vst [vmem:[#allocation1] ss:$9 sm:$0xff] %v2634_v27  ;;  %v2655_v27 = vrot.slane %v2415_v6, 2 }
 0x341   : > { %3233 = vst [vmem:[#allocation1 + $0x1] ss:$9 sm:$0xff] %v2635_v25  ;;  %v2656_v25 = vrot.slane %v2415_v6, 3 }
 0x342   : > { %3234 = vst [vmem:[#allocation1 + $0x2] ss:$9 sm:$0xff] %v2636_v52  ;;  %v2657_v52 = vrot.slane %v2415_v6, 4 }
 0x343   : > { %3235 = vst [vmem:[#allocation1 + $0x3] ss:$9 sm:$0xff] %v2637_v38 }
 0x344   : > { %3236 = vst [vmem:[#allocation1 + $0x4] ss:$9 sm:$0xff] %v2638_v42  ;;  %v2658_v42 = vrot.slane %v2415_v6, 5 }
 0x345   : > { %3237 = vst [vmem:[#allocation1 + $0x5] ss:$9 sm:$0xff] %v2639_v31  ;;  %v2417_v31 = vpop.f32.mrf.mxu2 }
 0x346   : > { %3238 = vst [vmem:[#allocation1 + $0x6] ss:$9 sm:$0xff] %v2410_v18  ;;  %v2659_v18 = vrot.slane %v2415_v6, 6 }
 0x347   : > { %3239 = vst [vmem:[#allocation1 + $0x7] ss:$9 sm:$0xff] %v2640_v16  ;;  %v2660_v16 = vrot.slane %v2415_v6, 7 }
 0x34e   : > { %v4955_v61 = vld [vmem:[#allocation1] sm:$0xff] }
 0x34f   : > { %6343 = vst [vmem:[#allocation5_spill] sm:$0xff] %v4955_v61 }
 0x350   : > { %3241 = vst [vmem:[#allocation1] ss:$9 sm:$0xff] %v2641_v62  ;;  %v2661_v62 = vrot.slane %v2417_v31, 1 }
 0x351   : > { %3242 = vst [vmem:[#allocation1 + $0x1] ss:$9 sm:$0xff] %v2642_v10  ;;  %v2662_v10 = vrot.slane %v2417_v31, 2 }
 0x352   : > { %3243 = vst [vmem:[#allocation1 + $0x2] ss:$9 sm:$0xff] %v2643_v8  ;;  %v2663_v8 = vrot.slane %v2417_v31, 3 }
 0x353   : > { %3244 = vst [vmem:[#allocation1 + $0x3] ss:$9 sm:$0xff] %v2644_v39 }
 0x354   : > { %3245 = vst [vmem:[#allocation1 + $0x4] ss:$9 sm:$0xff] %v2645_v2  ;;  %v2664_v2 = vrot.slane %v2417_v31, 4 }
 0x355   : > { %3246 = vst [vmem:[#allocation1 + $0x5] ss:$9 sm:$0xff] %v2646_v48 }
 0x356   : > { %3247 = vst [vmem:[#allocation1 + $0x6] ss:$9 sm:$0xff] %v2412_v22  ;;  %v2665_v22 = vrot.slane %v2417_v31, 5 }
 0x357   : > { %3248 = vst [vmem:[#allocation1 + $0x7] ss:$9 sm:$0xff] %v2647_v29  ;;  %v2666_v29 = vrot.slane %v2417_v31, 6 }
 0x35e   : > { %v4957_v54 = vld [vmem:[#allocation1] sm:$0xff] }
 0x35f   : > { %6344 = vst [vmem:[#allocation6_spill] sm:$0xff] %v4957_v54 }
 0x360   : > { %3250 = vst [vmem:[#allocation1] ss:$9 sm:$0xff] %v2648_v45  ;;  %v2420_v45 = vpop.f32.mrf.mxu2 }
 0x367   : > { %v4959_v51 = vld [vmem:[#allocation1] sm:$0xff] }
 0x368   : > { %6345 = vst [vmem:[#allocation7_spill] sm:$0xff] %v4959_v51  ;;  %v2707_v51 = vrot.slane %v4931_v13, 5 }
 0x369   : > { %3252 = vst [vmem:[#allocation1] ss:$9 sm:$0xff] %v2649_v9  ;;  %v2667_v9 = vrot.slane %v2417_v31, 7 }
 0x36a   : > { %3253 = vst [vmem:[#allocation1 + $0x1] ss:$9 sm:$0xff] %v2650_v40  ;;  %v2668_v40 = vrot.slane %v2420_v45, 1 }
 0x36b   : > { %3254 = vst [vmem:[#allocation1 + $0x2] ss:$9 sm:$0xff] %v2651_v7  ;;  %v2669_v7 = vrot.slane %v2420_v45, 2 }
 0x36c   : > { %3255 = vst [vmem:[#allocation1 + $0x3] ss:$9 sm:$0xff] %v2652_v60  ;;  %v2670_v60 = vrot.slane %v2420_v45, 3 }
 0x36d   : > { %3256 = vst [vmem:[#allocation1 + $0x4] ss:$9 sm:$0xff] %v2653_v3  ;;  %v2672_v3 = vrot.slane %v2420_v45, 5 }
 0x36e   : > { %3257 = vst [vmem:[#allocation1 + $0x5] ss:$9 sm:$0xff] %v2415_v6  ;;  %v2671_v6 = vrot.slane %v2420_v45, 4 }
 0x36f   : > { %3258 = vst [vmem:[#allocation1 + $0x6] ss:$9 sm:$0xff] %v2654_v37 }
 0x370   : > { %3259 = vst [vmem:[#allocation1 + $0x7] ss:$9 sm:$0xff] %v2655_v27  ;;  %v2673_v27 = vrot.slane %v2420_v45, 6 }
 0x377   : > { %v4961_v38 = vld [vmem:[#allocation1] sm:$0xff] }
 0x378   : > { %6346 = vst [vmem:[#allocation8_spill] sm:$0xff] %v4961_v38 }
 0x379   : > { %3261 = vst [vmem:[#allocation1] ss:$9 sm:$0xff] %v2656_v25  ;;  %v2422_v25 = vpop.f32.mrf.mxu2 }
 0x37a   : > { %3262 = vst [vmem:[#allocation1 + $0x1] ss:$9 sm:$0xff] %v2657_v52  ;;  %v2674_v52 = vrot.slane %v2420_v45, 7 }
 0x37b   : > { %3263 = vst [vmem:[#allocation1 + $0x2] ss:$9 sm:$0xff] %v2658_v42  ;;  %v2675_v42 = vrot.slane %v2422_v25, 1 }
 0x37c   : > { %3264 = vst [vmem:[#allocation1 + $0x3] ss:$9 sm:$0xff] %v2659_v18  ;;  %v2676_v18 = vrot.slane %v2422_v25, 2 }
 0x37d   : > { %3265 = vst [vmem:[#allocation1 + $0x4] ss:$9 sm:$0xff] %v2660_v16  ;;  %v2678_v16 = vrot.slane %v2422_v25, 4 }
 0x37e   : > { %3266 = vst [vmem:[#allocation1 + $0x5] ss:$9 sm:$0xff] %v2417_v31  ;;  %v2677_v31 = vrot.slane %v2422_v25, 3 }
 0x37f   : > { %3267 = vst [vmem:[#allocation1 + $0x6] ss:$9 sm:$0xff] %v2661_v62 }
 0x380   : > { %3268 = vst [vmem:[#allocation1 + $0x7] ss:$9 sm:$0xff] %v2662_v10  ;;  %v2679_v10 = vrot.slane %v2422_v25, 5 }
 0x387   : > { %v4963_v39 = vld [vmem:[#allocation1] sm:$0xff] }
 0x388   : > { %6347 = vst [vmem:[#allocation9_spill] sm:$0xff] %v4963_v39  ;;  %v2706_v39 = vrot.slane %v4931_v13, 4 }
 0x389   : > { %3270 = vst [vmem:[#allocation1] ss:$9 sm:$0xff] %v2663_v8  ;;  %v2680_v8 = vrot.slane %v2422_v25, 6 }
 0x390   : > { %v4965_v48 = vld [vmem:[#allocation1] sm:$0xff] }
 0x391   : > { %6348 = vst [vmem:[#allocation10_spill] sm:$0xff] %v4965_v48 }
 0x392   : > { %3272 = vst [vmem:[#allocation1] ss:$9 sm:$0xff] %v2664_v2 }
 0x393   : > { %3273 = vst [vmem:[#allocation1 + $0x1] ss:$9 sm:$0xff] %v2665_v22  ;;  %v2425_v22 = vpop.f32.mrf.mxu2 }
 0x394   : > { %3274 = vst [vmem:[#allocation1 + $0x2] ss:$9 sm:$0xff] %v2666_v29  ;;  %v2681_v29 = vrot.slane %v2422_v25, 7 }
 0x395   : > { %3275 = vst [vmem:[#allocation1 + $0x3] ss:$9 sm:$0xff] %v2667_v9  ;;  %v2683_v9 = vrot.slane %v2425_v22, 2 }
 0x396   : > { %3276 = vst [vmem:[#allocation1 + $0x4] ss:$9 sm:$0xff] %v2420_v45  ;;  %v2682_v45 = vrot.slane %v2425_v22, 1 }
 0x397   : > { %3277 = vst [vmem:[#allocation1 + $0x5] ss:$9 sm:$0xff] %v2668_v40  ;;  %v2684_v40 = vrot.slane %v2425_v22, 3 }
 0x398   : > { %3278 = vst [vmem:[#allocation1 + $0x6] ss:$9 sm:$0xff] %v2669_v7  ;;  %v2685_v7 = vrot.slane %v2425_v22, 4 }
 0x399   : > { %3279 = vst [vmem:[#allocation1 + $0x7] ss:$9 sm:$0xff] %v2670_v60  ;;  %v2686_v60 = vrot.slane %v2425_v22, 5 }
 0x3a0   : > { %v4967_v37 = vld [vmem:[#allocation1] sm:$0xff] }
 0x3a1   : > { %6349 = vst [vmem:[#allocation11_spill] sm:$0xff] %v4967_v37  ;;  %v6383_v37 = vmov 0  }
 0x3a2   : > { %3281 = vst [vmem:[#allocation1] ss:$9 sm:$0xff] %v2671_v6  ;;  %v2687_v6 = vrot.slane %v2425_v22, 6 }
 0x3a3   : > { %3282 = vst [vmem:[#allocation1 + $0x1] ss:$9 sm:$0xff] %v2672_v3 }
 0x3a4   : > { %3283 = vst [vmem:[#allocation1 + $0x2] ss:$9 sm:$0xff] %v2673_v27  ;;  %v2427_v27 = vpop.f32.mrf.mxu2 }
 0x3a5   : > { %3284 = vst [vmem:[#allocation1 + $0x3] ss:$9 sm:$0xff] %v2674_v52  ;;  %v2688_v52 = vrot.slane %v2425_v22, 7 }
 0x3a6   : > { %3285 = vst [vmem:[#allocation1 + $0x4] ss:$9 sm:$0xff] %v2422_v25  ;;  %v4978_v25 = vld [vmem:[%s6326_s3] sm:$0x1] }
 0x3a7   : > { %3286 = vst [vmem:[#allocation1 + $0x5] ss:$9 sm:$0xff] %v2675_v42  ;;  %v2791_v42 = vlaneseq  ;;  %vm2803_vm5 = vcmp.ge.s32.totalorder %v4978_v25, 1  ;;  %vm2820_vm6 = vcmp.le.s32.totalorder %v4978_v25, 32 }
 0x3a8   : > { %3287 = vst [vmem:[#allocation1 + $0x6] ss:$9 sm:$0xff] %v2676_v18  ;;  %v2689_v18 = vrot.slane %v2427_v27, 1  ;;  %vm2837_vm7 = vmand %vm2803_vm5, %vm2820_vm6 }
 0x3a9   : > { %3288 = vst [vmem:[#allocation1 + $0x7] ss:$9 sm:$0xff] %v2677_v31  ;;  %v2690_v31 = vrot.slane %v2427_v27, 2 }
 0x3b0   : > { %v4969_v62 = vld [vmem:[#allocation1] sm:$0xff] }
 0x3b1   : > { %6350 = vst [vmem:[#allocation12_spill] sm:$0xff] %v4969_v62 }
 0x3b2   : > { %3290 = vst [vmem:[#allocation1] ss:$9 sm:$0xff] %v2678_v16  ;;  %v2691_v16 = vrot.slane %v2427_v27, 3 }
 0x3b9   : > { %v4971_v2 = vld [vmem:[#allocation1] sm:$0xff] }
 0x3ba   : > { %6351 = vst [vmem:[#allocation13_spill] sm:$0xff] %v4971_v2  ;;  %v2702_v2 = vrot.slane %v4927_v53, 7 }
 0x3bb   : > { %3292 = vst [vmem:[#allocation1] ss:$9 sm:$0xff] %v2679_v10  ;;  %v2792_v10 = vshrl.u32 %v2791_v42, 7 }
 0x3bc   : > { %3293 = vst [vmem:[#allocation1 + $0x1] ss:$9 sm:$0xff] %v2680_v8  ;;  %v2692_v8 = vrot.slane %v2427_v27, 4 }
 0x3bd   : > { %3294 = vst [vmem:[#allocation1 + $0x2] ss:$9 sm:$0xff] %v2681_v29  ;;  %v2793_v29 = vadd.s32 8, %v2792_v10 }
 0x3be   : > { %3295 = vst [vmem:[#allocation1 + $0x3] ss:$9 sm:$0xff] %v2425_v22  ;;  %v2775_v22 = vadd.s32 2, %v4978_v25 }
 0x3bf   : > { %3296 = vst [vmem:[#allocation1 + $0x4] ss:$9 sm:$0xff] %v2682_v45  ;;  %v2795_v45 = vmul.u32 2, %v2792_v10 }
 0x3c0   : > { %3297 = vst [vmem:[#allocation1 + $0x5] ss:$9 sm:$0xff] %v2683_v9  ;;  %v4055_v9 = vld [vmem:[%s6327_s4] ss:$0 sm:$0xff]  ;;  %vm2804_vm8 = vcmp.ge.s32.totalorder %v2775_v22, 1  ;;  %vm2821_vm9 = vcmp.le.s32.totalorder %v2775_v22, 32 }
 0x3c1   : > { %3298 = vst [vmem:[#allocation1 + $0x6] ss:$9 sm:$0xff] %v2684_v40  ;;  %v2794_v40 = vadd.s32 16, %v2792_v10  ;;  %vm2838_vm10 = vmand %vm2804_vm8, %vm2821_vm9  ;;  %v2699_v22 = vrot.slane %v4927_v53, 4 }
 0x3c2   : > { %3299 = vst [vmem:[#allocation1 + $0x7] ss:$9 sm:$0xff] %v2685_v7  ;;  %v6334_v7 = vmov 0  }
 0x3c3   : > { %v2858_v10 = vsel %vm2838_vm10, 1, %v6334_v7 }
 0x3c9   : > { %v4973_v3 = vld [vmem:[#allocation1] sm:$0xff] }
 0x3ca   : > { %6352 = vst [vmem:[#allocation14_spill] sm:$0xff] %v4973_v3 }
 0x3cb   : > { %3301 = vst [vmem:[#allocation1] ss:$9 sm:$0xff] %v2686_v60  ;;  %v2857_v60 = vsel %vm2837_vm7, 1, %v6334_v7 }
 0x3cc   : > { %3302 = vst [vmem:[#allocation1 + $0x1] ss:$9 sm:$0xff] %v2687_v6  ;;  %v2796_v6 = vmul.u32 2, %v2793_v29  ;;  %v2874_v42 = vperm.slane %v2857_v60, 0  ;;  %v2694_v60 = vrot.slane %v2427_v27, 6 }
 0x3cd   : > { %3303 = vst [vmem:[#allocation1 + $0x2] ss:$9 sm:$0xff] %v2688_v52  ;;  %v4987_v52 = vadd.s32 %v4055_v9, %v2795_v45  ;;  %v2875_v45 = vperm.slane %v2858_v10, 0 }
 0x3ce   : > { %3304 = vst [vmem:[#allocation1 + $0x3] ss:$9 sm:$0xff] %v2427_v27  ;;  %v4992_v4 = vadd.s32 %v4055_v9, %v2796_v6  ;;  %vm4996_vm12 = vcmp.eq.s32.totalorder %v2874_v42, 1 }
 0x3cf   : > { %3305 = vst [vmem:[#allocation1 + $0x4] ss:$9 sm:$0xff] %v2689_v18  ;;  %v2693_v18 = vrot.slane %v2427_v27, 5  ;;  %vm6331_vm11 = vcmp.ge.s32.totalorder %v4987_v52, 1  ;;  %vm6333_vm2 = vcmp.le.s32.totalorder %v4987_v52, 32  ;;  %vm5018_vm6 = vcmp.eq.s32.totalorder %v2875_v45, 1 }
 0x3d0   : > { %3306 = vst [vmem:[#allocation1 + $0x5] ss:$9 sm:$0xff] %v2690_v31  ;;  %v2776_v31 = vadd.s32 4, %v4978_v25  ;;  %vm6330_vm15 = vcmp.ge.s32.totalorder %v4992_v4, 1  ;;  %vm2914_vm0 = vmand %vm4996_vm12, %vm6331_vm11  ;;  %vm6337_vm5 = vcmp.le.s32.totalorder %v4992_v4, 32  ;;  %v2698_v45 = vrot.slane %v4927_v53, 3 }
 0x3d1   : > { %3307 = vst [vmem:[#allocation1 + $0x6] ss:$9 sm:$0xff] %v2691_v16  ;;  %v2797_v16 = vmul.u32 2, %v2794_v40  ;;  %v2777_v40 = vadd.s32 6, %v4978_v25  ;;  %vm2915_vm4 = vmand %vm4996_vm12, %vm6330_vm15 }
 0x3d2   : > { %3308 = vst [vmem:[#allocation1 + $0x7] ss:$9 sm:$0xff] %v2692_v8  ;;  %vm2805_vm13 = vcmp.ge.s32.totalorder %v2776_v31, 1  ;;  %vm2822_vm14 = vcmp.le.s32.totalorder %v2776_v31, 32  ;;  %vm5024_vm7 = vmand %vm2914_vm0, %vm6333_vm2  ;;  %v2696_v31 = vrot.slane %v4927_v53, 1 }
 0x3d3   : > { %v5000_v29 = vadd.s32 %v4055_v9, %v2797_v16  ;;  %vm2839_vm1 = vmand %vm2805_vm13, %vm2822_vm14  ;;  %v2695_v9 = vrot.slane %v2427_v27, 7  ;;  %vm2806_vm8 = vcmp.ge.s32.totalorder %v2777_v40, 1  ;;  %vm2823_vm9 = vcmp.le.s32.totalorder %v2777_v40, 32 }
 0x3d4   : > { %v2859_v42 = vsel %vm2839_vm1, 1, %v6334_v7  ;;  %v2697_v16 = vrot.slane %v4927_v53, 2  ;;  %vm5038_vm14 = vmand %vm2915_vm4, %vm6337_vm5 }
 0x3d5   : > { %vm6338_vm3 = vcmp.ge.s32.totalorder %v5000_v29, 1  ;;  %vm6332_vm13 = vcmp.le.s32.totalorder %v5000_v29, 32  ;;  %v2876_v40 = vperm.slane %v2859_v42, 0  ;;  %vm2840_vm0 = vmand %vm2806_vm8, %vm2823_vm9  ;;  %v3424_v27 = vsel %vm5038_vm14, %v4883_v0, 0.0 }
 0x3d6   : > { %vm2916_vm10 = vmand %vm4996_vm12, %vm6338_vm3  ;;  %v2860_v42 = vsel %vm2840_vm0, 1, %v6334_v7  ;;  %v3588_v3 = vmul.f32 %v3424_v27, %v3424_v27 }
 0x3d7   : > { %vm2917_vm12 = vmand %vm5018_vm6, %vm6331_vm11  ;;  %vm5065_vm9 = vcmp.eq.s32.totalorder %v2876_v40, 1  ;;  %v3423_v40 = vsel %vm5024_vm7, %v4881_v33, 0.0  ;;  %vm6339_vm7 = vcmask 261120   ;;  %v2779_v33 = vadd.s32 10, %v4978_v25 }
 0x3d8   : > { %vm5051_vm1 = vmand %vm2916_vm10, %vm6332_vm13  ;;  %v3587_v7 = vmul.f32 %v3423_v40, %v3423_v40 }
 0x3d9   : > { %v4990_v8 = vld [vmem:[#allocation1] sm:$0xff]  ;;  %vm2918_vm4 = vmand %vm5018_vm6, %vm6330_vm15 }
 0x3da   : > { %6353 = vst [vmem:[#allocation15_spill] sm:$0xff] %v4990_v8  ;;  %vm2919_vm8 = vmand %vm5018_vm6, %vm6338_vm3  ;;  %vm6371_vm6 = vcmp.le.s32.totalorder %v5000_v29, 32  ;;  %v5123_v8 = vsel %vm6339_vm7, %v3423_v40, 0.0  ;;  %v3425_v40 = vsel %vm5051_vm1, %v4885_v30, 0.0  ;;  %v2704_v30 = vrot.slane %v4931_v13, 2 }
 0x3db   : > { %3310 = vst [vmem:[#allocation1] ss:$9 sm:$0xff] %v2693_v18  ;;  %vm5071_vm10 = vmand %vm2917_vm12, %vm6333_vm2  ;;  %vm6374_vm12 = vcmp.ge.s32.totalorder %v4987_v52, 1  ;;  %vm6394_vm1 = vcmp.ge.s32.totalorder %v4987_v52, 1  ;;  %v3589_v0 = vmul.f32 %v3425_v40, %v3425_v40 }
 0x3dc   : > { %vm5077_vm13 = vmand %vm2918_vm4, %vm6337_vm5  ;;  %v3426_v10 = vsel %vm5071_vm10, %v4887_v44, 0.0  ;;  %vm2808_vm10 = vcmp.ge.s32.totalorder %v2779_v33, 1 }
 0x3dd   : > { %vm5086_vm0 = vmand %vm2919_vm8, %vm6371_vm6  ;;  %vm6377_vm8 = vcmp.ge.s32.totalorder %v4992_v4, 1 }
 0x3de   : > { %vm5094_vm2 = vmand %vm5065_vm9, %vm6374_vm12  ;;  %vm2825_vm12 = vcmp.le.s32.totalorder %v2779_v33, 32  ;;  %v3428_v18 = vsel %vm5086_vm0, %v4891_v11, 0.0  ;;  %v2705_v11 = vrot.slane %v4931_v13, 3  ;;  %v3476_v33 = vsel %vm6339_vm7, %v3426_v10, 0.0 }
 0x3df   : > { %vm5106_vm6 = vmand %vm5065_vm9, %vm6377_vm8  ;;  %vm6336_vm8 = vcmask 253952   ;;  %v3592_v38 = vmul.f32 %v3428_v18, %v3428_v18 }
 0x3e0   : > { %vm5115_vm14 = vmand %vm5065_vm9, %vm6338_vm3 }
 0x3e1   : > { %vm5183_vm0 = vmand %vm2808_vm10, %vm2825_vm12 }
 0x3e2   : > { %v5010_v6 = vld [vmem:[#allocation1] sm:$0xff] }
 0x3e3   : > { %6356 = vst [vmem:[#allocation16_spill] sm:$0xff] %v5010_v6  ;;  %v2701_v6 = vrot.slane %v4927_v53, 6 }
 0x3e4   : > { %3312 = vst [vmem:[#allocation1] ss:$9 sm:$0xff] %v2694_v60  ;;  %v2778_v60 = vadd.s32 8, %v4978_v25 }
 0x3e5   : > { %3313 = vst [vmem:[#allocation1 + $0x1] ss:$9 sm:$0xff] %v2695_v9  ;;  %v3590_v9 = vmul.f32 %v3426_v10, %v3426_v10 }
 0x3e6   : > { %3314 = vst [vmem:[#allocation1 + $0x2] ss:$9 sm:$0xff] %v4927_v53  ;;  %vm2807_vm15 = vcmp.ge.s32.totalorder %v2778_v60, 1  ;;  %vm2824_vm11 = vcmp.le.s32.totalorder %v2778_v60, 32  ;;  %v3508_v60 = vsel %vm6339_vm7, %v3424_v27, 0.0  ;;  %v3704_v27 = vsel %vm6336_vm8, %v3589_v0, 0.0 }
 0x3e7   : > { %3315 = vst [vmem:[#allocation1 + $0x3] ss:$9 sm:$0xff] %v2696_v31  ;;  %v2700_v31 = vrot.slane %v4927_v53, 5  ;;  %vm2841_vm4 = vmand %vm2807_vm15, %vm2824_vm11  ;;  %vm6386_vm15 = vcmp.le.s32.totalorder %v4987_v52, 32  ;;  %v3427_v53 = vsel %vm5077_vm13, %v4889_v46, 0.0  ;;  %v2703_v46 = vrot.slane %v4931_v13, 1 }
 0x3e8   : > { %3316 = vst [vmem:[#allocation1 + $0x4] ss:$9 sm:$0xff] %v2697_v16  ;;  %v2861_v48 = vsel %vm2841_vm4, 1, %v6383_v37  ;;  %vm5137_vm9 = vmand %vm5094_vm2, %vm6386_vm15  ;;  %vm6391_vm2 = vcmp.le.s32.totalorder %v5000_v29, 32 }
 0x3e9   : > { %3317 = vst [vmem:[#allocation1 + $0x5] ss:$9 sm:$0xff] %v2698_v45  ;;  %vm5148_vm4 = vmand %vm5106_vm6, %vm6337_vm5 }
 0x3ea   : > { %3318 = vst [vmem:[#allocation1 + $0x6] ss:$9 sm:$0xff] %v2699_v22  ;;  %vm5161_vm13 = vmand %vm5115_vm14, %vm6391_vm2  ;;  %v2780_v22 = vadd.s32 12, %v4978_v25  ;;  %vm6399_vm14 = vcmp.ge.s32.totalorder %v4992_v4, 1  ;;  %v3430_v10 = vsel %vm5148_vm4, %v4895_v49, 0.0  ;;  %v3509_v49 = vsel %vm6339_vm7, %v3427_v53, 0.0 }
 0x3eb   : > { %3319 = vst [vmem:[#allocation1 + $0x7] ss:$9 sm:$0xff] %v2700_v31  ;;  %v2877_v31 = vperm.slane %v2860_v42, 0  ;;  %v3591_v42 = vmul.f32 %v3427_v53, %v3427_v53  ;;  %v3431_v45 = vsel %vm5161_vm13, %v4897_v32, 0.0 }
 0x3ec   : > { %vm2809_vm4 = vcmp.ge.s32.totalorder %v2780_v22, 1  ;;  %vm2826_vm2 = vcmp.le.s32.totalorder %v2780_v22, 32  ;;  %v3595_v54 = vmul.f32 %v3431_v45, %v3431_v45  ;;  %v2708_v22 = vrot.slane %v4931_v13, 6 }
 0x3ed   : > { %vm5129_vm11 = vcmp.eq.s32.totalorder %v2877_v31, 1  ;;  %v3638_v31 = vsel %vm6339_vm7, %v3587_v7, 0.0  ;;  %v3594_v7 = vmul.f32 %v3430_v10, %v3430_v10 }
 0x3ee   : > { %vm5174_vm6 = vmand %vm5129_vm11, %vm6394_vm1  ;;  %v3707_v44 = vsel %vm6336_vm8, %v3595_v54, 0.0 }
 0x3ef   : > { %vm5193_vm15 = vmand %vm5129_vm11, %vm6399_vm14  ;;  %vm6414_vm14 = vcmp.ge.s32.totalorder %v4987_v52, 1 }
 0x3f0   : > { %vm5204_vm10 = vmand %vm5129_vm11, %vm6338_vm3  ;;  %vm6406_vm11 = vcmp.le.s32.totalorder %v4987_v52, 32 }
 0x3f1   : > { %vm5236_vm1 = vmand %vm5193_vm15, %vm6337_vm5 }
 0x3f2   : > { %v5126_v62 = vld [vmem:[#allocation1] sm:$0xff]  ;;  %vm2843_vm15 = vmand %vm2809_vm4, %vm2826_vm2  ;;  %vm6422_vm4 = vcmp.le.s32.totalorder %v4987_v52, 32 }
 0x3f3   : > { %6382 = vst [vmem:[#allocation17_spill] sm:$0xff] %v5126_v62  ;;  %v3671_v62 = vsel %vm6339_vm7, %v3588_v3, 0.0  ;;  %v3510_v3 = vadd.f32 %v3509_v49, %v3508_v60  ;;  %v2863_v0 = vsel %vm2843_vm15, 1, %v6383_v37  ;;  %v3545_v49 = vsel %vm6336_vm8, %v3431_v45, 0.0 }
 0x3f4   : > { %3321 = vst [vmem:[#allocation1] ss:$9 sm:$0xff] %v2701_v6  ;;  %v3477_v6 = vadd.f32 %v3476_v33, %v5123_v8  ;;  %vm6430_vm15 = vcmp.le.s32.totalorder %v5000_v29, 32 }
 0x3f5   : > { %3322 = vst [vmem:[#allocation1 + $0x1] ss:$9 sm:$0xff] %v2702_v2  ;;  %v2878_v2 = vperm.slane %v2861_v48, 0 }
 0x3f6   : > { %3323 = vst [vmem:[#allocation1 + $0x2] ss:$9 sm:$0xff] %v4931_v13 }
 0x3f7   : > { %3324 = vst [vmem:[#allocation1 + $0x3] ss:$9 sm:$0xff] %v2703_v46  ;;  %v3542_v46 = vsel %vm6336_vm8, %v3425_v40, 0.0  ;;  %v3639_v40 = vsel %vm6339_vm7, %v3590_v9, 0.0  ;;  %vm5218_vm12 = vcmp.eq.s32.totalorder %v2878_v2, 1  ;;  %v3543_v9 = vsel %vm6336_vm8, %v3428_v18, 0.0 }
 0x3f8   : > { %3325 = vst [vmem:[#allocation1 + $0x4] ss:$9 sm:$0xff] %v2704_v30  ;;  %v3429_v30 = vsel %vm5137_vm9, %v4893_v5, 0.0  ;;  %vm5226_vm9 = vmand %vm5174_vm6, %vm6406_vm11  ;;  %vm6411_vm6 = vcmp.le.s32.totalorder %v5000_v29, 32  ;;  %v3640_v18 = vadd.f32 %v3639_v40, %v3638_v31  ;;  %v3511_v31 = vsel %vm6339_vm7, %v3430_v10, 0.0 }
 0x3f9   : > { %3326 = vst [vmem:[#allocation1 + $0x5] ss:$9 sm:$0xff] %v2705_v11  ;;  %v2862_v11 = vsel %vm5183_vm0, 1, %v6383_v37  ;;  %vm5248_vm0 = vmand %vm5204_vm10, %vm6411_vm6  ;;  %v3478_v53 = vsel %vm6339_vm7, %v3429_v30, 0.0  ;;  %v3593_v2 = vmul.f32 %v3429_v30, %v3429_v30  ;;  %v3544_v30 = vadd.f32 %v3543_v9, %v3542_v46 }
 0x3fa   : > { %3327 = vst [vmem:[#allocation1 + $0x6] ss:$9 sm:$0xff] %v2706_v39  ;;  %v3672_v39 = vsel %vm6339_vm7, %v3591_v42, 0.0  ;;  %v3705_v42 = vsel %vm6336_vm8, %v3592_v38, 0.0  ;;  %v2879_v48 = vperm.slane %v2862_v11, 0  ;;  %vm5258_vm13 = vmand %vm5218_vm12, %vm6414_vm14  ;;  %v2781_v11 = vadd.s32 14, %v4978_v25 }
 0x3fb   : > { %3328 = vst [vmem:[#allocation1 + $0x7] ss:$9 sm:$0xff] %v2707_v51  ;;  %v3673_v38 = vadd.f32 %v3672_v39, %v3671_v62  ;;  %v3432_v61 = vsel %vm5226_vm9, %v4899_v57, 0.0  ;;  %v3479_v17 = vadd.f32 %v3478_v53, %v3477_v6  ;;  %v3706_v41 = vadd.f32 %v3705_v42, %v3704_v27  ;;  %vm5293_vm2 = vmand %vm5258_vm13, %vm6422_vm4 }
 0x3fc   : > { %vm6417_vm10 = vcmp.ge.s32.totalorder %v4992_v4, 1  ;;  %v3433_v62 = vsel %vm5236_vm1, %v4901_v43, 0.0  ;;  %v3641_v60 = vsel %vm6339_vm7, %v3593_v2, 0.0  ;;  %v3674_v57 = vsel %vm6339_vm7, %v3594_v7, 0.0  ;;  %vm5307_vm1 = vmand %vm5218_vm12, %vm6338_vm3 }
 0x3fd   : > { %vm5273_vm11 = vmand %vm5218_vm12, %vm6417_vm10  ;;  %vm5285_vm9 = vcmp.eq.s32.totalorder %v2879_v48, 1  ;;  %v3434_v46 = vsel %vm5248_vm0, %v4903_v56, 0.0  ;;  %v2782_v40 = vadd.s32 16, %v4978_v25  ;;  %v3596_v39 = vmul.f32 %v3432_v61, %v3432_v61 }
 0x3fe   : > { %vm2810_vm6 = vcmp.ge.s32.totalorder %v2781_v11, 1  ;;  %vm2827_vm0 = vcmp.le.s32.totalorder %v2781_v11, 32  ;;  %vm5317_vm14 = vmand %vm5273_vm11, %vm6337_vm5  ;;  %v3597_v16 = vmul.f32 %v3433_v62, %v3433_v62  ;;  %v3642_v9 = vadd.f32 %v3641_v60, %v3640_v18 }
 0x3ff   : > { %v2880_v51 = vperm.slane %v2863_v0, 0  ;;  %vm6429_vm12 = vcmp.ge.s32.totalorder %v4987_v52, 1  ;;  %v3480_v54 = vsel %vm6339_vm7, %v3432_v61, 0.0  ;;  %v3512_v45 = vadd.f32 %v3511_v31, %v3510_v3  ;;  %vm5330_vm10 = vmand %vm5307_vm1, %vm6430_vm15 }
 0x400   : > { %vm2929_vm13 = vmand %vm5285_vm9, %vm6429_vm12  ;;  %v3598_v53 = vmul.f32 %v3434_v46, %v3434_v46  ;;  %v3435_v7 = vsel %vm5293_vm2, %v4905_v28, 0.0  ;;  %v3546_v42 = vadd.f32 %v3545_v49, %v3544_v30  ;;  %v3675_v48 = vadd.f32 %v3674_v57, %v3673_v38 }
 0x401   : > { %v3708_v32 = vadd.f32 %v3707_v44, %v3706_v41  ;;  %vm2811_vm11 = vcmp.ge.s32.totalorder %v2782_v40, 1  ;;  %vm2828_vm4 = vcmp.le.s32.totalorder %v2782_v40, 32  ;;  %vm5339_vm12 = vmand %vm2810_vm6, %vm2827_vm0  ;;  %v3436_v6 = vsel %vm5317_vm14, %v4907_v58, 0.0 }
 0x402   : > { %v5300_v10 = vld [vmem:[#allocation1] sm:$0xff]  ;;  %v3643_v18 = vsel %vm6339_vm7, %v3596_v39, 0.0  ;;  %vm6435_vm1 = vcmp.le.s32.totalorder %v4987_v52, 32  ;;  %v3481_v41 = vadd.f32 %v3480_v54, %v3479_v17  ;;  %v3513_v27 = vsel %vm6339_vm7, %v3433_v62, 0.0  ;;  %vm5387_vm15 = vmand %vm5285_vm9, %vm6338_vm3 }
 0x403   : > { %3330 = vst [vmem:[#allocation1] ss:$9 sm:$0xff] %v2708_v22  ;;  %vm5349_vm2 = vmand %vm2929_vm13, %vm6435_vm1  ;;  %v3547_v3 = vsel %vm6336_vm8, %v3434_v46, 0.0  ;;  %v3676_v30 = vsel %vm6339_vm7, %v3597_v16, 0.0  ;;  %vm5356_vm6 = vcmp.eq.s32.totalorder %v2880_v51, 1  ;;  %vm6440_vm0 = vcmp.ge.s32.totalorder %v4992_v4, 1 }
 0x404   : > { %vm5364_vm14 = vmand %vm5285_vm9, %vm6440_vm0  ;;  %v3482_v17 = vsel %vm6339_vm7, %v3435_v7, 0.0  ;;  %v3599_v11 = vmul.f32 %v3435_v7, %v3435_v7  ;;  %v3709_v8 = vsel %vm6336_vm8, %v3598_v53, 0.0  ;;  %v2709_v62 = vrot.slane %v4931_v13, 7 }
 0x405   : > { %vm5373_vm13 = vmand %vm2811_vm11, %vm2828_vm4  ;;  %v2864_v60 = vsel %vm5339_vm12, 1, %v6383_v37  ;;  %v3600_v57 = vmul.f32 %v3436_v6, %v3436_v6  ;;  %v3644_v22 = vadd.f32 %v3643_v18, %v3642_v9  ;;  %v2783_v43 = vadd.s32 18, %v4978_v25 }
 0x406   : > { %v3514_v46 = vadd.f32 %v3513_v27, %v3512_v45  ;;  %v3548_v40 = vadd.f32 %v3547_v3, %v3546_v42  ;;  %v3677_v5 = vadd.f32 %v3676_v30, %v3675_v48  ;;  %v2710_v49 = vrot.slane %v4935_v19, 1  ;;  %vm5416_vm9 = vmand %vm5364_vm14, %vm6337_vm5 }
 0x407   : > { %vm6447_vm11 = vcmp.ge.s32.totalorder %v4987_v52, 1  ;;  %v3437_v33 = vsel %vm5330_vm10, %v4909_v63, 0.0  ;;  %v5403_v44 = vadd.f32 %v3482_v17, %v3481_v41  ;;  %v5405_v56 = vadd.f32 %v3709_v8, %v3708_v32 }
 0x408   : > { %vm5396_vm4 = vmand %vm5356_vm6, %vm6447_vm11  ;;  %v2711_v16 = vrot.slane %v4935_v19, 2  ;;  %v2865_v9 = vsel %vm5373_vm13, 1, %v6383_v37  ;;  %v2881_v51 = vperm.slane %v2864_v60, 0  ;;  %v3645_v63 = vsel %vm6339_vm7, %v3599_v11, 0.0 }
 0x409   : > { %v2712_v45 = vrot.slane %v4935_v19, 3  ;;  %v2713_v53 = vrot.slane %v4935_v19, 4  ;;  %vm6452_vm10 = vcmp.le.s32.totalorder %v5000_v29, 32  ;;  %v3515_v7 = vsel %vm6339_vm7, %v3436_v6, 0.0 }
 0x40a   : > { %v5380_v0 = vld [vmem:[#allocation1] sm:$0xff]  ;;  %vm5427_vm12 = vmand %vm5387_vm15, %vm6452_vm10  ;;  %v3678_v42 = vsel %vm6339_vm7, %v3600_v57, 0.0  ;;  %vm2812_vm1 = vcmp.ge.s32.totalorder %v2783_v43, 1  ;;  %vm2829_vm0 = vcmp.le.s32.totalorder %v2783_v43, 32  ;;  %vm6455_vm14 = vcmp.le.s32.totalorder %v4987_v52, 32 }
 0x40b   : > { %3332 = vst [vmem:[#allocation1] ss:$9 sm:$0xff] %v2709_v62  ;;  %vm5437_vm13 = vmand %vm5396_vm4, %vm6455_vm14  ;;  %v3438_v32 = vsel %vm5349_vm2, %v4911_v20, 0.0  ;;  %v3601_v61 = vmul.f32 %v3437_v33, %v3437_v33  ;;  %v2714_v6 = vrot.slane %v4935_v19, 5  ;;  %v2882_v18 = vperm.slane %v2865_v9, 0 }
 0x40c   : > { %3333 = vst [vmem:[#allocation1 + $0x1] ss:$9 sm:$0xff] %v4935_v19  ;;  %vm6458_vm15 = vcmp.ge.s32.totalorder %v4992_v4, 1  ;;  %v3549_v27 = vsel %vm6336_vm8, %v3437_v33, 0.0  ;;  %v3646_v3 = vadd.f32 %v3645_v63, %v3644_v22  ;;  %v2715_v30 = vrot.slane %v4935_v19, 6  ;;  %vm5464_vm4 = vmand %vm5356_vm6, %vm6338_vm3 }
 0x40d   : > { %3334 = vst [vmem:[#allocation1 + $0x2] ss:$9 sm:$0xff] %v2710_v49  ;;  %vm5449_vm11 = vmand %vm5356_vm6, %vm6458_vm15  ;;  %v2784_v20 = vadd.s32 20, %v4978_v25  ;;  %vm5456_vm2 = vcmp.eq.s32.totalorder %v2881_v51, 1  ;;  %v3439_v17 = vsel %vm5416_vm9, %v4913_v24, 0.0  ;;  %v2716_v11 = vrot.slane %v4935_v19, 7 }
 0x40e   : > { %3335 = vst [vmem:[#allocation1 + $0x3] ss:$9 sm:$0xff] %v2711_v16  ;;  %vm5474_vm10 = vmand %vm2812_vm1, %vm2829_vm0  ;;  %v3516_v62 = vadd.f32 %v3515_v7, %v3514_v46  ;;  %v3602_v31 = vmul.f32 %v3438_v32, %v3438_v32  ;;  %v3679_v38 = vadd.f32 %v3678_v42, %v3677_v5  ;;  %v2717_v60 = vrot.slane %v4937_v26, 1 }
 0x40f   : > { %3336 = vst [vmem:[#allocation1 + $0x4] ss:$9 sm:$0xff] %v2712_v45  ;;  %v2718_v57 = vrot.slane %v4937_v26, 2  ;;  %vm5484_vm6 = vmand %vm5449_vm11, %vm6337_vm5  ;;  %v5488_v19 = vadd.f32 %v3549_v27, %v3548_v40  ;;  %v3711_v22 = vsel %vm6336_vm8, %v3601_v61, 0.0  ;;  %v2719_v43 = vrot.slane %v4937_v26, 3 }
 0x410   : > { %3337 = vst [vmem:[#allocation1 + $0x5] ss:$9 sm:$0xff] %v2713_v53  ;;  %vm5492_vm9 = vcmp.eq.s32.totalorder %v2882_v18, 1  ;;  %vm6471_vm1 = vcmp.ge.s32.totalorder %v4987_v52, 1  ;;  %vm6474_vm14 = vcmp.le.s32.totalorder %v5000_v29, 32  ;;  %v3484_v5 = vsel %vm6339_vm7, %v3438_v32, 0.0 }
 0x411   : > { %3338 = vst [vmem:[#allocation1 + $0x6] ss:$9 sm:$0xff] %v2714_v6  ;;  %vm5500_vm0 = vmand %vm5456_vm2, %vm6471_vm1  ;;  %v3603_v49 = vmul.f32 %v3439_v17, %v3439_v17  ;;  %vm2813_vm11 = vcmp.ge.s32.totalorder %v2784_v20, 1  ;;  %vm2830_vm8 = vcmp.le.s32.totalorder %v2784_v20, 32  ;;  %v2866_v39 = vsel %vm5474_vm10, 1, %v6383_v37 }
 0x412   : > { %3339 = vst [vmem:[#allocation1 + $0x7] ss:$9 sm:$0xff] %v2715_v30  ;;  %vm5508_vm15 = vmand %vm5464_vm4, %vm6474_vm14  ;;  %vm6477_vm1 = vcmp.ge.s32.totalorder %v4992_v4, 1  ;;  %v3440_v16 = vsel %vm5427_vm12, %v4915_v34, 0.0  ;;  %v2720_v9 = vrot.slane %v4937_v26, 4  ;;  %v2785_v51 = vadd.s32 22, %v4978_v25 }
 0x413   : > { %vm5520_vm5 = vmand %vm5456_vm2, %vm6477_vm1  ;;  %v3517_v63 = vsel %vm6339_vm7, %v3439_v17, 0.0  ;;  %v3647_v45 = vsel %vm6339_vm7, %v3602_v31, 0.0  ;;  %v2721_v53 = vrot.slane %v4937_v26, 5  ;;  %v2722_v34 = vrot.slane %v4937_v26, 6 }
 0x414   : > { %vm5533_vm4 = vmand %vm5456_vm2, %vm6338_vm3  ;;  %v2723_v2 = vrot.slane %v4937_v26, 7  ;;  %vm6482_vm12 = vcmp.ge.s32.totalorder %v4987_v52, 1  ;;  %v3712_v42 = vadd.f32 %v3711_v22, %v5405_v56  ;;  %v2883_v61 = vperm.slane %v2866_v39, 0 }
 0x415   : > { %vm5546_vm10 = vmand %vm5492_vm9, %vm6482_vm12  ;;  %vm6487_vm14 = vcmp.le.s32.totalorder %v4987_v52, 32  ;;  %v3485_v18 = vadd.f32 %v3484_v5, %v5403_v44  ;;  %v3604_v41 = vmul.f32 %v3440_v16, %v3440_v16  ;;  %v3680_v27 = vsel %vm6339_vm7, %v3603_v49, 0.0 }
 0x416   : > { %vm5552_vm2 = vmand %vm2813_vm11, %vm2830_vm8  ;;  %vm6490_vm12 = vcmp.le.s32.totalorder %v4992_v4, 32  ;;  %v3441_v30 = vsel %vm5437_vm13, %v4917_v35, 0.0  ;;  %v5577_v20 = vadd.f32 %v3517_v63, %v3516_v62  ;;  %v3648_v28 = vadd.f32 %v3647_v45, %v3646_v3 }
 0x417   : > { %vm5560_vm1 = vmand %vm5500_vm0, %vm6487_vm14  ;;  %v2724_v44 = vrot.slane %v4941_v36, 1  ;;  %v2786_v17 = vadd.s32 24, %v4978_v25  ;;  %vm2831_vm11 = vcmp.le.s32.totalorder %v2785_v51, 32  ;;  %vm6496_vm13 = vcmp.le.s32.totalorder %v4987_v52, 32 }
 0x418   : > { %vm5570_vm8 = vmand %vm5520_vm5, %vm6490_vm12  ;;  %vm6493_vm5 = vcmp.le.s32.totalorder %v5000_v29, 32  ;;  %v2725_v48 = vrot.slane %v4941_v36, 2  ;;  %v2867_v3 = vsel %vm5552_vm2, 1, %v6383_v37  ;;  %vm6502_vm0 = vcmask 253952  }
 0x419   : > { %v5580_v58 = vld [vmem:[#allocation1] sm:$0xff]  ;;  %vm5587_vm14 = vmand %vm5533_vm4, %vm6493_vm5  ;;  %vm6499_vm4 = vcmp.ge.s32.totalorder %v4992_v4, 1  ;;  %v3551_v31 = vsel %vm6502_vm0, %v3440_v16, 0.0  ;;  %v5612_v22 = vadd.f32 %v3680_v27, %v3679_v38  ;;  %v2726_v46 = vrot.slane %v4941_v36, 3 }
 0x41a   : > { %vm5595_vm12 = vmand %vm5546_vm10, %vm6496_vm13  ;;  %3341 = vst [vmem:[#allocation1] ss:$9 sm:$0xff] %v2716_v11  ;;  %vm5615_vm10 = vcmp.eq.s32.totalorder %v2883_v61, 1  ;;  %v3486_v49 = vsel %vm6339_vm7, %v3441_v30, 0.0  ;;  %v3605_v38 = vmul.f32 %v3441_v30, %v3441_v30  ;;  %v3713_v39 = vsel %vm6502_vm0, %v3604_v41, 0.0 }
 0x41b   : > { %vm5607_vm5 = vmand %vm5492_vm9, %vm6499_vm4  ;;  %3342 = vst [vmem:[#allocation1 + $0x1] ss:$9 sm:$0xff] %v4937_v26  ;;  %vm6507_vm13 = vcmp.ge.s32.totalorder %v2785_v51, 1  ;;  %v3442_v13 = vsel %vm5484_vm6, %v4919_v1, 0.0  ;;  %v2727_v16 = vrot.slane %v4941_v36, 4  ;;  %v2728_v54 = vrot.slane %v4941_v36, 5 }
 0x41c   : > { %vm5623_vm2 = vmand %vm5492_vm9, %vm6338_vm3  ;;  %3343 = vst [vmem:[#allocation1 + $0x2] ss:$9 sm:$0xff] %v2717_v60  ;;  %v2729_v63 = vrot.slane %v4941_v36, 6  ;;  %vm2832_vm3 = vcmp.le.s32.totalorder %v2786_v17, 32  ;;  %v2884_v45 = vperm.slane %v2867_v3, 0  ;;  %vm6510_vm0 = vcmp.le.s32.totalorder %v4992_v4, 32 }
 0x41d   : > { %vm5632_vm4 = vmand %vm6507_vm13, %vm2831_vm11  ;;  %3344 = vst [vmem:[#allocation1 + $0x3] ss:$9 sm:$0xff] %v2718_v57  ;;  %v2730_v1 = vrot.slane %v4941_v36, 7  ;;  %vm6513_vm6 = vcmp.ge.s32.totalorder %v4987_v52, 1  ;;  %vm6516_vm9 = vcmp.le.s32.totalorder %v5000_v29, 32  ;;  %v3443_v57 = vsel %vm5508_vm15, %v4921_v15, 0.0 }
 0x41e   : > { %vm5646_vm11 = vmand %vm5607_vm5, %vm6510_vm0  ;;  %3345 = vst [vmem:[#allocation1 + $0x4] ss:$9 sm:$0xff] %v2719_v43  ;;  %v3487_v7 = vadd.f32 %v3486_v49, %v3485_v18  ;;  %v3552_v32 = vadd.f32 %v3551_v31, %v5488_v19  ;;  %v3714_v61 = vadd.f32 %v3713_v39, %v3712_v42  ;;  %v2868_v41 = vsel %vm5632_vm4, 1, %v6383_v37 }
 0x41f   : > { %vm5657_vm13 = vmand %vm5615_vm10, %vm6513_vm6  ;;  %3346 = vst [vmem:[#allocation1 + $0x5] ss:$9 sm:$0xff] %v2720_v9  ;;  %v3606_v43 = vmul.f32 %v3442_v13, %v3442_v13  ;;  %v3649_v15 = vsel %vm6339_vm7, %v3605_v38, 0.0  ;;  %v2731_v40 = vrot.slane %v4945_v47, 1  ;;  %v2787_v19 = vadd.s32 26, %v4978_v25 }
 0x420   : > { %vm5665_vm5 = vmand %vm5623_vm2, %vm6516_vm9  ;;  %vm6519_vm2 = vcmp.ge.s32.totalorder %v4992_v4, 1  ;;  %vm6522_vm15 = vcmp.ge.s32.totalorder %v2786_v17, 1  ;;  %3347 = vst [vmem:[#allocation1 + $0x6] ss:$9 sm:$0xff] %v2721_v53  ;;  %v2732_v18 = vrot.slane %v4945_v47, 2  ;;  %v2733_v30 = vrot.slane %v4945_v47, 3 }
 0x421   : > { %vm5682_vm9 = vmand %vm5615_vm10, %vm6519_vm2  ;;  %v2734_v9 = vrot.slane %v4945_v47, 4  ;;  %vm5698_vm4 = vcmp.eq.s32.totalorder %v2884_v45, 1  ;;  %vm6527_vm6 = vcmp.le.s32.totalorder %v4987_v52, 32  ;;  %3348 = vst [vmem:[#allocation1 + $0x7] ss:$9 sm:$0xff] %v2722_v34  ;;  %v3607_v53 = vmul.f32 %v3443_v57, %v3443_v57 }
 0x422   : > { %vm5691_vm0 = vmand %vm6522_vm15, %vm2832_vm3  ;;  %v2735_v62 = vrot.slane %v4945_v47, 5  ;;  %v2885_v5 = vperm.slane %v2868_v41, 0  ;;  %vm6530_vm3 = vcmp.ge.s32.totalorder %v5000_v29, 1  ;;  %v3444_v38 = vsel %vm5560_vm1, %v4923_v12, 0.0 }
 0x423   : > { %vm5706_vm2 = vmand %vm5657_vm13, %vm6527_vm6  ;;  %v3445_v34 = vsel %vm5570_vm8, %v4925_v21, 0.0  ;;  %v3650_v39 = vadd.f32 %v3649_v15, %v3648_v28  ;;  %v2869_v33 = vsel %vm5691_vm0, 1, %v6383_v37  ;;  %vm6533_vm13 = vcmp.le.s32.totalorder %v4992_v4, 32 }
 0x424   : > { %vm5718_vm15 = vmand %vm5615_vm10, %vm6530_vm3  ;;  %v3519_v6 = vsel %vm6339_vm7, %v3442_v13, 0.0  ;;  %vm6536_vm1 = vcmask 253952   ;;  %v3682_v56 = vsel %vm6339_vm7, %v3606_v43, 0.0  ;;  %vm2833_vm6 = vcmp.le.s32.totalorder %v2787_v19, 32 }
 0x425   : > { %vm5735_vm10 = vmand %vm5682_vm9, %vm6533_vm13  ;;  %v3553_v12 = vsel %vm6536_vm1, %v3443_v57, 0.0  ;;  %vm6537_vm3 = vcmp.ge.s32.totalorder %v4987_v52, 1  ;;  %v3446_v28 = vsel %vm5587_vm14, %v4929_v55, 0.0  ;;  %v3447_v13 = vsel %vm5595_vm12, %v4933_v23, 0.0 }
 0x426   : > { %vm5746_vm0 = vmand %vm5698_vm4, %vm6537_vm3  ;;  %vm6540_vm9 = vcmp.ge.s32.totalorder %v4992_v4, 1  ;;  %vm6543_vm1 = vcmp.le.s32.totalorder %v5000_v29, 32  ;;  %v3488_v55 = vsel %vm6339_vm7, %v3444_v38, 0.0  ;;  %v3608_v8 = vmul.f32 %v3444_v38, %v3444_v38 }
 0x427   : > { %vm5760_vm13 = vmand %vm5698_vm4, %vm6540_vm9  ;;  %v3609_v23 = vmul.f32 %v3445_v34, %v3445_v34  ;;  %vm6546_vm14 = vcmask 253952   ;;  %v2886_v57 = vperm.slane %v2869_v33, 0  ;;  %vm5774_vm12 = vcmp.eq.s32.totalorder %v2885_v5, 1 }
 0x428   : > { %vm5768_vm3 = vmand %vm5718_vm15, %vm6543_vm1  ;;  %v3715_v35 = vsel %vm6546_vm14, %v3607_v53, 0.0  ;;  %vm6549_vm9 = vcmp.ge.s32.totalorder %v5000_v29, 1  ;;  %v3520_v43 = vadd.f32 %v3519_v6, %v5577_v20  ;;  %vm6552_vm15 = vcmp.ge.s32.totalorder %v2787_v19, 1  ;;  %v5812_v33 = vld [vmem:[#allocation1] sm:$0xff] }
 0x429   : > { %vm5782_vm8 = vmand %vm5698_vm4, %vm6549_vm9  ;;  %vm6555_vm14 = vcmp.le.s32.totalorder %v4987_v52, 32  ;;  %v3554_v53 = vadd.f32 %v3553_v12, %v3552_v32  ;;  %v3610_v5 = vmul.f32 %v3446_v28, %v3446_v28  ;;  %v3611_v49 = vmul.f32 %v3447_v13, %v3447_v13  ;;  %3350 = vst [vmem:[#allocation1] ss:$9 sm:$0xff] %v2723_v2 }
 0x42a   : > { %vm5790_vm1 = vmand %vm6552_vm15, %vm2833_vm6  ;;  %v3683_v20 = vadd.f32 %v3682_v56, %v5612_v22  ;;  %v2788_v38 = vadd.s32 28, %v4978_v25  ;;  %vm6558_vm4 = vcmp.le.s32.totalorder %v4992_v4, 32  ;;  %v6559_v19 = vmov 0 }
 0x42b   : > { %vm5798_vm7 = vmand %vm5746_vm0, %vm6555_vm14  ;;  %v3448_v32 = vsel %vm5646_vm11, %v4939_v59, 0.0  ;;  %v3489_v6 = vadd.f32 %v3488_v55, %v3487_v7  ;;  %v3716_v12 = vadd.f32 %v3715_v35, %v3714_v61  ;;  %vm6561_vm0 = vcmp.ge.s32.totalorder %v4987_v52, 1 }
 0x42c   : > { %vm5808_vm6 = vmand %vm5760_vm13, %vm6558_vm4  ;;  %v3449_v56 = vsel %vm5665_vm5, %v4943_v50, 0.0  ;;  %vm6564_vm13 = vcmask 261120   ;;  %v2870_v61 = vsel %vm5790_vm1, 1, %v6383_v37  ;;  %vm5836_vm14 = vcmp.eq.s32.totalorder %v2886_v57, 1 }
 0x42d   : > { %v6560_v19 = vsel %vm5808_vm6, 4294967295, %v6559_v19  ;;  %vm5821_vm9 = vmand %vm5774_vm12, %vm6561_vm0  ;;  %v3521_v51 = vsel %vm6564_vm13, %v3445_v34, 0.0  ;;  %vm6569_vm4 = vcmp.le.s32.totalorder %v5000_v29, 32  ;;  %v6570_v26 = vmov 0 }
 0x42e   : > { %vm6565_vm11 = vmmov %vm6564_vm13  ;;  %v3450_v50 = vsel %vm5706_vm2, %v4947_v14, 0.0  ;;  %vm6572_vm5 = vcmask 253952   ;;  %vm6573_vm1 = vcmp.ge.s32.totalorder %v4992_v4, 1  ;;  %vm2834_vm2 = vcmp.le.s32.totalorder %v2788_v38, 32 }
 0x42f   : > { %v3651_v59 = vsel %vm6565_vm11, %v3608_v8, 0.0  ;;  %vm6566_vm15 = vmmov %vm6565_vm11  ;;  %v3555_v2 = vsel %vm6572_vm5, %v3446_v28, 0.0  ;;  %v3490_v34 = vsel %vm6565_vm11, %v3447_v13, 0.0  ;;  %v3612_v28 = vmul.f32 %v3448_v32, %v3448_v32 }
 0x430   : > { %v3684_v7 = vsel %vm6566_vm15, %v3609_v23, 0.0  ;;  %vm5844_vm0 = vmand %vm5782_vm8, %vm6569_vm4  ;;  %v3613_v13 = vmul.f32 %v3449_v56, %v3449_v56  ;;  %v2887_v23 = vperm.slane %v2870_v61, 0  ;;  %v3522_v57 = vadd.f32 %v3521_v51, %v3520_v43  ;;  %v6594_v43 = vld [vmem:[#allocation3_spill] sm:$0xff]  ;;  %v5922_v11 = vld [vmem:[#allocation1] sm:$0xff] }
 0x431   : > { %v6571_v26 = vsel %vm5844_vm0, 4294967295, %v6570_v26  ;;  %vm5856_vm13 = vmand %vm5774_vm12, %vm6573_vm1  ;;  %vm2817_vm0 = vcmp.ge.s32.totalorder %v2788_v38, 1  ;;  %vm6582_vm1 = vcmp.le.s32.totalorder %v4987_v52, 32  ;;  %v3614_v41 = vmul.f32 %v3450_v50, %v3450_v50  ;;  %3352 = vst [vmem:[#allocation1] ss:$9 sm:$0xff] %v4941_v36  ;;  %v6636_v51 = vld [vmem:[#allocation8_spill] sm:$0xff] }
 0x432   : > { %vm6576_vm8 = vmmov %vm6565_vm11  ;;  %v3652_v27 = vadd.f32 %v3651_v59, %v3650_v39  ;;  %v2789_v42 = vadd.s32 30, %v4978_v25  ;;  %v3451_v39 = vsel %vm5735_vm10, %v6594_v43, 0.0  ;;  %v3685_v22 = vadd.f32 %v3684_v7, %v3683_v20  ;;  %3353 = vst [vmem:[#allocation1 + $0x1] ss:$9 sm:$0xff] %v2724_v44  ;;  %v6662_v44 = vld [vmem:[#allocation12_spill] sm:$0xff] }
 0x433   : > { %v3523_v45 = vsel %vm6576_vm8, %v3448_v32, 0.0  ;;  %vm6577_vm15 = vmmov %vm6576_vm8  ;;  %vm6585_vm8 = vcmp.ge.s32.totalorder %v4987_v52, 1  ;;  %v3556_v32 = vadd.f32 %v3555_v2, %v3554_v53  ;;  %v3491_v59 = vadd.f32 %v3490_v34, %v3489_v6  ;;  %v6600_v53 = vld [vmem:[#allocation4_spill] sm:$0xff]  ;;  %3354 = vst [vmem:[#allocation1 + $0x2] ss:$9 sm:$0xff] %v2725_v48 }
 0x434   : > { %v3653_v55 = vsel %vm6577_vm15, %v3611_v49, 0.0  ;;  %vm6578_vm4 = vmmov %vm6572_vm5  ;;  %vm6579_vm5 = vcmp.ge.s32.totalorder %v5000_v29, 1  ;;  %v3524_v61 = vadd.f32 %v3523_v45, %v3522_v57  ;;  %v3452_v20 = vsel %vm5768_vm3, %v6600_v53, 0.0  ;;  %3355 = vst [vmem:[#allocation1 + $0x3] ss:$9 sm:$0xff] %v2726_v46  ;;  %v6652_v49 = vld [vmem:[#allocation10_spill] sm:$0xff] }
 0x435   : > { %v3717_v8 = vsel %vm6578_vm4, %v3610_v5, 0.0  ;;  %vm5868_vm6 = vmand %vm5774_vm12, %vm6579_vm5  ;;  %vm6588_vm12 = vcmp.ge.s32.totalorder %v4992_v4, 1  ;;  %vm6591_vm4 = vcmp.le.s32.totalorder %v4992_v4, 32  ;;  %v3654_v15 = vadd.f32 %v3653_v55, %v3652_v27  ;;  %v6626_v27 = vld [vmem:[#allocation7_spill] sm:$0xff]  ;;  %3356 = vst [vmem:[#allocation1 + $0x4] ss:$9 sm:$0xff] %v2727_v16 }
 0x436   : > { %vm5876_vm11 = vmand %vm5821_vm9, %vm6582_vm1  ;;  %v3718_v24 = vadd.f32 %v3717_v8, %v3716_v12  ;;  %vm6601_vm10 = vcmask 253952   ;;  %v3615_v34 = vmul.f32 %v3451_v39, %v3451_v39  ;;  %v3616_v35 = vmul.f32 %v3452_v20, %v3452_v20  ;;  %3357 = vst [vmem:[#allocation1 + $0x5] ss:$9 sm:$0xff] %v2728_v54  ;;  %v6683_v16 = vld [vmem:[#allocation15_spill] sm:$0xff] }
 0x437   : > { %vm5884_vm15 = vmand %vm5836_vm14, %vm6585_vm8  ;;  %v3557_v38 = vsel %vm6601_vm10, %v3449_v56, 0.0  ;;  %v2790_v3 = vadd.s32 32, %v4978_v25  ;;  %3358 = vst [vmem:[#allocation1 + $0x6] ss:$9 sm:$0xff] %v2729_v63 }
 0x438   : > { %vm5893_vm9 = vmand %vm5836_vm14, %vm6588_vm12  ;;  %vm5930_vm12 = vcmp.eq.s32.totalorder %v2887_v23, 1  ;;  %v3558_v57 = vadd.f32 %v3557_v38, %v3556_v32  ;;  %3359 = vst [vmem:[#allocation1 + $0x7] ss:$9 sm:$0xff] %v2730_v1  ;;  %v6647_v38 = vld [vmem:[#allocation9_spill] sm:$0xff] }
 0x439   : > { %vm5901_vm5 = vmand %vm5856_vm13, %vm6591_vm4  ;;  %vm6597_vm13 = vcmp.le.s32.totalorder %v5000_v29, 32 }
 0x43a   : > { %vm5910_vm1 = vmand %vm2817_vm0, %vm2834_vm2  ;;  %vm6602_vm0 = vcmask 261120  }
 0x43b   : > { %vm5918_vm8 = vmand %vm5868_vm6, %vm6597_vm13  ;;  %v3686_v6 = vsel %vm6602_vm0, %v3612_v28, 0.0  ;;  %vm6606_vm6 = vcmp.le.s32.totalorder %v4987_v52, 32  ;;  %v2871_v45 = vsel %vm5910_vm1, 1, %v6383_v37  ;;  %v6618_v28 = vld [vmem:[#allocation6_spill] sm:$0xff] }
 0x43c   : > { %vm6603_vm2 = vmmov %vm6601_vm10  ;;  %vm2818_vm10 = vcmp.ge.s32.totalorder %v2789_v42, 1  ;;  %v2888_v48 = vperm.slane %v2871_v45, 0 }
 0x43d   : > { %v3719_v12 = vsel %vm6603_vm2, %v3613_v13, 0.0  ;;  %vm5938_vm4 = vmand %vm5884_vm15, %vm6606_vm6  ;;  %vm6611_vm2 = vcmp.le.s32.totalorder %v4992_v4, 32  ;;  %vm6615_vm6 = vcmp.ge.s32.totalorder %v5000_v29, 1 }
 0x43e   : > { %vm6609_vm13 = vmmov %vm6602_vm0 }
 0x43f   : > { %v3492_v60 = vsel %vm6609_vm13, %v3450_v50, 0.0  ;;  %vm6610_vm3 = vmmov %vm6602_vm0  ;;  %vm2835_vm0 = vcmp.le.s32.totalorder %v2789_v42, 32  ;;  %v6614_v50 = vld [vmem:[#allocation5_spill] sm:$0xff] }
 0x440   : > { %v3655_v56 = vsel %vm6610_vm3, %v3614_v41, 0.0  ;;  %vm5952_vm15 = vmand %vm5893_vm9, %vm6611_vm2  ;;  %v3453_v8 = vsel %vm5798_vm7, %v6614_v50, 0.0  ;;  %vm6619_vm9 = vnez %v6560_v19  ;;  %vm6621_vm7 = vcmp.ge.s32.totalorder %v4987_v52, 1 }
 0x441   : > { %vm5965_vm1 = vmand %vm5836_vm14, %vm6615_vm6  ;;  %v3454_v13 = vsel %vm6619_vm9, %v6618_v28, 0.0  ;;  %v3493_v21 = vadd.f32 %v3492_v60, %v3491_v59  ;;  %v3687_v19 = vadd.f32 %v3686_v6, %v3685_v22  ;;  %v3720_v41 = vadd.f32 %v3719_v12, %v3718_v24 }
 0x442   : > { %vm6620_vm13 = vmmov %vm6610_vm3  ;;  %vm6627_vm2 = vnez %v6571_v26  ;;  %v3617_v43 = vmul.f32 %v3453_v8, %v3453_v8  ;;  %vm6629_vm9 = vcmp.ge.s32.totalorder %v4992_v4, 1  ;;  %v3618_v22 = vmul.f32 %v3454_v13, %v3454_v13 }
 0x443   : > { %v3525_v23 = vsel %vm6620_vm13, %v3451_v39, 0.0  ;;  %vm5980_vm14 = vmand %vm5930_vm12, %vm6621_vm7  ;;  %v3455_v5 = vsel %vm6627_vm2, %v6626_v27, 0.0  ;;  %v3656_v26 = vadd.f32 %v3655_v56, %v3654_v15  ;;  %v3456_v59 = vsel %vm5876_vm11, %v6636_v51, 0.0 }
 0x444   : > { %vm5988_vm3 = vmand %vm2818_vm10, %vm2835_vm0  ;;  %v3526_v42 = vadd.f32 %v3525_v23, %v3524_v61  ;;  %vm6632_vm10 = vcmask 253952   ;;  %vm6633_vm0 = vcmp.le.s32.totalorder %v5000_v29, 32  ;;  %v6639_v15 = vmov 0 }
 0x445   : > { %vm6628_vm6 = vmmov %vm6620_vm13  ;;  %v3559_v32 = vsel %vm6632_vm10, %v3452_v20, 0.0  ;;  %v2872_v54 = vsel %vm5988_vm3, 1, %v6383_v37  ;;  %vm6641_vm11 = vcmask 261120   ;;  %v3619_v24 = vmul.f32 %v3455_v5, %v3455_v5 }
 0x446   : > { %v3688_v39 = vsel %vm6628_vm6, %v3615_v34, 0.0  ;;  %vm6002_vm13 = vmand %vm5930_vm12, %vm6629_vm9  ;;  %vm2819_vm6 = vcmp.ge.s32.totalorder %v2790_v3, 1  ;;  %vm2836_vm9 = vcmp.le.s32.totalorder %v2790_v3, 32  ;;  %v3494_v17 = vsel %vm6641_vm11, %v3453_v8, 0.0 }
 0x447   : > { %vm6013_vm7 = vmand %vm5965_vm1, %vm6633_vm0  ;;  %vm6638_vm1 = vcmp.le.s32.totalorder %v4987_v52, 32  ;;  %v3689_v53 = vadd.f32 %v3688_v39, %v3687_v19  ;;  %vm6037_vm0 = vcmp.eq.s32.totalorder %v2888_v48, 1  ;;  %vm6644_vm3 = vcmp.le.s32.totalorder %v4992_v4, 32 }
 0x448   : > { %vm6637_vm2 = vmmov %vm6632_vm10  ;;  %v3457_v6 = vsel %vm5901_vm5, %v6647_v38, 0.0  ;;  %v3560_v12 = vadd.f32 %v3559_v32, %v3558_v57  ;;  %v3620_v60 = vmul.f32 %v3456_v59, %v3456_v59  ;;  %v2889_v45 = vperm.slane %v2872_v54, 0 }
 0x449   : > { %v3721_v61 = vsel %vm6637_vm2, %v3616_v35, 0.0  ;;  %vm6030_vm10 = vmand %vm5980_vm14, %vm6638_vm1  ;;  %v3458_v50 = vsel %vm5918_vm8, %v6652_v49, 0.0  ;;  %v3495_v8 = vadd.f32 %v3494_v17, %v3493_v21  ;;  %vm6653_vm5 = vcmask 253952   ;;  %v6681_v17 = vld [vmem:[#allocation14_spill] sm:$0xff] }
 0x44a   : > { %v6640_v15 = vsel %vm6030_vm10, 4294967295, %v6639_v15  ;;  %vm6045_vm2 = vmand %vm6002_vm13, %vm6644_vm3  ;;  %v3722_v56 = vadd.f32 %v3721_v61, %v3720_v41  ;;  %vm6651_vm13 = vcmp.ge.s32.totalorder %v5000_v29, 1  ;;  %v3561_v14 = vsel %vm6653_vm5, %v3455_v5, 0.0 }
 0x44b   : > { %vm6648_vm14 = vmmov %vm6641_vm11  ;;  %v3621_v23 = vmul.f32 %v3457_v6, %v3457_v6  ;;  %vm6659_vm8 = vcmp.ge.s32.totalorder %v4992_v4, 1  ;;  %v3460_v21 = vsel %vm5952_vm15, %v6662_v44, 0.0  ;;  %v3562_v48 = vadd.f32 %v3561_v14, %v3560_v12 }
 0x44c   : > { %v3657_v36 = vsel %vm6648_vm14, %v3617_v43, 0.0  ;;  %vm6649_vm1 = vmmov %vm6641_vm11  ;;  %vm6654_vm14 = vcmp.ge.s32.totalorder %v4987_v52, 1  ;;  %v3622_v27 = vmul.f32 %v3458_v50, %v3458_v50  ;;  %vm6669_vm15 = vcmp.le.s32.totalorder %v4987_v52, 32 }
 0x44d   : > { %v3527_v1 = vsel %vm6649_vm1, %v3454_v13, 0.0  ;;  %vm6650_vm11 = vmmov %vm6649_vm1  ;;  %v6657_v13 = vld [vmem:[#allocation11_spill] sm:$0xff]  ;;  %v3658_v35 = vadd.f32 %v3657_v36, %v3656_v26  ;;  %v3624_v51 = vmul.f32 %v3460_v21, %v3460_v21 }
 0x44e   : > { %v3690_v34 = vsel %vm6650_vm11, %v3618_v22, 0.0  ;;  %vm2853_vm10 = vmand %vm2819_vm6, %vm2836_vm9  ;;  %v3459_v7 = vsel %vm5938_vm4, %v6657_v13, 0.0  ;;  %v3528_v57 = vadd.f32 %v3527_v1, %v3526_v42  ;;  %vm6663_vm4 = vcmp.le.s32.totalorder %v5000_v29, 32  ;;  %v6110_v42 = vld [vmem:[#allocation1] sm:$0xff] }
 0x44f   : > { %vm2955_vm3 = vmand %vm5930_vm12, %vm6651_vm13  ;;  %v3691_v19 = vadd.f32 %v3690_v34, %v3689_v53  ;;  %v2873_v2 = vsel %vm2853_vm10, 1, %v6383_v37  ;;  %v3496_v25 = vsel %vm6650_vm11, %v3456_v59, 0.0  ;;  %v3623_v39 = vmul.f32 %v3459_v7, %v3459_v7  ;;  %v6676_v22 = vld [vmem:[#allocation13_spill] sm:$0xff]  ;;  %3361 = vst [vmem:[#allocation1] ss:$9 sm:$0xff] %v4945_v47 }
 0x450   : > { %vm6069_vm1 = vmand %vm6037_vm0, %vm6654_vm14  ;;  %vm6673_vm14 = vcmp.le.s32.totalorder %v4992_v4, 32  ;;  %v3461_v26 = vsel %vm6013_vm7, %v6676_v22, 0.0  ;;  %v2890_v61 = vperm.slane %v2873_v2, 0  ;;  %v3463_v53 = vsel %vm6045_vm2, %v6683_v16, 0.0  ;;  %3362 = vst [vmem:[#allocation1 + $0x1] ss:$9 sm:$0xff] %v2731_v40 }
 0x451   : > { %vm6658_vm12 = vmmov %vm6653_vm5  ;;  %vm6097_vm5 = vcmp.eq.s32.totalorder %v2889_v45, 1  ;;  %v3497_v38 = vadd.f32 %v3496_v25, %v3495_v8  ;;  %vm6684_vm7 = vcmp.ge.s32.totalorder %v4987_v52, 1  ;;  %3363 = vst [vmem:[#allocation1 + $0x2] ss:$9 sm:$0xff] %v2732_v18  ;;  %vm6690_vm2 = vcmp.ge.s32.totalorder %v4992_v4, 1 }
 0x452   : > { %v3723_v31 = vsel %vm6658_vm12, %v3619_v24, 0.0  ;;  %vm6081_vm6 = vmand %vm6037_vm0, %vm6659_vm8  ;;  %vm6678_vm8 = vcmp.ge.s32.totalorder %v5000_v29, 1  ;;  %3364 = vst [vmem:[#allocation1 + $0x3] ss:$9 sm:$0xff] %v2733_v30  ;;  %v3627_v49 = vmul.f32 %v3463_v53, %v3463_v53 }
 0x453   : > { %vm6091_vm9 = vmand %vm2955_vm3, %vm6663_vm4  ;;  %v3724_v46 = vadd.f32 %v3723_v31, %v3722_v56  ;;  %3365 = vst [vmem:[#allocation1 + $0x4] ss:$9 sm:$0xff] %v2734_v9  ;;  %v6708_v31 = vld [vmem:[#allocation17_spill] sm:$0xff] }
 0x454   : > { %vm6666_vm13 = vmmov %vm6650_vm11  ;;  %3366 = vst [vmem:[#allocation1 + $0x5] ss:$9 sm:$0xff] %v2735_v62  ;;  %v6709_v62 = vrot.slane %v4945_v47, 6 }
 0x455   : > { %v3659_v5 = vsel %vm6666_vm13, %v3620_v60, 0.0  ;;  %vm6105_vm10 = vmand %vm6069_vm1, %vm6669_vm15  ;;  %vm6688_vm13 = vcmask 253952   ;;  %v3625_v60 = vmul.f32 %v3461_v26, %v3461_v26 }
 0x456   : > { %vm6672_vm3 = vmmov %vm6650_vm11  ;;  %v3563_v36 = vsel %vm6688_vm13, %v3458_v50, 0.0  ;;  %v3465_v3 = vsel %vm6105_vm10, %v6708_v31, 0.0  ;;  %3367 = vst [vmem:[#allocation1 + $0x6] ss:$9 sm:$0xff] %v6709_v62  ;;  %vm6716_vm10 = vcmp.ge.s32.totalorder %v5000_v29, 1 }
 0x457   : > { %v3529_v55 = vsel %vm6672_vm3, %v3457_v6, 0.0  ;;  %vm6116_vm12 = vmand %vm6081_vm6, %vm6673_vm14  ;;  %vm6682_vm6 = vnez %v6640_v15  ;;  %v3660_v6 = vadd.f32 %v3659_v5, %v3658_v35  ;;  %v3564_v28 = vadd.f32 %v3563_v36, %v3562_v48 }
 0x458   : > { %vm6677_vm1 = vmmov %vm6672_vm3  ;;  %v3462_v24 = vsel %vm6682_vm6, %v6681_v17, 0.0  ;;  %v3530_v12 = vadd.f32 %v3529_v55, %v3528_v57  ;;  %v3466_v57 = vsel %vm6116_vm12, %v5300_v10, 0.0  ;;  %v6715_v48 = vrot.slane %v4945_v47, 7 }
 0x459   : > { %v3692_v59 = vsel %vm6677_vm1, %v3621_v23, 0.0  ;;  %vm6129_vm4 = vmand %vm6037_vm0, %vm6678_vm8  ;;  %v3661_v34 = vsel %vm6677_vm1, %v3623_v39, 0.0  ;;  %vm6694_vm8 = vcmp.le.s32.totalorder %v5000_v29, 32  ;;  %v3626_v45 = vmul.f32 %v3462_v24, %v3462_v24  ;;  %v6707_v23 = vld [vmem:[#allocation16_spill] sm:$0xff] }
 0x45a   : > { %vm6145_vm0 = vmand %vm6097_vm5, %vm6684_vm7  ;;  %v3693_v56 = vadd.f32 %v3692_v59, %v3691_v19  ;;  %v3464_v35 = vsel %vm6091_vm9, %v6707_v23, 0.0  ;;  %vm6712_vm9 = vcmp.ge.s32.totalorder %v4987_v52, 1  ;;  %3368 = vst [vmem:[#allocation1 + $0x7] ss:$9 sm:$0xff] %v6715_v48  ;;  %v3629_v32 = vmul.f32 %v3465_v3, %v3465_v3 }
 0x45b   : > { %vm6687_vm11 = vmmov %vm6677_vm1 }
 0x45c   : > { %v3498_v15 = vsel %vm6687_vm11, %v3459_v7, 0.0  ;;  %vm6689_vm15 = vmmov %vm6688_vm13  ;;  %vm6175_vm11 = vcmp.eq.s32.totalorder %v2890_v61, 1  ;;  %vm6700_vm13 = vcmp.le.s32.totalorder %v4987_v52, 32 }
 0x45d   : > { %v3725_v20 = vsel %vm6689_vm15, %v3622_v27, 0.0  ;;  %vm6158_vm3 = vmand %vm6097_vm5, %vm6690_vm2  ;;  %v3499_v14 = vadd.f32 %v3498_v15, %v3497_v38  ;;  %vm6704_vm2 = vcmp.le.s32.totalorder %v4992_v4, 32 }
 0x45e   : > { %vm6693_vm14 = vmmov %vm6677_vm1  ;;  %v3726_v7 = vadd.f32 %v3725_v20, %v3724_v46  ;;  %v3628_v46 = vmul.f32 %v3464_v35, %v3464_v35 }
 0x45f   : > { %v3531_v1 = vsel %vm6693_vm14, %v3460_v21, 0.0  ;;  %vm6170_vm6 = vmand %vm6129_vm4, %vm6694_vm8  ;;  %vm6703_vm4 = vcmask 253952   ;;  %v3662_v21 = vadd.f32 %v3661_v34, %v3660_v6 }
 0x460   : > { %vm6697_vm7 = vmmov %vm6677_vm1  ;;  %v3565_v13 = vsel %vm6703_vm4, %v3461_v26, 0.0  ;;  %v3532_v44 = vadd.f32 %v3531_v1, %v3530_v12 }
 0x461   : > { %v3694_v50 = vsel %vm6697_vm7, %v3624_v51, 0.0  ;;  %vm6185_vm15 = vmand %vm6145_vm0, %vm6700_vm13  ;;  %v3566_v5 = vadd.f32 %v3565_v13, %v3564_v28  ;;  %v3630_v51 = vmul.f32 %v3466_v57, %v3466_v57  ;;  %v3369_v40 = vld [vmem:[#allocation1] sm:$0xff] }
 0x462   : > { %vm6196_vm14 = vmand %vm6158_vm3, %vm6704_vm2  ;;  %v3695_v2 = vadd.f32 %v3694_v50, %v3693_v56  ;;  %v3468_v61 = vsel %vm6185_vm15, %v5580_v58, 0.0  ;;  %v6737_v56 = vld [vmem:[#allocation2_spill] sm:$0xff] }
 0x463   : > { %vm6710_vm0 = vmmov %vm6677_vm1  ;;  %v3469_v47 = vsel %vm6196_vm14, %v5812_v33, 0.0  ;;  %v3632_v20 = vmul.f32 %v3468_v61, %v3468_v61  ;;  %3370 = vst [vmem:[#allocation1] ss:$9 sm:$0xff] %v6737_v56 }
 0x464   : > { %v3500_v19 = vsel %vm6710_vm0, %v3462_v24, 0.0  ;;  %vm6711_vm3 = vmmov %vm6703_vm4  ;;  %v3502_v26 = vsel %vm6710_vm0, %v3465_v3, 0.0 }
 0x465   : > { %v3727_v25 = vsel %vm6711_vm3, %v3625_v60, 0.0  ;;  %vm6217_vm1 = vmand %vm6175_vm11, %vm6712_vm9  ;;  %v3501_v22 = vadd.f32 %v3500_v19, %v3499_v14  ;;  %vm6727_vm9 = vcmp.le.s32.totalorder %v5000_v29, 32 }
 0x466   : > { %vm6227_vm12 = vmand %vm6097_vm5, %vm6716_vm10  ;;  %vm6723_vm5 = vcmp.ge.s32.totalorder %v4992_v4, 1  ;;  %v3728_v59 = vadd.f32 %v3727_v25, %v3726_v7 }
 0x467   : > { %vm6719_vm8 = vmmov %vm6710_vm0  ;;  %v3503_v6 = vadd.f32 %v3502_v26, %v3501_v22 }
 0x468   : > { %v3533_v27 = vsel %vm6719_vm8, %v3463_v53, 0.0  ;;  %vm6720_vm7 = vmmov %vm6710_vm0  ;;  %v3633_v53 = vmul.f32 %v3469_v47, %v3469_v47 }
 0x469   : > { %v3663_v37 = vsel %vm6720_vm7, %v3626_v45, 0.0  ;;  %vm6721_vm13 = vmmov %vm6710_vm0  ;;  %v3534_v54 = vadd.f32 %v3533_v27, %v3532_v44 }
 0x46a   : > { %v3696_v55 = vsel %vm6721_vm13, %v3627_v49, 0.0  ;;  %vm6722_vm4 = vmmov %vm6711_vm3  ;;  %vm6726_vm3 = vcmp.le.s32.totalorder %v4987_v52, 32  ;;  %v3664_v24 = vadd.f32 %v3663_v37, %v3662_v21  ;;  %v3467_v52 = vsel %vm6170_vm6, %v5380_v0, 0.0  ;;  %v3371_v48 = vld [vmem:[#allocation1] sm:$0xff] }
 0x46b   : > { %v3567_v39 = vsel %vm6722_vm4, %v3464_v35, 0.0  ;;  %vm6242_vm2 = vmand %vm6175_vm11, %vm6723_vm5  ;;  %v3697_v38 = vadd.f32 %v3696_v55, %v3695_v2  ;;  %v3631_v60 = vmul.f32 %v3467_v52, %v3467_v52 }
 0x46c   : > { %vm3022_vm14 = vmand %vm6217_vm1, %vm6726_vm3  ;;  %v3568_v16 = vadd.f32 %v3567_v39, %v3566_v5  ;;  %vm6731_vm1 = vcmp.le.s32.totalorder %v4992_v4, 32  ;;  %vm6741_vm3 = vcmp.ge.s32.totalorder %v5000_v29, 1 }
 0x46d   : > { %vm6255_vm10 = vmand %vm6227_vm12, %vm6727_vm9  ;;  %v3471_v15 = vsel %vm3022_vm14, %v6110_v42, 0.0 }
 0x46e   : > { %vm6730_vm8 = vmmov %vm6710_vm0  ;;  %v3470_v4 = vsel %vm6255_vm10, %v5922_v11, 0.0  ;;  %v3635_v42 = vmul.f32 %v3471_v15, %v3471_v15 }
 0x46f   : > { %v3535_v17 = vsel %vm6730_vm8, %v3466_v57, 0.0  ;;  %vm3023_vm12 = vmand %vm6242_vm2, %vm6731_vm1  ;;  %v3634_v11 = vmul.f32 %v3470_v4, %v3470_v4 }
 0x470   : > { %vm6732_vm7 = vmmov %vm6710_vm0  ;;  %v3536_v12 = vadd.f32 %v3535_v17, %v3534_v54  ;;  %v3472_v34 = vsel %vm3023_vm12, %v3369_v40, 0.0 }
 0x471   : > { %v3665_v63 = vsel %vm6732_vm7, %v3629_v32, 0.0  ;;  %vm6733_vm15 = vmmov %vm6722_vm4  ;;  %v3636_v49 = vmul.f32 %v3472_v34, %v3472_v34  ;;  %vm6747_vm7 = vcmp.le.s32.totalorder %v5000_v29, 32 }
 0x472   : > { %v3729_v58 = vsel %vm6733_vm15, %v3628_v46, 0.0  ;;  %vm6734_vm13 = vmmov %vm6710_vm0  ;;  %v3666_v14 = vadd.f32 %v3665_v63, %v3664_v24 }
 0x473   : > { %v3537_v36 = vsel %vm6734_vm13, %v3469_v47, 0.0  ;;  %vm6735_vm6 = vmmov %vm6710_vm0  ;;  %v3730_v21 = vadd.f32 %v3729_v58, %v3728_v59 }
 0x474   : > { %v3698_v0 = vsel %vm6735_vm6, %v3630_v51, 0.0  ;;  %vm6736_vm4 = vmmov %vm6710_vm0  ;;  %v3538_v50 = vadd.f32 %v3537_v36, %v3536_v12 }
 0x475   : > { %v3504_v1 = vsel %vm6736_vm4, %v3468_v61, 0.0  ;;  %vm6738_vm5 = vmmov %vm6710_vm0  ;;  %v3699_v28 = vadd.f32 %v3698_v0, %v3697_v38 }
 0x476   : > { %v3700_v18 = vsel %vm6738_vm5, %v3633_v53, 0.0  ;;  %vm6739_vm2 = vmmov %vm6710_vm0  ;;  %v3505_v23 = vadd.f32 %v3504_v1, %v3503_v6 }
 0x477   : > { %v3539_v45 = vsel %vm6739_vm2, %v3472_v34, 0.0  ;;  %vm6740_vm0 = vmmov %vm6733_vm15  ;;  %v3701_v35 = vadd.f32 %v3700_v18, %v3699_v28 }
 0x478   : > { %v3569_v30 = vsel %vm6740_vm0, %v3467_v52, 0.0  ;;  %vm2964_vm14 = vmand %vm6175_vm11, %vm6741_vm3  ;;  %v3540_v3 = vadd.f32 %v3539_v45, %v3538_v50 }
 0x479   : > { %vm6742_vm9 = vmmov %vm6739_vm2  ;;  %v3570_v62 = vadd.f32 %v3569_v30, %v3568_v16 }
 0x47a   : > { %v3667_v13 = vsel %vm6742_vm9, %v3632_v20, 0.0  ;;  %vm6743_vm10 = vmmov %vm6739_vm2 }
 0x47b   : > { %v3506_v7 = vsel %vm6743_vm10, %v3471_v15, 0.0  ;;  %vm6744_vm8 = vmmov %vm6739_vm2  ;;  %v3668_v57 = vadd.f32 %v3667_v13, %v3666_v14 }
 0x47c   : > { %v3702_v9 = vsel %vm6744_vm8, %v3636_v49, 0.0  ;;  %vm6745_vm1 = vmmov %vm6740_vm0  ;;  %v3507_v19 = vadd.f32 %v3506_v7, %v3505_v23 }
 0x47d   : > { %v3731_v31 = vsel %vm6745_vm1, %v3631_v60, 0.0  ;;  %vm6746_vm12 = vmmov %vm6740_vm0  ;;  %v3703_v2 = vadd.f32 %v3702_v9, %v3701_v35 }
 0x47e   : > { %v3571_v44 = vsel %vm6746_vm12, %v3470_v4, 0.0  ;;  %vm3024_vm15 = vmand %vm2964_vm14, %vm6747_vm7  ;;  %v3732_v25 = vadd.f32 %v3731_v31, %v3730_v21 }
 0x47f   : > { %vm6748_vm13 = vmmov %vm6739_vm2  ;;  %v3572_v10 = vadd.f32 %v3571_v44, %v3570_v62  ;;  %v3473_v37 = vsel %vm3024_vm15, %v3371_v48, 0.0  ;;  %v3738_v46 = vsel %vm6739_vm2, %v3703_v2, 0.0 }
 0x480   : > { %v3669_v8 = vsel %vm6748_vm13, %v3635_v42, 0.0  ;;  %vm6749_vm11 = vmmov %vm6740_vm0  ;;  %v3637_v47 = vmul.f32 %v3473_v37, %v3473_v37 }
 0x481   : > { %v3733_v41 = vsel %vm6749_vm11, %v3634_v11, 0.0  ;;  %v3670_v27 = vadd.f32 %v3669_v8, %v3668_v57  ;;  %vm6750_vm6 = vmmov %vm6739_vm2 }
 0x482   : > { %v3576_v5 = vsel %vm6750_vm6, %v3540_v3, 0.0  ;;  %vm6751_vm4 = vmmov %vm6740_vm0  ;;  %v3734_v29 = vadd.f32 %v3733_v41, %v3732_v25  ;;  %v3735_v22 = vsel %vm6740_vm0, %v3637_v47, 0.0 }
 0x483   : > { %v3573_v55 = vsel %vm6751_vm4, %v3473_v37, 0.0  ;;  %vm6752_vm5 = vmmov %vm6739_vm2 }
 0x484   : > { %v3575_v39 = vsel %vm6752_vm5, %v3507_v19, 0.0  ;;  %v3574_v32 = vadd.f32 %v3573_v55, %v3572_v10  ;;  %vm6753_vm3 = vmmov %vm6739_vm2  ;;  %v3736_v59 = vadd.f32 %v3735_v22, %v3734_v29 }
 0x485   : > { %v3577_v43 = vadd.f32 %v3576_v5, %v3575_v39  ;;  %v3737_v26 = vsel %vm6753_vm3, %v3670_v27, 0.0  ;;  %vm6754_vm14 = vmmov %vm6740_vm0 }
 0x486   : > { %v3578_v51 = vsel %vm6754_vm14, %v3574_v32, 0.0  ;;  %v3739_v33 = vadd.f32 %v3738_v46, %v3737_v26  ;;  %vm6755_vm9 = vmmov %vm6740_vm0 }
 0x487   : > { %v3579_v61 = vadd.f32 %v3578_v51, %v3577_v43  ;;  %v3740_v54 = vsel %vm6755_vm9, %v3736_v59, 0.0  ;;  %vm6756_vm10 = vmmov %vm6740_vm0 }
 0x488   : > { %v3741_v24 = vadd.f32 %v3740_v54, %v3739_v33  ;;  %vm6757_vm8 = vmmov %vm6740_vm0 }
 0x489   : > { %v3580_v17 = vrot.slane %v3579_v61, 4 }
 0x48a   : > { %v3742_v16 = vrot.slane %v3741_v24, 4 }
 0x48b   : > { %v3581_v52 = vadd.f32 %v3580_v17, %v3579_v61 }
 0x48c   : > { %v3743_v38 = vadd.f32 %v3742_v16, %v3741_v24 }
 0x48d   : > { %v3582_v53 = vrot.slane %v3581_v52, 2 }
 0x48e   : > { %v3744_v63 = vrot.slane %v3743_v38, 2 }
 0x48f   : > { %v3583_v6 = vadd.f32 %v3582_v53, %v3581_v52 }
 0x490   : > { %v3745_v15 = vadd.f32 %v3744_v63, %v3743_v38 }
 0x491   : > { %v3584_v58 = vrot.slane %v3583_v6, 1 }
 0x492   : > { %v3746_v36 = vrot.slane %v3745_v15, 1 }
 0x493   : > { %v3585_v12 = vadd.f32 %v3584_v58, %v3583_v6 }
 0x494   : > { %v3747_v20 = vadd.f32 %v3746_v36, %v3745_v15 }
 0x495   : > { %3586 = vst.msk [vmem:[%s364_s20] sm:$0x1] %vm6756_vm10, %v3585_v12 }
 0x496   : > { %3748 = vst.msk [vmem:[%s369_s27] sm:$0x1] %vm6757_vm8, %v3747_v20 }
 0x497 PF: > { %s17_s23 = sadd.s32 1, %s4078_s23   ;;  %s6758_s21 = smov %s4074_s22 }
 0x498   : > { %p14_p5 = scmp.ge.s32.totalorder %s17_s23, 4   ;;  %s6759_s22 = smov %s6761_s24 }
 0x49a   :  { %16 = sbr.rel (!%p14_p5) target bundleno = 2 (0x2), region = 99 }

// kernel: deconv_block_forward.3
= control target key start
LH: loop header
LB: loop body
LE: loop exit
PB: predicated region body
PF: predicated region fallthrough
CT: control target
= control target key end

     0   :  { %s5266_s18 = smov 0   ;;  %s5268_s19 = smov 0   ;;  %s8233_s0 = inlined_call_operand.vmem [shape: bf16[2,18,18,4], index: 0, kind: input, shape index: {}, may-alias: {0,1}]   ;;  %s8234_s1 = inlined_call_operand.vmem [shape: bf16[2,18,18,4], index: 1, kind: input, shape index: {}, may-alias: {0,1}]   ;;  %s8235_s2 = inlined_call_operand.vmem [shape: bf16[16,32], index: 2, kind: input, shape index: {}]   ;;  %s8236_s3 = inlined_call_operand.vmem [shape: f32[1,1,32], index: 3, kind: input, shape index: {}]   ;;  %s8237_s4 = inlined_call_operand.vmem [shape: f32[1,1,32], index: 4, kind: input, shape index: {}]   ;;  %s8238_s5 = inlined_call_operand.vmem [shape: f32[34,2,17,16], index: 5, kind: output, shape index: {}]  }
   0x1   :  { %s5270_s20 = smov 0  }
   0x2 LB: > { %s27_s21 = sadd.s32 1, %s5226_s19  ;;  %p4964_p0 = scmp.ge.s32.totalorder %s5230_s20, 1  ;;  %s5230_s20 = sphi %s5270_s20, %s15_s20   ;;  %s5226_s19 = sphi %s5268_s19, %s8990_s19   ;;  %s5222_s18 = sphi %s5266_s18, %s8989_s18  }
   0x3   : > { %p29_p1 = scmp.ge.s32.totalorder %s27_s21, 2  ;;  %p243_p2 = scmp.lt.s32.totalorder %s5230_s20, 3 }
   0x5   : > { %s8992_s21 = smov (%p29_p1, %s27_s21), 0  ;;  %p244_p3 = pnand %p4964_p0, %p243_p2 }
   0x7   : > { %247 = sbr.rel (%p244_p3) target bundleno = 1866 (0x74a), region = 40 }
   0xc   : > { %p300_p4 = scmp.lt.s32.totalorder %s5222_s18, 1  ;;  %s5232_s27 = smov 8   ;;  %vm692_vm0 = vsmask.f32 7424  ;;  %vm1157_vm1 = vcmask 31744   ;;  %vm1226_vm2 = vcmask 64512  }
   0xd   : > { %s5233_s28 = smov 12   ;;  %s5234_s29 = smov 4   ;;  %vm1295_vm3 = vcmask 97280   ;;  %vm2273_vm4 = vcmask 130048   ;;  %vm4258_vm5 = vcmask 122880  }
   0xe   : > { %s5288_s22 = scalar_select %p300_p4, %s5222_s18, 1 }
   0xf   : > { %s329_s15 = smul.u32 17, %s5222_s18  ;;  %s5235_s6 = smov 112  }
  0x10   : > { %s5170_s23 = smul.u32 216, %s5288_s22 }
  0x11   : > { %p330_p5 = scmp.lt.s32.totalorder %s329_s15, 33 }
  0x12   : > { %s5296_s26 = scalar_lea.vmem %s8233_s0, %s5170_s23  ;;  %s5117_s7 = sadd.s32 204, %s5170_s23 }
  0x13   : > { %v343_v0 = vld [vmem:[%s5296_s26 + $0x14] sm:$0x1]  ;;  %v341_v1 = vld [vmem:[%s5296_s26 + $0xc] sm:$0xff]   ;;  %v340_v2 = vld [vmem:[%s5296_s26 + $0x8] sm:$0x1]  ;;  %s5857_s10 = scalar_lea.vmem %s8234_s1, %s5117_s7  ;;  %s8994_s15 = smov (!%p330_p5, %s329_s15), 33 }
  0x14   : > { %v399_v3 = vunpack.c.l.bf16 %v343_v0  ;;  %v397_v4 = vunpack.c.l.bf16 %v341_v1  ;;  %v398_v5 = vunpack.c.h.bf16 %v341_v1  ;;  %v396_v6 = vunpack.c.l.bf16 %v340_v2  ;;  %v5159_v7 = vld [vmem:[%s5296_s26 + $0x18] sm:$0xff]   ;;  %v346_v8 = vld [vmem:[%s5296_s26 + $0x20] sm:$0x1]  ;;  %v347_v36 = vld [vmem:[%s5296_s26 + $0x24] sm:$0xff]   ;;  %s5172_s16 = smul.u32 48, %s8994_s15 }
  0x15   : > { %v5120_v9 = vld [vmem:[%s5296_s26] sm:$0xff]   ;;  %v5125_v10 = vunpack.c.l.bf16 %v5159_v7  ;;  %v5126_v11 = vunpack.c.h.bf16 %v5159_v7  ;;  %v402_v12 = vunpack.c.l.bf16 %v346_v8  ;;  %v403_v47 = vunpack.c.l.bf16 %v347_v36  ;;  %v349_v58 = vld [vmem:[%s5296_s26 + $0x2c] sm:$0x1]  ;;  %v5160_v61 = vld [vmem:[%s5296_s26 + $0x30] sm:$0xff]  }
  0x16   : > { %v5121_v13 = vunpack.c.l.bf16 %v5120_v9  ;;  %v453_v14 = vmax.f32 %v399_v3, 0.0  ;;  %v451_v15 = vmax.f32 %v397_v4, 0.0  ;;  %v452_v16 = vmax.f32 %v398_v5, 0.0  ;;  %v352_v7 = vld [vmem:[%s5296_s26 + $0x38] sm:$0x1]  ;;  %s6556_s22 = scalar_lea.vmem %s8238_s5, %s5172_s16 }
  0x17   : > { %v450_v17 = vmax.f32 %v396_v6, 0.0  ;;  %v454_v18 = vmax.f32 %v5125_v10, 0.0  ;;  %v455_v19 = vmax.f32 %v5126_v11, 0.0  ;;  %v5122_v20 = vunpack.c.h.bf16 %v5120_v9 }
  0x18   : > { %v507_v21 = vpack.c.bf16 %v453_v14, %v453_v14  ;;  %v505_v22 = vpack.c.bf16 %v451_v15, %v451_v15  ;;  %v506_v23 = vpack.c.bf16 %v452_v16, %v452_v16  ;;  %v456_v27 = vmax.f32 %v402_v12, 0.0 }
  0x19   : > { %v504_v24 = vpack.c.bf16 %v450_v17, %v450_v17  ;;  %v508_v25 = vpack.c.bf16 %v454_v18, %v454_v18  ;;  %v509_v26 = vpack.c.bf16 %v455_v19, %v455_v19  ;;  %v448_v28 = vmax.f32 %v5121_v13, 0.0 }
  0x1a   : > { %v612_v29 = vunpack.c.l.b16 %v507_v21  ;;  %v610_v30 = vunpack.c.l.b16 %v505_v22  ;;  %v611_v31 = vunpack.c.l.b16 %v506_v23  ;;  %v449_v35 = vmax.f32 %v5122_v20, 0.0 }
  0x1b   : > { %v609_v32 = vunpack.c.l.b16 %v504_v24  ;;  %v613_v33 = vunpack.c.l.b16 %v508_v25  ;;  %v614_v34 = vunpack.c.l.b16 %v509_v26  ;;  %v502_v39 = vpack.c.bf16 %v448_v28, %v448_v28 }
  0x1c   : > { %v5305_v37 = vpack.c.b16 %v612_v29, %v612_v29  ;;  %v5307_v38 = vpack.c.b16 %v611_v31, %v610_v30  ;;  %v510_v42 = vpack.c.bf16 %v456_v27, %v456_v27  ;;  %v503_v43 = vpack.c.bf16 %v449_v35, %v449_v35 }
  0x1d   : > { %v5309_v40 = vpack.c.b16 %v609_v32, %v609_v32  ;;  %v5311_v41 = vpack.c.b16 %v614_v34, %v613_v33  ;;  %v607_v50 = vunpack.c.l.b16 %v502_v39  ;;  %v404_v55 = vunpack.c.h.bf16 %v347_v36 }
  0x1e   : > { %1009 = vrot.lane.b32.xlu1 %v5305_v37, %s5232_s27  ;;  %1007 = vrot.lane.b32.xlu0 %v5307_v38, %s5232_s27  ;;  %v708_v44 = vshrl.u32 %v5307_v38, 16  ;;  %v710_v45 = vshll.u32 %v5307_v38, 16  ;;  %v715_v46 = vshll.u32 %v5305_v37, 16  ;;  %v608_v51 = vunpack.c.l.b16 %v503_v43 }
  0x1f   : > { %1011 = vrot.lane.b32.xlu2 %v5311_v41, %s5232_s27  ;;  %v615_v52 = vunpack.c.l.b16 %v510_v42  ;;  %v705_v54 = vshrl.u32 %v5309_v40, 16  ;;  %v457_v56 = vmax.f32 %v403_v47, 0.0  ;;  %v458_v60 = vmax.f32 %v404_v55, 0.0 }
  0x20   : > { %v712_v48 = vrot.slane %v710_v45, 1  ;;  %v717_v49 = vrot.slane %v715_v46, 1  ;;  %v5323_v57 = vpack.c.b16 %v608_v51, %v607_v50  ;;  %v719_v62 = vshrl.u32 %v5305_v37, 16  ;;  %v353_v51 = vld [vmem:[%s5296_s26 + $0x3c] sm:$0xff]  }
  0x21   : > { %v5329_v63 = vpack.c.b16 %v615_v52, %v615_v52  ;;  %v724_v0 = vshll.u32 %v5311_v41, 16  ;;  %v511_v1 = vpack.c.bf16 %v457_v56, %v457_v56  ;;  %v512_v2 = vpack.c.bf16 %v458_v60, %v458_v60 }
  0x22   : > { %v713_v53 = vor.u32 %v712_v48, %v708_v44  ;;  %v405_v3 = vunpack.c.l.bf16 %v349_v58  ;;  %v696_v4 = vshll.u32 %v5323_v57, 16  ;;  %v5129_v5 = vunpack.c.l.bf16 %v5160_v61 }
  0x23   : > { %v5130_v6 = vunpack.c.h.bf16 %v5160_v61  ;;  %v722_v9 = vshrl.u32 %v5311_v41, 16  ;;  %v726_v10 = vrot.slane %v724_v0, 1  ;;  %v729_v11 = vshll.u32 %v5329_v63, 16 }
  0x24   : > { %v718_v59 = vsel %vm692_vm0, %v713_v53, %v717_v49  ;;  %v459_v8 = vmax.f32 %v405_v3, 0.0  ;;  %v701_v12 = vshll.u32 %v5309_v40, 16  ;;  %v616_v13 = vunpack.c.l.b16 %v511_v1 }
  0x25   : > { %v617_v14 = vunpack.c.l.b16 %v512_v2  ;;  %v408_v16 = vunpack.c.l.bf16 %v352_v7  ;;  %v694_v17 = vshrl.u32 %v5323_v57, 16  ;;  %v698_v18 = vrot.slane %v696_v4, 1  ;;  %v5161_v2 = vld [vmem:[%s5296_s26 + $0x48] sm:$0xff]  }
  0x26   : > { %1089 = vrot.lane.b32.xlu1 %v718_v59, %s5233_s28  ;;  %933 = vrot.lane.b32.xlu0 %v705_v54, %s5234_s29  ;;  %v513_v15 = vpack.c.bf16 %v459_v8, %v459_v8  ;;  %v460_v19 = vmax.f32 %v5129_v5, 0.0  ;;  %v461_v20 = vmax.f32 %v5130_v6, 0.0  ;;  %v731_v21 = vrot.slane %v729_v11, 1 }
  0x27   : > { %1091 = vrot.lane.b32.xlu2 %v719_v62, %s5233_s28  ;;  %v727_v22 = vor.u32 %v726_v10, %v722_v9  ;;  %v5343_v23 = vpack.c.b16 %v617_v14, %v616_v13  ;;  %v462_v25 = vmax.f32 %v408_v16, 0.0  ;;  %v699_v26 = vor.u32 %v698_v18, %v694_v17  ;;  %v358_v9 = vld [vmem:[%s5296_s26 + $0x50] sm:$0x1] }
  0x28   : > { %v618_v24 = vunpack.c.l.b16 %v513_v15  ;;  %v703_v27 = vrot.slane %v701_v12, 1  ;;  %v514_v28 = vpack.c.bf16 %v460_v19, %v460_v19  ;;  %v515_v29 = vpack.c.bf16 %v461_v20, %v461_v20 }
  0x29   : > { %v738_v31 = vshll.u32 %v5343_v23, 16  ;;  %v516_v32 = vpack.c.bf16 %v462_v25, %v462_v25  ;;  %v732_v33 = vsel %vm692_vm0, %v727_v22, %v731_v21  ;;  %v736_v39 = vshrl.u32 %v5343_v23, 16 }
  0x2a   : > { %v5347_v30 = vpack.c.b16 %v618_v24, %v618_v24  ;;  %v704_v34 = vsel %vm692_vm0, %v699_v26, %v703_v27  ;;  %v619_v35 = vunpack.c.l.b16 %v514_v28  ;;  %v620_v36 = vunpack.c.l.b16 %v515_v29 }
  0x2b   : > { %v740_v42 = vrot.slane %v738_v31, 1  ;;  %v621_v44 = vunpack.c.l.b16 %v516_v32  ;;  %v733_v47 = vshrl.u32 %v5329_v63, 16  ;;  %v409_v56 = vunpack.c.l.bf16 %v353_v51 }
  0x2c   : > { %v743_v43 = vshll.u32 %v5347_v30, 16  ;;  %v5356_v45 = vpack.c.b16 %v620_v36, %v619_v35  ;;  %v410_v58 = vunpack.c.h.bf16 %v353_v51  ;;  %v5133_v7 = vunpack.c.l.bf16 %v5161_v2 }
  0x2d   : > { %v741_v48 = vor.u32 %v740_v42, %v736_v39  ;;  %v5361_v50 = vpack.c.b16 %v621_v44, %v621_v44  ;;  %v5134_v8 = vunpack.c.h.bf16 %v5161_v2  ;;  %v414_v13 = vunpack.c.l.bf16 %v358_v9 }
  0x2e   : > { %935 = vrot.lane.b32.xlu1 %v718_v59, %s5234_s29  ;;  %937 = vrot.lane.b32.xlu0 %v719_v62, %s5234_s29  ;;  %v752_v46 = vshll.u32 %v5356_v45, 16  ;;  %v745_v49 = vrot.slane %v743_v43, 1  ;;  %v750_v52 = vshrl.u32 %v5356_v45, 16  ;;  %v355_v59 = vld [vmem:[%s5296_s26 + $0x44] sm:$0x1]  ;;  %v463_v62 = vmax.f32 %v409_v56, 0.0 }
  0x2f   : > { %1013 = vrot.lane.b32.xlu2 %v5329_v63, %s5232_s27  ;;  %v757_v55 = vshll.u32 %v5361_v50, 16  ;;  %v464_v0 = vmax.f32 %v410_v58, 0.0  ;;  %v411_v1 = vunpack.c.l.bf16 %v355_v59  ;;  %v466_v14 = vmax.f32 %v5133_v7, 0.0  ;;  %v359_v43 = vld [vmem:[%s5296_s26 + $0x54] sm:$0xff]   ;;  %v5162_v59 = vld [vmem:[%s5296_s26 + $0x60] sm:$0xff]  }
  0x30   : > { %v754_v53 = vrot.slane %v752_v46, 1  ;;  %v746_v54 = vsel %vm692_vm0, %v741_v48, %v745_v49  ;;  %v517_v4 = vpack.c.bf16 %v463_v62, %v463_v62  ;;  %v467_v15 = vmax.f32 %v5134_v8, 0.0 }
  0x31   : > { %v759_v61 = vrot.slane %v757_v55, 1  ;;  %v518_v5 = vpack.c.bf16 %v464_v0, %v464_v0  ;;  %v465_v6 = vmax.f32 %v411_v1, 0.0  ;;  %v747_v16 = vshrl.u32 %v5347_v30, 16 }
  0x32   : > { %v755_v60 = vor.u32 %v754_v53, %v750_v52  ;;  %v622_v10 = vunpack.c.l.b16 %v517_v4  ;;  %v468_v19 = vmax.f32 %v414_v13, 0.0  ;;  %v520_v20 = vpack.c.bf16 %v466_v14, %v466_v14  ;;  %v361_v52 = vld [vmem:[%s5296_s26 + $0x5c] sm:$0x1] }
  0x33   : > { %v623_v11 = vunpack.c.l.b16 %v518_v5  ;;  %v519_v12 = vpack.c.bf16 %v465_v6, %v465_v6  ;;  %v521_v21 = vpack.c.bf16 %v467_v15, %v467_v15  ;;  %v761_v35 = vshrl.u32 %v5361_v50, 16 }
  0x34   : > { %v760_v3 = vsel %vm692_vm0, %v755_v60, %v759_v61  ;;  %v522_v25 = vpack.c.bf16 %v468_v19, %v468_v19  ;;  %v625_v26 = vunpack.c.l.b16 %v520_v20  ;;  %v415_v49 = vunpack.c.l.bf16 %v359_v43 }
  0x35   : > { %v5383_v17 = vpack.c.b16 %v623_v11, %v622_v10  ;;  %v624_v18 = vunpack.c.l.b16 %v519_v12  ;;  %v626_v27 = vunpack.c.l.b16 %v521_v21  ;;  %v416_v51 = vunpack.c.h.bf16 %v359_v43 }
  0x36   : > { %939 = vrot.lane.b32.xlu1 %v732_v33, %s5234_s29  ;;  %931 = vrot.lane.b32.xlu0 %v704_v34, %s5234_s29  ;;  %v627_v32 = vunpack.c.l.b16 %v522_v25  ;;  %v469_v55 = vmax.f32 %v415_v49, 0.0  ;;  %v417_v58 = vunpack.c.l.bf16 %v361_v52  ;;  %v5137_v1 = vunpack.c.l.bf16 %v5162_v59 }
  0x37   : > { %1093 = vrot.lane.b32.xlu2 %v732_v33, %s5233_s28  ;;  %v5386_v22 = vpack.c.b16 %v624_v18, %v624_v18  ;;  %v766_v24 = vshll.u32 %v5383_v17, 16  ;;  %v764_v28 = vshrl.u32 %v5383_v17, 16  ;;  %v5393_v33 = vpack.c.b16 %v626_v27, %v625_v26 }
  0x38   : > { %v5399_v42 = vpack.c.b16 %v627_v32, %v627_v32  ;;  %v470_v56 = vmax.f32 %v416_v51, 0.0  ;;  %v523_v61 = vpack.c.bf16 %v469_v55, %v469_v55  ;;  %v471_v0 = vmax.f32 %v417_v58, 0.0  ;;  %v367_v51 = vld [vmem:[%s5296_s26 + $0x74] sm:$0x1] }
  0x39   : > { %v768_v29 = vrot.slane %v766_v24, 1  ;;  %v771_v31 = vshll.u32 %v5386_v22, 16  ;;  %v780_v34 = vshll.u32 %v5393_v33, 16  ;;  %v778_v44 = vshrl.u32 %v5393_v33, 16 }
  0x3a   : > { %v785_v48 = vshll.u32 %v5399_v42, 16  ;;  %v524_v62 = vpack.c.bf16 %v470_v56, %v470_v56  ;;  %v5138_v2 = vunpack.c.h.bf16 %v5162_v59  ;;  %v628_v4 = vunpack.c.l.b16 %v523_v61 }
  0x3b   : > { %v769_v36 = vor.u32 %v768_v29, %v764_v28  ;;  %v773_v39 = vrot.slane %v771_v31, 1  ;;  %v782_v46 = vrot.slane %v780_v34, 1  ;;  %v525_v6 = vpack.c.bf16 %v471_v0, %v471_v0 }
  0x3c   : > { %v629_v5 = vunpack.c.l.b16 %v524_v62  ;;  %v472_v8 = vmax.f32 %v5137_v1, 0.0  ;;  %v473_v9 = vmax.f32 %v5138_v2, 0.0  ;;  %v775_v10 = vshrl.u32 %v5386_v22, 16 }
  0x3d   : > { %v783_v53 = vor.u32 %v782_v46, %v778_v44  ;;  %v630_v12 = vunpack.c.l.b16 %v525_v6  ;;  %v789_v31 = vshrl.u32 %v5399_v42, 16  ;;  %v423_v56 = vunpack.c.l.bf16 %v367_v51 }
  0x3e   : > { %1095 = vrot.lane.b32.xlu1 %v733_v47, %s5233_s28  ;;  %1015 = vrot.lane.b32.xlu0 %v5343_v23, %s5232_s27  ;;  %v5421_v11 = vpack.c.b16 %v629_v5, %v628_v4  ;;  %v526_v14 = vpack.c.bf16 %v472_v8, %v472_v8  ;;  %v527_v15 = vpack.c.bf16 %v473_v9, %v473_v9  ;;  %v5163_v5 = vld [vmem:[%s5296_s26 + $0x78] sm:$0xff]  }
  0x3f   : > { %1097 = vrot.lane.b32.xlu2 %v746_v54, %s5233_s28  ;;  %v477_v61 = vmax.f32 %v423_v56, 0.0  ;;  %v5141_v9 = vunpack.c.l.bf16 %v5163_v5  ;;  %v5118_v56 = vld [vmem:[%s8235_s2] sm:$0xff] }
  0x40   : > { %v794_v18 = vshll.u32 %v5421_v11, 16  ;;  %v631_v20 = vunpack.c.l.b16 %v526_v14  ;;  %v632_v21 = vunpack.c.l.b16 %v527_v15  ;;  %v792_v24 = vshrl.u32 %v5421_v11, 16  ;;  %2319 = vmatpush.bf16.msra.mxu0 %v5118_v56  ;;  %5167 = vmatpush.bf16.msra.mxu1 %v5118_v56 }
  0x41   : > { %v531_v2 = vpack.c.bf16 %v477_v61, %v477_v61  ;;  %v478_v15 = vmax.f32 %v5141_v9, 0.0  ;;  %5168 = vmatpush.bf16.msra.mxu2 %v5118_v56  ;;  %5169 = vmatpush.bf16.msra.mxu3 %v5118_v56 }
  0x42   : > { %v796_v25 = vrot.slane %v794_v18, 1  ;;  %v5431_v28 = vpack.c.b16 %v632_v21, %v631_v20 }
  0x43   : > { %v636_v6 = vunpack.c.l.b16 %v531_v2 }
  0x44   : > { %v808_v29 = vshll.u32 %v5431_v28, 16  ;;  %v797_v32 = vor.u32 %v796_v25, %v792_v24 }
  0x46   : > { %1019 = vrot.lane.b32.xlu1 %v5356_v45, %s5232_s27  ;;  %943 = vrot.lane.b32.xlu0 %v746_v54, %s5234_s29  ;;  %v787_v54 = vrot.slane %v785_v48, 1  ;;  %v810_v43 = vrot.slane %v808_v29, 1 }
  0x47   : > { %1101 = vrot.lane.b32.xlu2 %v760_v3, %s5233_s28 }
  0x48   : > { %v788_v60 = vsel %vm692_vm0, %v783_v53, %v787_v54 }
  0x4e   : > { %1017 = vrot.lane.b32.xlu1 %v5347_v30, %s5232_s27  ;;  %941 = vrot.lane.b32.xlu0 %v733_v47, %s5234_s29  ;;  %v774_v47 = vsel %vm692_vm0, %v769_v36, %v773_v39  ;;  %v365_v36 = vld [vmem:[%s5296_s26 + $0x6c] sm:$0xff]   ;;  %v806_v39 = vshrl.u32 %v5431_v28, 16 }
  0x4f   : > { %1099 = vrot.lane.b32.xlu2 %v747_v16, %s5233_s28  ;;  %v422_v48 = vunpack.c.h.bf16 %v365_v36 }
  0x50   : > { %v811_v52 = vor.u32 %v810_v43, %v806_v39 }
  0x51   : > { %v476_v55 = vmax.f32 %v422_v48, 0.0 }
  0x56   : > { %947 = vrot.lane.b32.xlu1 %v760_v3, %s5234_s29  ;;  %945 = vrot.lane.b32.xlu0 %v747_v16, %s5234_s29  ;;  %v364_v3 = vld [vmem:[%s5296_s26 + $0x68] sm:$0x1]  ;;  %v5424_v16 = vpack.c.b16 %v630_v12, %v630_v12  ;;  %v5467_v12 = vpack.c.b16 %v636_v6, %v636_v6 }
  0x57   : > { %1021 = vrot.lane.b32.xlu2 %v5361_v50, %s5232_s27  ;;  %v420_v7 = vunpack.c.l.bf16 %v364_v3 }
  0x58   : > { %v799_v26 = vshll.u32 %v5424_v16, 16  ;;  %v803_v3 = vshrl.u32 %v5424_v16, 16  ;;  %v827_v21 = vshll.u32 %v5467_v12, 16 }
  0x59   : > { %v474_v13 = vmax.f32 %v420_v7, 0.0 }
  0x5a   : > { %v801_v34 = vrot.slane %v799_v26, 1 }
  0x5b   : > { %v528_v19 = vpack.c.bf16 %v474_v13, %v474_v13 }
  0x5c   : > { %v802_v44 = vsel %vm692_vm0, %v797_v32, %v801_v34  ;;  %v829_v32 = vrot.slane %v827_v21, 1  ;;  %v370_v34 = vld [vmem:[%s5296_s26 + $0x80] sm:$0x1] }
  0x5d   : > { %v633_v27 = vunpack.c.l.b16 %v528_v19 }
  0x5e   : > { %1103 = vrot.lane.b32.xlu1 %v761_v35, %s5233_s28  ;;  %1023 = vrot.lane.b32.xlu0 %v5383_v17, %s5232_s27 }
  0x5f   : > { %1105 = vrot.lane.b32.xlu2 %v774_v47, %s5233_s28 }
  0x66   : > { %1027 = vrot.lane.b32.xlu1 %v5393_v33, %s5232_s27  ;;  %951 = vrot.lane.b32.xlu0 %v774_v47, %s5234_s29  ;;  %v421_v47 = vunpack.c.l.bf16 %v365_v36  ;;  %v426_v36 = vunpack.c.l.bf16 %v370_v34 }
  0x67   : > { %1109 = vrot.lane.b32.xlu2 %v788_v60, %s5233_s28 }
  0x68   : > { %v475_v54 = vmax.f32 %v421_v47, 0.0  ;;  %v480_v43 = vmax.f32 %v426_v36, 0.0 }
  0x6a   : > { %v529_v59 = vpack.c.bf16 %v475_v54, %v475_v54  ;;  %v534_v48 = vpack.c.bf16 %v480_v43, %v480_v43 }
  0x6c   : > { %v634_v0 = vunpack.c.l.b16 %v529_v59  ;;  %v639_v54 = vunpack.c.l.b16 %v534_v48  ;;  %v831_v48 = vshrl.u32 %v5467_v12, 16 }
  0x6e   : > { %1025 = vrot.lane.b32.xlu1 %v5386_v22, %s5232_s27  ;;  %949 = vrot.lane.b32.xlu0 %v761_v35, %s5234_s29  ;;  %v5437_v35 = vpack.c.b16 %v633_v27, %v633_v27  ;;  %v532_v27 = vpack.c.bf16 %v478_v15, %v478_v15  ;;  %v5500_v59 = vpack.c.b16 %v639_v54, %v639_v54 }
  0x6f   : > { %1107 = vrot.lane.b32.xlu2 %v775_v10, %s5233_s28 }
  0x70   : > { %v813_v46 = vshll.u32 %v5437_v35, 16  ;;  %v817_v26 = vshrl.u32 %v5437_v35, 16  ;;  %v841_v9 = vshll.u32 %v5500_v59, 16 }
  0x72   : > { %v815_v53 = vrot.slane %v813_v46, 1 }
  0x74   : > { %v816_v58 = vsel %vm692_vm0, %v811_v52, %v815_v53 }
  0x76   : > { %955 = vrot.lane.b32.xlu1 %v788_v60, %s5234_s29  ;;  %953 = vrot.lane.b32.xlu0 %v775_v10, %s5234_s29  ;;  %v530_v60 = vpack.c.bf16 %v476_v55, %v476_v55  ;;  %v5142_v10 = vunpack.c.h.bf16 %v5163_v5 }
  0x77   : > { %1029 = vrot.lane.b32.xlu2 %v5399_v42, %s5232_s27 }
  0x78   : > { %v635_v1 = vunpack.c.l.b16 %v530_v60  ;;  %v479_v18 = vmax.f32 %v5142_v10, 0.0  ;;  %v371_v10 = vld [vmem:[%s5296_s26 + $0x84] sm:$0xff]  }
  0x79   : > { %v5446_v49 = vpop.permute.xlu2 %1011  ;;  %v427_v21 = vunpack.c.l.bf16 %v371_v10 }
  0x7a   : > { %v5461_v4 = vpack.c.b16 %v635_v1, %v634_v0  ;;  %v533_v29 = vpack.c.bf16 %v479_v18, %v479_v18 }
  0x7c   : > { %v822_v13 = vshll.u32 %v5461_v4, 16  ;;  %v820_v19 = vshrl.u32 %v5461_v4, 16  ;;  %v638_v46 = vunpack.c.l.b16 %v533_v29 }
  0x7e   : > { %1111 = vrot.lane.b32.xlu1 %v789_v31, %s5233_s28  ;;  %1031 = vrot.lane.b32.xlu0 %v5421_v11, %s5232_s27  ;;  %v824_v20 = vrot.slane %v822_v13, 1 }
  0x7f   : > { %1113 = vrot.lane.b32.xlu2 %v802_v44, %s5233_s28 }
  0x81   : > { %v5455_v62 = vpop.permute.xlu2 %1091 }
  0x86   : > { %1035 = vrot.lane.b32.xlu1 %v5431_v28, %s5232_s27  ;;  %959 = vrot.lane.b32.xlu0 %v802_v44, %s5234_s29  ;;  %v637_v44 = vunpack.c.l.b16 %v532_v27 }
  0x87   : > { %1117 = vrot.lane.b32.xlu2 %v816_v58, %s5233_s28 }
  0x88   : > { %v5489_v53 = vpack.c.b16 %v638_v46, %v637_v44 }
  0x89   : > { %v5470_v14 = vpop.permute.xlu2 %1013 }
  0x8e   : > { %1033 = vrot.lane.b32.xlu1 %v5424_v16, %s5232_s27  ;;  %957 = vrot.lane.b32.xlu0 %v789_v31, %s5234_s29  ;;  %v825_v31 = vor.u32 %v824_v20, %v820_v19 }
  0x8f   : > { %1115 = vrot.lane.b32.xlu2 %v803_v3, %s5233_s28 }
  0x90   : > { %v5465_v7 = vpop.permute.xlu1 %1009  ;;  %v1008_v8 = vpop.permute.xlu0 %1007  ;;  %v830_v47 = vsel %vm692_vm0, %v825_v31, %v829_v32  ;;  %v373_v31 = vld [vmem:[%s5296_s26 + $0x8c] sm:$0x1] }
  0x91   : > { %v1094_v39 = vpop.permute.xlu2 %1093  ;;  %v429_v46 = vunpack.c.l.bf16 %v373_v31 }
  0x96   : > { %963 = vrot.lane.b32.xlu1 %v816_v58, %s5234_s29  ;;  %961 = vrot.lane.b32.xlu0 %v803_v3, %s5234_s29  ;;  %v836_v58 = vshll.u32 %v5489_v53, 16  ;;  %v834_v3 = vshrl.u32 %v5489_v53, 16 }
  0x97   : > { %1037 = vrot.lane.b32.xlu2 %v5437_v35, %s5232_s27 }
  0x98   : > { %v1090_v24 = vpop.permute.xlu1 %1089  ;;  %v5478_v25 = vpop.permute.xlu0 %933  ;;  %v838_v5 = vrot.slane %v836_v58, 1 }
  0x99   : > { %v5491_v55 = vpop.permute.xlu2 %1097 }
  0x9a   : > { %v839_v19 = vor.u32 %v838_v5, %v834_v3 }
  0x9e   : > { %1119 = vrot.lane.b32.xlu1 %v817_v26, %s5233_s28  ;;  %1039 = vrot.lane.b32.xlu0 %v5461_v4, %s5232_s27 }
  0x9f   : > { %1121 = vrot.lane.b32.xlu2 %v830_v47, %s5233_s28 }
  0xa0   : > { %v936_v51 = vpop.permute.xlu1 %935  ;;  %v5487_v52 = vpop.permute.xlu0 %937 }
  0xa1   : > { %v1163_v0 = vsel %vm1157_vm1, %v5307_v38, %v936_v51  ;;  %v5521_v29 = vpop.permute.xlu2 %1101 }
  0xa2   : > { %v1232_v13 = vsel %vm1226_vm2, %v1163_v0, %v5446_v49 }
  0xa3   : > { %v5519_v27 = vsel %vm1295_vm3, %v1232_v13, %v1094_v39  ;;  %v1161_v39 = vsel %vm1157_vm1, %v5309_v40, %v5478_v25 }
  0xa4   : > { %v1406_v56 = vrot.slane %v5519_v27, 2  ;;  %v1230_v58 = vsel %vm1226_vm2, %v1161_v39, %v5465_v7  ;;  %v1407_v40 = vrot.slane %v5519_v27, 3  ;;  %v1408_v25 = vrot.slane %v5519_v27, 4 }
  0xa5   : > { %v1535_v3 = vunpack.i.h.s16 %v5519_v27  ;;  %v1409_v7 = vrot.slane %v5519_v27, 5 }
  0xa6   : > { %1043 = vrot.lane.b32.xlu1 %v5489_v53, %s5232_s27  ;;  %967 = vrot.lane.b32.xlu0 %v830_v47, %s5234_s29  ;;  %v1405_v47 = vrot.slane %v5519_v27, 1 }
  0xa8   : > { %v5502_v60 = vpop.permute.xlu1 %939  ;;  %v932_v61 = vpop.permute.xlu0 %931  ;;  %v1537_v5 = vunpack.i.h.s16 %v1405_v47 }
  0xa9   : > { %v1159_v1 = vsel %vm1157_vm1, %v5323_v57, %v932_v61 }
  0xaa   : > { %v1228_v2 = vsel %vm1226_vm2, %v1159_v1, %v1008_v8  ;;  %v843_v8 = vrot.slane %v841_v9, 1  ;;  %v5164_v1 = vld [vmem:[%s5296_s26 + $0x90] sm:$0xff]  }
  0xab   : > { %v1297_v6 = vsel %vm1295_vm3, %v1228_v2, %v1090_v24  ;;  %v428_v24 = vunpack.c.h.bf16 %v371_v10  ;;  %v483_v2 = vmax.f32 %v429_v46, 0.0  ;;  %v5146_v9 = vunpack.c.h.bf16 %v5164_v1 }
  0xac   : > { %v1398_v15 = vrot.slane %v1297_v6, 1  ;;  %v1399_v38 = vrot.slane %v1297_v6, 2  ;;  %v1400_v18 = vrot.slane %v1297_v6, 3  ;;  %1952 = vst [vmem:[#allocation1] ss:$9 sm:$0xff] %v1297_v6  ;;  %v1401_v57 = vrot.slane %v1297_v6, 4 }
  0xad   : > { %v1402_v20 = vrot.slane %v1297_v6, 5  ;;  %v1403_v49 = vrot.slane %v1297_v6, 6  ;;  %v1404_v32 = vrot.slane %v1297_v6, 7  ;;  %v844_v43 = vsel %vm692_vm0, %v839_v19, %v843_v8 }
  0xae   : > { %1955 = vst [vmem:[#allocation1 + $0x1] ss:$9 sm:$0xff] %v1398_v15  ;;  %1041 = vrot.lane.b32.xlu1 %v5467_v12, %s5232_s27  ;;  %965 = vrot.lane.b32.xlu0 %v817_v26, %s5234_s29  ;;  %v481_v26 = vmax.f32 %v427_v21, 0.0  ;;  %v482_v44 = vmax.f32 %v428_v24, 0.0  ;;  %v5145_v6 = vunpack.c.l.bf16 %v5164_v1  ;;  %v1539_v10 = vunpack.i.h.s16 %v1406_v56  ;;  %v5550_v24 = vpop.permute.xlu2 %1099 }
  0xaf   : > { %1958 = vst [vmem:[#allocation1 + $0x2] ss:$9 sm:$0xff] %v1399_v38  ;;  %1125 = vrot.lane.b32.xlu2 %v844_v43, %s5233_s28  ;;  %v537_v15 = vpack.c.bf16 %v483_v2, %v483_v2  ;;  %v1541_v38 = vunpack.i.h.s16 %v1407_v40  ;;  %v485_v8 = vmax.f32 %v5146_v9, 0.0  ;;  %v1543_v21 = vunpack.i.h.s16 %v1408_v25 }
  0xb0   : > { %1961 = vst [vmem:[#allocation1 + $0x3] ss:$9 sm:$0xff] %v1400_v18  ;;  %v5524_v34 = vpop.permute.xlu1 %1095  ;;  %v5526_v36 = vpop.permute.xlu0 %1015  ;;  %v535_v51 = vpack.c.bf16 %v481_v26, %v481_v26  ;;  %v536_v54 = vpack.c.bf16 %v482_v44, %v482_v44  ;;  %v1410_v18 = vrot.slane %v5519_v27, 6  ;;  %v4971_v39 = vpack.i.b16 %v1407_v40, %v1539_v10 }
  0xb1   : > { %1964 = vst [vmem:[#allocation1 + $0x4] ss:$9 sm:$0xff] %v1401_v57  ;;  %v539_v44 = vpack.c.bf16 %v485_v8, %v485_v8  ;;  %v1545_v1 = vunpack.i.h.s16 %v1409_v7 }
  0xb2   : > { %1967 = vst [vmem:[#allocation1 + $0x5] ss:$9 sm:$0xff] %v1402_v20  ;;  %v640_v61 = vunpack.c.l.b16 %v535_v51  ;;  %v641_v0 = vunpack.c.l.b16 %v536_v54  ;;  %v484_v20 = vmax.f32 %v5145_v6, 0.0  ;;  %v1547_v2 = vunpack.i.h.s16 %v1410_v18 }
  0xb3   : > { %1970 = vst [vmem:[#allocation1 + $0x6] ss:$9 sm:$0xff] %v1403_v49  ;;  %v642_v49 = vunpack.c.l.b16 %v537_v15 }
  0xb4   : > { %1973 = vst [vmem:[#allocation1 + $0x7] ss:$9 sm:$0xff] %v1404_v32  ;;  %v5545_v13 = vpack.c.b16 %v641_v0, %v640_v61  ;;  %v4970_v32 = vpack.i.b16 %v1406_v56, %v1537_v5  ;;  %v538_v26 = vpack.c.bf16 %v484_v20, %v484_v20  ;;  %v4972_v0 = vpack.i.b16 %v1408_v25, %v1541_v38 }
  0xb5   : > { %v5555_v51 = vpack.c.b16 %v642_v49, %v642_v49  ;;  %v4969_v56 = vpack.i.b16 %v1405_v47, %v1535_v3  ;;  %v644_v5 = vunpack.c.l.b16 %v539_v44  ;;  %v4973_v47 = vpack.i.b16 %v1409_v7, %v1543_v21 }
  0xb6   : > { %971 = vrot.lane.b32.xlu1 %v844_v43, %s5234_s29  ;;  %969 = vrot.lane.b32.xlu0 %v831_v48, %s5234_s29  ;;  %v850_v31 = vshll.u32 %v5545_v13, 16  ;;  %v845_v43 = vshrl.u32 %v5500_v59, 16  ;;  %v848_v54 = vshrl.u32 %v5545_v13, 16  ;;  %v643_v25 = vunpack.c.l.b16 %v538_v26  ;;  %v5573_v20 = vpop.permute.xlu2 %1021 }
  0xb7   : > { %1123 = vrot.lane.b32.xlu2 %v831_v48, %s5233_s28  ;;  %v1299_v48 = vsel %vm1295_vm3, %v1230_v58, %v5455_v62  ;;  %v855_v6 = vshll.u32 %v5555_v51, 16  ;;  %v1411_v62 = vrot.slane %v5519_v27, 7  ;;  %v4974_v3 = vpack.i.b16 %v1410_v18, %v1545_v1  ;;  %v376_v18 = vld [vmem:[%s5296_s26 + $0x98] sm:$0x1] }
  0xb8   : > { %v5548_v57 = vpop.permute.xlu1 %1019  ;;  %v944_v19 = vpop.permute.xlu0 %943  ;;  %v852_v61 = vrot.slane %v850_v31, 1  ;;  %v4968_v40 = vpack.i.b16 %v5519_v27, %v1299_v48  ;;  %v1165_v27 = vsel %vm1157_vm1, %v5305_v37, %v5487_v52  ;;  %v5580_v7 = vpack.c.b16 %v644_v5, %v643_v25 }
  0xb9   : > { %v857_v15 = vrot.slane %v855_v6, 1  ;;  %v4975_v38 = vpack.i.b16 %v1411_v62, %v1547_v2  ;;  %v1167_v21 = vsel %vm1157_vm1, %v5311_v41, %v5502_v60  ;;  %v432_v49 = vunpack.c.l.bf16 %v376_v18  ;;  %v377_v6 = vld [vmem:[%s5296_s26 + $0x9c] sm:$0xff]  }
  0xba   : > { %v853_v58 = vor.u32 %v852_v61, %v848_v54  ;;  %v1234_v31 = vsel %vm1226_vm2, %v1165_v27, %v5470_v14  ;;  %v1549_v26 = vunpack.i.h.s16 %v1411_v62  ;;  %v1171_v41 = vsel %vm1157_vm1, %v5343_v23, %v944_v19 }
  0xbb   : > { %v1974_v46 = vld [vmem:[#allocation1] sm:$0xff]  ;;  %v1303_v37 = vsel %vm1295_vm3, %v1234_v31, %v5524_v34  ;;  %v486_v52 = vmax.f32 %v432_v49, 0.0  ;;  %v862_v48 = vshrl.u32 %v5580_v7, 16 }
  0xbc   : > { %1980 = vst [vmem:[#allocation1 + $0x2] ss:$9 sm:$0xff] %v4970_v32  ;;  %5044 = vmatmul.msk.bf16.vlgmr.msra.gmra.mxu0 %vm2273_vm4, %v1974_v46  ;;  %v858_v8 = vsel %vm692_vm0, %v853_v58, %v857_v15  ;;  %v1236_v32 = vsel %vm1226_vm2, %v1167_v21, %v5526_v36  ;;  %v4976_v34 = vpack.i.b16 %v1303_v37, %v1549_v26  ;;  %v433_v15 = vunpack.c.l.bf16 %v377_v6  ;;  %v379_v49 = vld [vmem:[%s5296_s26 + $0xa4] sm:$0x1] }
  0xbd   : > { %1982 = vst [vmem:[#allocation1 + $0x3] ss:$9 sm:$0xff] %v4971_v39  ;;  %v5600_v60 = vsel %vm1295_vm3, %v1236_v32, %v5491_v55  ;;  %v540_v44 = vpack.c.bf16 %v486_v52, %v486_v52  ;;  %v1240_v46 = vsel %vm1226_vm2, %v1171_v41, %v5548_v57  ;;  %v864_v55 = vshll.u32 %v5580_v7, 16 }
  0xbe   : > { %1984 = vst [vmem:[#allocation1 + $0x4] ss:$9 sm:$0xff] %v4972_v0  ;;  %1127 = vrot.lane.b32.xlu1 %v845_v43, %s5233_s28  ;;  %1047 = vrot.lane.b32.xlu0 %v5545_v13, %s5232_s27  ;;  %v1412_v23 = vrot.slane %v5600_v60, 1  ;;  %v5610_v19 = vpop.permute.xlu2 %1105  ;;  %v1413_v61 = vrot.slane %v5600_v60, 2  ;;  %v1414_v1 = vrot.slane %v5600_v60, 3  ;;  %v5621_v57 = vsel %vm1295_vm3, %v1240_v46, %v5521_v29 }
  0xbf   : > { %1978 = vst [vmem:[#allocation1 + $0x1] ss:$9 sm:$0xff] %v4969_v56  ;;  %1045 = vrot.lane.b32.xlu2 %v5500_v59, %s5232_s27  ;;  %v645_v54 = vunpack.c.l.b16 %v540_v44  ;;  %v866_v56 = vrot.slane %v864_v55, 1  ;;  %v1415_v2 = vrot.slane %v5600_v60, 4  ;;  %v1416_v25 = vrot.slane %v5600_v60, 5 }
  0xc0   : > { %1976 = vst [vmem:[#allocation1] ss:$9 sm:$0xff] %v4968_v40  ;;  %v5569_v9 = vpop.permute.xlu1 %1017  ;;  %v5571_v10 = vpop.permute.xlu0 %941  ;;  %v1417_v29 = vrot.slane %v5600_v60, 6  ;;  %v1419_v62 = vrot.slane %v5621_v57, 1  ;;  %v487_v21 = vmax.f32 %v433_v15, 0.0  ;;  %v1421_v31 = vrot.slane %v5621_v57, 3 }
  0xc1   : > { %1986 = vst [vmem:[#allocation1 + $0x5] ss:$9 sm:$0xff] %v4973_v47  ;;  %v5616_v0 = vpack.c.b16 %v645_v54, %v645_v54  ;;  %v867_v5 = vor.u32 %v866_v56, %v862_v48  ;;  %v1169_v27 = vsel %vm1157_vm1, %v5329_v63, %v5571_v10  ;;  %v1422_v32 = vrot.slane %v5621_v57, 4 }
  0xc2   : > { %1988 = vst [vmem:[#allocation1 + $0x6] ss:$9 sm:$0xff] %v4974_v3  ;;  %v1571_v37 = vunpack.i.h.s16 %v1419_v62  ;;  %v1238_v41 = vsel %vm1226_vm2, %v1169_v27, %v5569_v9  ;;  %v541_v10 = vpack.c.bf16 %v487_v21, %v487_v21  ;;  %v435_v44 = vunpack.c.l.bf16 %v379_v49 }
  0xc3   : > { %1990 = vst [vmem:[#allocation1 + $0x7] ss:$9 sm:$0xff] %v4975_v38  ;;  %v869_v40 = vshll.u32 %v5616_v0, 16  ;;  %v1420_v38 = vrot.slane %v5621_v57, 2  ;;  %v1575_v54 = vunpack.i.h.s16 %v1421_v31  ;;  %v1307_v9 = vsel %vm1295_vm3, %v1238_v41, %v5550_v24  ;;  %v382_v41 = vld [vmem:[%s5296_s26 + $0xb0] sm:$0x1] }
  0xc4   : > { %v646_v55 = vunpack.c.l.b16 %v541_v10  ;;  %v873_v15 = vshrl.u32 %v5616_v0, 16  ;;  %v4977_v21 = vpack.i.b16 %v5621_v57, %v1307_v9 }
  0xc5   : > { %v871_v3 = vrot.slane %v869_v40, 1  ;;  %v1573_v26 = vunpack.i.h.s16 %v1420_v38 }
  0xc6   : > { %1051 = vrot.lane.b32.xlu1 %v5580_v7, %s5232_s27  ;;  %975 = vrot.lane.b32.xlu0 %v858_v8, %s5234_s29  ;;  %v5651_v63 = vpop.permute.xlu2 %1109 }
  0xc7   : > { %1129 = vrot.lane.b32.xlu2 %v858_v8, %s5233_s28  ;;  %v872_v18 = vsel %vm692_vm0, %v867_v5, %v871_v3  ;;  %v859_v8 = vshrl.u32 %v5555_v51, 16  ;;  %v4980_v5 = vpack.i.b16 %v1421_v31, %v1573_v26  ;;  %v1424_v31 = vrot.slane %v5621_v57, 6 }
  0xc8   : > { %v5602_v14 = vpop.permute.xlu1 %947  ;;  %v5604_v36 = vpop.permute.xlu0 %945 }
  0xca   : > { %v1991_v39 = vld [vmem:[#allocation1] sm:$0xff] }
  0xcb   : > { %1993 = vst [vmem:[#allocation1] ss:$9 sm:$0xff] %v4976_v34  ;;  %v1418_v34 = vrot.slane %v5600_v60, 7 }
  0xcc   : > { %1995 = vst [vmem:[#allocation1 + $0x1] ss:$9 sm:$0xff] %v5600_v60  ;;  %5045 = vmatmul.msk.bf16.gmra.mxu0 %vm2273_vm4, %v1991_v39  ;;  %v1569_v39 = vunpack.i.h.s16 %v5621_v57 }
  0xcd   : > { %1997 = vst [vmem:[#allocation1 + $0x2] ss:$9 sm:$0xff] %v1412_v23  ;;  %v1423_v23 = vrot.slane %v5621_v57, 5 }
  0xce   : > { %1999 = vst [vmem:[#allocation1 + $0x3] ss:$9 sm:$0xff] %v1413_v61  ;;  %1049 = vrot.lane.b32.xlu1 %v5555_v51, %s5232_s27  ;;  %973 = vrot.lane.b32.xlu0 %v845_v43, %s5234_s29  ;;  %v434_v43 = vunpack.c.h.bf16 %v377_v6  ;;  %v5165_v61 = vld [vmem:[%s5296_s26 + $0xa8] sm:$0xff]   ;;  %v1577_v6 = vunpack.i.h.s16 %v1422_v32 }
  0xcf   : > { %2001 = vst [vmem:[#allocation1 + $0x4] ss:$9 sm:$0xff] %v1414_v1  ;;  %1133 = vrot.lane.b32.xlu2 %v872_v18, %s5233_s28  ;;  %v489_v1 = vmax.f32 %v435_v44, 0.0  ;;  %v5150_v40 = vunpack.c.h.bf16 %v5165_v61  ;;  %v1579_v49 = vunpack.i.h.s16 %v1423_v23  ;;  %v1425_v44 = vrot.slane %v5621_v57, 7 }
  0xd0   : > { %2003 = vst [vmem:[#allocation1 + $0x5] ss:$9 sm:$0xff] %v1415_v2  ;;  %v5635_v47 = vpop.permute.xlu1 %1103  ;;  %v5637_v58 = vpop.permute.xlu0 %1023  ;;  %v488_v52 = vmax.f32 %v434_v43, 0.0  ;;  %v5149_v2 = vunpack.c.l.bf16 %v5165_v61 }
  0xd1   : > { %2005 = vst [vmem:[#allocation1 + $0x6] ss:$9 sm:$0xff] %v1416_v25  ;;  %v543_v3 = vpack.c.bf16 %v489_v1, %v489_v1  ;;  %v491_v24 = vmax.f32 %v5150_v40, 0.0  ;;  %v1583_v40 = vunpack.i.h.s16 %v1425_v44 }
  0xd2   : > { %2007 = vst [vmem:[#allocation1 + $0x7] ss:$9 sm:$0xff] %v1417_v29  ;;  %v542_v46 = vpack.c.bf16 %v488_v52, %v488_v52  ;;  %v4979_v29 = vpack.i.b16 %v1420_v38, %v1571_v37  ;;  %v490_v27 = vmax.f32 %v5149_v2, 0.0  ;;  %v4978_v38 = vpack.i.b16 %v1419_v62, %v1569_v39  ;;  %v5673_v37 = vpop.permute.xlu2 %1107 }
  0xd3   : > { %v648_v52 = vunpack.c.l.b16 %v543_v3  ;;  %v545_v10 = vpack.c.bf16 %v491_v24, %v491_v24  ;;  %v438_v62 = vunpack.c.l.bf16 %v382_v41  ;;  %v1581_v2 = vunpack.i.h.s16 %v1424_v31 }
  0xd4   : > { %v647_v60 = vunpack.c.l.b16 %v542_v46  ;;  %v544_v26 = vpack.c.bf16 %v490_v27, %v490_v27 }
  0xd5   : > { %v650_v46 = vunpack.c.l.b16 %v545_v10 }
  0xd6   : > { %979 = vrot.lane.b32.xlu1 %v872_v18, %s5234_s29  ;;  %977 = vrot.lane.b32.xlu0 %v859_v8, %s5234_s29  ;;  %v5666_v43 = vpack.c.b16 %v647_v60, %v646_v55  ;;  %v4981_v18 = vpack.i.b16 %v1422_v32, %v1575_v54  ;;  %v1173_v32 = vsel %vm1157_vm1, %v5347_v30, %v5604_v36  ;;  %v649_v39 = vunpack.c.l.b16 %v544_v26 }
  0xd7   : > { %1131 = vrot.lane.b32.xlu2 %v859_v8, %s5233_s28  ;;  %v4982_v8 = vpack.i.b16 %v1423_v23, %v1577_v6  ;;  %v5684_v54 = vpack.c.b16 %v648_v52, %v648_v52  ;;  %v1175_v30 = vsel %vm1157_vm1, %v5356_v45, %v5602_v14  ;;  %v1242_v23 = vsel %vm1226_vm2, %v1173_v32, %v5573_v20 }
  0xd8   : > { %v5661_v48 = vpop.permute.xlu1 %1027  ;;  %v5663_v56 = vpop.permute.xlu0 %951  ;;  %v5695_v55 = vpack.c.b16 %v650_v46, %v649_v39  ;;  %v876_v61 = vshrl.u32 %v5666_v43, 16  ;;  %v878_v1 = vshll.u32 %v5666_v43, 16  ;;  %v1311_v9 = vsel %vm1295_vm3, %v1242_v23, %v5635_v47  ;;  %v383_v23 = vld [vmem:[%s5296_s26 + $0xb4] sm:$0xff]  }
  0xd9   : > { %v2008_v25 = vld [vmem:[#allocation1] sm:$0xff]  ;;  %v1244_v45 = vsel %vm1226_vm2, %v1175_v30, %v5637_v58  ;;  %v883_v14 = vshll.u32 %v5684_v54, 16  ;;  %v492_v60 = vmax.f32 %v438_v62, 0.0  ;;  %v4985_v6 = vpack.i.b16 %v1311_v9, %v1583_v40 }
  0xda   : > { %2010 = vst [vmem:[#allocation1] ss:$9 sm:$0xff] %v1418_v34  ;;  %v4983_v34 = vpack.i.b16 %v1424_v31, %v1579_v49  ;;  %v892_v20 = vshll.u32 %v5695_v55, 16  ;;  %v5709_v47 = vsel %vm1295_vm3, %v1244_v45, %v5610_v19  ;;  %v5711_v58 = vpop.permute.xlu2 %1029  ;;  %v1179_v27 = vsel %vm1157_vm1, %v5383_v17, %v5663_v56 }
  0xdb   : > { %2016 = vst [vmem:[#allocation1 + $0x3] ss:$9 sm:$0xff] %v4979_v29  ;;  %v885_v29 = vrot.slane %v883_v14, 1  ;;  %v4984_v49 = vpack.i.b16 %v1425_v44, %v1581_v2  ;;  %v1426_v19 = vrot.slane %v5709_v47, 1  ;;  %v1427_v56 = vrot.slane %v5709_v47, 2 }
  0xdc   : > { %2018 = vst [vmem:[#allocation1 + $0x4] ss:$9 sm:$0xff] %v4980_v5  ;;  %5046 = vmatmul.msk.bf16.gmra.mxu0 %vm2273_vm4, %v2008_v25  ;;  %v880_v25 = vrot.slane %v878_v1, 1  ;;  %v546_v5 = vpack.c.bf16 %v492_v60, %v492_v60  ;;  %v1248_v26 = vsel %vm1226_vm2, %v1179_v27, %v5661_v48  ;;  %v1428_v10 = vrot.slane %v5709_v47, 3 }
  0xdd   : > { %2020 = vst [vmem:[#allocation1 + $0x5] ss:$9 sm:$0xff] %v4981_v18  ;;  %v890_v18 = vshrl.u32 %v5695_v55, 16  ;;  %v1430_v62 = vrot.slane %v5709_v47, 5  ;;  %v439_v9 = vunpack.c.l.bf16 %v383_v23  ;;  %v440_v45 = vunpack.c.h.bf16 %v383_v23 }
  0xde   : > { %2014 = vst [vmem:[#allocation1 + $0x2] ss:$9 sm:$0xff] %v4978_v38  ;;  %1135 = vrot.lane.b32.xlu1 %v873_v15, %s5233_s28  ;;  %1055 = vrot.lane.b32.xlu0 %v5666_v43, %s5232_s27  ;;  %v881_v3 = vor.u32 %v880_v25, %v876_v61  ;;  %v651_v24 = vunpack.c.l.b16 %v546_v5 }
  0xdf   : > { %2012 = vst [vmem:[#allocation1 + $0x1] ss:$9 sm:$0xff] %v4977_v21  ;;  %1053 = vrot.lane.b32.xlu2 %v5616_v0, %s5232_s27  ;;  %v894_v21 = vrot.slane %v892_v20, 1  ;;  %v493_v25 = vmax.f32 %v439_v9, 0.0  ;;  %v494_v20 = vmax.f32 %v440_v45, 0.0 }
  0xe0   : > { %2022 = vst [vmem:[#allocation1 + $0x6] ss:$9 sm:$0xff] %v4982_v8  ;;  %v5689_v36 = vpop.permute.xlu1 %1025  ;;  %v5691_v57 = vpop.permute.xlu0 %949  ;;  %v886_v52 = vsel %vm692_vm0, %v881_v3, %v885_v29  ;;  %v5726_v17 = vpack.c.b16 %v651_v24, %v651_v24  ;;  %v1429_v8 = vrot.slane %v5709_v47, 4  ;;  %v385_v29 = vld [vmem:[%s5296_s26 + $0xbc] sm:$0x1]  ;;  %v887_v3 = vshrl.u32 %v5684_v54, 16 }
  0xe1   : > { %2024 = vst [vmem:[#allocation1 + $0x7] ss:$9 sm:$0xff] %v4983_v34  ;;  %v895_v32 = vor.u32 %v894_v21, %v890_v18  ;;  %v5739_v34 = vsel %vm1295_vm3, %v1248_v26, %v5651_v63  ;;  %v1177_v40 = vsel %vm1157_vm1, %v5361_v50, %v5691_v57  ;;  %v547_v27 = vpack.c.bf16 %v493_v25, %v493_v25 }
  0xe2   : > { %v897_v44 = vshll.u32 %v5726_v17, 16  ;;  %v5742_v39 = vpop.permute.xlu2 %1113  ;;  %v1433_v30 = vrot.slane %v5739_v34, 1  ;;  %v1434_v63 = vrot.slane %v5739_v34, 2  ;;  %v1435_v14 = vrot.slane %v5739_v34, 3 }
  0xe3   : > { %v1436_v60 = vrot.slane %v5739_v34, 4  ;;  %v1603_v2 = vunpack.i.h.s16 %v5739_v34  ;;  %v1246_v18 = vsel %vm1226_vm2, %v1177_v40, %v5689_v36  ;;  %v441_v50 = vunpack.c.l.bf16 %v385_v29 }
  0xe4   : > { %v899_v48 = vrot.slane %v897_v44, 1  ;;  %v1605_v5 = vunpack.i.h.s16 %v1433_v30  ;;  %v1609_v24 = vunpack.i.h.s16 %v1435_v14  ;;  %v1431_v57 = vrot.slane %v5709_v47, 6 }
  0xe5   : > { %v1437_v36 = vrot.slane %v5739_v34, 5  ;;  %v1438_v29 = vrot.slane %v5739_v34, 6 }
  0xe6   : > { %1059 = vrot.lane.b32.xlu1 %v5695_v55, %s5232_s27  ;;  %983 = vrot.lane.b32.xlu0 %v886_v52, %s5234_s29  ;;  %v5747_v46 = vsel %vm692_vm0, %v895_v32, %v899_v48  ;;  %v4988_v26 = vpack.i.b16 %v1434_v63, %v1605_v5  ;;  %v495_v32 = vmax.f32 %v441_v50, 0.0  ;;  %v1439_v5 = vrot.slane %v5739_v34, 7 }
  0xe7   : > { %1137 = vrot.lane.b32.xlu2 %v886_v52, %s5233_s28  ;;  %v1611_v52 = vunpack.i.h.s16 %v1436_v60 }
  0xe8   : > { %v2025_v41 = vld [vmem:[#allocation1] sm:$0xff]  ;;  %v5722_v38 = vpop.permute.xlu1 %955  ;;  %v5724_v31 = vpop.permute.xlu0 %953 }
  0xe9   : > { %2027 = vst [vmem:[#allocation1] ss:$9 sm:$0xff] %v4984_v49  ;;  %v548_v49 = vpack.c.bf16 %v494_v20, %v494_v20  ;;  %v1181_v20 = vsel %vm1157_vm1, %v5386_v22, %v5724_v31 }
  0xea   : > { %2029 = vst [vmem:[#allocation1 + $0x1] ss:$9 sm:$0xff] %v4985_v6  ;;  %v1607_v6 = vunpack.i.h.s16 %v1434_v63  ;;  %v5771_v21 = vpop.permute.xlu2 %1117  ;;  %v4991_v63 = vpack.i.b16 %v1437_v36, %v1611_v52  ;;  %v1250_v50 = vsel %vm1226_vm2, %v1181_v20, %v5711_v58 }
  0xeb   : > { %2031 = vst [vmem:[#allocation1 + $0x2] ss:$9 sm:$0xff] %v5709_v47 }
  0xec   : > { %2033 = vst [vmem:[#allocation1 + $0x3] ss:$9 sm:$0xff] %v1426_v19  ;;  %5047 = vmatmul.msk.bf16.gmra.mxu0 %vm2273_vm4, %v2025_v41  ;;  %v4987_v41 = vpack.i.b16 %v1433_v30, %v1603_v2  ;;  %v1432_v19 = vrot.slane %v5709_v47, 7  ;;  %v4989_v44 = vpack.i.b16 %v1435_v14, %v1607_v6  ;;  %v4990_v30 = vpack.i.b16 %v1436_v60, %v1609_v24 }
  0xed   : > { %2035 = vst [vmem:[#allocation1 + $0x4] ss:$9 sm:$0xff] %v1427_v56  ;;  %v549_v47 = vpack.c.bf16 %v495_v32, %v495_v32  ;;  %v1183_v24 = vsel %vm1157_vm1, %v5393_v33, %v5722_v38  ;;  %v1617_v38 = vunpack.i.h.s16 %v1439_v5 }
  0xee   : > { %2037 = vst [vmem:[#allocation1 + $0x5] ss:$9 sm:$0xff] %v1428_v10  ;;  %1057 = vrot.lane.b32.xlu1 %v5684_v54, %s5232_s27  ;;  %1141 = vrot.lane.b32.xlu0 %v5747_v46, %s5233_s28  ;;  %v653_v10 = vunpack.c.l.b16 %v548_v49 }
  0xef   : > { %2039 = vst [vmem:[#allocation1 + $0x6] ss:$9 sm:$0xff] %v1429_v8  ;;  %981 = vrot.lane.b32.xlu2 %v873_v15, %s5234_s29  ;;  %v652_v15 = vunpack.c.l.b16 %v547_v27  ;;  %v1315_v8 = vsel %vm1295_vm3, %v1246_v18, %v5673_v37  ;;  %v654_v45 = vunpack.c.l.b16 %v549_v47  ;;  %v901_v37 = vshrl.u32 %v5726_v17, 16  ;;  %v5166_v27 = vld [vmem:[%s5296_s26 + $0xc0] sm:$0xff]  }
  0xf0   : > { %2041 = vst [vmem:[#allocation1 + $0x7] ss:$9 sm:$0xff] %v1430_v62  ;;  %v5754_v61 = vpop.permute.xlu1 %1111  ;;  %v5756_v1 = vpop.permute.xlu0 %1031  ;;  %v4986_v9 = vpack.i.b16 %v5739_v34, %v1315_v8  ;;  %v1613_v18 = vunpack.i.h.s16 %v1437_v36  ;;  %v5153_v49 = vunpack.c.l.bf16 %v5166_v27  ;;  %v5154_v52 = vunpack.c.h.bf16 %v5166_v27 }
  0xf1   : > { %v5783_v23 = vpack.c.b16 %v653_v10, %v652_v15  ;;  %v5792_v2 = vpack.c.b16 %v654_v45, %v654_v45  ;;  %v1252_v34 = vsel %vm1226_vm2, %v1183_v24, %v5756_v1  ;;  %v1615_v15 = vunpack.i.h.s16 %v1438_v29 }
  0xf2   : > { %v5790_v60 = vpop.permute.xlu2 %1115  ;;  %v496_v33 = vmax.f32 %v5153_v49, 0.0  ;;  %v5821_v58 = vsel %vm1295_vm3, %v1252_v34, %v5742_v39  ;;  %v4992_v1 = vpack.i.b16 %v1438_v29, %v1613_v18  ;;  %v5156_v34 = vld [vmem:[%s5857_s10] sm:$0xff]  }
  0xf3   : > { %v906_v14 = vshll.u32 %v5783_v23, 16  ;;  %v904_v40 = vshrl.u32 %v5783_v23, 16  ;;  %v4993_v8 = vpack.i.b16 %v1439_v5, %v1615_v15  ;;  %v1440_v39 = vrot.slane %v5821_v58, 1 }
  0xf4   : > { %v1442_v45 = vrot.slane %v5821_v58, 3  ;;  %v5158_v15 = vunpack.c.h.bf16 %v5156_v34 }
  0xf5   : > { %v908_v25 = vrot.slane %v906_v14, 1 }
  0xf6   : > { %1061 = vrot.lane.b32.xlu1 %v5726_v17, %s5232_s27  ;;  %985 = vrot.lane.b32.xlu0 %v887_v3, %s5234_s29 }
  0xf7   : > { %v2042_v56 = vld [vmem:[#allocation1] sm:$0xff]  ;;  %1139 = vrot.lane.b32.xlu2 %v887_v3, %s5233_s28  ;;  %v909_v6 = vor.u32 %v908_v25, %v904_v40  ;;  %v911_v3 = vshll.u32 %v5792_v2, 16  ;;  %v1443_v40 = vrot.slane %v5821_v58, 4  ;;  %v915_v25 = vshrl.u32 %v5792_v2, 16 }
  0xf8   : > { %2044 = vst [vmem:[#allocation1] ss:$9 sm:$0xff] %v1431_v57  ;;  %v5781_v62 = vpop.permute.xlu1 %1035  ;;  %v960_v48 = vpop.permute.xlu0 %959 }
  0xf9   : > { %2046 = vst [vmem:[#allocation1 + $0x1] ss:$9 sm:$0xff] %v1432_v19  ;;  %v913_v57 = vrot.slane %v911_v3, 1  ;;  %v1187_v32 = vsel %vm1157_vm1, %v5421_v11, %v960_v48 }
  0xfa   : > { %2050 = vst [vmem:[#allocation1 + $0x3] ss:$9 sm:$0xff] %v4987_v41  ;;  %v1319_v41 = vsel %vm1295_vm3, %v1250_v50, %v5754_v61  ;;  %v5825_v61 = vpop.permute.xlu2 %1037  ;;  %v1256_v11 = vsel %vm1226_vm2, %v1187_v32, %v5781_v62 }
  0xfb   : > { %2052 = vst [vmem:[#allocation1 + $0x4] ss:$9 sm:$0xff] %v4988_v26  ;;  %v914_v19 = vsel %vm692_vm0, %v909_v6, %v913_v57  ;;  %v550_v26 = vpack.c.bf16 %v496_v33, %v496_v33  ;;  %v4994_v10 = vpack.i.b16 %v1319_v41, %v1617_v38  ;;  %v5847_v62 = vsel %vm1295_vm3, %v1256_v11, %v5771_v21 }
  0xfc   : > { %2054 = vst [vmem:[#allocation1 + $0x5] ss:$9 sm:$0xff] %v4989_v44  ;;  %5048 = vmatmul.msk.bf16.gmra.mxu0 %vm2273_vm4, %v2042_v56  ;;  %v497_v56 = vmax.f32 %v5154_v52, 0.0  ;;  %v1447_v21 = vrot.slane %v5847_v62, 1  ;;  %v1448_v6 = vrot.slane %v5847_v62, 2  ;;  %v1449_v27 = vrot.slane %v5847_v62, 3 }
  0xfd   : > { %2056 = vst [vmem:[#allocation1 + $0x6] ss:$9 sm:$0xff] %v4990_v30  ;;  %v655_v47 = vunpack.c.l.b16 %v550_v26  ;;  %v1637_v24 = vunpack.i.h.s16 %v5847_v62  ;;  %v5157_v57 = vunpack.c.l.bf16 %v5156_v34  ;;  %v1444_v33 = vrot.slane %v5821_v58, 5 }
  0xfe   : > { %2058 = vst [vmem:[#allocation1 + $0x7] ss:$9 sm:$0xff] %v4991_v63  ;;  %1063 = vrot.lane.b32.xlu1 %v5783_v23, %s5232_s27  ;;  %1143 = vrot.lane.b32.xlu0 %v901_v37, %s5233_s28  ;;  %v551_v36 = vpack.c.bf16 %v497_v56, %v497_v56  ;;  %v1639_v52 = vunpack.i.h.s16 %v1447_v21  ;;  %v1445_v38 = vrot.slane %v5821_v58, 6  ;;  %v1643_v56 = vunpack.i.h.s16 %v1449_v27 }
  0xff   : > { %2048 = vst [vmem:[#allocation1 + $0x2] ss:$9 sm:$0xff] %v4986_v9  ;;  %987 = vrot.lane.b32.xlu2 %v5747_v46, %s5234_s29  ;;  %v1441_v46 = vrot.slane %v5821_v58, 2  ;;  %v388_v9 = vld [vmem:[%s5296_s26 + $0xc8] sm:$0x1]  ;;  %v4996_v26 = vpack.i.b16 %v1447_v21, %v1637_v24 }
 0x100   : > { %v5808_v22 = vpop.permute.xlu1 %1033  ;;  %v958_v31 = vpop.permute.xlu0 %957  ;;  %v656_v63 = vunpack.c.l.b16 %v551_v36  ;;  %v444_v14 = vunpack.c.l.bf16 %v388_v9  ;;  %v391_v21 = vld [vmem:[%s5857_s10 + $0x8] sm:$0x1] }
 0x101   : > { %v1185_v18 = vsel %vm1157_vm1, %v5399_v42, %v958_v31  ;;  %v1446_v31 = vrot.slane %v5821_v58, 7  ;;  %v447_v24 = vunpack.c.l.bf16 %v391_v21 }
 0x102   : > { %v5850_v20 = vpack.c.b16 %v656_v63, %v655_v47  ;;  %v5852_v29 = vpop.permute.xlu2 %1121  ;;  %v1254_v42 = vsel %vm1226_vm2, %v1185_v18, %v5808_v22  ;;  %v1450_v22 = vrot.slane %v5847_v62, 4 }
 0x103   : > { %v501_v34 = vmax.f32 %v447_v24, 0.0 }
 0x104   : > { %v918_v36 = vshrl.u32 %v5850_v20, 16 }
 0x106   : > { %v2059_v44 = vld [vmem:[#allocation1] sm:$0xff]  ;;  %991 = vrot.lane.b32.xlu1 %v914_v19, %s5234_s29  ;;  %989 = vrot.lane.b32.xlu0 %v901_v37, %s5234_s29  ;;  %v498_v37 = vmax.f32 %v444_v14, 0.0  ;;  %v4999_v14 = vpack.i.b16 %v1450_v22, %v1643_v56 }
 0x107   : > { %5049 = vmatmul.msk.bf16.vlgmr.msra.gmra.mxu1 %vm2273_vm4, %v2059_v44  ;;  %2061 = vst [vmem:[#allocation1] ss:$9 sm:$0xff] %v4992_v1  ;;  %1145 = vrot.lane.b32.xlu2 %v914_v19, %s5233_s28  ;;  %v1641_v19 = vunpack.i.h.s16 %v1448_v6  ;;  %v920_v1 = vshll.u32 %v5850_v20, 16 }
 0x108   : > { %2063 = vst [vmem:[#allocation1 + $0x1] ss:$9 sm:$0xff] %v4993_v8  ;;  %v5834_v48 = vpop.permute.xlu1 %963  ;;  %v5836_v30 = vpop.permute.xlu0 %961  ;;  %v552_v5 = vpack.c.bf16 %v498_v37, %v498_v37  ;;  %v499_v8 = vmax.f32 %v5157_v57, 0.0 }
 0x109   : > { %2065 = vst [vmem:[#allocation1 + $0x2] ss:$9 sm:$0xff] %v4994_v10  ;;  %v922_v11 = vrot.slane %v920_v1, 1  ;;  %v4998_v47 = vpack.i.b16 %v1449_v27, %v1641_v19  ;;  %v1189_v57 = vsel %vm1157_vm1, %v5424_v16, %v5836_v30  ;;  %v1191_v19 = vsel %vm1157_vm1, %v5431_v28, %v5834_v48 }
 0x10a   : > { %2067 = vst [vmem:[#allocation1 + $0x3] ss:$9 sm:$0xff] %v5821_v58  ;;  %v657_v3 = vunpack.c.l.b16 %v552_v5  ;;  %v5883_v32 = vpop.permute.xlu2 %1125  ;;  %v1323_v58 = vsel %vm1295_vm3, %v1254_v42, %v5790_v60  ;;  %v553_v9 = vpack.c.bf16 %v499_v8, %v499_v8  ;;  %v1645_v42 = vunpack.i.h.s16 %v1450_v22 }
 0x10b   : > { %2069 = vst [vmem:[#allocation1 + $0x4] ss:$9 sm:$0xff] %v1440_v39  ;;  %v500_v39 = vmax.f32 %v5158_v15, 0.0  ;;  %v923_v5 = vor.u32 %v922_v11, %v918_v36  ;;  %v4995_v60 = vpack.i.b16 %v5847_v62, %v1323_v58  ;;  %v1258_v56 = vsel %vm1226_vm2, %v1189_v57, %v5825_v61 }
 0x10c   : > { %2071 = vst [vmem:[#allocation1 + $0x5] ss:$9 sm:$0xff] %v1441_v46  ;;  %v5873_v41 = vpack.c.b16 %v657_v3, %v657_v3  ;;  %v4997_v46 = vpack.i.b16 %v1448_v6, %v1639_v52  ;;  %v1002_v6 = vunpack.c.l.b16 %v553_v9  ;;  %v1452_v52 = vrot.slane %v5847_v62, 6 }
 0x10d   : > { %2073 = vst [vmem:[#allocation1 + $0x6] ss:$9 sm:$0xff] %v1442_v45  ;;  %v554_v45 = vpack.c.bf16 %v500_v39, %v500_v39 }
 0x10e   : > { %2075 = vst [vmem:[#allocation1 + $0x7] ss:$9 sm:$0xff] %v1443_v40  ;;  %1147 = vrot.lane.b32.xlu1 %v915_v25, %s5233_s28  ;;  %1067 = vrot.lane.b32.xlu0 %v5850_v20, %s5232_s27  ;;  %v925_v44 = vshll.u32 %v5873_v41, 16  ;;  %v929_v36 = vshrl.u32 %v5873_v41, 16 }
 0x10f   : > { %1065 = vrot.lane.b32.xlu2 %v5792_v2, %s5232_s27  ;;  %v1003_v3 = vunpack.c.l.b16 %v554_v45 }
 0x110   : > { %v5868_v49 = vpop.permute.xlu1 %1119  ;;  %v5870_v50 = vpop.permute.xlu0 %1039  ;;  %v927_v63 = vrot.slane %v925_v44, 1 }
 0x111   : > { %v5897_v18 = vpack.c.b16 %v1003_v3, %v1002_v6  ;;  %v1260_v30 = vsel %vm1226_vm2, %v1191_v19, %v5870_v50  ;;  %v1327_v1 = vsel %vm1295_vm3, %v1258_v56, %v5868_v49 }
 0x112   : > { %v928_v27 = vsel %vm692_vm0, %v923_v5, %v927_v63  ;;  %v5905_v15 = vpop.permute.xlu2 %1123  ;;  %v1329_v61 = vsel %vm1295_vm3, %v1260_v30, %v5852_v29 }
 0x113   : > { %v1454_v58 = vrot.slane %v1329_v61, 1  ;;  %v1455_v29 = vrot.slane %v1329_v61, 2  ;;  %v1457_v3 = vrot.slane %v1329_v61, 4 }
 0x115   : > { %v2076_v10 = vld [vmem:[#allocation1] sm:$0xff] }
 0x116   : > { %2078 = vst [vmem:[#allocation1] ss:$9 sm:$0xff] %v1444_v33  ;;  %1069 = vrot.lane.b32.xlu1 %v5873_v41, %s5232_s27  ;;  %993 = vrot.lane.b32.xlu0 %v915_v25, %s5234_s29  ;;  %v1451_v25 = vrot.slane %v5847_v62, 5  ;;  %v555_v33 = vpack.c.bf16 %v501_v34, %v501_v34  ;;  %v1076_v34 = vshrl.u32 %v5897_v18, 16 }
 0x117   : > { %2080 = vst [vmem:[#allocation1 + $0x1] ss:$9 sm:$0xff] %v1445_v38  ;;  %5050 = vmatmul.msk.bf16.gmra.mxu1 %vm2273_vm4, %v2076_v10  ;;  %1149 = vrot.lane.b32.xlu2 %v928_v27, %s5233_s28  ;;  %v1453_v38 = vrot.slane %v5847_v62, 7  ;;  %v1649_v10 = vunpack.i.h.s16 %v1452_v52 }
 0x118   : > { %2082 = vst [vmem:[#allocation1 + $0x2] ss:$9 sm:$0xff] %v1446_v31  ;;  %v1044_v40 = vpop.permute.xlu1 %1043  ;;  %v968_v37 = vpop.permute.xlu0 %967  ;;  %v1004_v31 = vunpack.c.l.b16 %v555_v33  ;;  %v1647_v16 = vunpack.i.h.s16 %v1451_v25  ;;  %v5000_v44 = vpack.i.b16 %v1451_v25, %v1645_v42 }
 0x119   : > { %2086 = vst [vmem:[#allocation1 + $0x4] ss:$9 sm:$0xff] %v4996_v26  ;;  %v1651_v28 = vunpack.i.h.s16 %v1453_v38  ;;  %v1195_v22 = vsel %vm1157_vm1, %v5461_v4, %v968_v37 }
 0x11a   : > { %2088 = vst [vmem:[#allocation1 + $0x5] ss:$9 sm:$0xff] %v4997_v46  ;;  %v5921_v48 = vpack.c.b16 %v1004_v31, %v1004_v31  ;;  %v5001_v8 = vpack.i.b16 %v1452_v52, %v1647_v16  ;;  %v5002_v46 = vpack.i.b16 %v1453_v38, %v1649_v10  ;;  %v5928_v49 = vpop.permute.xlu2 %1045  ;;  %v1264_v11 = vsel %vm1226_vm2, %v1195_v22, %v1044_v40 }
 0x11b   : > { %2090 = vst [vmem:[#allocation1 + $0x6] ss:$9 sm:$0xff] %v4998_v47  ;;  %v5003_v39 = vpack.i.b16 %v1327_v1, %v1651_v28  ;;  %v1456_v47 = vrot.slane %v1329_v61, 3  ;;  %v5937_v9 = vsel %vm1295_vm3, %v1264_v11, %v5883_v32  ;;  %v1078_v40 = vshll.u32 %v5897_v18, 16 }
 0x11c   : > { %2092 = vst [vmem:[#allocation1 + $0x7] ss:$9 sm:$0xff] %v4999_v14  ;;  %v1461_v45 = vrot.slane %v5937_v9, 1  ;;  %v1462_v14 = vrot.slane %v5937_v9, 2  ;;  %v1671_v21 = vunpack.i.h.s16 %v5937_v9  ;;  %v1083_v57 = vshll.u32 %v5921_v48, 16 }
 0x11d   : > { %2084 = vst [vmem:[#allocation1 + $0x3] ss:$9 sm:$0xff] %v4995_v60  ;;  %v1080_v25 = vrot.slane %v1078_v40, 1  ;;  %v1458_v52 = vrot.slane %v1329_v61, 5  ;;  %v1459_v38 = vrot.slane %v1329_v61, 6  ;;  %v1460_v31 = vrot.slane %v1329_v61, 7 }
 0x11e   : > { %1071 = vrot.lane.b32.xlu1 %v5897_v18, %s5232_s27  ;;  %995 = vrot.lane.b32.xlu0 %v928_v27, %s5234_s29  ;;  %v1673_v24 = vunpack.i.h.s16 %v1461_v45  ;;  %v1675_v27 = vunpack.i.h.s16 %v1462_v14  ;;  %v5005_v19 = vpack.i.b16 %v1461_v45, %v1671_v21  ;;  %v1085_v18 = vrot.slane %v1083_v57, 1 }
 0x11f   : > { %1151 = vrot.lane.b32.xlu2 %v929_v36, %s5233_s28  ;;  %v1081_v30 = vor.u32 %v1080_v25, %v1076_v34  ;;  %v1465_v28 = vrot.slane %v5937_v9, 5 }
 0x120   : > { %v1042_v26 = vpop.permute.xlu1 %1041  ;;  %v966_v62 = vpop.permute.xlu0 %965  ;;  %v5006_v56 = vpack.i.b16 %v1462_v14, %v1673_v24 }
 0x121   : > { %v1193_v37 = vsel %vm1157_vm1, %v5437_v35, %v966_v62  ;;  %v1463_v35 = vrot.slane %v5937_v9, 3  ;;  %v1086_v62 = vsel %vm692_vm0, %v1081_v30, %v1085_v18 }
 0x122   : > { %v1130_v5 = vpop.permute.xlu2 %1129  ;;  %v1262_v32 = vsel %vm1226_vm2, %v1193_v37, %v1042_v26 }
 0x123   : > { %v1331_v42 = vsel %vm1295_vm3, %v1262_v32, %v5905_v15  ;;  %v5007_v16 = vpack.i.b16 %v1463_v35, %v1675_v27  ;;  %v1464_v15 = vrot.slane %v5937_v9, 4 }
 0x124   : > { %v2093_v50 = vld [vmem:[#allocation1] sm:$0xff]  ;;  %v5004_v26 = vpack.i.b16 %v5937_v9, %v1331_v42 }
 0x125   : > { %2095 = vst [vmem:[#allocation1] ss:$9 sm:$0xff] %v5000_v44 }
 0x126   : > { %2097 = vst [vmem:[#allocation1 + $0x1] ss:$9 sm:$0xff] %v5001_v8  ;;  %1073 = vrot.lane.b32.xlu1 %v5921_v48, %s5232_s27  ;;  %997 = vrot.lane.b32.xlu0 %v929_v36, %s5234_s29  ;;  %v1467_v8 = vrot.slane %v5937_v9, 7 }
 0x127   : > { %5051 = vmatmul.msk.bf16.gmra.mxu1 %vm2273_vm4, %v2093_v50  ;;  %2099 = vst [vmem:[#allocation1 + $0x2] ss:$9 sm:$0xff] %v5002_v46  ;;  %1153 = vrot.lane.b32.xlu2 %v1086_v62, %s5233_s28  ;;  %v1677_v50 = vunpack.i.h.s16 %v1463_v35  ;;  %v1679_v46 = vunpack.i.h.s16 %v1464_v15 }
 0x128   : > { %2101 = vst [vmem:[#allocation1 + $0x3] ss:$9 sm:$0xff] %v5003_v39  ;;  %v972_v4 = vpop.permute.xlu1 %971  ;;  %v970_v63 = vpop.permute.xlu0 %969  ;;  %v1087_v39 = vshrl.u32 %v5921_v48, 16  ;;  %v1685_v14 = vunpack.i.h.s16 %v1467_v8 }
 0x129   : > { %2103 = vst [vmem:[#allocation1 + $0x4] ss:$9 sm:$0xff] %v1329_v61  ;;  %v1197_v44 = vsel %vm1157_vm1, %v5467_v12, %v970_v63  ;;  %v1466_v61 = vrot.slane %v5937_v9, 6  ;;  %v1199_v22 = vsel %vm1157_vm1, %v5489_v53, %v972_v4  ;;  %v5008_v45 = vpack.i.b16 %v1464_v15, %v1677_v50 }
 0x12a   : > { %2105 = vst [vmem:[#allocation1 + $0x5] ss:$9 sm:$0xff] %v1454_v58  ;;  %v1134_v36 = vpop.permute.xlu2 %1133  ;;  %v1266_v58 = vsel %vm1226_vm2, %v1197_v44, %v5928_v49  ;;  %v5009_v40 = vpack.i.b16 %v1465_v28, %v1679_v46 }
 0x12b   : > { %2107 = vst [vmem:[#allocation1 + $0x6] ss:$9 sm:$0xff] %v1455_v29  ;;  %v1681_v29 = vunpack.i.h.s16 %v1465_v28  ;;  %v1683_v12 = vunpack.i.h.s16 %v1466_v61 }
 0x12c   : > { %2109 = vst [vmem:[#allocation1 + $0x7] ss:$9 sm:$0xff] %v1456_v47 }
 0x12d   : > { %v5010_v4 = vpack.i.b16 %v1466_v61, %v1681_v29  ;;  %v5011_v21 = vpack.i.b16 %v1467_v8, %v1683_v12 }
 0x12f   : > { %1155 = vrot.lane.b32.xlu2 %v1087_v39, %s5233_s28 }
 0x130   : > { %v1128_v60 = vpop.permute.xlu1 %1127  ;;  %v1048_v6 = vpop.permute.xlu0 %1047 }
 0x131   : > { %v1268_v11 = vsel %vm1226_vm2, %v1199_v22, %v1048_v6  ;;  %v1335_v47 = vsel %vm1295_vm3, %v1266_v58, %v1128_v60 }
 0x132   : > { %v1337_v53 = vsel %vm1295_vm3, %v1268_v11, %v1130_v5  ;;  %v5012_v37 = vpack.i.b16 %v1335_v47, %v1685_v14  ;;  %v1132_v60 = vpop.permute.xlu2 %1131 }
 0x133   : > { %v2110_v33 = vld [vmem:[#allocation1] sm:$0xff]  ;;  %v1468_v6 = vrot.slane %v1337_v53, 1  ;;  %v1471_v35 = vrot.slane %v1337_v53, 4  ;;  %v1472_v42 = vrot.slane %v1337_v53, 5  ;;  %v1474_v18 = vrot.slane %v1337_v53, 7 }
 0x134   : > { %2112 = vst [vmem:[#allocation1] ss:$9 sm:$0xff] %v1457_v3  ;;  %v1469_v3 = vrot.slane %v1337_v53, 2 }
 0x135   : > { %2114 = vst [vmem:[#allocation1 + $0x1] ss:$9 sm:$0xff] %v1458_v52 }
 0x136   : > { %2116 = vst [vmem:[#allocation1 + $0x2] ss:$9 sm:$0xff] %v1459_v38 }
 0x137   : > { %2118 = vst [vmem:[#allocation1 + $0x3] ss:$9 sm:$0xff] %v1460_v31  ;;  %5052 = vmatmul.msk.bf16.gmra.mxu1 %vm2273_vm4, %v2110_v33  ;;  %v1470_v33 = vrot.slane %v1337_v53, 3 }
 0x138   : > { %2122 = vst [vmem:[#allocation1 + $0x5] ss:$9 sm:$0xff] %v5005_v19  ;;  %v1052_v1 = vpop.permute.xlu1 %1051  ;;  %v976_v10 = vpop.permute.xlu0 %975 }
 0x139   : > { %2124 = vst [vmem:[#allocation1 + $0x6] ss:$9 sm:$0xff] %v5006_v56  ;;  %v1203_v49 = vsel %vm1157_vm1, %v5545_v13, %v976_v10 }
 0x13a   : > { %2126 = vst [vmem:[#allocation1 + $0x7] ss:$9 sm:$0xff] %v5007_v16  ;;  %v1272_v24 = vsel %vm1226_vm2, %v1203_v49, %v1052_v1  ;;  %v1054_v25 = vpop.permute.xlu2 %1053  ;;  %v1473_v16 = vrot.slane %v1337_v53, 6 }
 0x13b   : > { %2120 = vst [vmem:[#allocation1 + $0x4] ss:$9 sm:$0xff] %v5004_v26  ;;  %v5975_v5 = vsel %vm1295_vm3, %v1272_v24, %v1134_v36 }
 0x13c   : > { %v1475_v27 = vrot.slane %v5975_v5, 1  ;;  %v1705_v57 = vunpack.i.h.s16 %v5975_v5  ;;  %v1476_v31 = vrot.slane %v5975_v5, 2  ;;  %v1477_v10 = vrot.slane %v5975_v5, 3 }
 0x13d   : > { %v1478_v36 = vrot.slane %v5975_v5, 4  ;;  %v1479_v28 = vrot.slane %v5975_v5, 5  ;;  %v1480_v50 = vrot.slane %v5975_v5, 6  ;;  %v1481_v39 = vrot.slane %v5975_v5, 7 }
 0x13e   : > { %v1707_v38 = vunpack.i.h.s16 %v1475_v27  ;;  %v1709_v44 = vunpack.i.h.s16 %v1476_v31  ;;  %v1711_v8 = vunpack.i.h.s16 %v1477_v10 }
 0x13f   : > { %v1713_v46 = vunpack.i.h.s16 %v1478_v36  ;;  %v1715_v11 = vunpack.i.h.s16 %v1479_v28 }
 0x140   : > { %v974_v63 = vpop.permute.xlu0 %973  ;;  %v1050_v9 = vpop.permute.xlu1 %1049  ;;  %v5015_v26 = vpack.i.b16 %v1476_v31, %v1707_v38  ;;  %v5016_v12 = vpack.i.b16 %v1477_v10, %v1709_v44  ;;  %v5017_v14 = vpack.i.b16 %v1478_v36, %v1711_v8 }
 0x141   : > { %v1201_v34 = vsel %vm1157_vm1, %v5500_v59, %v974_v63  ;;  %v5014_v59 = vpack.i.b16 %v1475_v27, %v1705_v57 }
 0x142   : > { %v2127_v48 = vld [vmem:[#allocation1] sm:$0xff]  ;;  %v1270_v52 = vsel %vm1226_vm2, %v1201_v34, %v1050_v9  ;;  %v1138_v15 = vpop.permute.xlu2 %1137 }
 0x143   : > { %2129 = vst [vmem:[#allocation1] ss:$9 sm:$0xff] %v5008_v45  ;;  %v1339_v56 = vsel %vm1295_vm3, %v1270_v52, %v1132_v60  ;;  %v1717_v45 = vunpack.i.h.s16 %v1480_v50 }
 0x144   : > { %2131 = vst [vmem:[#allocation1 + $0x1] ss:$9 sm:$0xff] %v5009_v40  ;;  %v5013_v62 = vpack.i.b16 %v5975_v5, %v1339_v56  ;;  %v5018_v40 = vpack.i.b16 %v1479_v28, %v1713_v46 }
 0x145   : > { %2133 = vst [vmem:[#allocation1 + $0x2] ss:$9 sm:$0xff] %v5010_v4  ;;  %v5020_v49 = vpack.i.b16 %v1481_v39, %v1717_v45 }
 0x146   : > { %2135 = vst [vmem:[#allocation1 + $0x3] ss:$9 sm:$0xff] %v5011_v21 }
 0x147   : > { %5053 = vmatmul.msk.bf16.gmra.mxu1 %vm2273_vm4, %v2127_v48  ;;  %2137 = vst [vmem:[#allocation1 + $0x4] ss:$9 sm:$0xff] %v5012_v37  ;;  %v1719_v48 = vunpack.i.h.s16 %v1481_v39 }
 0x148   : > { %2139 = vst [vmem:[#allocation1 + $0x5] ss:$9 sm:$0xff] %v1337_v53  ;;  %v978_v32 = vpop.permute.xlu0 %977  ;;  %v980_v13 = vpop.permute.xlu1 %979 }
 0x149   : > { %2141 = vst [vmem:[#allocation1 + $0x6] ss:$9 sm:$0xff] %v1468_v6  ;;  %v1205_v61 = vsel %vm1157_vm1, %v5555_v51, %v978_v32  ;;  %v1207_v22 = vsel %vm1157_vm1, %v5580_v7, %v980_v13  ;;  %v5019_v7 = vpack.i.b16 %v1480_v50, %v1715_v11 }
 0x14a   : > { %2143 = vst [vmem:[#allocation1 + $0x7] ss:$9 sm:$0xff] %v1469_v3  ;;  %v1274_v29 = vsel %vm1226_vm2, %v1205_v61, %v1054_v25  ;;  %v982_v37 = vpop.permute.xlu2 %981 }
 0x14b   : > { %v1209_v32 = vsel %vm1157_vm1, %v5616_v0, %v982_v37 }
 0x150   : > { %v1056_v30 = vpop.permute.xlu0 %1055  ;;  %v1136_v1 = vpop.permute.xlu1 %1135 }
 0x151   : > { %v2144_v19 = vld [vmem:[#allocation1] sm:$0xff]  ;;  %v1276_v47 = vsel %vm1226_vm2, %v1207_v22, %v1056_v30  ;;  %v1343_v63 = vsel %vm1295_vm3, %v1274_v29, %v1136_v1 }
 0x152   : > { %2146 = vst [vmem:[#allocation1] ss:$9 sm:$0xff] %v1470_v33  ;;  %5054 = vmatmul.msk.bf16.vlgmr.msra.gmra.mxu2 %vm2273_vm4, %v2144_v19  ;;  %v1345_v53 = vsel %vm1295_vm3, %v1276_v47, %v1138_v15  ;;  %v5021_v4 = vpack.i.b16 %v1343_v63, %v1719_v48  ;;  %v1140_v13 = vpop.permute.xlu2 %1139 }
 0x153   : > { %2148 = vst [vmem:[#allocation1 + $0x1] ss:$9 sm:$0xff] %v1471_v35  ;;  %v1482_v21 = vrot.slane %v1345_v53, 1  ;;  %v1483_v34 = vrot.slane %v1345_v53, 2  ;;  %v1484_v52 = vrot.slane %v1345_v53, 3  ;;  %v1485_v38 = vrot.slane %v1345_v53, 4 }
 0x154   : > { %2150 = vst [vmem:[#allocation1 + $0x2] ss:$9 sm:$0xff] %v1472_v42  ;;  %v1486_v35 = vrot.slane %v1345_v53, 5  ;;  %v1487_v42 = vrot.slane %v1345_v53, 6  ;;  %v1488_v31 = vrot.slane %v1345_v53, 7 }
 0x155   : > { %2152 = vst [vmem:[#allocation1 + $0x3] ss:$9 sm:$0xff] %v1473_v16 }
 0x156   : > { %2154 = vst [vmem:[#allocation1 + $0x4] ss:$9 sm:$0xff] %v1474_v18 }
 0x157   : > { %2158 = vst [vmem:[#allocation1 + $0x6] ss:$9 sm:$0xff] %v5014_v59 }
 0x158   : > { %2160 = vst [vmem:[#allocation1 + $0x7] ss:$9 sm:$0xff] %v5015_v26  ;;  %v984_v58 = vpop.permute.xlu0 %983  ;;  %v1060_v51 = vpop.permute.xlu1 %1059 }
 0x159   : > { %2156 = vst [vmem:[#allocation1 + $0x5] ss:$9 sm:$0xff] %v5013_v62  ;;  %v1211_v60 = vsel %vm1157_vm1, %v5666_v43, %v984_v58 }
 0x15a   : > { %v1280_v24 = vsel %vm1226_vm2, %v1211_v60, %v1060_v51  ;;  %v988_v30 = vpop.permute.xlu2 %987 }
 0x160   : > { %v2161_v9 = vld [vmem:[#allocation1] sm:$0xff]  ;;  %v1142_v6 = vpop.permute.xlu0 %1141  ;;  %v1058_v3 = vpop.permute.xlu1 %1057 }
 0x161   : > { %2163 = vst [vmem:[#allocation1] ss:$9 sm:$0xff] %v5016_v12  ;;  %v1349_v5 = vsel %vm1295_vm3, %v1280_v24, %v1142_v6  ;;  %v1278_v27 = vsel %vm1226_vm2, %v1209_v32, %v1058_v3 }
 0x162   : > { %2165 = vst [vmem:[#allocation1 + $0x1] ss:$9 sm:$0xff] %v5017_v14  ;;  %5055 = vmatmul.msk.bf16.gmra.mxu2 %vm2273_vm4, %v2161_v9  ;;  %v1489_v25 = vrot.slane %v1349_v5, 1  ;;  %v1739_v57 = vunpack.i.h.s16 %v1349_v5  ;;  %v1347_v43 = vsel %vm1295_vm3, %v1278_v27, %v1140_v13  ;;  %v1490_v59 = vrot.slane %v1349_v5, 2  ;;  %v1146_v14 = vpop.permute.xlu2 %1145 }
 0x163   : > { %2167 = vst [vmem:[#allocation1 + $0x2] ss:$9 sm:$0xff] %v5018_v40  ;;  %v5022_v56 = vpack.i.b16 %v1349_v5, %v1347_v43  ;;  %v1491_v18 = vrot.slane %v1349_v5, 3  ;;  %v1492_v26 = vrot.slane %v1349_v5, 4  ;;  %v1493_v1 = vrot.slane %v1349_v5, 5 }
 0x164   : > { %2169 = vst [vmem:[#allocation1 + $0x3] ss:$9 sm:$0xff] %v5019_v7  ;;  %v5023_v0 = vpack.i.b16 %v1489_v25, %v1739_v57  ;;  %v1741_v62 = vunpack.i.h.s16 %v1489_v25  ;;  %v1743_v10 = vunpack.i.h.s16 %v1490_v59  ;;  %v1494_v36 = vrot.slane %v1349_v5, 6 }
 0x165   : > { %2171 = vst [vmem:[#allocation1 + $0x4] ss:$9 sm:$0xff] %v5020_v49  ;;  %v1745_v28 = vunpack.i.h.s16 %v1491_v18  ;;  %v1495_v44 = vrot.slane %v1349_v5, 7  ;;  %v1747_v50 = vunpack.i.h.s16 %v1492_v26  ;;  %v1749_v46 = vunpack.i.h.s16 %v1493_v1 }
 0x166   : > { %2173 = vst [vmem:[#allocation1 + $0x5] ss:$9 sm:$0xff] %v5021_v4  ;;  %v5024_v8 = vpack.i.b16 %v1490_v59, %v1741_v62  ;;  %v5025_v58 = vpack.i.b16 %v1491_v18, %v1743_v10  ;;  %v1751_v11 = vunpack.i.h.s16 %v1494_v36 }
 0x167   : > { %2175 = vst [vmem:[#allocation1 + $0x6] ss:$9 sm:$0xff] %v1345_v53  ;;  %v5026_v12 = vpack.i.b16 %v1492_v26, %v1745_v28  ;;  %v1753_v63 = vunpack.i.h.s16 %v1495_v44  ;;  %v5027_v51 = vpack.i.b16 %v1493_v1, %v1747_v50  ;;  %v5028_v9 = vpack.i.b16 %v1494_v36, %v1749_v46 }
 0x168   : > { %2177 = vst [vmem:[#allocation1 + $0x7] ss:$9 sm:$0xff] %v1482_v21  ;;  %v986_v19 = vpop.permute.xlu0 %985  ;;  %v1062_v16 = vpop.permute.xlu1 %1061  ;;  %v5029_v40 = vpack.i.b16 %v1495_v44, %v1751_v11 }
 0x169   : > { %v1213_v15 = vsel %vm1157_vm1, %v5684_v54, %v986_v19  ;;  %v1215_v54 = vsel %vm1157_vm1, %v5695_v55, %v988_v30 }
 0x16a   : > { %v1282_v22 = vsel %vm1226_vm2, %v1213_v15, %v1062_v16  ;;  %v1066_v3 = vpop.permute.xlu2 %1065 }
 0x16f   : > { %v2178_v33 = vld [vmem:[#allocation1] sm:$0xff] }
 0x170   : > { %2180 = vst [vmem:[#allocation1] ss:$9 sm:$0xff] %v1483_v34  ;;  %v1144_v61 = vpop.permute.xlu0 %1143  ;;  %v1064_v39 = vpop.permute.xlu1 %1063 }
 0x171   : > { %2182 = vst [vmem:[#allocation1 + $0x1] ss:$9 sm:$0xff] %v1484_v52  ;;  %v1351_v47 = vsel %vm1295_vm3, %v1282_v22, %v1144_v61  ;;  %v1284_v45 = vsel %vm1226_vm2, %v1215_v54, %v1064_v39 }
 0x172   : > { %2184 = vst [vmem:[#allocation1 + $0x2] ss:$9 sm:$0xff] %v1485_v38  ;;  %5056 = vmatmul.msk.bf16.gmra.mxu2 %vm2273_vm4, %v2178_v33  ;;  %v5030_v48 = vpack.i.b16 %v1351_v47, %v1753_v63  ;;  %v1353_v53 = vsel %vm1295_vm3, %v1284_v45, %v1146_v14  ;;  %v1150_v34 = vpop.permute.xlu2 %1149 }
 0x173   : > { %2186 = vst [vmem:[#allocation1 + $0x3] ss:$9 sm:$0xff] %v1486_v35  ;;  %v1496_v7 = vrot.slane %v1353_v53, 1  ;;  %v1497_v4 = vrot.slane %v1353_v53, 2  ;;  %v1498_v49 = vrot.slane %v1353_v53, 3  ;;  %v1499_v60 = vrot.slane %v1353_v53, 4 }
 0x174   : > { %2188 = vst [vmem:[#allocation1 + $0x4] ss:$9 sm:$0xff] %v1487_v42  ;;  %v1500_v6 = vrot.slane %v1353_v53, 5  ;;  %v1501_v24 = vrot.slane %v1353_v53, 6  ;;  %v1502_v5 = vrot.slane %v1353_v53, 7 }
 0x175   : > { %2190 = vst [vmem:[#allocation1 + $0x5] ss:$9 sm:$0xff] %v1488_v31 }
 0x176   : > { %2194 = vst [vmem:[#allocation1 + $0x7] ss:$9 sm:$0xff] %v5023_v0 }
 0x177   : > { %2192 = vst [vmem:[#allocation1 + $0x6] ss:$9 sm:$0xff] %v5022_v56 }
 0x178   : > { %v990_v55 = vpop.permute.xlu0 %989  ;;  %v992_v21 = vpop.permute.xlu1 %991 }
 0x179   : > { %v1217_v13 = vsel %vm1157_vm1, %v5726_v17, %v990_v55  ;;  %v1219_v25 = vsel %vm1157_vm1, %v5783_v23, %v992_v21 }
 0x17a   : > { %v1286_v57 = vsel %vm1226_vm2, %v1217_v13, %v1066_v3  ;;  %v1152_v30 = vpop.permute.xlu2 %1151  ;;  %v6044_v3 = vld [vmem:[%s8236_s3] ss:$0 sm:$0xff] }
 0x17b   : > { %v6052_v13 = vld [vmem:[%s8237_s4] ss:$0 sm:$0xff] }
 0x17e   : > { %v2195_v29 = vld [vmem:[#allocation1] sm:$0xff] }
 0x17f   : > { %2197 = vst [vmem:[#allocation1] ss:$9 sm:$0xff] %v5024_v8 }
 0x180   : > { %2199 = vst [vmem:[#allocation1 + $0x1] ss:$9 sm:$0xff] %v5025_v58  ;;  %v1068_v32 = vpop.permute.xlu0 %1067  ;;  %v1148_v27 = vpop.permute.xlu1 %1147 }
 0x181   : > { %2201 = vst [vmem:[#allocation1 + $0x2] ss:$9 sm:$0xff] %v5026_v12  ;;  %v1355_v52 = vsel %vm1295_vm3, %v1286_v57, %v1148_v27  ;;  %v1288_v33 = vsel %vm1226_vm2, %v1219_v25, %v1068_v32  ;;  %v6047_v32 = vrot.slane %v6044_v3, 1  ;;  %v6055_v25 = vrot.slane %v6044_v3, 2 }
 0x182   : > { %5057 = vmatmul.msk.bf16.gmra.mxu2 %vm2273_vm4, %v2195_v29  ;;  %2203 = vst [vmem:[#allocation1 + $0x3] ss:$9 sm:$0xff] %v5027_v51  ;;  %v1357_v38 = vsel %vm1295_vm3, %v1288_v33, %v1150_v34  ;;  %v1154_v45 = vpop.permute.xlu2 %1153 }
 0x183   : > { %2205 = vst [vmem:[#allocation1 + $0x4] ss:$9 sm:$0xff] %v5028_v9  ;;  %v1503_v43 = vrot.slane %v1357_v38, 1  ;;  %v5031_v35 = vpack.i.b16 %v1357_v38, %v1355_v52  ;;  %v1504_v42 = vrot.slane %v1357_v38, 2  ;;  %v1505_v0 = vrot.slane %v1357_v38, 3 }
 0x184   : > { %2207 = vst [vmem:[#allocation1 + $0x5] ss:$9 sm:$0xff] %v5029_v40  ;;  %v1506_v31 = vrot.slane %v1357_v38, 4  ;;  %v1773_v18 = vunpack.i.h.s16 %v1357_v38  ;;  %v1507_v62 = vrot.slane %v1357_v38, 5  ;;  %v1508_v1 = vrot.slane %v1357_v38, 6 }
 0x185   : > { %2209 = vst [vmem:[#allocation1 + $0x6] ss:$9 sm:$0xff] %v5030_v48  ;;  %v1775_v56 = vunpack.i.h.s16 %v1503_v43  ;;  %v1777_v16 = vunpack.i.h.s16 %v1504_v42  ;;  %v1779_v59 = vunpack.i.h.s16 %v1505_v0  ;;  %v1509_v15 = vrot.slane %v1357_v38, 7 }
 0x186   : > { %2211 = vst [vmem:[#allocation1 + $0x7] ss:$9 sm:$0xff] %v1353_v53  ;;  %v1781_v36 = vunpack.i.h.s16 %v1506_v31  ;;  %v1783_v61 = vunpack.i.h.s16 %v1507_v62  ;;  %v1785_v39 = vunpack.i.h.s16 %v1508_v1  ;;  %v5032_v22 = vpack.i.b16 %v1503_v43, %v1773_v18 }
 0x187   : > { %v5033_v10 = vpack.i.b16 %v1504_v42, %v1775_v56  ;;  %v5034_v28 = vpack.i.b16 %v1505_v0, %v1777_v16  ;;  %v5035_v50 = vpack.i.b16 %v1506_v31, %v1779_v59  ;;  %v1787_v46 = vunpack.i.h.s16 %v1509_v15 }
 0x188   : > { %v994_v19 = vpop.permute.xlu0 %993  ;;  %v1070_v17 = vpop.permute.xlu1 %1069  ;;  %v5036_v58 = vpack.i.b16 %v1507_v62, %v1781_v36  ;;  %v5037_v29 = vpack.i.b16 %v1508_v1, %v1783_v61  ;;  %v5038_v54 = vpack.i.b16 %v1509_v15, %v1785_v39  ;;  %v6058_v52 = vrot.slane %v6044_v3, 3 }
 0x189   : > { %v1221_v23 = vsel %vm1157_vm1, %v5792_v2, %v994_v19  ;;  %v6061_v38 = vrot.slane %v6044_v3, 4  ;;  %v6066_v19 = vrot.slane %v6044_v3, 5  ;;  %v6070_v0 = vrot.slane %v6052_v13, 1 }
 0x18a   : > { %v1290_v26 = vsel %vm1226_vm2, %v1221_v23, %v1070_v17  ;;  %v6073_v31 = vrot.slane %v6044_v3, 6  ;;  %v6077_v23 = vrot.slane %v6052_v13, 2  ;;  %v6080_v59 = vrot.slane %v6044_v3, 7 }
 0x18b   : > { %v1359_v8 = vsel %vm1295_vm3, %v1290_v26, %v1152_v30  ;;  %v6084_v18 = vrot.slane %v6052_v13, 3  ;;  %v6088_v62 = vrot.slane %v6052_v13, 4  ;;  %v6095_v15 = vrot.slane %v6052_v13, 5 }
 0x18c   : > { %v5039_v11 = vpack.i.b16 %v1359_v8, %v1787_v46  ;;  %v6102_v61 = vrot.slane %v6052_v13, 6  ;;  %v6110_v39 = vrot.slane %v6052_v13, 7 }
 0x18d   : > { %v2212_v37 = vld [vmem:[#allocation1] sm:$0xff] }
 0x18e   : > { %2214 = vst [vmem:[#allocation1] ss:$9 sm:$0xff] %v1496_v7 }
 0x18f   : > { %2216 = vst [vmem:[#allocation1 + $0x1] ss:$9 sm:$0xff] %v1497_v4 }
 0x190   : > { %2218 = vst [vmem:[#allocation1 + $0x2] ss:$9 sm:$0xff] %v1498_v49  ;;  %v996_v2 = vpop.permute.xlu0 %995  ;;  %v1072_v12 = vpop.permute.xlu1 %1071 }
 0x191   : > { %2220 = vst [vmem:[#allocation1 + $0x3] ss:$9 sm:$0xff] %v1499_v60  ;;  %v1223_v47 = vsel %vm1157_vm1, %v5850_v20, %v996_v2  ;;  %v1156_v60 = vpop.permute.xlu2 %1155 }
 0x192   : > { %2222 = vst [vmem:[#allocation1 + $0x4] ss:$9 sm:$0xff] %v1500_v6  ;;  %5058 = vmatmul.msk.bf16.gmra.mxu2 %vm2273_vm4, %v2212_v37  ;;  %v1292_v63 = vsel %vm1226_vm2, %v1223_v47, %v1072_v12 }
 0x193   : > { %2224 = vst [vmem:[#allocation1 + $0x5] ss:$9 sm:$0xff] %v1501_v24  ;;  %v1361_v51 = vsel %vm1295_vm3, %v1292_v63, %v1154_v45  ;;  %v2321_v24 = vpop.f32.mrf.mxu0 }
 0x194   : > { %2226 = vst [vmem:[#allocation1 + $0x6] ss:$9 sm:$0xff] %v1502_v5  ;;  %v1510_v14 = vrot.slane %v1361_v51, 1  ;;  %v1511_v9 = vrot.slane %v1361_v51, 2  ;;  %v1512_v48 = vrot.slane %v1361_v51, 3  ;;  %v1513_v55 = vrot.slane %v1361_v51, 4 }
 0x195   : > { %2228 = vst [vmem:[#allocation1 + $0x7] ss:$9 sm:$0xff] %v5031_v35  ;;  %v1514_v7 = vrot.slane %v1361_v51, 5  ;;  %v1515_v20 = vrot.slane %v1361_v51, 6  ;;  %v1516_v49 = vrot.slane %v1361_v51, 7  ;;  %v2452_v34 = vrot.slane %v2321_v24, 2 }
 0x196   : > { %v2453_v57 = vrot.slane %v2321_v24, 3  ;;  %v2454_v33 = vrot.slane %v2321_v24, 4  ;;  %v2973_v43 = vmul.f32 %v6044_v3, %v2321_v24  ;;  %v2455_v35 = vrot.slane %v2321_v24, 5 }
 0x197   : > { %v2456_v17 = vrot.slane %v2321_v24, 6  ;;  %v2975_v56 = vmul.f32 %v6055_v25, %v2452_v34  ;;  %v2457_v16 = vrot.slane %v2321_v24, 7 }
 0x198   : > { %v998_v53 = vpop.permute.xlu0 %997  ;;  %v1074_v37 = vpop.permute.xlu1 %1073  ;;  %v2976_v30 = vmul.f32 %v6058_v52, %v2453_v57  ;;  %v2977_v26 = vmul.f32 %v6061_v38, %v2454_v33  ;;  %v6091_v1 = vadd.f32 %v6052_v13, %v2973_v43 }
 0x199   : > { %v1225_v4 = vsel %vm1157_vm1, %v5873_v41, %v998_v53  ;;  %v2451_v41 = vrot.slane %v2321_v24, 1  ;;  %v2980_v8 = vmul.f32 %v6080_v59, %v2457_v16 }
 0x19a   : > { %v1294_v21 = vsel %vm1226_vm2, %v1225_v4, %v1074_v37  ;;  %v6113_v2 = vadd.f32 %v6084_v18, %v2976_v30 }
 0x19b   : > { %v1363_v6 = vsel %vm1295_vm3, %v1294_v21, %v1156_v60  ;;  %v2974_v42 = vmul.f32 %v6047_v32, %v2451_v41 }
 0x19c   : > { %v2229_v44 = vld [vmem:[#allocation1] sm:$0xff]  ;;  %v1805_v5 = vunpack.i.l.s16 %v1363_v6 }
 0x19d   : > { %2233 = vst [vmem:[#allocation1 + $0x1] ss:$9 sm:$0xff] %v5033_v10  ;;  %5059 = vmatmul.msk.bf16.vlgmr.msra.gmra.mxu3 %vm2273_vm4, %v2229_v44  ;;  %v2978_v10 = vmul.f32 %v6066_v19, %v2455_v35  ;;  %v6098_v36 = vadd.f32 %v6070_v0, %v2974_v42  ;;  %v2979_v44 = vmul.f32 %v6073_v31, %v2456_v17 }
 0x19e   : > { %2235 = vst [vmem:[#allocation1 + $0x2] ss:$9 sm:$0xff] %v5034_v28 }
 0x19f   : > { %2237 = vst [vmem:[#allocation1 + $0x3] ss:$9 sm:$0xff] %v5035_v50  ;;  %v6105_v50 = vadd.f32 %v6077_v23, %v2975_v56  ;;  %v6121_v46 = vadd.f32 %v6095_v15, %v2978_v10 }
 0x1a0   : > { %2231 = vst [vmem:[#allocation1] ss:$9 sm:$0xff] %v5032_v22  ;;  %v6117_v22 = vadd.f32 %v6088_v62, %v2977_v26 }
 0x1a1   : > { %2239 = vst [vmem:[#allocation1 + $0x4] ss:$9 sm:$0xff] %v5036_v58  ;;  %v2323_v58 = vpop.f32.mrf.mxu0 }
 0x1a2   : > { %2241 = vst [vmem:[#allocation1 + $0x5] ss:$9 sm:$0xff] %v5037_v29  ;;  %v6125_v29 = vadd.f32 %v6102_v61, %v2979_v44  ;;  %v2458_v47 = vrot.slane %v2323_v58, 1  ;;  %v2459_v12 = vrot.slane %v2323_v58, 2  ;;  %v2461_v63 = vrot.slane %v2323_v58, 4 }
 0x1a3   : > { %2243 = vst [vmem:[#allocation1 + $0x6] ss:$9 sm:$0xff] %v5038_v54  ;;  %v2460_v54 = vrot.slane %v2323_v58, 3  ;;  %v2981_v45 = vmul.f32 %v6044_v3, %v2323_v58 }
 0x1a4   : > { %2245 = vst [vmem:[#allocation1 + $0x7] ss:$9 sm:$0xff] %v5039_v11  ;;  %v6129_v11 = vadd.f32 %v6110_v39, %v2980_v8 }
 0x1a5   : > { %v2984_v53 = vmul.f32 %v6058_v52, %v2460_v54 }
 0x1a7   : > { %v6156_v6 = vadd.f32 %v6084_v18, %v2984_v53 }
 0x1a9   : > { %v2326_v34 = vpop.f32.mrf.mxu0 }
 0x1aa   : > { %v2989_v57 = vmul.f32 %v6044_v3, %v2326_v34  ;;  %v2465_v33 = vrot.slane %v2326_v34, 1  ;;  %v2466_v35 = vrot.slane %v2326_v34, 2  ;;  %v2467_v17 = vrot.slane %v2326_v34, 3 }
 0x1ab   : > { %v2246_v40 = vld [vmem:[#allocation1] sm:$0xff]  ;;  %v2468_v56 = vrot.slane %v2326_v34, 4  ;;  %v2469_v16 = vrot.slane %v2326_v34, 5  ;;  %v2470_v26 = vrot.slane %v2326_v34, 6 }
 0x1ac   : > { %2248 = vst [vmem:[#allocation1] ss:$9 sm:$0xff] %v1361_v51  ;;  %v2462_v51 = vrot.slane %v2323_v58, 5  ;;  %v6179_v43 = vadd.f32 %v6052_v13, %v2989_v57  ;;  %v2990_v30 = vmul.f32 %v6044_v3, %v2465_v33  ;;  %v2991_v10 = vmul.f32 %v6047_v32, %v2466_v35 }
 0x1ad   : > { %2250 = vst [vmem:[#allocation1 + $0x1] ss:$9 sm:$0xff] %v1510_v14  ;;  %5060 = vmatmul.msk.bf16.gmra.mxu3 %vm2273_vm4, %v2246_v40  ;;  %v2982_v14 = vmul.f32 %v6047_v32, %v2458_v47  ;;  %v2464_v40 = vrot.slane %v2323_v58, 7  ;;  %v2992_v44 = vmul.f32 %v6055_v25, %v2467_v17  ;;  %v2993_v8 = vmul.f32 %v6058_v52, %v2468_v56 }
 0x1ae   : > { %2252 = vst [vmem:[#allocation1 + $0x2] ss:$9 sm:$0xff] %v1511_v9  ;;  %v2463_v9 = vrot.slane %v2323_v58, 6  ;;  %v2994_v58 = vmul.f32 %v6061_v38, %v2469_v16  ;;  %v6190_v47 = vadd.f32 %v6052_v13, %v2990_v30  ;;  %v2995_v54 = vmul.f32 %v6066_v19, %v2470_v26 }
 0x1af   : > { %2254 = vst [vmem:[#allocation1 + $0x3] ss:$9 sm:$0xff] %v1512_v48  ;;  %v2983_v48 = vmul.f32 %v6055_v25, %v2459_v12  ;;  %v6145_v4 = vadd.f32 %v6070_v0, %v2982_v14  ;;  %v2988_v60 = vmul.f32 %v6080_v59, %v2464_v40  ;;  %v6200_v14 = vadd.f32 %v6077_v23, %v2992_v44 }
 0x1b0   : > { %2256 = vst [vmem:[#allocation1 + $0x4] ss:$9 sm:$0xff] %v1513_v55  ;;  %v2985_v55 = vmul.f32 %v6061_v38, %v2461_v63  ;;  %v6194_v63 = vadd.f32 %v6070_v0, %v2991_v10  ;;  %v6209_v40 = vadd.f32 %v6088_v62, %v2994_v58  ;;  %v6213_v53 = vadd.f32 %v6095_v15, %v2995_v54 }
 0x1b1   : > { %2258 = vst [vmem:[#allocation1 + $0x5] ss:$9 sm:$0xff] %v1514_v7  ;;  %v6141_v7 = vadd.f32 %v6052_v13, %v2981_v45  ;;  %v6151_v21 = vadd.f32 %v6077_v23, %v2983_v48  ;;  %v2328_v12 = vpop.f32.mrf.mxu0 }
 0x1b2   : > { %2260 = vst [vmem:[#allocation1 + $0x6] ss:$9 sm:$0xff] %v1515_v20  ;;  %v2986_v20 = vmul.f32 %v6066_v19, %v2462_v51  ;;  %v6160_v24 = vadd.f32 %v6088_v62, %v2985_v55  ;;  %v2997_v48 = vmul.f32 %v6080_v59, %v2328_v12  ;;  %v2475_v57 = vrot.slane %v2328_v12, 4 }
 0x1b3   : > { %2262 = vst [vmem:[#allocation1 + $0x7] ss:$9 sm:$0xff] %v1516_v49  ;;  %v2987_v49 = vmul.f32 %v6073_v31, %v2463_v9  ;;  %v6204_v9 = vadd.f32 %v6084_v18, %v2993_v8  ;;  %v2476_v33 = vrot.slane %v2328_v12, 5  ;;  %v2477_v17 = vrot.slane %v2328_v12, 6 }
 0x1b4   : > { %8489 = vst [vmem:[#allocation2_spill] sm:$0xff] %v6200_v14  ;;  %v2478_v16 = vrot.slane %v2328_v12, 7  ;;  %v3001_v26 = vmul.f32 %v6058_v52, %v2475_v57 }
 0x1b5   : > { %v6168_v41 = vadd.f32 %v6102_v61, %v2987_v49  ;;  %8490 = vst [vmem:[#allocation3_spill] sm:$0xff] %v6204_v9  ;;  %v6221_v49 = vadd.f32 %v6110_v39, %v2997_v48  ;;  %v3002_v10 = vmul.f32 %v6061_v38, %v2476_v33  ;;  %v3003_v8 = vmul.f32 %v6066_v19, %v2477_v17 }
 0x1b6   : > { %8491 = vst [vmem:[#allocation4_spill] sm:$0xff] %v6209_v40  ;;  %v6246_v48 = vadd.f32 %v6084_v18, %v3001_v26 }
 0x1b7   : > { %8492 = vst [vmem:[#allocation5_spill] sm:$0xff] %v6213_v53 }
 0x1b8   : > { %8494 = vst [vmem:[#allocation7_spill] sm:$0xff] %v6221_v49 }
 0x1b9   : > { %v2331_v44 = vpop.f32.mrf.mxu0  ;;  %8498 = vst [vmem:[#allocation11_spill] sm:$0xff] %v6246_v48 }
 0x1ba   : > { %v2263_v27 = vld [vmem:[#allocation1] sm:$0xff]  ;;  %v2479_v33 = vrot.slane %v2331_v44, 1 }
 0x1bb   : > { %2265 = vst [vmem:[#allocation1] ss:$9 sm:$0xff] %v1805_v5  ;;  %v6164_v5 = vadd.f32 %v6095_v15, %v2986_v20  ;;  %v2472_v20 = vrot.slane %v2328_v12, 1 }
 0x1bc   : > { %v3006_v17 = vmul.f32 %v6044_v3, %v2479_v33 }
 0x1bd   : > { %5061 = vmatmul.msk.bf16.gmra.mxu3 %vm2273_vm4, %v2263_v27  ;;  %v6172_v27 = vadd.f32 %v6110_v39, %v2988_v60  ;;  %v2473_v60 = vrot.slane %v2328_v12, 2  ;;  %v2998_v35 = vmul.f32 %v6044_v3, %v2472_v20  ;;  %v3005_v20 = vmul.f32 %v6080_v59, %v2331_v44 }
 0x1bf   : > { %v2999_v56 = vmul.f32 %v6047_v32, %v2473_v60  ;;  %v6251_v60 = vadd.f32 %v6088_v62, %v3002_v10  ;;  %v2482_v10 = vrot.slane %v2331_v44, 4 }
 0x1c1   : > { %v6236_v58 = vadd.f32 %v6070_v0, %v2999_v56  ;;  %8499 = vst [vmem:[#allocation12_spill] sm:$0xff] %v6251_v60  ;;  %v2480_v56 = vrot.slane %v2331_v44, 2  ;;  %v3009_v33 = vmul.f32 %v6055_v25, %v2482_v10 }
 0x1c2   : > { %v2266_v28 = vld [vmem:[#allocation1] sm:$0xff] }
 0x1c3   : > { %3858 = vst [vmem:[#allocation1] ss:$9 sm:$0xff] %v6091_v1 }
 0x1c4   : > { %3860 = vst [vmem:[#allocation1 + $0x1] ss:$9 sm:$0xff] %v6098_v36 }
 0x1c5   : > { %3862 = vst [vmem:[#allocation1 + $0x2] ss:$9 sm:$0xff] %v6105_v50 }
 0x1c6   : > { %3864 = vst [vmem:[#allocation1 + $0x3] ss:$9 sm:$0xff] %v6113_v2 }
 0x1c7   : > { %3866 = vst [vmem:[#allocation1 + $0x4] ss:$9 sm:$0xff] %v6117_v22 }
 0x1c8   : > { %3868 = vst [vmem:[#allocation1 + $0x5] ss:$9 sm:$0xff] %v6121_v46 }
 0x1c9   : > { %3870 = vst [vmem:[#allocation1 + $0x6] ss:$9 sm:$0xff] %v6125_v29 }
 0x1ca   : > { %3872 = vst [vmem:[#allocation1 + $0x7] ss:$9 sm:$0xff] %v6129_v11 }
 0x1cb   : > { %8496 = vst [vmem:[#allocation9_spill] sm:$0xff] %v6236_v58 }
 0x1cd   : > { %5062 = vmatmul.msk.bf16.gmra.mxu3 %vm2273_vm4, %v2266_v28  ;;  %v2471_v28 = vrot.slane %v2326_v34, 7  ;;  %v2474_v34 = vrot.slane %v2328_v12, 3 }
 0x1cf   : > { %v2996_v51 = vmul.f32 %v6073_v31, %v2471_v28  ;;  %v3000_v30 = vmul.f32 %v6055_v25, %v2474_v34  ;;  %v6232_v28 = vadd.f32 %v6052_v13, %v2998_v35  ;;  %v6255_v34 = vadd.f32 %v6095_v15, %v3003_v8 }
 0x1d0   : > { %v6263_v35 = vadd.f32 %v6110_v39, %v3005_v20  ;;  %v2483_v8 = vrot.slane %v2331_v44, 5  ;;  %v3007_v20 = vmul.f32 %v6044_v3, %v2480_v56 }
 0x1d1   : > { %v6147_v37 = vld [vmem:[#allocation1] sm:$0xff]  ;;  %v6217_v55 = vadd.f32 %v6102_v61, %v2996_v51  ;;  %8495 = vst [vmem:[#allocation8_spill] sm:$0xff] %v6232_v28  ;;  %v3004_v51 = vmul.f32 %v6073_v31, %v2478_v16  ;;  %v6242_v12 = vadd.f32 %v6077_v23, %v3000_v30  ;;  %v6270_v16 = vadd.f32 %v6052_v13, %v3006_v17 }
 0x1d2   : > { %3874 = vst [vmem:[#allocation1] ss:$9 sm:$0xff] %v6141_v7  ;;  %v2481_v30 = vrot.slane %v2331_v44, 3 }
 0x1d3   : > { %3875 = vst [vmem:[#allocation1 + $0x1] ss:$9 sm:$0xff] %v6145_v4  ;;  %v6259_v57 = vadd.f32 %v6102_v61, %v3004_v51  ;;  %v2484_v51 = vrot.slane %v2331_v44, 6 }
 0x1d4   : > { %3876 = vst [vmem:[#allocation1 + $0x2] ss:$9 sm:$0xff] %v6151_v21 }
 0x1d5   : > { %3877 = vst [vmem:[#allocation1 + $0x3] ss:$9 sm:$0xff] %v6156_v6 }
 0x1d6   : > { %3878 = vst [vmem:[#allocation1 + $0x4] ss:$9 sm:$0xff] %v6160_v24 }
 0x1d7   : > { %3879 = vst [vmem:[#allocation1 + $0x5] ss:$9 sm:$0xff] %v6164_v5 }
 0x1d8   : > { %3880 = vst [vmem:[#allocation1 + $0x6] ss:$9 sm:$0xff] %v6168_v41 }
 0x1d9   : > { %3881 = vst [vmem:[#allocation1 + $0x7] ss:$9 sm:$0xff] %v6172_v27 }
 0x1da   : > { %8493 = vst [vmem:[#allocation6_spill] sm:$0xff] %v6217_v55 }
 0x1db   : > { %8497 = vst [vmem:[#allocation10_spill] sm:$0xff] %v6242_v12 }
 0x1dc   : > { %8500 = vst [vmem:[#allocation13_spill] sm:$0xff] %v6255_v34 }
 0x1dd   : > { %8501 = vst [vmem:[#allocation14_spill] sm:$0xff] %v6259_v57 }
 0x1de   : > { %8502 = vst [vmem:[#allocation15_spill] sm:$0xff] %v6263_v35 }
 0x1df   : > { %8503 = vst [vmem:[#allocation16_spill] sm:$0xff] %v6270_v16 }
 0x1e0   : > { %v6181_v42 = vld [vmem:[#allocation1] sm:$0xff]  ;;  %4256 = vst.msk [vmem:[%s6556_s22] sm:$0xff] %vm2273_vm4, %v6147_v37 }
 0x1e1   : > { %3883 = vst [vmem:[#allocation1] ss:$9 sm:$0xff] %v6179_v43 }
 0x1e2   : > { %4257 = vst.msk [vmem:[%s6556_s22 + $0x8] sm:$0xff] %vm2273_vm4, %v6181_v42 }
 0x1e8   : > { %v6196_v45 = vld [vmem:[#allocation1] sm:$0xff] }
 0x1e9   : > { %3885 = vst [vmem:[#allocation1] ss:$9 sm:$0xff] %v6190_v47 }
 0x1ea   : > { %3886 = vst [vmem:[#allocation1 + $0x1] ss:$9 sm:$0xff] %v6194_v63 }
 0x1eb   : > { %3887 = vst [vmem:[#allocation1 + $0x2] ss:$9 sm:$0xff] %v6200_v14 }
 0x1ec   : > { %3888 = vst [vmem:[#allocation1 + $0x3] ss:$9 sm:$0xff] %v6204_v9 }
 0x1ed   : > { %3889 = vst [vmem:[#allocation1 + $0x4] ss:$9 sm:$0xff] %v6209_v40 }
 0x1ee   : > { %3890 = vst [vmem:[#allocation1 + $0x5] ss:$9 sm:$0xff] %v6213_v53 }
 0x1ef   : > { %3891 = vst [vmem:[#allocation1 + $0x6] ss:$9 sm:$0xff] %v6217_v55 }
 0x1f0   : > { %3892 = vst [vmem:[#allocation1 + $0x7] ss:$9 sm:$0xff] %v6221_v49 }
 0x1f1   : > { %4259 = vst.msk [vmem:[%s6556_s22 + $0x10] sm:$0x1] %vm4258_vm5, %v6196_v45 }
 0x1f7   : > { %v6238_v54 = vld [vmem:[#allocation1] sm:$0xff] }
 0x1f8   : > { %3894 = vst [vmem:[#allocation1] ss:$9 sm:$0xff] %v6232_v28 }
 0x1f9   : > { %3895 = vst [vmem:[#allocation1 + $0x1] ss:$9 sm:$0xff] %v6236_v58 }
 0x1fa   : > { %3896 = vst [vmem:[#allocation1 + $0x2] ss:$9 sm:$0xff] %v6242_v12  ;;  %v6281_v12 = vadd.f32 %v6052_v13, %v3007_v20 }
 0x1fb   : > { %3897 = vst [vmem:[#allocation1 + $0x3] ss:$9 sm:$0xff] %v6246_v48  ;;  %v3011_v48 = vmul.f32 %v6061_v38, %v2484_v51 }
 0x1fc   : > { %3898 = vst [vmem:[#allocation1 + $0x4] ss:$9 sm:$0xff] %v6251_v60  ;;  %v3010_v60 = vmul.f32 %v6058_v52, %v2483_v8 }
 0x1fd   : > { %3899 = vst [vmem:[#allocation1 + $0x5] ss:$9 sm:$0xff] %v6255_v34  ;;  %v2333_v34 = vpop.f32.mrf.mxu0 }
 0x1fe   : > { %3900 = vst [vmem:[#allocation1 + $0x6] ss:$9 sm:$0xff] %v6259_v57  ;;  %v2485_v57 = vrot.slane %v2331_v44, 7  ;;  %v2486_v17 = vrot.slane %v2333_v34, 1  ;;  %v6290_v44 = vadd.f32 %v6077_v23, %v3009_v33  ;;  %v6295_v10 = vadd.f32 %v6084_v18, %v3010_v60 }
 0x1ff   : > { %3901 = vst [vmem:[#allocation1 + $0x7] ss:$9 sm:$0xff] %v6263_v35  ;;  %v3008_v35 = vmul.f32 %v6047_v32, %v2481_v30  ;;  %v3013_v30 = vmul.f32 %v6073_v31, %v2333_v34  ;;  %v2487_v60 = vrot.slane %v2333_v34, 2  ;;  %v2489_v33 = vrot.slane %v2333_v34, 4 }
 0x200   : > { %8504 = vst [vmem:[#allocation17_spill] sm:$0xff] %v6281_v12  ;;  %v3014_v8 = vmul.f32 %v6080_v59, %v2486_v17  ;;  %v2491_v17 = vrot.slane %v2333_v34, 6 }
 0x201   : > { %v6285_v58 = vadd.f32 %v6070_v0, %v3008_v35  ;;  %8506 = vst [vmem:[#allocation19_spill] sm:$0xff] %v6290_v44  ;;  %v6308_v51 = vadd.f32 %v6102_v61, %v3013_v30 }
 0x202   : > { %8507 = vst [vmem:[#allocation20_spill] sm:$0xff] %v6295_v10  ;;  %v6312_v20 = vadd.f32 %v6110_v39, %v3014_v8 }
 0x203   : > { %8505 = vst [vmem:[#allocation18_spill] sm:$0xff] %v6285_v58 }
 0x204   : > { %8510 = vst [vmem:[#allocation23_spill] sm:$0xff] %v6308_v51 }
 0x205   : > { %8511 = vst [vmem:[#allocation24_spill] sm:$0xff] %v6312_v20  ;;  %v2336_v30 = vpop.f32.mrf.mxu0 }
 0x206   : > { %v6272_v26 = vld [vmem:[#allocation1] sm:$0xff]  ;;  %4260 = vst.msk [vmem:[%s6556_s22 + $0x30] sm:$0xff] %vm2273_vm4, %v6238_v54 }
 0x207   : > { %3903 = vst [vmem:[#allocation1] ss:$9 sm:$0xff] %v6270_v16  ;;  %v3012_v16 = vmul.f32 %v6066_v19, %v2485_v57  ;;  %v6300_v57 = vadd.f32 %v6088_v62, %v3011_v48  ;;  %v2488_v48 = vrot.slane %v2333_v34, 3 }
 0x208   : > { %4261 = vst.msk [vmem:[%s6556_s22 + $0x38] sm:$0xff] %vm2273_vm4, %v6272_v26 }
 0x209   : > { %8508 = vst [vmem:[#allocation21_spill] sm:$0xff] %v6300_v57  ;;  %v6304_v35 = vadd.f32 %v6095_v15, %v3012_v16  ;;  %v2490_v16 = vrot.slane %v2333_v34, 5 }
 0x20b   : > { %8509 = vst [vmem:[#allocation22_spill] sm:$0xff] %v6304_v35  ;;  %v3018_v8 = vmul.f32 %v6058_v52, %v2490_v16  ;;  %v2494_v16 = vrot.slane %v2336_v30, 2 }
 0x20e   : > { %v6287_v56 = vld [vmem:[#allocation1] sm:$0xff] }
 0x20f   : > { %3905 = vst [vmem:[#allocation1] ss:$9 sm:$0xff] %v6281_v12  ;;  %v2493_v12 = vrot.slane %v2336_v30, 1 }
 0x210   : > { %3906 = vst [vmem:[#allocation1 + $0x1] ss:$9 sm:$0xff] %v6285_v58  ;;  %v3017_v58 = vmul.f32 %v6055_v25, %v2489_v33  ;;  %v6337_v33 = vadd.f32 %v6084_v18, %v3018_v8  ;;  %v2496_v8 = vrot.slane %v2336_v30, 4 }
 0x211   : > { %3907 = vst [vmem:[#allocation1 + $0x2] ss:$9 sm:$0xff] %v6290_v44  ;;  %v2492_v44 = vrot.slane %v2333_v34, 7 }
 0x212   : > { %3908 = vst [vmem:[#allocation1 + $0x3] ss:$9 sm:$0xff] %v6295_v10  ;;  %v3015_v10 = vmul.f32 %v6044_v3, %v2487_v60  ;;  %v6332_v34 = vadd.f32 %v6077_v23, %v3017_v58 }
 0x213   : > { %3909 = vst [vmem:[#allocation1 + $0x4] ss:$9 sm:$0xff] %v6300_v57  ;;  %v3016_v57 = vmul.f32 %v6047_v32, %v2488_v48  ;;  %v3021_v48 = vmul.f32 %v6073_v31, %v2336_v30 }
 0x214   : > { %3910 = vst [vmem:[#allocation1 + $0x5] ss:$9 sm:$0xff] %v6304_v35  ;;  %v3019_v35 = vmul.f32 %v6061_v38, %v2491_v17 }
 0x215   : > { %3911 = vst [vmem:[#allocation1 + $0x6] ss:$9 sm:$0xff] %v6308_v51  ;;  %v6323_v51 = vadd.f32 %v6052_v13, %v3015_v10  ;;  %v6327_v28 = vadd.f32 %v6070_v0, %v3016_v57  ;;  %v3022_v10 = vmul.f32 %v6080_v59, %v2493_v12  ;;  %v6350_v58 = vadd.f32 %v6102_v61, %v3021_v48 }
 0x216   : > { %3912 = vst [vmem:[#allocation1 + $0x7] ss:$9 sm:$0xff] %v6312_v20  ;;  %v3020_v20 = vmul.f32 %v6066_v19, %v2492_v44  ;;  %v6342_v44 = vadd.f32 %v6088_v62, %v3019_v35  ;;  %v3023_v35 = vmul.f32 %v6044_v3, %v2494_v16 }
 0x217   : > { %8512 = vst [vmem:[#allocation25_spill] sm:$0xff] %v6323_v51  ;;  %v6354_v12 = vadd.f32 %v6110_v39, %v3022_v10  ;;  %v2498_v10 = vrot.slane %v2336_v30, 6 }
 0x218   : > { %8513 = vst [vmem:[#allocation26_spill] sm:$0xff] %v6327_v28  ;;  %v6346_v57 = vadd.f32 %v6095_v15, %v3020_v20  ;;  %v2495_v20 = vrot.slane %v2336_v30, 3  ;;  %v6361_v17 = vadd.f32 %v6052_v13, %v3023_v35 }
 0x219   : > { %8514 = vst [vmem:[#allocation27_spill] sm:$0xff] %v6332_v34 }
 0x21a   : > { %8515 = vst [vmem:[#allocation28_spill] sm:$0xff] %v6337_v33 }
 0x21b   : > { %8516 = vst [vmem:[#allocation29_spill] sm:$0xff] %v6342_v44 }
 0x21c   : > { %8517 = vst [vmem:[#allocation30_spill] sm:$0xff] %v6346_v57 }
 0x21d   : > { %v6329_v60 = vld [vmem:[#allocation1] sm:$0xff]  ;;  %8518 = vst [vmem:[#allocation31_spill] sm:$0xff] %v6350_v58 }
 0x21e   : > { %3914 = vst [vmem:[#allocation1] ss:$9 sm:$0xff] %v6323_v51 }
 0x21f   : > { %3915 = vst [vmem:[#allocation1 + $0x1] ss:$9 sm:$0xff] %v6327_v28  ;;  %v3027_v28 = vmul.f32 %v6058_v52, %v2498_v10 }
 0x220   : > { %3916 = vst [vmem:[#allocation1 + $0x2] ss:$9 sm:$0xff] %v6332_v34  ;;  %v2499_v34 = vrot.slane %v2336_v30, 7 }
 0x221   : > { %3917 = vst [vmem:[#allocation1 + $0x3] ss:$9 sm:$0xff] %v6337_v33  ;;  %v2338_v33 = vpop.f32.mrf.mxu0 }
 0x222   : > { %3918 = vst [vmem:[#allocation1 + $0x4] ss:$9 sm:$0xff] %v6342_v44  ;;  %v2497_v44 = vrot.slane %v2336_v30, 5  ;;  %v2500_v16 = vrot.slane %v2338_v33, 1  ;;  %v2501_v35 = vrot.slane %v2338_v33, 2  ;;  %v3028_v51 = vmul.f32 %v6061_v38, %v2499_v34 }
 0x223   : > { %8519 = vst [vmem:[#allocation32_spill] sm:$0xff] %v6354_v12  ;;  %v3029_v30 = vmul.f32 %v6066_v19, %v2338_v33 }
 0x224   : > { %3919 = vst [vmem:[#allocation1 + $0x5] ss:$9 sm:$0xff] %v6346_v57  ;;  %v3024_v57 = vmul.f32 %v6044_v3, %v2495_v20  ;;  %v3031_v34 = vmul.f32 %v6080_v59, %v2501_v35  ;;  %v2505_v35 = vrot.slane %v2338_v33, 6 }
 0x225   : > { %3920 = vst [vmem:[#allocation1 + $0x6] ss:$9 sm:$0xff] %v6350_v58  ;;  %v3025_v58 = vmul.f32 %v6047_v32, %v2496_v8  ;;  %v6386_v8 = vadd.f32 %v6084_v18, %v3027_v28  ;;  %v2502_v28 = vrot.slane %v2338_v33, 3 }
 0x226   : > { %3921 = vst [vmem:[#allocation1 + $0x7] ss:$9 sm:$0xff] %v6354_v12  ;;  %v3026_v12 = vmul.f32 %v6055_v25, %v2497_v44  ;;  %v6372_v49 = vadd.f32 %v6052_v13, %v3024_v57  ;;  %v3030_v44 = vmul.f32 %v6073_v31, %v2500_v16  ;;  %v6391_v57 = vadd.f32 %v6088_v62, %v3028_v51 }
 0x227   : > { %8520 = vst [vmem:[#allocation33_spill] sm:$0xff] %v6361_v17  ;;  %v6403_v10 = vadd.f32 %v6110_v39, %v3031_v34  ;;  %v2503_v51 = vrot.slane %v2338_v33, 4  ;;  %v2504_v16 = vrot.slane %v2338_v33, 5  ;;  %v3035_v34 = vmul.f32 %v6058_v52, %v2505_v35 }
 0x228   : > { %8521 = vst [vmem:[#allocation34_spill] sm:$0xff] %v6372_v49  ;;  %v6381_v20 = vadd.f32 %v6077_v23, %v3026_v12  ;;  %v6399_v12 = vadd.f32 %v6102_v61, %v3030_v44  ;;  %v3032_v44 = vmul.f32 %v6044_v3, %v2502_v28 }
 0x229   : > { %8524 = vst [vmem:[#allocation37_spill] sm:$0xff] %v6386_v8 }
 0x22a   : > { %8523 = vst [vmem:[#allocation36_spill] sm:$0xff] %v6381_v20 }
 0x22b   : > { %8525 = vst [vmem:[#allocation38_spill] sm:$0xff] %v6391_v57 }
 0x22c   : > { %8527 = vst [vmem:[#allocation40_spill] sm:$0xff] %v6399_v12 }
 0x22d   : > { %v6363_v48 = vld [vmem:[#allocation1] sm:$0xff]  ;;  %8528 = vst [vmem:[#allocation41_spill] sm:$0xff] %v6403_v10 }
 0x22e   : > { %3923 = vst [vmem:[#allocation1] ss:$9 sm:$0xff] %v6361_v17  ;;  %v6375_v17 = vadd.f32 %v6070_v0, %v3025_v58  ;;  %v6395_v58 = vadd.f32 %v6095_v15, %v3029_v30  ;;  %v2341_v30 = vpop.f32.mrf.mxu0 }
 0x22f   : > { %4263 = vst.msk [vmem:[%s6556_s22 + $0x60] sm:$0xff] %vm2273_vm4, %v6329_v60 }
 0x230   : > { %8522 = vst [vmem:[#allocation35_spill] sm:$0xff] %v6375_v17 }
 0x231   : > { %8526 = vst [vmem:[#allocation39_spill] sm:$0xff] %v6395_v58 }
 0x232   : > { %4264 = vst.msk [vmem:[%s6556_s22 + $0x68] sm:$0xff] %vm2273_vm4, %v6363_v48 }
 0x233   : > { %4262 = vst.msk [vmem:[%s6556_s22 + $0x40] sm:$0x1] %vm4258_vm5, %v6287_v56 }
 0x235   : > { %v6378_v55 = vld [vmem:[#allocation1] sm:$0xff] }
 0x236   : > { %3925 = vst [vmem:[#allocation1] ss:$9 sm:$0xff] %v6372_v49  ;;  %v2508_v49 = vrot.slane %v2341_v30, 2 }
 0x237   : > { %3926 = vst [vmem:[#allocation1 + $0x1] ss:$9 sm:$0xff] %v6375_v17  ;;  %v2507_v17 = vrot.slane %v2341_v30, 1 }
 0x238   : > { %3927 = vst [vmem:[#allocation1 + $0x2] ss:$9 sm:$0xff] %v6381_v20  ;;  %v3033_v20 = vmul.f32 %v6047_v32, %v2503_v51 }
 0x239   : > { %3928 = vst [vmem:[#allocation1 + $0x3] ss:$9 sm:$0xff] %v6386_v8  ;;  %v2506_v8 = vrot.slane %v2338_v33, 7  ;;  %v3037_v33 = vmul.f32 %v6066_v19, %v2341_v30  ;;  %v3038_v51 = vmul.f32 %v6073_v31, %v2507_v17 }
 0x23a   : > { %3929 = vst [vmem:[#allocation1 + $0x4] ss:$9 sm:$0xff] %v6391_v57  ;;  %v3034_v57 = vmul.f32 %v6055_v25, %v2504_v16  ;;  %v6428_v16 = vadd.f32 %v6084_v18, %v3035_v34 }
 0x23b   : > { %3930 = vst [vmem:[#allocation1 + $0x5] ss:$9 sm:$0xff] %v6395_v58  ;;  %v3036_v58 = vmul.f32 %v6061_v38, %v2506_v8  ;;  %v3039_v8 = vmul.f32 %v6080_v59, %v2508_v49  ;;  %v6437_v35 = vadd.f32 %v6095_v15, %v3037_v33  ;;  %v6441_v17 = vadd.f32 %v6102_v61, %v3038_v51 }
 0x23c   : > { %3931 = vst [vmem:[#allocation1 + $0x6] ss:$9 sm:$0xff] %v6399_v12  ;;  %v6414_v12 = vadd.f32 %v6052_v13, %v3032_v44  ;;  %v6423_v28 = vadd.f32 %v6077_v23, %v3034_v57  ;;  %v2509_v57 = vrot.slane %v2341_v30, 3  ;;  %v2510_v44 = vrot.slane %v2341_v30, 4 }
 0x23d   : > { %3932 = vst [vmem:[#allocation1 + $0x7] ss:$9 sm:$0xff] %v6403_v10  ;;  %v6417_v10 = vadd.f32 %v6070_v0, %v3033_v20  ;;  %v6433_v20 = vadd.f32 %v6088_v62, %v3036_v58  ;;  %v6445_v49 = vadd.f32 %v6110_v39, %v3039_v8  ;;  %v2511_v33 = vrot.slane %v2341_v30, 5 }
 0x23e   : > { %8529 = vst [vmem:[#allocation42_spill] sm:$0xff] %v6414_v12  ;;  %v3040_v58 = vmul.f32 %v6044_v3, %v2509_v57  ;;  %v2513_v8 = vrot.slane %v2341_v30, 7 }
 0x23f   : > { %8530 = vst [vmem:[#allocation43_spill] sm:$0xff] %v6417_v10 }
 0x240   : > { %8531 = vst [vmem:[#allocation44_spill] sm:$0xff] %v6423_v28  ;;  %v6452_v34 = vadd.f32 %v6052_v13, %v3040_v58 }
 0x241   : > { %8532 = vst [vmem:[#allocation45_spill] sm:$0xff] %v6428_v16 }
 0x242   : > { %8533 = vst [vmem:[#allocation46_spill] sm:$0xff] %v6433_v20 }
 0x243   : > { %8534 = vst [vmem:[#allocation47_spill] sm:$0xff] %v6437_v35 }
 0x244   : > { %v6420_v53 = vld [vmem:[#allocation1] sm:$0xff]  ;;  %8535 = vst [vmem:[#allocation48_spill] sm:$0xff] %v6441_v17 }
 0x245   : > { %3934 = vst [vmem:[#allocation1] ss:$9 sm:$0xff] %v6414_v12 }
 0x246   : > { %3935 = vst [vmem:[#allocation1 + $0x1] ss:$9 sm:$0xff] %v6417_v10  ;;  %v3044_v10 = vmul.f32 %v6058_v52, %v2513_v8 }
 0x247   : > { %3936 = vst [vmem:[#allocation1 + $0x2] ss:$9 sm:$0xff] %v6423_v28 }
 0x248   : > { %3937 = vst [vmem:[#allocation1 + $0x3] ss:$9 sm:$0xff] %v6428_v16  ;;  %v2343_v16 = vpop.f32.mrf.mxu0  ;;  %v6477_v8 = vadd.f32 %v6084_v18, %v3044_v10 }
 0x249   : > { %3938 = vst [vmem:[#allocation1 + $0x4] ss:$9 sm:$0xff] %v6433_v20  ;;  %v2512_v20 = vrot.slane %v2341_v30, 6  ;;  %v2514_v28 = vrot.slane %v2343_v16, 1  ;;  %v2515_v57 = vrot.slane %v2343_v16, 2  ;;  %v2516_v58 = vrot.slane %v2343_v16, 3 }
 0x24a   : > { %8536 = vst [vmem:[#allocation49_spill] sm:$0xff] %v6445_v49  ;;  %v3045_v40 = vmul.f32 %v6061_v38, %v2343_v16  ;;  %v2517_v10 = vrot.slane %v2343_v16, 4 }
 0x24b   : > { %3939 = vst [vmem:[#allocation1 + $0x5] ss:$9 sm:$0xff] %v6437_v35  ;;  %v3041_v35 = vmul.f32 %v6044_v3, %v2510_v44  ;;  %v3046_v30 = vmul.f32 %v6066_v19, %v2514_v28 }
 0x24c   : > { %3940 = vst [vmem:[#allocation1 + $0x6] ss:$9 sm:$0xff] %v6441_v17  ;;  %v3042_v17 = vmul.f32 %v6047_v32, %v2511_v33 }
 0x24d   : > { %3941 = vst [vmem:[#allocation1 + $0x7] ss:$9 sm:$0xff] %v6445_v49  ;;  %v3043_v49 = vmul.f32 %v6055_v25, %v2512_v20  ;;  %v6462_v12 = vadd.f32 %v6052_v13, %v3041_v35  ;;  %v3047_v20 = vmul.f32 %v6073_v31, %v2515_v57  ;;  %v3048_v35 = vmul.f32 %v6080_v59, %v2516_v58  ;;  %v2346_v58 = vpop.f32.mrf.mxu1 }
 0x24e   : > { %8537 = vst [vmem:[#allocation50_spill] sm:$0xff] %v6452_v34  ;;  %v6466_v9 = vadd.f32 %v6070_v0, %v3042_v17  ;;  %v6482_v17 = vadd.f32 %v6088_v62, %v3045_v40  ;;  %v6486_v28 = vadd.f32 %v6095_v15, %v3046_v30  ;;  %v2518_v40 = vrot.slane %v2343_v16, 5 }
 0x24f   : > { %8538 = vst [vmem:[#allocation51_spill] sm:$0xff] %v6462_v12  ;;  %v6472_v33 = vadd.f32 %v6077_v23, %v3043_v49  ;;  %v6490_v49 = vadd.f32 %v6102_v61, %v3047_v20  ;;  %v6494_v57 = vadd.f32 %v6110_v39, %v3048_v35  ;;  %v2520_v30 = vrot.slane %v2343_v16, 7 }
 0x250   : > { %8539 = vst [vmem:[#allocation52_spill] sm:$0xff] %v6466_v9  ;;  %v2521_v20 = vrot.slane %v2346_v58, 1  ;;  %v2523_v35 = vrot.slane %v2346_v58, 3 }
 0x251   : > { %8540 = vst [vmem:[#allocation53_spill] sm:$0xff] %v6472_v33 }
 0x252   : > { %8541 = vst [vmem:[#allocation54_spill] sm:$0xff] %v6477_v8  ;;  %v3054_v14 = vmul.f32 %v6066_v19, %v2521_v20 }
 0x253   : > { %8542 = vst [vmem:[#allocation55_spill] sm:$0xff] %v6482_v17 }
 0x254   : > { %v6454_v51 = vld [vmem:[#allocation1] sm:$0xff]  ;;  %8543 = vst [vmem:[#allocation56_spill] sm:$0xff] %v6486_v28 }
 0x255   : > { %3943 = vst [vmem:[#allocation1] ss:$9 sm:$0xff] %v6452_v34  ;;  %v3052_v34 = vmul.f32 %v6058_v52, %v2520_v30  ;;  %v2524_v30 = vrot.slane %v2346_v58, 4 }
 0x256   : > { %8544 = vst [vmem:[#allocation57_spill] sm:$0xff] %v6490_v49 }
 0x257   : > { %8545 = vst [vmem:[#allocation58_spill] sm:$0xff] %v6494_v57 }
 0x258   : > { %4266 = vst.msk [vmem:[%s6556_s22 + $0x90] sm:$0xff] %vm2273_vm4, %v6420_v53 }
 0x259   : > { %4267 = vst.msk [vmem:[%s6556_s22 + $0x98] sm:$0xff] %vm2273_vm4, %v6454_v51 }
 0x25a   : > { %4265 = vst.msk [vmem:[%s6556_s22 + $0x70] sm:$0x1] %vm4258_vm5, %v6378_v55 }
 0x25c   : > { %v6469_v44 = vld [vmem:[#allocation1] sm:$0xff] }
 0x25d   : > { %3945 = vst [vmem:[#allocation1] ss:$9 sm:$0xff] %v6462_v12 }
 0x25e   : > { %3946 = vst [vmem:[#allocation1 + $0x1] ss:$9 sm:$0xff] %v6466_v9  ;;  %v3050_v9 = vmul.f32 %v6047_v32, %v2518_v40 }
 0x25f   : > { %3947 = vst [vmem:[#allocation1 + $0x2] ss:$9 sm:$0xff] %v6472_v33  ;;  %v2519_v33 = vrot.slane %v2343_v16, 6 }
 0x260   : > { %3948 = vst [vmem:[#allocation1 + $0x3] ss:$9 sm:$0xff] %v6477_v8  ;;  %v3049_v8 = vmul.f32 %v6044_v3, %v2517_v10  ;;  %v6509_v16 = vadd.f32 %v6070_v0, %v3050_v9 }
 0x261   : > { %3949 = vst [vmem:[#allocation1 + $0x4] ss:$9 sm:$0xff] %v6482_v17  ;;  %v2522_v17 = vrot.slane %v2346_v58, 2  ;;  %v3051_v12 = vmul.f32 %v6055_v25, %v2519_v33  ;;  %v3056_v33 = vmul.f32 %v6080_v59, %v2523_v35  ;;  %v2526_v35 = vrot.slane %v2346_v58, 6 }
 0x262   : > { %3950 = vst [vmem:[#allocation1 + $0x5] ss:$9 sm:$0xff] %v6486_v28  ;;  %v3053_v28 = vmul.f32 %v6061_v38, %v2346_v58 }
 0x263   : > { %3951 = vst [vmem:[#allocation1 + $0x6] ss:$9 sm:$0xff] %v6490_v49  ;;  %v6505_v49 = vadd.f32 %v6052_v13, %v3049_v8  ;;  %v3055_v40 = vmul.f32 %v6073_v31, %v2522_v17  ;;  %v6520_v8 = vadd.f32 %v6084_v18, %v3052_v34  ;;  %v6528_v17 = vadd.f32 %v6095_v15, %v3054_v14 }
 0x264   : > { %3952 = vst [vmem:[#allocation1 + $0x7] ss:$9 sm:$0xff] %v6494_v57  ;;  %v6515_v57 = vadd.f32 %v6077_v23, %v3051_v12  ;;  %v6524_v9 = vadd.f32 %v6088_v62, %v3053_v28  ;;  %v6536_v34 = vadd.f32 %v6110_v39, %v3056_v33  ;;  %v3057_v14 = vmul.f32 %v6044_v3, %v2524_v30 }
 0x265   : > { %8546 = vst [vmem:[#allocation59_spill] sm:$0xff] %v6505_v49  ;;  %v6532_v12 = vadd.f32 %v6102_v61, %v3055_v40  ;;  %v2525_v28 = vrot.slane %v2346_v58, 5  ;;  %v2348_v40 = vpop.f32.mrf.mxu1  ;;  %v2527_v33 = vrot.slane %v2346_v58, 7 }
 0x266   : > { %8547 = vst [vmem:[#allocation60_spill] sm:$0xff] %v6509_v16  ;;  %v6544_v20 = vadd.f32 %v6052_v13, %v3057_v14  ;;  %v2529_v30 = vrot.slane %v2348_v40, 2  ;;  %v2530_v14 = vrot.slane %v2348_v40, 3 }
 0x267   : > { %8548 = vst [vmem:[#allocation61_spill] sm:$0xff] %v6515_v57 }
 0x268   : > { %8549 = vst [vmem:[#allocation62_spill] sm:$0xff] %v6520_v8 }
 0x269   : > { %8550 = vst [vmem:[#allocation63_spill] sm:$0xff] %v6524_v9 }
 0x26a   : > { %8551 = vst [vmem:[#allocation64_spill] sm:$0xff] %v6528_v17 }
 0x26b   : > { %v6511_v10 = vld [vmem:[#allocation1] sm:$0xff]  ;;  %8552 = vst [vmem:[#allocation65_spill] sm:$0xff] %v6532_v12 }
 0x26c   : > { %3954 = vst [vmem:[#allocation1] ss:$9 sm:$0xff] %v6505_v49 }
 0x26d   : > { %3955 = vst [vmem:[#allocation1 + $0x1] ss:$9 sm:$0xff] %v6509_v16  ;;  %v3061_v16 = vmul.f32 %v6058_v52, %v2348_v40 }
 0x26e   : > { %3956 = vst [vmem:[#allocation1 + $0x2] ss:$9 sm:$0xff] %v6515_v57  ;;  %v2531_v57 = vrot.slane %v2348_v40, 4 }
 0x26f   : > { %3957 = vst [vmem:[#allocation1 + $0x3] ss:$9 sm:$0xff] %v6520_v8  ;;  %v3060_v8 = vmul.f32 %v6055_v25, %v2527_v33  ;;  %v3063_v33 = vmul.f32 %v6066_v19, %v2529_v30  ;;  %v6581_v37 = vadd.f32 %v6084_v18, %v3061_v16  ;;  %v2533_v30 = vrot.slane %v2348_v40, 6 }
 0x270   : > { %3958 = vst [vmem:[#allocation1 + $0x4] ss:$9 sm:$0xff] %v6524_v9 }
 0x271   : > { %8553 = vst [vmem:[#allocation66_spill] sm:$0xff] %v6536_v34  ;;  %v6575_v49 = vadd.f32 %v6077_v23, %v3060_v8  ;;  %v6589_v42 = vadd.f32 %v6095_v15, %v3063_v33 }
 0x272   : > { %3959 = vst [vmem:[#allocation1 + $0x5] ss:$9 sm:$0xff] %v6528_v17  ;;  %v2528_v17 = vrot.slane %v2348_v40, 1 }
 0x273   : > { %3960 = vst [vmem:[#allocation1 + $0x6] ss:$9 sm:$0xff] %v6532_v12  ;;  %v3058_v12 = vmul.f32 %v6044_v3, %v2525_v28 }
 0x274   : > { %3961 = vst [vmem:[#allocation1 + $0x7] ss:$9 sm:$0xff] %v6536_v34  ;;  %v3059_v34 = vmul.f32 %v6047_v32, %v2526_v35  ;;  %v3062_v28 = vmul.f32 %v6061_v38, %v2528_v17  ;;  %v3065_v17 = vmul.f32 %v6080_v59, %v2531_v57  ;;  %v2532_v57 = vrot.slane %v2348_v40, 5 }
 0x275   : > { %8554 = vst [vmem:[#allocation67_spill] sm:$0xff] %v6544_v20  ;;  %v6559_v58 = vadd.f32 %v6052_v13, %v3058_v12  ;;  %v3064_v12 = vmul.f32 %v6073_v31, %v2530_v14  ;;  %v2351_v14 = vpop.f32.mrf.mxu1 }
 0x276   : > { %v6566_v35 = vadd.f32 %v6070_v0, %v3059_v34  ;;  %v6585_v34 = vadd.f32 %v6088_v62, %v3062_v28  ;;  %8556 = vst [vmem:[#allocation69_spill] sm:$0xff] %v6589_v42  ;;  %v6597_v16 = vadd.f32 %v6110_v39, %v3065_v17  ;;  %v2534_v28 = vrot.slane %v2348_v40, 7 }
 0x277   : > { %v6593_v8 = vadd.f32 %v6102_v61, %v3064_v12  ;;  %v3066_v33 = vmul.f32 %v6044_v3, %v2532_v57  ;;  %v2535_v12 = vrot.slane %v2351_v14, 1  ;;  %v3067_v17 = vmul.f32 %v6047_v32, %v2533_v30  ;;  %4269 = vst.msk [vmem:[%s6556_s22 + $0xc0] sm:$0xff] %vm2273_vm4, %v6511_v10 }
 0x278   : > { %8555 = vst [vmem:[#allocation68_spill] sm:$0xff] %v6585_v34  ;;  %v3068_v40 = vmul.f32 %v6055_v25, %v2534_v28  ;;  %v2538_v54 = vrot.slane %v2351_v14, 4  ;;  %v3069_v57 = vmul.f32 %v6058_v52, %v2351_v14 }
 0x279   : > { %8557 = vst [vmem:[#allocation70_spill] sm:$0xff] %v6593_v8  ;;  %v6622_v26 = vadd.f32 %v6052_v13, %v3066_v33  ;;  %v3070_v30 = vmul.f32 %v6061_v38, %v2535_v12  ;;  %v6629_v60 = vadd.f32 %v6070_v0, %v3067_v17  ;;  %v2539_v12 = vrot.slane %v2351_v14, 5 }
 0x27a   : > { %8558 = vst [vmem:[#allocation71_spill] sm:$0xff] %v6597_v16  ;;  %v3073_v33 = vmul.f32 %v6080_v59, %v2538_v54  ;;  %v6642_v51 = vadd.f32 %v6084_v18, %v3069_v57  ;;  %v2540_v54 = vrot.slane %v2351_v14, 6 }
 0x27b   : > { %v6546_v9 = vld [vmem:[#allocation1] sm:$0xff]  ;;  %8559 = vst [vmem:[#allocation72_spill] sm:$0xff] %v6622_v26 }
 0x27c   : > { %3963 = vst [vmem:[#allocation1] ss:$9 sm:$0xff] %v6544_v20  ;;  %v6658_v17 = vadd.f32 %v6110_v39, %v3073_v33 }
 0x27d   : > { %8560 = vst [vmem:[#allocation73_spill] sm:$0xff] %v6629_v60 }
 0x27e   : > { %8562 = vst [vmem:[#allocation75_spill] sm:$0xff] %v6642_v51 }
 0x27f   : > { %8566 = vst [vmem:[#allocation79_spill] sm:$0xff] %v6658_v17 }
 0x280   : > { %4270 = vst.msk [vmem:[%s6556_s22 + $0xc8] sm:$0xff] %vm2273_vm4, %v6546_v9 }
 0x281   : > { %4268 = vst.msk [vmem:[%s6556_s22 + $0xa0] sm:$0x1] %vm4258_vm5, %v6469_v44 }
 0x283   : > { %v6569_v20 = vld [vmem:[#allocation1] sm:$0xff] }
 0x284   : > { %3965 = vst [vmem:[#allocation1] ss:$9 sm:$0xff] %v6559_v58 }
 0x285   : > { %3966 = vst [vmem:[#allocation1 + $0x1] ss:$9 sm:$0xff] %v6566_v35 }
 0x286   : > { %3967 = vst [vmem:[#allocation1 + $0x2] ss:$9 sm:$0xff] %v6575_v49 }
 0x287   : > { %3968 = vst [vmem:[#allocation1 + $0x3] ss:$9 sm:$0xff] %v6581_v37 }
 0x288   : > { %3969 = vst [vmem:[#allocation1 + $0x4] ss:$9 sm:$0xff] %v6585_v34 }
 0x289   : > { %3970 = vst [vmem:[#allocation1 + $0x5] ss:$9 sm:$0xff] %v6589_v42  ;;  %v2536_v42 = vrot.slane %v2351_v14, 2 }
 0x28a   : > { %3971 = vst [vmem:[#allocation1 + $0x6] ss:$9 sm:$0xff] %v6593_v8  ;;  %v6636_v8 = vadd.f32 %v6077_v23, %v3068_v40  ;;  %v3074_v40 = vmul.f32 %v6044_v3, %v2539_v12 }
 0x28b   : > { %3972 = vst [vmem:[#allocation1 + $0x7] ss:$9 sm:$0xff] %v6597_v16  ;;  %v2537_v16 = vrot.slane %v2351_v14, 3  ;;  %v3071_v28 = vmul.f32 %v6066_v19, %v2536_v42  ;;  %v6646_v42 = vadd.f32 %v6088_v62, %v3070_v30  ;;  %v2353_v30 = vpop.f32.mrf.mxu1 }
 0x28c   : > { %8561 = vst [vmem:[#allocation74_spill] sm:$0xff] %v6636_v8  ;;  %v6670_v57 = vadd.f32 %v6052_v13, %v3074_v40  ;;  %v2542_v33 = vrot.slane %v2353_v30, 1  ;;  %v2544_v12 = vrot.slane %v2353_v30, 3 }
 0x28d   : > { %v3072_v53 = vmul.f32 %v6073_v31, %v2537_v16  ;;  %8563 = vst [vmem:[#allocation76_spill] sm:$0xff] %v6646_v42  ;;  %v6650_v10 = vadd.f32 %v6095_v15, %v3071_v28  ;;  %v2541_v28 = vrot.slane %v2351_v14, 7 }
 0x28e   : > { %8567 = vst [vmem:[#allocation80_spill] sm:$0xff] %v6670_v57  ;;  %v3078_v40 = vmul.f32 %v6058_v52, %v2542_v33 }
 0x28f   : > { %8564 = vst [vmem:[#allocation77_spill] sm:$0xff] %v6650_v10  ;;  %v6654_v16 = vadd.f32 %v6102_v61, %v3072_v53  ;;  %v3076_v9 = vmul.f32 %v6047_v32, %v2541_v28 }
 0x290   : > { %4271 = vst.msk [vmem:[%s6556_s22 + $0xd0] sm:$0x1] %vm4258_vm5, %v6569_v20 }
 0x291   : > { %8565 = vst [vmem:[#allocation78_spill] sm:$0xff] %v6654_v16 }
 0x292   : > { %v3973_v48 = vld [vmem:[#allocation1] sm:$0xff] }
 0x293   : > { %3974 = vst [vmem:[#allocation1] ss:$9 sm:$0xff] %v6622_v26 }
 0x294   : > { %3975 = vst [vmem:[#allocation1 + $0x1] ss:$9 sm:$0xff] %v6629_v60 }
 0x295   : > { %3976 = vst [vmem:[#allocation1 + $0x2] ss:$9 sm:$0xff] %v6636_v8 }
 0x296   : > { %3977 = vst [vmem:[#allocation1 + $0x3] ss:$9 sm:$0xff] %v6642_v51  ;;  %v6684_v51 = vadd.f32 %v6070_v0, %v3076_v9 }
 0x297   : > { %3978 = vst [vmem:[#allocation1 + $0x4] ss:$9 sm:$0xff] %v6646_v42  ;;  %v2546_v42 = vrot.slane %v2353_v30, 5 }
 0x298   : > { %3979 = vst [vmem:[#allocation1 + $0x5] ss:$9 sm:$0xff] %v6650_v10  ;;  %v2545_v10 = vrot.slane %v2353_v30, 4 }
 0x299   : > { %3980 = vst [vmem:[#allocation1 + $0x6] ss:$9 sm:$0xff] %v6654_v16  ;;  %v2543_v16 = vrot.slane %v2353_v30, 2  ;;  %v3082_v33 = vmul.f32 %v6080_v59, %v2546_v42  ;;  %v2547_v42 = vrot.slane %v2353_v30, 6 }
 0x29a   : > { %3981 = vst [vmem:[#allocation1 + $0x7] ss:$9 sm:$0xff] %v6658_v17  ;;  %v3075_v17 = vmul.f32 %v6044_v3, %v2540_v54  ;;  %v3080_v54 = vmul.f32 %v6066_v19, %v2544_v12  ;;  %v3081_v28 = vmul.f32 %v6073_v31, %v2545_v10 }
 0x29b   : > { %4272 = vst.msk [vmem:[%s6556_s22 + $0xf0] sm:$0xff] %vm2273_vm4, %v3973_v48  ;;  %v3077_v48 = vmul.f32 %v6055_v25, %v2353_v30  ;;  %v6712_v12 = vadd.f32 %v6110_v39, %v3082_v33 }
 0x29c   : > { %v6680_v14 = vadd.f32 %v6052_v13, %v3075_v17  ;;  %8569 = vst [vmem:[#allocation82_spill] sm:$0xff] %v6684_v51  ;;  %v6696_v17 = vadd.f32 %v6084_v18, %v3078_v40  ;;  %v6704_v9 = vadd.f32 %v6095_v15, %v3080_v54  ;;  %v6708_v10 = vadd.f32 %v6102_v61, %v3081_v28 }
 0x29d   : > { %v6691_v8 = vadd.f32 %v6077_v23, %v3077_v48  ;;  %8575 = vst [vmem:[#allocation88_spill] sm:$0xff] %v6712_v12  ;;  %v2356_v48 = vpop.f32.mrf.mxu1  ;;  %v3083_v54 = vmul.f32 %v6044_v3, %v2547_v42 }
 0x29e   : > { %8568 = vst [vmem:[#allocation81_spill] sm:$0xff] %v6680_v14  ;;  %v2549_v40 = vrot.slane %v2356_v48, 1  ;;  %v2553_v33 = vrot.slane %v2356_v48, 5 }
 0x29f   : > { %8570 = vst [vmem:[#allocation83_spill] sm:$0xff] %v6691_v8 }
 0x2a0   : > { %8571 = vst [vmem:[#allocation84_spill] sm:$0xff] %v6696_v17 }
 0x2a1   : > { %v3982_v53 = vld [vmem:[#allocation1] sm:$0xff]  ;;  %8573 = vst [vmem:[#allocation86_spill] sm:$0xff] %v6704_v9 }
 0x2a2   : > { %3983 = vst [vmem:[#allocation1] ss:$9 sm:$0xff] %v6670_v57  ;;  %v3079_v57 = vmul.f32 %v6061_v38, %v2543_v16 }
 0x2a3   : > { %4273 = vst.msk [vmem:[%s6556_s22 + $0xf8] sm:$0xff] %vm2273_vm4, %v3982_v53 }
 0x2a4   : > { %v6700_v16 = vadd.f32 %v6088_v62, %v3079_v57  ;;  %8574 = vst [vmem:[#allocation87_spill] sm:$0xff] %v6708_v10  ;;  %v2548_v57 = vrot.slane %v2353_v30, 7 }
 0x2a6   : > { %8572 = vst [vmem:[#allocation85_spill] sm:$0xff] %v6700_v16  ;;  %v3084_v28 = vmul.f32 %v6047_v32, %v2548_v57 }
 0x2a9   : > { %v6687_v53 = vld [vmem:[#allocation1] sm:$0xff] }
 0x2aa   : > { %3985 = vst [vmem:[#allocation1] ss:$9 sm:$0xff] %v6680_v14  ;;  %v3086_v14 = vmul.f32 %v6058_v52, %v2549_v40  ;;  %v3090_v40 = vmul.f32 %v6080_v59, %v2553_v33  ;;  %v2358_v33 = vpop.f32.mrf.mxu1 }
 0x2ab   : > { %3986 = vst [vmem:[#allocation1 + $0x1] ss:$9 sm:$0xff] %v6684_v51  ;;  %v3085_v51 = vmul.f32 %v6055_v25, %v2356_v48 }
 0x2ac   : > { %3987 = vst [vmem:[#allocation1 + $0x2] ss:$9 sm:$0xff] %v6691_v8  ;;  %v2551_v8 = vrot.slane %v2356_v48, 3 }
 0x2ad   : > { %3988 = vst [vmem:[#allocation1 + $0x3] ss:$9 sm:$0xff] %v6696_v17  ;;  %v2550_v17 = vrot.slane %v2356_v48, 2 }
 0x2ae   : > { %3989 = vst [vmem:[#allocation1 + $0x4] ss:$9 sm:$0xff] %v6700_v16  ;;  %v2552_v16 = vrot.slane %v2356_v48, 4  ;;  %v3088_v3 = vmul.f32 %v6066_v19, %v2551_v8 }
 0x2af   : > { %3990 = vst [vmem:[#allocation1 + $0x5] ss:$9 sm:$0xff] %v6704_v9  ;;  %v6722_v9 = vadd.f32 %v6052_v13, %v3083_v54  ;;  %v3087_v30 = vmul.f32 %v6061_v38, %v2550_v17  ;;  %v6736_v13 = vadd.f32 %v6084_v18, %v3086_v14  ;;  %v6752_v14 = vadd.f32 %v6110_v39, %v3090_v40  ;;  %v6762_v54 = vld [vmem:[%s8236_s3] ss:$0 sm:$0xff] }
 0x2b0   : > { %3991 = vst [vmem:[#allocation1 + $0x6] ss:$9 sm:$0xff] %v6708_v10  ;;  %v3089_v57 = vmul.f32 %v6073_v31, %v2552_v16  ;;  %v6731_v10 = vadd.f32 %v6077_v23, %v3085_v51  ;;  %v6744_v8 = vadd.f32 %v6095_v15, %v3088_v3  ;;  %v2554_v16 = vrot.slane %v2356_v48, 6  ;;  %v6768_v3 = vld [vmem:[%s8237_s4] ss:$0 sm:$0xff] }
 0x2b1   : > { %3992 = vst [vmem:[#allocation1 + $0x7] ss:$9 sm:$0xff] %v6712_v12  ;;  %v6726_v12 = vadd.f32 %v6070_v0, %v3084_v28  ;;  %v6740_v17 = vadd.f32 %v6088_v62, %v3087_v30  ;;  %v2555_v30 = vrot.slane %v2356_v48, 7  ;;  %v3093_v48 = vmul.f32 %v6047_v32, %v2358_v33 }
 0x2b2   : > { %8576 = vst [vmem:[#allocation89_spill] sm:$0xff] %v6722_v9  ;;  %v6748_v51 = vadd.f32 %v6102_v61, %v3089_v57  ;;  %v3091_v28 = vmul.f32 %v6762_v54, %v2554_v16  ;;  %v2558_v16 = vrot.slane %v2358_v33, 3 }
 0x2b3   : > { %8577 = vst [vmem:[#allocation90_spill] sm:$0xff] %v6726_v12 }
 0x2b4   : > { %8578 = vst [vmem:[#allocation91_spill] sm:$0xff] %v6731_v10  ;;  %v6771_v57 = vadd.f32 %v6768_v3, %v3091_v28 }
 0x2b5   : > { %8579 = vst [vmem:[#allocation92_spill] sm:$0xff] %v6736_v13 }
 0x2b6   : > { %8580 = vst [vmem:[#allocation93_spill] sm:$0xff] %v6740_v17 }
 0x2b7   : > { %8581 = vst [vmem:[#allocation94_spill] sm:$0xff] %v6744_v8 }
 0x2b8   : > { %v3993_v42 = vld [vmem:[#allocation1] sm:$0xff]  ;;  %8582 = vst [vmem:[#allocation95_spill] sm:$0xff] %v6748_v51 }
 0x2b9   : > { %3994 = vst [vmem:[#allocation1] ss:$9 sm:$0xff] %v6722_v9 }
 0x2ba   : > { %3995 = vst [vmem:[#allocation1 + $0x1] ss:$9 sm:$0xff] %v6726_v12 }
 0x2bb   : > { %3996 = vst [vmem:[#allocation1 + $0x2] ss:$9 sm:$0xff] %v6731_v10  ;;  %v2561_v10 = vrot.slane %v2358_v33, 6 }
 0x2bc   : > { %3997 = vst [vmem:[#allocation1 + $0x3] ss:$9 sm:$0xff] %v6736_v13 }
 0x2bd   : > { %3998 = vst [vmem:[#allocation1 + $0x4] ss:$9 sm:$0xff] %v6740_v17  ;;  %v2560_v17 = vrot.slane %v2358_v33, 5 }
 0x2be   : > { %8583 = vst [vmem:[#allocation96_spill] sm:$0xff] %v6752_v14 }
 0x2bf   : > { %3999 = vst [vmem:[#allocation1 + $0x5] ss:$9 sm:$0xff] %v6744_v8  ;;  %v2559_v8 = vrot.slane %v2358_v33, 4  ;;  %v3098_v60 = vmul.f32 %v6073_v31, %v2560_v17  ;;  %v2361_v17 = vpop.f32.mrf.mxu1 }
 0x2c0   : > { %4000 = vst [vmem:[#allocation1 + $0x6] ss:$9 sm:$0xff] %v6748_v51  ;;  %v3092_v51 = vmul.f32 %v6762_v54, %v2555_v30 }
 0x2c1   : > { %4001 = vst [vmem:[#allocation1 + $0x7] ss:$9 sm:$0xff] %v6752_v14  ;;  %v2556_v14 = vrot.slane %v2358_v33, 1  ;;  %v3097_v9 = vmul.f32 %v6066_v19, %v2559_v8 }
 0x2c2   : > { %4275 = vst.msk [vmem:[%s6556_s22 + $0x120] sm:$0xff] %vm2273_vm4, %v3993_v42  ;;  %v2557_v42 = vrot.slane %v2358_v33, 2  ;;  %v6781_v12 = vadd.f32 %v6768_v3, %v3092_v51 }
 0x2c3   : > { %8584 = vst [vmem:[#allocation97_spill] sm:$0xff] %v6771_v57  ;;  %v3094_v13 = vmul.f32 %v6055_v25, %v2556_v14  ;;  %v3099_v14 = vmul.f32 %v6080_v59, %v2561_v10  ;;  %v2562_v10 = vrot.slane %v2358_v33, 7 }
 0x2c4   : > { %v3095_v28 = vmul.f32 %v6058_v52, %v2557_v42  ;;  %8585 = vst [vmem:[#allocation98_spill] sm:$0xff] %v6781_v12  ;;  %v6805_v42 = vadd.f32 %v6095_v15, %v3097_v9  ;;  %v2564_v9 = vrot.slane %v2361_v17, 2 }
 0x2c5   : > { %v6792_v26 = vadd.f32 %v6077_v23, %v3094_v13  ;;  %v6809_v13 = vadd.f32 %v6102_v61, %v3098_v60  ;;  %v2566_v60 = vrot.slane %v2361_v17, 4  ;;  %4274 = vst.msk [vmem:[%s6556_s22 + $0x100] sm:$0x1] %vm4258_vm5, %v6687_v53 }
 0x2c6   : > { %v6797_v51 = vadd.f32 %v6084_v18, %v3095_v28  ;;  %8590 = vst [vmem:[#allocation103_spill] sm:$0xff] %v6805_v42  ;;  %v2565_v28 = vrot.slane %v2361_v17, 3 }
 0x2c7   : > { %8587 = vst [vmem:[#allocation100_spill] sm:$0xff] %v6792_v26 }
 0x2c8   : > { %v4002_v40 = vld [vmem:[#allocation1] sm:$0xff]  ;;  %8588 = vst [vmem:[#allocation101_spill] sm:$0xff] %v6797_v51 }
 0x2c9   : > { %4003 = vst [vmem:[#allocation1] ss:$9 sm:$0xff] %v6771_v57  ;;  %v3096_v57 = vmul.f32 %v6061_v38, %v2558_v16  ;;  %v6813_v16 = vadd.f32 %v6110_v39, %v3099_v14  ;;  %v3103_v14 = vmul.f32 %v6058_v52, %v2564_v9 }
 0x2ca   : > { %4276 = vst.msk [vmem:[%s6556_s22 + $0x128] sm:$0xff] %vm2273_vm4, %v4002_v40  ;;  %v6786_v40 = vadd.f32 %v6070_v0, %v3093_v48  ;;  %v3100_v48 = vmul.f32 %v6762_v54, %v2562_v10 }
 0x2cb   : > { %v6801_v8 = vadd.f32 %v6088_v62, %v3096_v57  ;;  %8591 = vst [vmem:[#allocation104_spill] sm:$0xff] %v6809_v13  ;;  %v2563_v57 = vrot.slane %v2361_v17, 1  ;;  %v6837_v9 = vadd.f32 %v6084_v18, %v3103_v14 }
 0x2cc   : > { %8586 = vst [vmem:[#allocation99_spill] sm:$0xff] %v6786_v40 }
 0x2cd   : > { %8589 = vst [vmem:[#allocation102_spill] sm:$0xff] %v6801_v8  ;;  %v3102_v33 = vmul.f32 %v6055_v25, %v2563_v57 }
 0x2ce   : > { %8592 = vst [vmem:[#allocation105_spill] sm:$0xff] %v6813_v16 }
 0x2cf   : > { %v6832_v34 = vadd.f32 %v6077_v23, %v3102_v33  ;;  %8595 = vst [vmem:[#allocation108_spill] sm:$0xff] %v6837_v9 }
 0x2d0   : > { %v6788_v30 = vld [vmem:[#allocation1] sm:$0xff] }
 0x2d1   : > { %4005 = vst [vmem:[#allocation1] ss:$9 sm:$0xff] %v6781_v12 }
 0x2d2   : > { %4006 = vst [vmem:[#allocation1 + $0x1] ss:$9 sm:$0xff] %v6786_v40 }
 0x2d3   : > { %4007 = vst [vmem:[#allocation1 + $0x2] ss:$9 sm:$0xff] %v6792_v26  ;;  %v2567_v26 = vrot.slane %v2361_v17, 5 }
 0x2d4   : > { %4008 = vst [vmem:[#allocation1 + $0x3] ss:$9 sm:$0xff] %v6797_v51  ;;  %v3101_v51 = vmul.f32 %v6047_v32, %v2361_v17 }
 0x2d5   : > { %4009 = vst [vmem:[#allocation1 + $0x4] ss:$9 sm:$0xff] %v6801_v8  ;;  %v2568_v8 = vrot.slane %v2361_v17, 6  ;;  %v3106_v12 = vmul.f32 %v6073_v31, %v2567_v26 }
 0x2d6   : > { %4010 = vst [vmem:[#allocation1 + $0x5] ss:$9 sm:$0xff] %v6805_v42  ;;  %v6823_v42 = vadd.f32 %v6768_v3, %v3100_v48  ;;  %v6828_v40 = vadd.f32 %v6070_v0, %v3101_v51 }
 0x2d7   : > { %4011 = vst [vmem:[#allocation1 + $0x6] ss:$9 sm:$0xff] %v6809_v13  ;;  %v3104_v13 = vmul.f32 %v6061_v38, %v2565_v28  ;;  %v3107_v57 = vmul.f32 %v6080_v59, %v2568_v8  ;;  %v6849_v51 = vadd.f32 %v6102_v61, %v3106_v12  ;;  %v2569_v8 = vrot.slane %v2361_v17, 7 }
 0x2d8   : > { %4012 = vst [vmem:[#allocation1 + $0x7] ss:$9 sm:$0xff] %v6813_v16  ;;  %v3105_v16 = vmul.f32 %v6066_v19, %v2566_v60 }
 0x2d9   : > { %8593 = vst [vmem:[#allocation106_spill] sm:$0xff] %v6828_v40  ;;  %v6841_v48 = vadd.f32 %v6088_v62, %v3104_v13  ;;  %v6853_v28 = vadd.f32 %v6110_v39, %v3107_v57  ;;  %v3108_v13 = vmul.f32 %v6762_v54, %v2569_v8 }
 0x2da   : > { %8594 = vst [vmem:[#allocation107_spill] sm:$0xff] %v6832_v34  ;;  %v6845_v26 = vadd.f32 %v6095_v15, %v3105_v16  ;;  %v2363_v16 = vpop.f32.mrf.mxu1 }
 0x2db   : > { %8596 = vst [vmem:[#allocation109_spill] sm:$0xff] %v6841_v48  ;;  %v6862_v12 = vadd.f32 %v6768_v3, %v3108_v13  ;;  %v2570_v17 = vrot.slane %v2363_v16, 1  ;;  %v2571_v33 = vrot.slane %v2363_v16, 2  ;;  %v2572_v14 = vrot.slane %v2363_v16, 3 }
 0x2dc   : > { %8597 = vst [vmem:[#allocation110_spill] sm:$0xff] %v6845_v26  ;;  %v2573_v57 = vrot.slane %v2363_v16, 4  ;;  %v2575_v13 = vrot.slane %v2363_v16, 6 }
 0x2dd   : > { %8598 = vst [vmem:[#allocation111_spill] sm:$0xff] %v6849_v51  ;;  %v3110_v8 = vmul.f32 %v6047_v32, %v2570_v17 }
 0x2de   : > { %8599 = vst [vmem:[#allocation112_spill] sm:$0xff] %v6853_v28  ;;  %v3115_v45 = vmul.f32 %v6073_v31, %v2575_v13 }
 0x2df   : > { %v4013_v10 = vld [vmem:[#allocation1] sm:$0xff]  ;;  %8600 = vst [vmem:[#allocation113_spill] sm:$0xff] %v6862_v12 }
 0x2e0   : > { %4014 = vst [vmem:[#allocation1] ss:$9 sm:$0xff] %v6823_v42 }
 0x2e1   : > { %4015 = vst [vmem:[#allocation1 + $0x1] ss:$9 sm:$0xff] %v6828_v40 }
 0x2e2   : > { %4016 = vst [vmem:[#allocation1 + $0x2] ss:$9 sm:$0xff] %v6832_v34  ;;  %v6888_v34 = vadd.f32 %v6070_v0, %v3110_v8 }
 0x2e3   : > { %4017 = vst [vmem:[#allocation1 + $0x3] ss:$9 sm:$0xff] %v6837_v9 }
 0x2e4   : > { %4018 = vst [vmem:[#allocation1 + $0x4] ss:$9 sm:$0xff] %v6841_v48  ;;  %v3112_v48 = vmul.f32 %v6058_v52, %v2572_v14 }
 0x2e5   : > { %4019 = vst [vmem:[#allocation1 + $0x5] ss:$9 sm:$0xff] %v6845_v26  ;;  %v6870_v26 = vpop.f32.mrf.mxu3 }
 0x2e6   : > { %4020 = vst [vmem:[#allocation1 + $0x6] ss:$9 sm:$0xff] %v6849_v51  ;;  %v3111_v51 = vmul.f32 %v6055_v25, %v2571_v33  ;;  %v6900_v55 = vadd.f32 %v6084_v18, %v3112_v48 }
 0x2e7   : > { %4021 = vst [vmem:[#allocation1 + $0x7] ss:$9 sm:$0xff] %v6853_v28  ;;  %v2574_v28 = vrot.slane %v2363_v16, 5 }
 0x2e8   : > { %4278 = vst.msk [vmem:[%s6556_s22 + $0x150] sm:$0xff] %vm2273_vm4, %v4013_v10  ;;  %v3109_v10 = vmul.f32 %v6762_v54, %v2363_v16  ;;  %v6895_v56 = vadd.f32 %v6077_v23, %v3111_v51  ;;  %v2366_v51 = vpop.f32.mrf.mxu1 }
 0x2e9   : > { %v3114_v33 = vmul.f32 %v6066_v19, %v2574_v28  ;;  %8602 = vst [vmem:[#allocation115_spill] sm:$0xff] %v6888_v34  ;;  %v2577_v14 = vrot.slane %v2366_v51, 1  ;;  %v2579_v8 = vrot.slane %v2366_v51, 3  ;;  %v2580_v13 = vrot.slane %v2366_v51, 4 }
 0x2ea   : > { %v6881_v9 = vadd.f32 %v6768_v3, %v3109_v10  ;;  %8603 = vst [vmem:[#allocation116_spill] sm:$0xff] %v6895_v56  ;;  %v2578_v10 = vrot.slane %v2366_v51, 2 }
 0x2eb   : > { %8604 = vst [vmem:[#allocation117_spill] sm:$0xff] %v6900_v55  ;;  %v6908_v44 = vadd.f32 %v6095_v15, %v3114_v33  ;;  %v2581_v33 = vrot.slane %v2366_v51, 5  ;;  %v3120_v20 = vmul.f32 %v6058_v52, %v2579_v8 }
 0x2ec   : > { %8601 = vst [vmem:[#allocation114_spill] sm:$0xff] %v6881_v9 }
 0x2ed   : > { %8606 = vst [vmem:[#allocation119_spill] sm:$0xff] %v6908_v44 }
 0x2ee   : > { %v4022_v60 = vld [vmem:[#allocation1] sm:$0xff]  ;;  %4277 = vst.msk [vmem:[%s6556_s22 + $0x130] sm:$0x1] %vm4258_vm5, %v6788_v30 }
 0x2ef   : > { %4023 = vst [vmem:[#allocation1] ss:$9 sm:$0xff] %v6862_v12  ;;  %v2576_v12 = vrot.slane %v2363_v16, 7 }
 0x2f0   : > { %4279 = vst.msk [vmem:[%s6556_s22 + $0x158] sm:$0xff] %vm2273_vm4, %v4022_v60  ;;  %v3113_v60 = vmul.f32 %v6061_v38, %v2573_v57  ;;  %v6920_v57 = vpop.f32.mrf.mxu3 }
 0x2f1   : > { %v3116_v16 = vmul.f32 %v6080_v59, %v2576_v12  ;;  %v6912_v12 = vadd.f32 %v6102_v61, %v3115_v45  ;;  %v3118_v45 = vmul.f32 %v6047_v32, %v2577_v14 }
 0x2f2   : > { %v6904_v28 = vadd.f32 %v6088_v62, %v3113_v60  ;;  %v3117_v60 = vmul.f32 %v6762_v54, %v2366_v51 }
 0x2f3   : > { %8607 = vst [vmem:[#allocation120_spill] sm:$0xff] %v6912_v12  ;;  %v6916_v48 = vadd.f32 %v6110_v39, %v3116_v16  ;;  %v2582_v16 = vrot.slane %v2366_v51, 6  ;;  %v6944_v14 = vadd.f32 %v6070_v0, %v3118_v45 }
 0x2f4   : > { %8605 = vst [vmem:[#allocation118_spill] sm:$0xff] %v6904_v28 }
 0x2f5   : > { %8608 = vst [vmem:[#allocation121_spill] sm:$0xff] %v6916_v48  ;;  %v3123_v30 = vmul.f32 %v6073_v31, %v2582_v16 }
 0x2f6   : > { %v4024_v17 = vld [vmem:[#allocation1] sm:$0xff]  ;;  %8610 = vst [vmem:[#allocation123_spill] sm:$0xff] %v6944_v14 }
 0x2f7   : > { %4025 = vst [vmem:[#allocation1] ss:$9 sm:$0xff] %v6881_v9 }
 0x2f8   : > { %4026 = vst [vmem:[#allocation1 + $0x1] ss:$9 sm:$0xff] %v6888_v34  ;;  %v6956_v8 = vpop.f32.mrf.mxu3 }
 0x2f9   : > { %4027 = vst [vmem:[#allocation1 + $0x2] ss:$9 sm:$0xff] %v6895_v56 }
 0x2fa   : > { %4028 = vst [vmem:[#allocation1 + $0x3] ss:$9 sm:$0xff] %v6900_v55  ;;  %v3122_v55 = vmul.f32 %v6066_v19, %v2581_v33 }
 0x2fb   : > { %4029 = vst [vmem:[#allocation1 + $0x4] ss:$9 sm:$0xff] %v6904_v28  ;;  %v6940_v28 = vadd.f32 %v6768_v3, %v3117_v60  ;;  %v6967_v60 = vadd.f32 %v6102_v61, %v3123_v30 }
 0x2fc   : > { %4030 = vst [vmem:[#allocation1 + $0x5] ss:$9 sm:$0xff] %v6908_v44  ;;  %v3121_v44 = vmul.f32 %v6061_v38, %v2580_v13 }
 0x2fd   : > { %4031 = vst [vmem:[#allocation1 + $0x6] ss:$9 sm:$0xff] %v6912_v12  ;;  %v2583_v12 = vrot.slane %v2366_v51, 7  ;;  %v6953_v51 = vadd.f32 %v6084_v18, %v3120_v20 }
 0x2fe   : > { %4032 = vst [vmem:[#allocation1 + $0x7] ss:$9 sm:$0xff] %v6916_v48  ;;  %v3119_v48 = vmul.f32 %v6055_v25, %v2578_v10  ;;  %v6959_v13 = vadd.f32 %v6088_v62, %v3121_v44  ;;  %v2368_v44 = vpop.f32.mrf.mxu1 }
 0x2ff   : > { %4280 = vst.msk [vmem:[%s6556_s22 + $0x160] sm:$0x1] %vm4258_vm5, %v4024_v17  ;;  %v3124_v17 = vmul.f32 %v6080_v59, %v2583_v12  ;;  %v2584_v45 = vrot.slane %v2368_v44, 1  ;;  %v2585_v30 = vrot.slane %v2368_v44, 2 }
 0x300   : > { %8609 = vst [vmem:[#allocation122_spill] sm:$0xff] %v6940_v28  ;;  %v6948_v10 = vadd.f32 %v6077_v23, %v3119_v48  ;;  %v6963_v48 = vadd.f32 %v6095_v15, %v3122_v55  ;;  %v3125_v55 = vmul.f32 %v6762_v54, %v2368_v44  ;;  %v6979_v33 = vpop.f32.mrf.mxu3 }
 0x301   : > { %8612 = vst [vmem:[#allocation125_spill] sm:$0xff] %v6953_v51  ;;  %v6971_v12 = vadd.f32 %v6110_v39, %v3124_v17  ;;  %v2586_v17 = vrot.slane %v2368_v44, 3 }
 0x302   : > { %8611 = vst [vmem:[#allocation124_spill] sm:$0xff] %v6948_v10  ;;  %v6982_v16 = vadd.f32 %v6768_v3, %v3125_v55 }
 0x303   : > { %8613 = vst [vmem:[#allocation126_spill] sm:$0xff] %v6959_v13 }
 0x304   : > { %8614 = vst [vmem:[#allocation127_spill] sm:$0xff] %v6963_v48 }
 0x305   : > { %v4033_v53 = vld [vmem:[#allocation1] sm:$0xff]  ;;  %8615 = vst [vmem:[#allocation128_spill] sm:$0xff] %v6967_v60 }
 0x306   : > { %4034 = vst [vmem:[#allocation1] ss:$9 sm:$0xff] %v6940_v28 }
 0x307   : > { %4035 = vst [vmem:[#allocation1 + $0x1] ss:$9 sm:$0xff] %v6944_v14 }
 0x308   : > { %4036 = vst [vmem:[#allocation1 + $0x2] ss:$9 sm:$0xff] %v6948_v10  ;;  %v3128_v10 = vmul.f32 %v6055_v25, %v2586_v17  ;;  %v6995_v56 = vpop.f32.mrf.mxu3 }
 0x309   : > { %4037 = vst [vmem:[#allocation1 + $0x3] ss:$9 sm:$0xff] %v6953_v51  ;;  %v2590_v51 = vrot.slane %v2368_v44, 7 }
 0x30a   : > { %4038 = vst [vmem:[#allocation1 + $0x4] ss:$9 sm:$0xff] %v6959_v13  ;;  %v3127_v13 = vmul.f32 %v6047_v32, %v2585_v30  ;;  %v7003_v30 = vadd.f32 %v6077_v23, %v3128_v10 }
 0x30b   : > { %8616 = vst [vmem:[#allocation129_spill] sm:$0xff] %v6971_v12 }
 0x30c   : > { %4039 = vst [vmem:[#allocation1 + $0x5] ss:$9 sm:$0xff] %v6963_v48  ;;  %v2587_v48 = vrot.slane %v2368_v44, 4 }
 0x30d   : > { %4040 = vst [vmem:[#allocation1 + $0x6] ss:$9 sm:$0xff] %v6967_v60  ;;  %v2588_v60 = vrot.slane %v2368_v44, 5 }
 0x30e   : > { %4041 = vst [vmem:[#allocation1 + $0x7] ss:$9 sm:$0xff] %v6971_v12  ;;  %v3126_v12 = vmul.f32 %v6762_v54, %v2584_v45  ;;  %v3129_v55 = vmul.f32 %v6058_v52, %v2587_v48  ;;  %v6999_v45 = vadd.f32 %v6070_v0, %v3127_v13 }
 0x30f   : > { %4281 = vst.msk [vmem:[%s6556_s22 + $0x180] sm:$0xff] %vm2273_vm4, %v4033_v53  ;;  %v2589_v53 = vrot.slane %v2368_v44, 6  ;;  %v3130_v14 = vmul.f32 %v6061_v38, %v2588_v60  ;;  %v3132_v44 = vmul.f32 %v6073_v31, %v2590_v51 }
 0x310   : > { %8617 = vst [vmem:[#allocation130_spill] sm:$0xff] %v6982_v16  ;;  %v6993_v28 = vadd.f32 %v6768_v3, %v3126_v12  ;;  %v7007_v48 = vadd.f32 %v6084_v18, %v3129_v55 }
 0x311   : > { %8619 = vst [vmem:[#allocation132_spill] sm:$0xff] %v6999_v45  ;;  %v7012_v12 = vadd.f32 %v6088_v62, %v3130_v14  ;;  %v7020_v10 = vadd.f32 %v6102_v61, %v3132_v44 }
 0x312   : > { %8618 = vst [vmem:[#allocation131_spill] sm:$0xff] %v6993_v28 }
 0x313   : > { %8620 = vst [vmem:[#allocation133_spill] sm:$0xff] %v7003_v30 }
 0x314   : > { %8621 = vst [vmem:[#allocation134_spill] sm:$0xff] %v7007_v48 }
 0x315   : > { %v4042_v20 = vld [vmem:[#allocation1] sm:$0xff]  ;;  %8622 = vst [vmem:[#allocation135_spill] sm:$0xff] %v7012_v12 }
 0x316   : > { %4043 = vst [vmem:[#allocation1] ss:$9 sm:$0xff] %v6982_v16  ;;  %v2371_v16 = vpop.f32.mrf.mxu2 }
 0x317   : > { %4282 = vst.msk [vmem:[%s6556_s22 + $0x188] sm:$0xff] %vm2273_vm4, %v4042_v20  ;;  %v3131_v20 = vmul.f32 %v6066_v19, %v2589_v53  ;;  %v3133_v60 = vmul.f32 %v6080_v59, %v2371_v16  ;;  %v2591_v13 = vrot.slane %v2371_v16, 1  ;;  %v2592_v14 = vrot.slane %v2371_v16, 2 }
 0x318   : > { %8624 = vst [vmem:[#allocation137_spill] sm:$0xff] %v7020_v10  ;;  %v2593_v53 = vrot.slane %v2371_v16, 3  ;;  %v2594_v55 = vrot.slane %v2371_v16, 4  ;;  %v2595_v44 = vrot.slane %v2371_v16, 5 }
 0x319   : > { %v7016_v51 = vadd.f32 %v6095_v15, %v3131_v20  ;;  %v7025_v17 = vadd.f32 %v6110_v39, %v3133_v60  ;;  %v7029_v20 = vpop.f32.mrf.mxu3 }
 0x31a   : > { %v3136_v60 = vmul.f32 %v6055_v25, %v2593_v53 }
 0x31b   : > { %8623 = vst [vmem:[#allocation136_spill] sm:$0xff] %v7016_v51 }
 0x31c   : > { %8625 = vst [vmem:[#allocation138_spill] sm:$0xff] %v7025_v17 }
 0x31d   : > { %v4044_v34 = vld [vmem:[#allocation1] sm:$0xff] }
 0x31e   : > { %4045 = vst [vmem:[#allocation1] ss:$9 sm:$0xff] %v6993_v28  ;;  %v2373_v28 = vpop.f32.mrf.mxu2 }
 0x31f   : > { %4046 = vst [vmem:[#allocation1 + $0x1] ss:$9 sm:$0xff] %v6999_v45  ;;  %v3138_v45 = vmul.f32 %v6061_v38, %v2595_v44 }
 0x320   : > { %4047 = vst [vmem:[#allocation1 + $0x2] ss:$9 sm:$0xff] %v7003_v30  ;;  %v2597_v30 = vrot.slane %v2371_v16, 7 }
 0x321   : > { %4048 = vst [vmem:[#allocation1 + $0x3] ss:$9 sm:$0xff] %v7007_v48  ;;  %v2596_v48 = vrot.slane %v2371_v16, 6  ;;  %v7047_v16 = vadd.f32 %v6077_v23, %v3136_v60  ;;  %v2600_v60 = vrot.slane %v2373_v28, 3 }
 0x322   : > { %4049 = vst [vmem:[#allocation1 + $0x4] ss:$9 sm:$0xff] %v7012_v12  ;;  %v3134_v12 = vmul.f32 %v6762_v54, %v2591_v13  ;;  %v3140_v40 = vmul.f32 %v6073_v31, %v2597_v30 }
 0x323   : > { %4050 = vst [vmem:[#allocation1 + $0x5] ss:$9 sm:$0xff] %v7016_v51  ;;  %v3135_v51 = vmul.f32 %v6047_v32, %v2592_v14  ;;  %v3139_v9 = vmul.f32 %v6066_v19, %v2596_v48  ;;  %v7056_v48 = vadd.f32 %v6088_v62, %v3138_v45 }
 0x324   : > { %4051 = vst [vmem:[#allocation1 + $0x6] ss:$9 sm:$0xff] %v7020_v10  ;;  %v3137_v10 = vmul.f32 %v6058_v52, %v2594_v55  ;;  %v7066_v53 = vadd.f32 %v6102_v61, %v3140_v40  ;;  %v2599_v40 = vrot.slane %v2373_v28, 2 }
 0x325   : > { %4052 = vst [vmem:[#allocation1 + $0x7] ss:$9 sm:$0xff] %v7025_v17  ;;  %v7039_v17 = vadd.f32 %v6768_v3, %v3134_v12  ;;  %v3141_v12 = vmul.f32 %v6080_v59, %v2373_v28  ;;  %v7060_v30 = vadd.f32 %v6095_v15, %v3139_v9 }
 0x326   : > { %4283 = vst.msk [vmem:[%s6556_s22 + $0x190] sm:$0x1] %vm4258_vm5, %v4044_v34  ;;  %v7043_v34 = vadd.f32 %v6070_v0, %v3135_v51  ;;  %v7051_v14 = vadd.f32 %v6084_v18, %v3137_v10  ;;  %v7063_v51 = vpop.f32.mrf.mxu3  ;;  %v2598_v10 = vrot.slane %v2373_v28, 1 }
 0x327   : > { %8626 = vst [vmem:[#allocation139_spill] sm:$0xff] %v7039_v17  ;;  %v7071_v45 = vadd.f32 %v6110_v39, %v3141_v12  ;;  %v2602_v12 = vrot.slane %v2373_v28, 5 }
 0x328   : > { %8627 = vst [vmem:[#allocation140_spill] sm:$0xff] %v7043_v34  ;;  %v3142_v9 = vmul.f32 %v6762_v54, %v2598_v10  ;;  %v3144_v10 = vmul.f32 %v6047_v32, %v2600_v60 }
 0x329   : > { %8628 = vst [vmem:[#allocation141_spill] sm:$0xff] %v7047_v16 }
 0x32a   : > { %8629 = vst [vmem:[#allocation142_spill] sm:$0xff] %v7051_v14  ;;  %v7079_v44 = vadd.f32 %v6768_v3, %v3142_v9  ;;  %v3146_v9 = vmul.f32 %v6058_v52, %v2602_v12 }
 0x32b   : > { %8630 = vst [vmem:[#allocation143_spill] sm:$0xff] %v7056_v48 }
 0x32c   : > { %v4053_v13 = vld [vmem:[#allocation1] sm:$0xff]  ;;  %8631 = vst [vmem:[#allocation144_spill] sm:$0xff] %v7060_v30  ;;  %v7102_v60 = vadd.f32 %v6084_v18, %v3146_v9 }
 0x32d   : > { %4054 = vst [vmem:[#allocation1] ss:$9 sm:$0xff] %v7039_v17 }
 0x32e   : > { %4055 = vst [vmem:[#allocation1 + $0x1] ss:$9 sm:$0xff] %v7043_v34  ;;  %v2413_v55 = vpop.f32.mrf.mxu3 }
 0x32f   : > { %4056 = vst [vmem:[#allocation1 + $0x2] ss:$9 sm:$0xff] %v7047_v16 }
 0x330   : > { %4057 = vst [vmem:[#allocation1 + $0x3] ss:$9 sm:$0xff] %v7051_v14  ;;  %v2376_v14 = vpop.f32.mrf.mxu2 }
 0x331   : > { %8632 = vst [vmem:[#allocation145_spill] sm:$0xff] %v7066_v53  ;;  %v2605_v16 = vrot.slane %v2376_v14, 1  ;;  %v2610_v9 = vrot.slane %v2376_v14, 6 }
 0x332   : > { %4058 = vst [vmem:[#allocation1 + $0x4] ss:$9 sm:$0xff] %v7056_v48 }
 0x333   : > { %4059 = vst [vmem:[#allocation1 + $0x5] ss:$9 sm:$0xff] %v7060_v30  ;;  %v2601_v30 = vrot.slane %v2373_v28, 4 }
 0x334   : > { %8633 = vst [vmem:[#allocation146_spill] sm:$0xff] %v7071_v45 }
 0x335   : > { %4060 = vst [vmem:[#allocation1 + $0x6] ss:$9 sm:$0xff] %v7066_v53  ;;  %v2603_v53 = vrot.slane %v2373_v28, 6  ;;  %v3145_v55 = vmul.f32 %v6055_v25, %v2601_v30  ;;  %v3149_v30 = vmul.f32 %v6073_v31, %v2376_v14 }
 0x336   : > { %4061 = vst [vmem:[#allocation1 + $0x7] ss:$9 sm:$0xff] %v7071_v45  ;;  %v3143_v45 = vmul.f32 %v6762_v54, %v2599_v40 }
 0x337   : > { %4284 = vst.msk [vmem:[%s6556_s22 + $0x1b0] sm:$0xff] %vm2273_vm4, %v4053_v13  ;;  %v2604_v13 = vrot.slane %v2373_v28, 7  ;;  %v3147_v34 = vmul.f32 %v6061_v38, %v2603_v53  ;;  %v7097_v28 = vadd.f32 %v6077_v23, %v3145_v55  ;;  %v3150_v53 = vmul.f32 %v6080_v59, %v2605_v16 }
 0x338   : > { %8634 = vst [vmem:[#allocation147_spill] sm:$0xff] %v7079_v44  ;;  %v7090_v17 = vadd.f32 %v6768_v3, %v3143_v45  ;;  %v2608_v55 = vrot.slane %v2376_v14, 4 }
 0x339   : > { %8637 = vst [vmem:[#allocation150_spill] sm:$0xff] %v7097_v28  ;;  %v7107_v45 = vadd.f32 %v6088_v62, %v3147_v34  ;;  %v7120_v16 = vadd.f32 %v6110_v39, %v3150_v53  ;;  %v2607_v34 = vrot.slane %v2376_v14, 3 }
 0x33a   : > { %8635 = vst [vmem:[#allocation148_spill] sm:$0xff] %v7090_v17 }
 0x33b   : > { %8638 = vst [vmem:[#allocation151_spill] sm:$0xff] %v7102_v60 }
 0x33c   : > { %8639 = vst [vmem:[#allocation152_spill] sm:$0xff] %v7107_v45 }
 0x33d   : > { %v4062_v48 = vld [vmem:[#allocation1] sm:$0xff]  ;;  %8642 = vst [vmem:[#allocation155_spill] sm:$0xff] %v7120_v16 }
 0x33e   : > { %4063 = vst [vmem:[#allocation1] ss:$9 sm:$0xff] %v7079_v44  ;;  %v3148_v44 = vmul.f32 %v6066_v19, %v2604_v13  ;;  %v7116_v13 = vadd.f32 %v6102_v61, %v3149_v30  ;;  %v2378_v30 = vpop.f32.mrf.mxu2 }
 0x33f   : > { %4285 = vst.msk [vmem:[%s6556_s22 + $0x1b8] sm:$0xff] %vm2273_vm4, %v4062_v48  ;;  %v7094_v48 = vadd.f32 %v6070_v0, %v3144_v10  ;;  %v2606_v10 = vrot.slane %v2376_v14, 2 }
 0x340   : > { %v7111_v12 = vadd.f32 %v6095_v15, %v3148_v44  ;;  %8641 = vst [vmem:[#allocation154_spill] sm:$0xff] %v7116_v13  ;;  %v2609_v44 = vrot.slane %v2376_v14, 5 }
 0x341   : > { %8636 = vst [vmem:[#allocation149_spill] sm:$0xff] %v7094_v48 }
 0x342   : > { %8640 = vst [vmem:[#allocation153_spill] sm:$0xff] %v7111_v12  ;;  %v3154_v53 = vmul.f32 %v6058_v52, %v2609_v44  ;;  %v2613_v44 = vrot.slane %v2378_v30, 2 }
 0x345   : > { %v4064_v40 = vld [vmem:[#allocation1] sm:$0xff] }
 0x346   : > { %4065 = vst [vmem:[#allocation1] ss:$9 sm:$0xff] %v7090_v17 }
 0x347   : > { %4066 = vst [vmem:[#allocation1 + $0x1] ss:$9 sm:$0xff] %v7094_v48  ;;  %v2612_v48 = vrot.slane %v2378_v30, 1 }
 0x348   : > { %4067 = vst [vmem:[#allocation1 + $0x2] ss:$9 sm:$0xff] %v7097_v28  ;;  %v3153_v28 = vmul.f32 %v6055_v25, %v2608_v55  ;;  %v7144_v55 = vadd.f32 %v6084_v18, %v3154_v53  ;;  %v2615_v53 = vrot.slane %v2378_v30, 4 }
 0x349   : > { %4068 = vst [vmem:[#allocation1 + $0x3] ss:$9 sm:$0xff] %v7102_v60  ;;  %v2611_v60 = vrot.slane %v2376_v14, 7 }
 0x34a   : > { %4069 = vst [vmem:[#allocation1 + $0x4] ss:$9 sm:$0xff] %v7107_v45  ;;  %v3151_v45 = vmul.f32 %v6762_v54, %v2606_v10  ;;  %v7139_v14 = vadd.f32 %v6077_v23, %v3153_v28 }
 0x34b   : > { %4070 = vst [vmem:[#allocation1 + $0x5] ss:$9 sm:$0xff] %v7111_v12  ;;  %v3152_v12 = vmul.f32 %v6047_v32, %v2607_v34  ;;  %v3157_v34 = vmul.f32 %v6073_v31, %v2378_v30 }
 0x34c   : > { %4071 = vst [vmem:[#allocation1 + $0x6] ss:$9 sm:$0xff] %v7116_v13  ;;  %v3155_v13 = vmul.f32 %v6061_v38, %v2610_v9  ;;  %v7132_v17 = vadd.f32 %v6768_v3, %v3151_v45  ;;  %v3158_v45 = vmul.f32 %v6080_v59, %v2612_v48 }
 0x34d   : > { %4072 = vst [vmem:[#allocation1 + $0x7] ss:$9 sm:$0xff] %v7120_v16  ;;  %v3156_v16 = vmul.f32 %v6066_v19, %v2611_v60 }
 0x34e   : > { %4286 = vst.msk [vmem:[%s6556_s22 + $0x1c0] sm:$0x1] %vm4258_vm5, %v4064_v40  ;;  %v7136_v40 = vadd.f32 %v6070_v0, %v3152_v12  ;;  %v7149_v60 = vadd.f32 %v6088_v62, %v3155_v13  ;;  %v7158_v12 = vadd.f32 %v6102_v61, %v3157_v34  ;;  %v7162_v48 = vadd.f32 %v6110_v39, %v3158_v45  ;;  %v2381_v45 = vpop.f32.mrf.mxu2 }
 0x34f   : > { %8643 = vst [vmem:[#allocation156_spill] sm:$0xff] %v7132_v17  ;;  %v7153_v28 = vadd.f32 %v6095_v15, %v3156_v16  ;;  %v3159_v13 = vmul.f32 %v6762_v54, %v2613_v44  ;;  %v2614_v16 = vrot.slane %v2378_v30, 3 }
 0x350   : > { %8644 = vst [vmem:[#allocation157_spill] sm:$0xff] %v7136_v40 }
 0x351   : > { %8645 = vst [vmem:[#allocation158_spill] sm:$0xff] %v7139_v14  ;;  %v7170_v9 = vadd.f32 %v6768_v3, %v3159_v13 }
 0x352   : > { %8646 = vst [vmem:[#allocation159_spill] sm:$0xff] %v7144_v55 }
 0x353   : > { %8647 = vst [vmem:[#allocation160_spill] sm:$0xff] %v7149_v60 }
 0x354   : > { %v4073_v10 = vld [vmem:[#allocation1] sm:$0xff]  ;;  %8648 = vst [vmem:[#allocation161_spill] sm:$0xff] %v7153_v28 }
 0x355   : > { %4074 = vst [vmem:[#allocation1] ss:$9 sm:$0xff] %v7132_v17 }
 0x356   : > { %4075 = vst [vmem:[#allocation1 + $0x1] ss:$9 sm:$0xff] %v7136_v40 }
 0x357   : > { %4076 = vst [vmem:[#allocation1 + $0x2] ss:$9 sm:$0xff] %v7139_v14  ;;  %v2620_v14 = vrot.slane %v2381_v45, 2 }
 0x358   : > { %4077 = vst [vmem:[#allocation1 + $0x3] ss:$9 sm:$0xff] %v7144_v55  ;;  %v2619_v55 = vrot.slane %v2381_v45, 1 }
 0x359   : > { %4078 = vst [vmem:[#allocation1 + $0x4] ss:$9 sm:$0xff] %v7149_v60  ;;  %v2616_v60 = vrot.slane %v2378_v30, 5 }
 0x35a   : > { %8649 = vst [vmem:[#allocation162_spill] sm:$0xff] %v7158_v12 }
 0x35b   : > { %4079 = vst [vmem:[#allocation1 + $0x5] ss:$9 sm:$0xff] %v7153_v28  ;;  %v2617_v28 = vrot.slane %v2378_v30, 6  ;;  %v3162_v44 = vmul.f32 %v6055_v25, %v2616_v60  ;;  %v3166_v60 = vmul.f32 %v6073_v31, %v2619_v55 }
 0x35c   : > { %8650 = vst [vmem:[#allocation163_spill] sm:$0xff] %v7162_v48 }
 0x35d   : > { %4080 = vst [vmem:[#allocation1 + $0x6] ss:$9 sm:$0xff] %v7158_v12  ;;  %v2618_v12 = vrot.slane %v2378_v30, 7  ;;  %v3163_v13 = vmul.f32 %v6058_v52, %v2617_v28  ;;  %v3165_v30 = vmul.f32 %v6066_v19, %v2381_v45  ;;  %v7207_v55 = vadd.f32 %v6102_v61, %v3166_v60 }
 0x35e   : > { %4081 = vst [vmem:[#allocation1 + $0x7] ss:$9 sm:$0xff] %v7162_v48  ;;  %v3160_v48 = vmul.f32 %v6762_v54, %v2614_v16  ;;  %v7188_v16 = vadd.f32 %v6077_v23, %v3162_v44 }
 0x35f   : > { %4287 = vst.msk [vmem:[%s6556_s22 + $0x1e0] sm:$0xff] %vm2273_vm4, %v4073_v10  ;;  %v3161_v10 = vmul.f32 %v6047_v32, %v2615_v53  ;;  %v3164_v40 = vmul.f32 %v6061_v38, %v2618_v12  ;;  %v7193_v28 = vadd.f32 %v6084_v18, %v3163_v13  ;;  %v3167_v12 = vmul.f32 %v6080_v59, %v2620_v14 }
 0x360   : > { %8651 = vst [vmem:[#allocation164_spill] sm:$0xff] %v7170_v9  ;;  %v7181_v17 = vadd.f32 %v6768_v3, %v3160_v48  ;;  %v7203_v53 = vadd.f32 %v6095_v15, %v3165_v30  ;;  %v2623_v14 = vrot.slane %v2381_v45, 5  ;;  %v2624_v13 = vrot.slane %v2381_v45, 6  ;;  %v2383_v30 = vpop.f32.mrf.mxu2 }
 0x361   : > { %8654 = vst [vmem:[#allocation167_spill] sm:$0xff] %v7188_v16  ;;  %v7198_v48 = vadd.f32 %v6088_v62, %v3164_v40  ;;  %v7210_v44 = vadd.f32 %v6110_v39, %v3167_v12  ;;  %v2622_v40 = vrot.slane %v2381_v45, 4 }
 0x362   : > { %8652 = vst [vmem:[#allocation165_spill] sm:$0xff] %v7181_v17  ;;  %v3170_v12 = vmul.f32 %v6055_v25, %v2623_v14 }
 0x363   : > { %8655 = vst [vmem:[#allocation168_spill] sm:$0xff] %v7193_v28 }
 0x364   : > { %8656 = vst [vmem:[#allocation169_spill] sm:$0xff] %v7198_v48 }
 0x365   : > { %v4082_v34 = vld [vmem:[#allocation1] sm:$0xff]  ;;  %8657 = vst [vmem:[#allocation170_spill] sm:$0xff] %v7203_v53 }
 0x366   : > { %4083 = vst [vmem:[#allocation1] ss:$9 sm:$0xff] %v7170_v9  ;;  %v7184_v9 = vadd.f32 %v6070_v0, %v3161_v10  ;;  %v2621_v10 = vrot.slane %v2381_v45, 3 }
 0x367   : > { %4288 = vst.msk [vmem:[%s6556_s22 + $0x1e8] sm:$0xff] %vm2273_vm4, %v4082_v34 }
 0x368   : > { %8653 = vst [vmem:[#allocation166_spill] sm:$0xff] %v7184_v9  ;;  %v3168_v60 = vmul.f32 %v6762_v54, %v2621_v10  ;;  %v7230_v10 = vadd.f32 %v6077_v23, %v3170_v12 }
 0x369   : > { %8658 = vst [vmem:[#allocation171_spill] sm:$0xff] %v7207_v55 }
 0x36a   : > { %8659 = vst [vmem:[#allocation172_spill] sm:$0xff] %v7210_v44 }
 0x36b   : > { %8661 = vst [vmem:[#allocation174_spill] sm:$0xff] %v7230_v10 }
 0x36d   : > { %v4084_v34 = vld [vmem:[#allocation1] sm:$0xff] }
 0x36e   : > { %4085 = vst [vmem:[#allocation1] ss:$9 sm:$0xff] %v7181_v17  ;;  %v7223_v17 = vadd.f32 %v6768_v3, %v3168_v60 }
 0x36f   : > { %4086 = vst [vmem:[#allocation1 + $0x1] ss:$9 sm:$0xff] %v7184_v9  ;;  %v2627_v9 = vrot.slane %v2383_v30, 2 }
 0x370   : > { %4087 = vst [vmem:[#allocation1 + $0x2] ss:$9 sm:$0xff] %v7188_v16  ;;  %v2626_v16 = vrot.slane %v2383_v30, 1 }
 0x371   : > { %4088 = vst [vmem:[#allocation1 + $0x3] ss:$9 sm:$0xff] %v7193_v28  ;;  %v3169_v28 = vmul.f32 %v6047_v32, %v2622_v40 }
 0x372   : > { %4089 = vst [vmem:[#allocation1 + $0x4] ss:$9 sm:$0xff] %v7198_v48  ;;  %v2625_v48 = vrot.slane %v2381_v45, 7  ;;  %v3173_v45 = vmul.f32 %v6066_v19, %v2383_v30  ;;  %v3174_v40 = vmul.f32 %v6073_v31, %v2626_v16 }
 0x373   : > { %4090 = vst [vmem:[#allocation1 + $0x5] ss:$9 sm:$0xff] %v7203_v53  ;;  %v3171_v53 = vmul.f32 %v6058_v52, %v2624_v13 }
 0x374   : > { %4091 = vst [vmem:[#allocation1 + $0x6] ss:$9 sm:$0xff] %v7207_v55  ;;  %v3172_v55 = vmul.f32 %v6061_v38, %v2625_v48  ;;  %v3175_v48 = vmul.f32 %v6080_v59, %v2627_v9  ;;  %v7245_v13 = vadd.f32 %v6095_v15, %v3173_v45  ;;  %v7249_v16 = vadd.f32 %v6102_v61, %v3174_v40 }
 0x375   : > { %4092 = vst [vmem:[#allocation1 + $0x7] ss:$9 sm:$0xff] %v7210_v44  ;;  %v7226_v44 = vadd.f32 %v6070_v0, %v3169_v28  ;;  %v7235_v14 = vadd.f32 %v6084_v18, %v3171_v53  ;;  %v2628_v53 = vrot.slane %v2383_v30, 3  ;;  %v2630_v45 = vrot.slane %v2383_v30, 5 }
 0x376   : > { %4289 = vst.msk [vmem:[%s6556_s22 + $0x1f0] sm:$0x1] %vm4258_vm5, %v4084_v34  ;;  %v7240_v28 = vadd.f32 %v6088_v62, %v3172_v55  ;;  %v7252_v60 = vadd.f32 %v6110_v39, %v3175_v48  ;;  %v2629_v55 = vrot.slane %v2383_v30, 4  ;;  %v2386_v48 = vpop.f32.mrf.mxu2 }
 0x377   : > { %8660 = vst [vmem:[#allocation173_spill] sm:$0xff] %v7226_v44  ;;  %v3176_v9 = vmul.f32 %v6762_v54, %v2628_v53 }
 0x378   : > { %8662 = vst [vmem:[#allocation175_spill] sm:$0xff] %v7235_v14 }
 0x379   : > { %8663 = vst [vmem:[#allocation176_spill] sm:$0xff] %v7240_v28  ;;  %v7261_v12 = vadd.f32 %v6768_v3, %v3176_v9 }
 0x37a   : > { %8664 = vst [vmem:[#allocation177_spill] sm:$0xff] %v7245_v13 }
 0x37b   : > { %8665 = vst [vmem:[#allocation178_spill] sm:$0xff] %v7249_v16 }
 0x37c   : > { %v4093_v34 = vld [vmem:[#allocation1] sm:$0xff]  ;;  %8666 = vst [vmem:[#allocation179_spill] sm:$0xff] %v7252_v60 }
 0x37d   : > { %4094 = vst [vmem:[#allocation1] ss:$9 sm:$0xff] %v7223_v17 }
 0x37e   : > { %4095 = vst [vmem:[#allocation1 + $0x1] ss:$9 sm:$0xff] %v7226_v44 }
 0x37f   : > { %4096 = vst [vmem:[#allocation1 + $0x2] ss:$9 sm:$0xff] %v7230_v10  ;;  %v2635_v10 = vrot.slane %v2386_v48, 3 }
 0x380   : > { %4097 = vst [vmem:[#allocation1 + $0x3] ss:$9 sm:$0xff] %v7235_v14  ;;  %v2632_v14 = vrot.slane %v2383_v30, 7 }
 0x381   : > { %4098 = vst [vmem:[#allocation1 + $0x4] ss:$9 sm:$0xff] %v7240_v28  ;;  %v2631_v28 = vrot.slane %v2383_v30, 6 }
 0x382   : > { %4099 = vst [vmem:[#allocation1 + $0x5] ss:$9 sm:$0xff] %v7245_v13  ;;  %v2634_v13 = vrot.slane %v2386_v48, 2  ;;  %v3180_v9 = vmul.f32 %v6058_v52, %v2632_v14 }
 0x383   : > { %4100 = vst [vmem:[#allocation1 + $0x6] ss:$9 sm:$0xff] %v7249_v16  ;;  %v3177_v16 = vmul.f32 %v6762_v54, %v2629_v55  ;;  %v3179_v53 = vmul.f32 %v6055_v25, %v2631_v28 }
 0x384   : > { %4101 = vst [vmem:[#allocation1 + $0x7] ss:$9 sm:$0xff] %v7252_v60  ;;  %v3178_v60 = vmul.f32 %v6047_v32, %v2630_v45  ;;  %v3183_v28 = vmul.f32 %v6073_v31, %v2634_v13  ;;  %v7284_v14 = vadd.f32 %v6084_v18, %v3180_v9 }
 0x385   : > { %4290 = vst.msk [vmem:[%s6556_s22 + $0x210] sm:$0xff] %vm2273_vm4, %v4093_v34  ;;  %v2633_v34 = vrot.slane %v2386_v48, 1  ;;  %v7271_v44 = vadd.f32 %v6768_v3, %v3177_v16  ;;  %v7279_v45 = vadd.f32 %v6077_v23, %v3179_v53  ;;  %v3184_v16 = vmul.f32 %v6080_v59, %v2635_v10 }
 0x386   : > { %8667 = vst [vmem:[#allocation180_spill] sm:$0xff] %v7261_v12  ;;  %v7275_v30 = vadd.f32 %v6070_v0, %v3178_v60  ;;  %v7297_v13 = vadd.f32 %v6102_v61, %v3183_v28  ;;  %v2636_v53 = vrot.slane %v2386_v48, 4  ;;  %v2637_v10 = vrot.slane %v2386_v48, 5 }
 0x387   : > { %8668 = vst [vmem:[#allocation181_spill] sm:$0xff] %v7271_v44  ;;  %v3182_v55 = vmul.f32 %v6066_v19, %v2633_v34  ;;  %v7301_v9 = vadd.f32 %v6110_v39, %v3184_v16 }
 0x388   : > { %8669 = vst [vmem:[#allocation182_spill] sm:$0xff] %v7275_v30  ;;  %v3185_v28 = vmul.f32 %v6762_v54, %v2636_v53 }
 0x389   : > { %8670 = vst [vmem:[#allocation183_spill] sm:$0xff] %v7279_v45  ;;  %v7294_v34 = vadd.f32 %v6095_v15, %v3182_v55  ;;  %v2639_v55 = vrot.slane %v2386_v48, 7 }
 0x38a   : > { %8671 = vst [vmem:[#allocation184_spill] sm:$0xff] %v7284_v14 }
 0x38b   : > { %v4102_v40 = vld [vmem:[#allocation1] sm:$0xff]  ;;  %8673 = vst [vmem:[#allocation186_spill] sm:$0xff] %v7294_v34 }
 0x38c   : > { %4103 = vst [vmem:[#allocation1] ss:$9 sm:$0xff] %v7261_v12  ;;  %v3181_v12 = vmul.f32 %v6061_v38, %v2386_v48 }
 0x38d   : > { %4291 = vst.msk [vmem:[%s6556_s22 + $0x218] sm:$0xff] %vm2273_vm4, %v4102_v40 }
 0x38e   : > { %v7290_v60 = vadd.f32 %v6088_v62, %v3181_v12  ;;  %8674 = vst [vmem:[#allocation187_spill] sm:$0xff] %v7297_v13  ;;  %v2638_v12 = vrot.slane %v2386_v48, 6 }
 0x38f   : > { %8675 = vst [vmem:[#allocation188_spill] sm:$0xff] %v7301_v9 }
 0x390   : > { %8672 = vst [vmem:[#allocation185_spill] sm:$0xff] %v7290_v60  ;;  %v3187_v16 = vmul.f32 %v6055_v25, %v2638_v12 }
 0x393   : > { %v4104_v40 = vld [vmem:[#allocation1] sm:$0xff] }
 0x394   : > { %4105 = vst [vmem:[#allocation1] ss:$9 sm:$0xff] %v7271_v44 }
 0x395   : > { %4106 = vst [vmem:[#allocation1 + $0x1] ss:$9 sm:$0xff] %v7275_v30 }
 0x396   : > { %4107 = vst [vmem:[#allocation1 + $0x2] ss:$9 sm:$0xff] %v7279_v45 }
 0x397   : > { %4108 = vst [vmem:[#allocation1 + $0x3] ss:$9 sm:$0xff] %v7284_v14  ;;  %v2388_v14 = vpop.f32.mrf.mxu2 }
 0x398   : > { %4109 = vst [vmem:[#allocation1 + $0x4] ss:$9 sm:$0xff] %v7290_v60  ;;  %v3186_v60 = vmul.f32 %v6047_v32, %v2637_v10  ;;  %v2640_v45 = vrot.slane %v2388_v14, 1  ;;  %v2641_v30 = vrot.slane %v2388_v14, 2  ;;  %v2642_v44 = vrot.slane %v2388_v14, 3 }
 0x399   : > { %4110 = vst [vmem:[#allocation1 + $0x5] ss:$9 sm:$0xff] %v7294_v34  ;;  %v3188_v34 = vmul.f32 %v6058_v52, %v2639_v55  ;;  %v7321_v10 = vadd.f32 %v6077_v23, %v3187_v16 }
 0x39a   : > { %4111 = vst [vmem:[#allocation1 + $0x6] ss:$9 sm:$0xff] %v7297_v13  ;;  %v7313_v13 = vadd.f32 %v6768_v3, %v3185_v28  ;;  %v7317_v48 = vadd.f32 %v6070_v0, %v3186_v60  ;;  %v3190_v53 = vmul.f32 %v6066_v19, %v2640_v45  ;;  %v3191_v12 = vmul.f32 %v6073_v31, %v2641_v30 }
 0x39b   : > { %4112 = vst [vmem:[#allocation1 + $0x7] ss:$9 sm:$0xff] %v7301_v9  ;;  %v3189_v9 = vmul.f32 %v6061_v38, %v2388_v14  ;;  %v7326_v55 = vadd.f32 %v6084_v18, %v3188_v34  ;;  %v3192_v28 = vmul.f32 %v6080_v59, %v2642_v44  ;;  %v2643_v30 = vrot.slane %v2388_v14, 4 }
 0x39c   : > { %4292 = vst.msk [vmem:[%s6556_s22 + $0x220] sm:$0x1] %vm4258_vm5, %v4104_v40  ;;  %v7336_v45 = vadd.f32 %v6095_v15, %v3190_v53  ;;  %v7339_v16 = vadd.f32 %v6102_v61, %v3191_v12  ;;  %v2645_v12 = vrot.slane %v2388_v14, 6 }
 0x39d   : > { %8676 = vst [vmem:[#allocation189_spill] sm:$0xff] %v7313_v13  ;;  %v7332_v60 = vadd.f32 %v6088_v62, %v3189_v9  ;;  %v7343_v34 = vadd.f32 %v6110_v39, %v3192_v28  ;;  %v3193_v44 = vmul.f32 %v6762_v54, %v2643_v30  ;;  %v2644_v9 = vrot.slane %v2388_v14, 5 }
 0x39e   : > { %8677 = vst [vmem:[#allocation190_spill] sm:$0xff] %v7317_v48 }
 0x39f   : > { %8678 = vst [vmem:[#allocation191_spill] sm:$0xff] %v7321_v10  ;;  %v7352_v53 = vadd.f32 %v6768_v3, %v3193_v44  ;;  %v3194_v28 = vmul.f32 %v6762_v54, %v2644_v9 }
 0x3a0   : > { %8679 = vst [vmem:[#allocation192_spill] sm:$0xff] %v7326_v55 }
 0x3a1   : > { %8680 = vst [vmem:[#allocation193_spill] sm:$0xff] %v7332_v60 }
 0x3a2   : > { %v4113_v40 = vld [vmem:[#allocation1] sm:$0xff]  ;;  %8681 = vst [vmem:[#allocation194_spill] sm:$0xff] %v7336_v45 }
 0x3a3   : > { %4114 = vst [vmem:[#allocation1] ss:$9 sm:$0xff] %v7313_v13  ;;  %v7362_v13 = vadd.f32 %v6768_v3, %v3194_v28 }
 0x3a4   : > { %4115 = vst [vmem:[#allocation1 + $0x1] ss:$9 sm:$0xff] %v7317_v48 }
 0x3a5   : > { %4116 = vst [vmem:[#allocation1 + $0x2] ss:$9 sm:$0xff] %v7321_v10  ;;  %v2646_v10 = vrot.slane %v2388_v14, 7 }
 0x3a6   : > { %4117 = vst [vmem:[#allocation1 + $0x3] ss:$9 sm:$0xff] %v7326_v55  ;;  %v2391_v55 = vpop.f32.mrf.mxu2 }
 0x3a7   : > { %8682 = vst [vmem:[#allocation195_spill] sm:$0xff] %v7339_v16  ;;  %v3196_v30 = vmul.f32 %v6055_v25, %v2646_v10  ;;  %v2650_v48 = vrot.slane %v2391_v55, 4  ;;  %v3197_v44 = vmul.f32 %v6058_v52, %v2391_v55 }
 0x3a8   : > { %4118 = vst [vmem:[#allocation1 + $0x4] ss:$9 sm:$0xff] %v7332_v60 }
 0x3a9   : > { %8683 = vst [vmem:[#allocation196_spill] sm:$0xff] %v7343_v34  ;;  %v3201_v28 = vmul.f32 %v6080_v59, %v2650_v48  ;;  %v2651_v48 = vrot.slane %v2391_v55, 5 }
 0x3aa   : > { %4119 = vst [vmem:[#allocation1 + $0x5] ss:$9 sm:$0xff] %v7336_v45  ;;  %v2649_v45 = vrot.slane %v2391_v55, 3 }
 0x3ab   : > { %4120 = vst [vmem:[#allocation1 + $0x6] ss:$9 sm:$0xff] %v7339_v16  ;;  %v2647_v16 = vrot.slane %v2391_v55, 1 }
 0x3ac   : > { %4121 = vst [vmem:[#allocation1 + $0x7] ss:$9 sm:$0xff] %v7343_v34  ;;  %v3195_v34 = vmul.f32 %v6047_v32, %v2645_v12  ;;  %v7370_v12 = vadd.f32 %v6077_v23, %v3196_v30  ;;  %v3200_v10 = vmul.f32 %v6073_v31, %v2649_v45  ;;  %v7392_v30 = vadd.f32 %v6110_v39, %v3201_v28 }
 0x3ad   : > { %4293 = vst.msk [vmem:[%s6556_s22 + $0x240] sm:$0xff] %vm2273_vm4, %v4113_v40  ;;  %v2648_v40 = vrot.slane %v2391_v55, 2  ;;  %v3198_v14 = vmul.f32 %v6061_v38, %v2647_v16  ;;  %v7377_v16 = vadd.f32 %v6084_v18, %v3197_v44  ;;  %v2652_v44 = vrot.slane %v2391_v55, 6 }
 0x3ae   : > { %8684 = vst [vmem:[#allocation197_spill] sm:$0xff] %v7352_v53  ;;  %v7388_v45 = vadd.f32 %v6102_v61, %v3200_v10 }
 0x3af   : > { %8685 = vst [vmem:[#allocation198_spill] sm:$0xff] %v7362_v13  ;;  %v3199_v9 = vmul.f32 %v6066_v19, %v2648_v40 }
 0x3b0   : > { %8687 = vst [vmem:[#allocation200_spill] sm:$0xff] %v7370_v12 }
 0x3b1   : > { %8688 = vst [vmem:[#allocation201_spill] sm:$0xff] %v7377_v16  ;;  %v7384_v40 = vadd.f32 %v6095_v15, %v3199_v9  ;;  %v3202_v9 = vmul.f32 %v6762_v54, %v2651_v48 }
 0x3b2   : > { %8691 = vst [vmem:[#allocation204_spill] sm:$0xff] %v7388_v45 }
 0x3b3   : > { %v4122_v60 = vld [vmem:[#allocation1] sm:$0xff]  ;;  %8690 = vst [vmem:[#allocation203_spill] sm:$0xff] %v7384_v40 }
 0x3b4   : > { %4123 = vst [vmem:[#allocation1] ss:$9 sm:$0xff] %v7352_v53  ;;  %v7366_v53 = vadd.f32 %v6070_v0, %v3195_v34  ;;  %v7381_v34 = vadd.f32 %v6088_v62, %v3198_v14  ;;  %v2393_v14 = vpop.f32.mrf.mxu2 }
 0x3b5   : > { %4294 = vst.msk [vmem:[%s6556_s22 + $0x248] sm:$0xff] %vm2273_vm4, %v4122_v60  ;;  %v2654_v10 = vrot.slane %v2393_v14, 1 }
 0x3b6   : > { %8686 = vst [vmem:[#allocation199_spill] sm:$0xff] %v7366_v53 }
 0x3b7   : > { %8689 = vst [vmem:[#allocation202_spill] sm:$0xff] %v7381_v34 }
 0x3b8   : > { %8692 = vst [vmem:[#allocation205_spill] sm:$0xff] %v7392_v30 }
 0x3bb   : > { %v4124_v60 = vld [vmem:[#allocation1] sm:$0xff] }
 0x3bc   : > { %4125 = vst [vmem:[#allocation1] ss:$9 sm:$0xff] %v7362_v13  ;;  %v2657_v13 = vrot.slane %v2393_v14, 4 }
 0x3bd   : > { %4126 = vst [vmem:[#allocation1 + $0x1] ss:$9 sm:$0xff] %v7366_v53  ;;  %v2656_v53 = vrot.slane %v2393_v14, 3 }
 0x3be   : > { %4127 = vst [vmem:[#allocation1 + $0x2] ss:$9 sm:$0xff] %v7370_v12  ;;  %v2653_v12 = vrot.slane %v2391_v55, 7  ;;  %v3206_v55 = vmul.f32 %v6061_v38, %v2654_v10 }
 0x3bf   : > { %4128 = vst [vmem:[#allocation1 + $0x3] ss:$9 sm:$0xff] %v7377_v16  ;;  %v2655_v16 = vrot.slane %v2393_v14, 2 }
 0x3c0   : > { %4129 = vst [vmem:[#allocation1 + $0x4] ss:$9 sm:$0xff] %v7381_v34  ;;  %v3203_v34 = vmul.f32 %v6047_v32, %v2652_v44  ;;  %v3204_v28 = vmul.f32 %v6055_v25, %v2653_v12  ;;  %v3208_v12 = vmul.f32 %v6073_v31, %v2656_v53 }
 0x3c1   : > { %4130 = vst [vmem:[#allocation1 + $0x5] ss:$9 sm:$0xff] %v7384_v40  ;;  %v3205_v40 = vmul.f32 %v6058_v52, %v2393_v14  ;;  %v3207_v54 = vmul.f32 %v6066_v19, %v2655_v16 }
 0x3c2   : > { %4131 = vst [vmem:[#allocation1 + $0x6] ss:$9 sm:$0xff] %v7388_v45  ;;  %v7404_v45 = vadd.f32 %v6768_v3, %v3202_v9  ;;  %v7412_v48 = vadd.f32 %v6077_v23, %v3204_v28  ;;  %v3209_v3 = vmul.f32 %v6080_v59, %v2657_v13  ;;  %v7430_v9 = vadd.f32 %v6102_v61, %v3208_v12 }
 0x3c3   : > { %4132 = vst [vmem:[#allocation1 + $0x7] ss:$9 sm:$0xff] %v7392_v30  ;;  %v7408_v30 = vadd.f32 %v6070_v0, %v3203_v34  ;;  %v7419_v44 = vadd.f32 %v6084_v18, %v3205_v40  ;;  %v7423_v34 = vadd.f32 %v6088_v62, %v3206_v55  ;;  %v7426_v16 = vadd.f32 %v6095_v15, %v3207_v54  ;;  %v7444_v40 = vld [vmem:[%s8236_s3] ss:$0 sm:$0xff] }
 0x3c4   : > { %4295 = vst.msk [vmem:[%s6556_s22 + $0x250] sm:$0x1] %vm4258_vm5, %v4124_v60  ;;  %v2658_v13 = vrot.slane %v2393_v14, 5  ;;  %v7434_v53 = vadd.f32 %v6110_v39, %v3209_v3  ;;  %v2659_v28 = vrot.slane %v2393_v14, 6  ;;  %v7450_v55 = vld [vmem:[%s8237_s4] ss:$0 sm:$0xff] }
 0x3c5   : > { %8693 = vst [vmem:[#allocation206_spill] sm:$0xff] %v7404_v45  ;;  %v2660_v12 = vrot.slane %v2393_v14, 7  ;;  %v3213_v14 = vmul.f32 %v6055_v25, %v6870_v26 }
 0x3c6   : > { %8694 = vst [vmem:[#allocation207_spill] sm:$0xff] %v7408_v30  ;;  %v3210_v10 = vmul.f32 %v7444_v40, %v2658_v13  ;;  %v2662_v13 = vrot.slane %v6870_v26, 2 }
 0x3c7   : > { %8695 = vst [vmem:[#allocation208_spill] sm:$0xff] %v7412_v48 }
 0x3c8   : > { %8696 = vst [vmem:[#allocation209_spill] sm:$0xff] %v7419_v44  ;;  %v7453_v54 = vadd.f32 %v7450_v55, %v3210_v10  ;;  %v2665_v10 = vrot.slane %v6870_v26, 5 }
 0x3c9   : > { %8697 = vst [vmem:[#allocation210_spill] sm:$0xff] %v7423_v34 }
 0x3ca   : > { %v4133_v60 = vld [vmem:[#allocation1] sm:$0xff]  ;;  %8698 = vst [vmem:[#allocation211_spill] sm:$0xff] %v7426_v16 }
 0x3cb   : > { %4134 = vst [vmem:[#allocation1] ss:$9 sm:$0xff] %v7404_v45  ;;  %v7479_v45 = vadd.f32 %v6077_v23, %v3213_v14  ;;  %v2667_v14 = vrot.slane %v6870_v26, 7 }
 0x3cc   : > { %4135 = vst [vmem:[#allocation1 + $0x1] ss:$9 sm:$0xff] %v7408_v30 }
 0x3cd   : > { %4136 = vst [vmem:[#allocation1 + $0x2] ss:$9 sm:$0xff] %v7412_v48 }
 0x3ce   : > { %4137 = vst [vmem:[#allocation1 + $0x3] ss:$9 sm:$0xff] %v7419_v44 }
 0x3cf   : > { %8699 = vst [vmem:[#allocation212_spill] sm:$0xff] %v7430_v9 }
 0x3d0   : > { %4138 = vst [vmem:[#allocation1 + $0x4] ss:$9 sm:$0xff] %v7423_v34  ;;  %v2664_v34 = vrot.slane %v6870_v26, 4 }
 0x3d1   : > { %8700 = vst [vmem:[#allocation213_spill] sm:$0xff] %v7434_v53 }
 0x3d2   : > { %4139 = vst [vmem:[#allocation1 + $0x5] ss:$9 sm:$0xff] %v7426_v16  ;;  %v2663_v16 = vrot.slane %v6870_v26, 3  ;;  %v3217_v30 = vmul.f32 %v6073_v31, %v2664_v34 }
 0x3d3   : > { %4140 = vst [vmem:[#allocation1 + $0x6] ss:$9 sm:$0xff] %v7430_v9  ;;  %v3212_v9 = vmul.f32 %v6047_v32, %v2660_v12 }
 0x3d4   : > { %4141 = vst [vmem:[#allocation1 + $0x7] ss:$9 sm:$0xff] %v7434_v53  ;;  %v3211_v53 = vmul.f32 %v7444_v40, %v2659_v28  ;;  %v3215_v28 = vmul.f32 %v6061_v38, %v2662_v13  ;;  %v3216_v48 = vmul.f32 %v6066_v19, %v2663_v16  ;;  %v7495_v34 = vadd.f32 %v6102_v61, %v3217_v30 }
 0x3d5   : > { %4296 = vst.msk [vmem:[%s6556_s22 + $0x270] sm:$0xff] %vm2273_vm4, %v4133_v60  ;;  %v2661_v60 = vrot.slane %v6870_v26, 1  ;;  %v2666_v13 = vrot.slane %v6870_v26, 6  ;;  %v3221_v26 = vmul.f32 %v6055_v25, %v6920_v57 }
 0x3d6   : > { %8701 = vst [vmem:[#allocation214_spill] sm:$0xff] %v7453_v54  ;;  %v7469_v44 = vadd.f32 %v7450_v55, %v3211_v53  ;;  %v3218_v53 = vmul.f32 %v6080_v59, %v2665_v10  ;;  %v7491_v16 = vadd.f32 %v6095_v15, %v3216_v48  ;;  %v2668_v48 = vrot.slane %v6920_v57, 1 }
 0x3d7   : > { %8703 = vst [vmem:[#allocation216_spill] sm:$0xff] %v7479_v45  ;;  %v3219_v30 = vmul.f32 %v7444_v40, %v2666_v13  ;;  %v2669_v10 = vrot.slane %v6920_v57, 2 }
 0x3d8   : > { %8706 = vst [vmem:[#allocation219_spill] sm:$0xff] %v7491_v16 }
 0x3d9   : > { %8707 = vst [vmem:[#allocation220_spill] sm:$0xff] %v7495_v34 }
 0x3db   : > { %v4142_v3 = vld [vmem:[#allocation1] sm:$0xff] }
 0x3dc   : > { %4143 = vst [vmem:[#allocation1] ss:$9 sm:$0xff] %v7453_v54  ;;  %v3214_v54 = vmul.f32 %v6058_v52, %v2661_v60 }
 0x3dd   : > { %4297 = vst.msk [vmem:[%s6556_s22 + $0x278] sm:$0xff] %vm2273_vm4, %v4142_v3  ;;  %v7473_v3 = vadd.f32 %v6070_v0, %v3212_v9  ;;  %v7487_v9 = vadd.f32 %v6088_v62, %v3215_v28  ;;  %v3220_v28 = vmul.f32 %v6047_v32, %v2667_v14 }
 0x3de   : > { %v7484_v60 = vadd.f32 %v6084_v18, %v3214_v54  ;;  %v7500_v54 = vadd.f32 %v6110_v39, %v3218_v53  ;;  %v2670_v53 = vrot.slane %v6920_v57, 3 }
 0x3df   : > { %8702 = vst [vmem:[#allocation215_spill] sm:$0xff] %v7473_v3  ;;  %v7523_v13 = vadd.f32 %v6070_v0, %v3220_v28 }
 0x3e0   : > { %8704 = vst [vmem:[#allocation217_spill] sm:$0xff] %v7484_v60 }
 0x3e1   : > { %8705 = vst [vmem:[#allocation218_spill] sm:$0xff] %v7487_v9 }
 0x3e2   : > { %8708 = vst [vmem:[#allocation221_spill] sm:$0xff] %v7500_v54 }
 0x3e3   : > { %v4144_v12 = vld [vmem:[#allocation1] sm:$0xff]  ;;  %8709 = vst [vmem:[#allocation222_spill] sm:$0xff] %v7523_v13 }
 0x3e4   : > { %4145 = vst [vmem:[#allocation1] ss:$9 sm:$0xff] %v7469_v44 }
 0x3e5   : > { %4146 = vst [vmem:[#allocation1 + $0x1] ss:$9 sm:$0xff] %v7473_v3  ;;  %v7529_v3 = vadd.f32 %v6077_v23, %v3221_v26 }
 0x3e6   : > { %4147 = vst [vmem:[#allocation1 + $0x2] ss:$9 sm:$0xff] %v7479_v45 }
 0x3e7   : > { %4148 = vst [vmem:[#allocation1 + $0x3] ss:$9 sm:$0xff] %v7484_v60  ;;  %v3224_v60 = vmul.f32 %v6066_v19, %v2670_v53 }
 0x3e8   : > { %4149 = vst [vmem:[#allocation1 + $0x4] ss:$9 sm:$0xff] %v7487_v9  ;;  %v7519_v9 = vadd.f32 %v7450_v55, %v3219_v30 }
 0x3e9   : > { %4150 = vst [vmem:[#allocation1 + $0x5] ss:$9 sm:$0xff] %v7491_v16  ;;  %v2671_v16 = vrot.slane %v6920_v57, 4  ;;  %v7541_v28 = vadd.f32 %v6095_v15, %v3224_v60 }
 0x3ea   : > { %4151 = vst [vmem:[#allocation1 + $0x6] ss:$9 sm:$0xff] %v7495_v34  ;;  %v2672_v34 = vrot.slane %v6920_v57, 5 }
 0x3eb   : > { %4152 = vst [vmem:[#allocation1 + $0x7] ss:$9 sm:$0xff] %v7500_v54  ;;  %v3222_v54 = vmul.f32 %v6058_v52, %v2668_v48  ;;  %v3225_v45 = vmul.f32 %v6073_v31, %v2671_v16 }
 0x3ec   : > { %4298 = vst.msk [vmem:[%s6556_s22 + $0x280] sm:$0x1] %vm4258_vm5, %v4144_v12  ;;  %v3223_v12 = vmul.f32 %v6061_v38, %v2669_v10  ;;  %v3226_v48 = vmul.f32 %v6080_v59, %v2672_v34  ;;  %v2673_v34 = vrot.slane %v6920_v57, 6 }
 0x3ed   : > { %8710 = vst [vmem:[#allocation223_spill] sm:$0xff] %v7529_v3  ;;  %v7534_v30 = vadd.f32 %v6084_v18, %v3222_v54  ;;  %v7545_v16 = vadd.f32 %v6102_v61, %v3225_v45  ;;  %v2674_v45 = vrot.slane %v6920_v57, 7  ;;  %v3229_v57 = vmul.f32 %v6047_v32, %v6956_v8 }
 0x3ee   : > { %v7537_v10 = vadd.f32 %v6088_v62, %v3223_v12  ;;  %8713 = vst [vmem:[#allocation226_spill] sm:$0xff] %v7541_v28  ;;  %v7550_v54 = vadd.f32 %v6110_v39, %v3226_v48  ;;  %v3227_v60 = vmul.f32 %v7444_v40, %v2673_v34  ;;  %v2675_v12 = vrot.slane %v6956_v8, 1 }
 0x3ef   : > { %8711 = vst [vmem:[#allocation224_spill] sm:$0xff] %v7534_v30  ;;  %v2676_v48 = vrot.slane %v6956_v8, 2  ;;  %v2678_v34 = vrot.slane %v6956_v8, 4 }
 0x3f0   : > { %8712 = vst [vmem:[#allocation225_spill] sm:$0xff] %v7537_v10  ;;  %v7560_v53 = vadd.f32 %v7450_v55, %v3227_v60  ;;  %v2679_v60 = vrot.slane %v6956_v8, 5 }
 0x3f1   : > { %8714 = vst [vmem:[#allocation227_spill] sm:$0xff] %v7545_v16 }
 0x3f2   : > { %v4153_v14 = vld [vmem:[#allocation1] sm:$0xff]  ;;  %8715 = vst [vmem:[#allocation228_spill] sm:$0xff] %v7550_v54 }
 0x3f3   : > { %4154 = vst [vmem:[#allocation1] ss:$9 sm:$0xff] %v7519_v9 }
 0x3f4   : > { %4155 = vst [vmem:[#allocation1 + $0x1] ss:$9 sm:$0xff] %v7523_v13  ;;  %v3234_v13 = vmul.f32 %v6073_v31, %v2679_v60  ;;  %v2684_v60 = vrot.slane %v6979_v33, 3 }
 0x3f5   : > { %4156 = vst [vmem:[#allocation1 + $0x2] ss:$9 sm:$0xff] %v7529_v3  ;;  %v7582_v3 = vadd.f32 %v6070_v0, %v3229_v57  ;;  %v2683_v57 = vrot.slane %v6979_v33, 2 }
 0x3f6   : > { %4157 = vst [vmem:[#allocation1 + $0x3] ss:$9 sm:$0xff] %v7534_v30  ;;  %v3233_v30 = vmul.f32 %v6066_v19, %v2678_v34 }
 0x3f7   : > { %4158 = vst [vmem:[#allocation1 + $0x4] ss:$9 sm:$0xff] %v7537_v10 }
 0x3f8   : > { %4159 = vst [vmem:[#allocation1 + $0x5] ss:$9 sm:$0xff] %v7541_v28  ;;  %v3231_v28 = vmul.f32 %v6058_v52, %v2676_v48  ;;  %v7599_v34 = vadd.f32 %v6095_v15, %v3233_v30  ;;  %v2682_v30 = vrot.slane %v6979_v33, 1 }
 0x3f9   : > { %4160 = vst [vmem:[#allocation1 + $0x6] ss:$9 sm:$0xff] %v7545_v16  ;;  %v3230_v16 = vmul.f32 %v6055_v25, %v2675_v12 }
 0x3fa   : > { %4161 = vst [vmem:[#allocation1 + $0x7] ss:$9 sm:$0xff] %v7550_v54  ;;  %v3228_v54 = vmul.f32 %v7444_v40, %v2674_v45 }
 0x3fb   : > { %4299 = vst.msk [vmem:[%s6556_s22 + $0x2a0] sm:$0xff] %vm2273_vm4, %v4153_v14  ;;  %v2677_v14 = vrot.slane %v6956_v8, 3  ;;  %v7587_v12 = vadd.f32 %v6077_v23, %v3230_v16  ;;  %v7603_v16 = vadd.f32 %v6102_v61, %v3234_v13 }
 0x3fc   : > { %8716 = vst [vmem:[#allocation229_spill] sm:$0xff] %v7560_v53  ;;  %v7577_v10 = vadd.f32 %v7450_v55, %v3228_v54  ;;  %v7591_v54 = vadd.f32 %v6084_v18, %v3231_v28  ;;  %v2681_v28 = vrot.slane %v6956_v8, 7 }
 0x3fd   : > { %v3232_v45 = vmul.f32 %v6061_v38, %v2677_v14  ;;  %8717 = vst [vmem:[#allocation230_spill] sm:$0xff] %v7582_v3 }
 0x3fe   : > { %8718 = vst [vmem:[#allocation231_spill] sm:$0xff] %v7587_v12  ;;  %v3236_v13 = vmul.f32 %v7444_v40, %v2681_v28 }
 0x3ff   : > { %8719 = vst [vmem:[#allocation232_spill] sm:$0xff] %v7591_v54  ;;  %v7595_v14 = vadd.f32 %v6088_v62, %v3232_v45  ;;  %v3237_v45 = vmul.f32 %v6047_v32, %v6979_v33 }
 0x400   : > { %8721 = vst [vmem:[#allocation234_spill] sm:$0xff] %v7599_v34 }
 0x401   : > { %v4162_v26 = vld [vmem:[#allocation1] sm:$0xff]  ;;  %8720 = vst [vmem:[#allocation233_spill] sm:$0xff] %v7595_v14 }
 0x402   : > { %4163 = vst [vmem:[#allocation1] ss:$9 sm:$0xff] %v7560_v53  ;;  %v2680_v53 = vrot.slane %v6956_v8, 6  ;;  %v2685_v8 = vrot.slane %v6979_v33, 4 }
 0x403   : > { %4300 = vst.msk [vmem:[%s6556_s22 + $0x2a8] sm:$0xff] %vm2273_vm4, %v4162_v26 }
 0x404   : > { %v3235_v48 = vmul.f32 %v6080_v59, %v2680_v53  ;;  %8722 = vst [vmem:[#allocation235_spill] sm:$0xff] %v7603_v16 }
 0x406   : > { %v7608_v53 = vadd.f32 %v6110_v39, %v3235_v48  ;;  %v2686_v48 = vrot.slane %v6979_v33, 5 }
 0x408   : > { %8723 = vst [vmem:[#allocation236_spill] sm:$0xff] %v7608_v53 }
 0x409   : > { %v4164_v26 = vld [vmem:[#allocation1] sm:$0xff] }
 0x40a   : > { %4165 = vst [vmem:[#allocation1] ss:$9 sm:$0xff] %v7577_v10 }
 0x40b   : > { %4166 = vst [vmem:[#allocation1 + $0x1] ss:$9 sm:$0xff] %v7582_v3  ;;  %v3242_v3 = vmul.f32 %v6073_v31, %v2686_v48  ;;  %v2689_v48 = vrot.slane %v6995_v56, 1 }
 0x40c   : > { %4167 = vst [vmem:[#allocation1 + $0x2] ss:$9 sm:$0xff] %v7587_v12  ;;  %v7632_v12 = vadd.f32 %v6070_v0, %v3237_v45 }
 0x40d   : > { %4168 = vst [vmem:[#allocation1 + $0x3] ss:$9 sm:$0xff] %v7591_v54  ;;  %v3241_v54 = vmul.f32 %v6066_v19, %v2685_v8 }
 0x40e   : > { %4169 = vst [vmem:[#allocation1 + $0x4] ss:$9 sm:$0xff] %v7595_v14  ;;  %v7627_v14 = vadd.f32 %v7450_v55, %v3236_v13 }
 0x40f   : > { %4170 = vst [vmem:[#allocation1 + $0x5] ss:$9 sm:$0xff] %v7599_v34  ;;  %v3239_v34 = vmul.f32 %v6058_v52, %v2683_v57  ;;  %v7649_v8 = vadd.f32 %v6095_v15, %v3241_v54 }
 0x410   : > { %4171 = vst [vmem:[#allocation1 + $0x6] ss:$9 sm:$0xff] %v7603_v16  ;;  %v3238_v16 = vmul.f32 %v6055_v25, %v2682_v30 }
 0x411   : > { %4172 = vst [vmem:[#allocation1 + $0x7] ss:$9 sm:$0xff] %v7608_v53  ;;  %v2687_v53 = vrot.slane %v6979_v33, 6  ;;  %v7641_v13 = vadd.f32 %v6084_v18, %v3239_v34  ;;  %v2688_v34 = vrot.slane %v6979_v33, 7  ;;  %v2690_v33 = vrot.slane %v6995_v56, 2 }
 0x412   : > { %4301 = vst.msk [vmem:[%s6556_s22 + $0x2b0] sm:$0x1] %vm4258_vm5, %v4164_v26  ;;  %v3240_v26 = vmul.f32 %v6061_v38, %v2684_v60  ;;  %v7637_v30 = vadd.f32 %v6077_v23, %v3238_v16  ;;  %v7653_v16 = vadd.f32 %v6102_v61, %v3242_v3 }
 0x413   : > { %8724 = vst [vmem:[#allocation237_spill] sm:$0xff] %v7627_v14  ;;  %v3243_v57 = vmul.f32 %v6080_v59, %v2687_v53  ;;  %v3244_v54 = vmul.f32 %v7444_v40, %v2688_v34  ;;  %v2693_v34 = vrot.slane %v6995_v56, 5 }
 0x414   : > { %8725 = vst [vmem:[#allocation238_spill] sm:$0xff] %v7632_v12  ;;  %v7645_v60 = vadd.f32 %v6088_v62, %v3240_v26  ;;  %v2691_v26 = vrot.slane %v6995_v56, 3 }
 0x415   : > { %8726 = vst [vmem:[#allocation239_spill] sm:$0xff] %v7637_v30  ;;  %v7658_v53 = vadd.f32 %v6110_v39, %v3243_v57  ;;  %v7667_v3 = vadd.f32 %v7450_v55, %v3244_v54  ;;  %v2692_v57 = vrot.slane %v6995_v56, 4  ;;  %v3246_v54 = vmul.f32 %v6047_v32, %v2689_v48 }
 0x416   : > { %8727 = vst [vmem:[#allocation240_spill] sm:$0xff] %v7641_v13 }
 0x417   : > { %8728 = vst [vmem:[#allocation241_spill] sm:$0xff] %v7645_v60 }
 0x418   : > { %v4173_v28 = vld [vmem:[#allocation1] sm:$0xff]  ;;  %8729 = vst [vmem:[#allocation242_spill] sm:$0xff] %v7649_v8 }
 0x419   : > { %4174 = vst [vmem:[#allocation1] ss:$9 sm:$0xff] %v7627_v14 }
 0x41a   : > { %4175 = vst [vmem:[#allocation1 + $0x1] ss:$9 sm:$0xff] %v7632_v12  ;;  %v7690_v12 = vadd.f32 %v6070_v0, %v3246_v54 }
 0x41b   : > { %4176 = vst [vmem:[#allocation1 + $0x2] ss:$9 sm:$0xff] %v7637_v30  ;;  %v3250_v30 = vmul.f32 %v6066_v19, %v2693_v34  ;;  %v2700_v34 = vrot.slane %v7029_v20, 5 }
 0x41c   : > { %4177 = vst [vmem:[#allocation1 + $0x3] ss:$9 sm:$0xff] %v7641_v13 }
 0x41d   : > { %8730 = vst [vmem:[#allocation243_spill] sm:$0xff] %v7653_v16 }
 0x41e   : > { %4178 = vst [vmem:[#allocation1 + $0x4] ss:$9 sm:$0xff] %v7645_v60  ;;  %v3249_v60 = vmul.f32 %v6061_v38, %v2692_v57  ;;  %v2699_v57 = vrot.slane %v7029_v20, 4 }
 0x41f   : > { %8731 = vst [vmem:[#allocation244_spill] sm:$0xff] %v7658_v53 }
 0x420   : > { %4179 = vst [vmem:[#allocation1 + $0x5] ss:$9 sm:$0xff] %v7649_v8  ;;  %v3248_v8 = vmul.f32 %v6058_v52, %v2691_v26  ;;  %v7703_v26 = vadd.f32 %v6088_v62, %v3249_v60  ;;  %v2696_v60 = vrot.slane %v7029_v20, 1 }
 0x421   : > { %4180 = vst [vmem:[#allocation1 + $0x6] ss:$9 sm:$0xff] %v7653_v16  ;;  %v3247_v16 = vmul.f32 %v6055_v25, %v2690_v33 }
 0x422   : > { %4181 = vst [vmem:[#allocation1 + $0x7] ss:$9 sm:$0xff] %v7658_v53  ;;  %v2694_v53 = vrot.slane %v6995_v56, 6  ;;  %v7699_v33 = vadd.f32 %v6084_v18, %v3248_v8  ;;  %v3254_v54 = vmul.f32 %v6047_v32, %v2696_v60  ;;  %v8762_v60 = vld [vmem:[#allocation25_spill] sm:$0xff] }
 0x423   : > { %4302 = vst.msk [vmem:[%s6556_s22 + $0x2d0] sm:$0xff] %vm2273_vm4, %v4173_v28  ;;  %v3245_v28 = vmul.f32 %v7444_v40, %v6995_v56  ;;  %v7694_v14 = vadd.f32 %v6077_v23, %v3247_v16 }
 0x424   : > { %8732 = vst [vmem:[#allocation245_spill] sm:$0xff] %v7667_v3  ;;  %v3251_v48 = vmul.f32 %v6073_v31, %v2694_v53  ;;  %v7707_v53 = vadd.f32 %v6095_v15, %v3250_v30  ;;  %v2697_v30 = vrot.slane %v7029_v20, 2 }
 0x425   : > { %8733 = vst [vmem:[#allocation246_spill] sm:$0xff] %v7694_v14 }
 0x426   : > { %8734 = vst [vmem:[#allocation247_spill] sm:$0xff] %v7699_v33  ;;  %v7711_v16 = vadd.f32 %v6102_v61, %v3251_v48  ;;  %v2701_v48 = vrot.slane %v7029_v20, 6 }
 0x427   : > { %8735 = vst [vmem:[#allocation248_spill] sm:$0xff] %v7703_v26 }
 0x428   : > { %8736 = vst [vmem:[#allocation249_spill] sm:$0xff] %v7707_v53  ;;  %v3259_v32 = vmul.f32 %v6073_v31, %v2701_v48  ;;  %v8769_v48 = vld [vmem:[#allocation32_spill] sm:$0xff] }
 0x429   : > { %v4182_v45 = vld [vmem:[#allocation1] sm:$0xff]  ;;  %8737 = vst [vmem:[#allocation250_spill] sm:$0xff] %v7711_v16 }
 0x42a   : > { %4183 = vst [vmem:[#allocation1] ss:$9 sm:$0xff] %v7667_v3  ;;  %v2695_v3 = vrot.slane %v6995_v56, 7  ;;  %v7761_v31 = vadd.f32 %v6102_v61, %v3259_v32  ;;  %v8770_v32 = vld [vmem:[#allocation33_spill] sm:$0xff] }
 0x42b   : > { %4303 = vst.msk [vmem:[%s6556_s22 + $0x2d8] sm:$0xff] %vm2273_vm4, %v4182_v45  ;;  %v7686_v45 = vadd.f32 %v7450_v55, %v3245_v28  ;;  %v3253_v28 = vmul.f32 %v7444_v40, %v7029_v20 }
 0x42c   : > { %v3252_v56 = vmul.f32 %v6080_v59, %v2695_v3  ;;  %v2698_v3 = vrot.slane %v7029_v20, 3 }
 0x42e   : > { %v7715_v8 = vadd.f32 %v6110_v39, %v3252_v56  ;;  %v3255_v56 = vmul.f32 %v6055_v25, %v2697_v30  ;;  %v8763_v30 = vld [vmem:[#allocation26_spill] sm:$0xff] }
 0x430   : > { %8738 = vst [vmem:[#allocation251_spill] sm:$0xff] %v7715_v8  ;;  %v7744_v25 = vadd.f32 %v6077_v23, %v3255_v56 }
 0x431   : > { %v4184_v13 = vld [vmem:[#allocation1] sm:$0xff] }
 0x432   : > { %4185 = vst [vmem:[#allocation1] ss:$9 sm:$0xff] %v7686_v45 }
 0x433   : > { %4186 = vst [vmem:[#allocation1 + $0x1] ss:$9 sm:$0xff] %v7690_v12 }
 0x434   : > { %4187 = vst [vmem:[#allocation1 + $0x2] ss:$9 sm:$0xff] %v7694_v14  ;;  %v7740_v14 = vadd.f32 %v6070_v0, %v3254_v54  ;;  %v8768_v54 = vld [vmem:[#allocation31_spill] sm:$0xff] }
 0x435   : > { %4188 = vst [vmem:[#allocation1 + $0x3] ss:$9 sm:$0xff] %v7699_v33  ;;  %v3258_v33 = vmul.f32 %v6066_v19, %v2700_v34  ;;  %v8767_v34 = vld [vmem:[#allocation30_spill] sm:$0xff] }
 0x436   : > { %4189 = vst [vmem:[#allocation1 + $0x4] ss:$9 sm:$0xff] %v7703_v26 }
 0x437   : > { %4190 = vst [vmem:[#allocation1 + $0x5] ss:$9 sm:$0xff] %v7707_v53  ;;  %v3257_v53 = vmul.f32 %v6061_v38, %v2699_v57  ;;  %v7757_v0 = vadd.f32 %v6095_v15, %v3258_v33  ;;  %v8758_v33 = vld [vmem:[#allocation21_spill] sm:$0xff]  ;;  %v8765_v57 = vld [vmem:[#allocation28_spill] sm:$0xff] }
 0x438   : > { %4191 = vst [vmem:[#allocation1 + $0x6] ss:$9 sm:$0xff] %v7711_v16  ;;  %v3256_v16 = vmul.f32 %v6058_v52, %v2698_v3  ;;  %v8764_v3 = vld [vmem:[#allocation27_spill] sm:$0xff] }
 0x439   : > { %4192 = vst [vmem:[#allocation1 + $0x7] ss:$9 sm:$0xff] %v7715_v8  ;;  %v2702_v8 = vrot.slane %v7029_v20, 7  ;;  %v7753_v19 = vadd.f32 %v6088_v62, %v3257_v53  ;;  %v8754_v20 = vld [vmem:[#allocation17_spill] sm:$0xff]  ;;  %v8760_v53 = vld [vmem:[#allocation23_spill] sm:$0xff] }
 0x43a   : > { %4304 = vst.msk [vmem:[%s6556_s22 + $0x2e0] sm:$0x1] %vm4258_vm5, %v4184_v13  ;;  %v7736_v13 = vadd.f32 %v7450_v55, %v3253_v28  ;;  %v7749_v38 = vadd.f32 %v6084_v18, %v3256_v16  ;;  %v8761_v16 = vld [vmem:[#allocation24_spill] sm:$0xff]  ;;  %v8766_v28 = vld [vmem:[#allocation29_spill] sm:$0xff] }
 0x43b   : > { %v3260_v52 = vmul.f32 %v6080_v59, %v2702_v8  ;;  %v3261_v59 = vmul.f32 %v7444_v40, %v7063_v51  ;;  %v8755_v51 = vld [vmem:[#allocation18_spill] sm:$0xff]  ;;  %v8756_v40 = vld [vmem:[#allocation19_spill] sm:$0xff] }
 0x43d   : > { %v7765_v23 = vadd.f32 %v6110_v39, %v3260_v52  ;;  %v7775_v18 = vadd.f32 %v7450_v55, %v3261_v59  ;;  %v8740_v39 = vld [vmem:[#allocation3_spill] sm:$0xff]  ;;  %v8757_v55 = vld [vmem:[#allocation20_spill] sm:$0xff]  ;;  %v8771_v59 = vld [vmem:[#allocation34_spill] sm:$0xff] }
 0x440   : > { %v4193_v26 = vld [vmem:[#allocation1] sm:$0xff] }
 0x441   : > { %4194 = vst [vmem:[#allocation1] ss:$9 sm:$0xff] %v7736_v13 }
 0x442   : > { %4195 = vst [vmem:[#allocation1 + $0x1] ss:$9 sm:$0xff] %v7740_v14 }
 0x443   : > { %4196 = vst [vmem:[#allocation1 + $0x2] ss:$9 sm:$0xff] %v7744_v25 }
 0x444   : > { %4197 = vst [vmem:[#allocation1 + $0x3] ss:$9 sm:$0xff] %v7749_v38 }
 0x445   : > { %4198 = vst [vmem:[#allocation1 + $0x4] ss:$9 sm:$0xff] %v7753_v19 }
 0x446   : > { %4199 = vst [vmem:[#allocation1 + $0x5] ss:$9 sm:$0xff] %v7757_v0 }
 0x447   : > { %4200 = vst [vmem:[#allocation1 + $0x6] ss:$9 sm:$0xff] %v7761_v31 }
 0x448   : > { %4201 = vst [vmem:[#allocation1 + $0x7] ss:$9 sm:$0xff] %v7765_v23 }
 0x449   : > { %4305 = vst.msk [vmem:[%s6556_s22 + $0x300] sm:$0xff] %vm2273_vm4, %v4193_v26  ;;  %v8759_v26 = vld [vmem:[#allocation22_spill] sm:$0xff] }
 0x44f   : > { %v4202_v62 = vld [vmem:[#allocation1] sm:$0xff] }
 0x450   : > { %4203 = vst [vmem:[#allocation1] ss:$9 sm:$0xff] %v7775_v18 }
 0x451   : > { %4306 = vst.msk [vmem:[%s6556_s22 + $0x308] sm:$0xff] %vm2273_vm4, %v4202_v62  ;;  %v8772_v62 = vld [vmem:[#allocation35_spill] sm:$0xff] }
 0x457   : > { %v4204_v15 = vld [vmem:[#allocation1] sm:$0xff] }
 0x458   : > { %4308 = vst [vmem:[#allocation1] ss:$9 sm:$0xff] %v6091_v1 }
 0x459   : > { %4310 = vst [vmem:[#allocation1 + $0x1] ss:$9 sm:$0xff] %v6098_v36 }
 0x45a   : > { %4312 = vst [vmem:[#allocation1 + $0x2] ss:$9 sm:$0xff] %v6105_v50  ;;  %v8739_v50 = vld [vmem:[#allocation2_spill] sm:$0xff] }
 0x45b   : > { %4314 = vst [vmem:[#allocation1 + $0x3] ss:$9 sm:$0xff] %v6113_v2  ;;  %v8741_v2 = vld [vmem:[#allocation4_spill] sm:$0xff] }
 0x45c   : > { %4316 = vst [vmem:[#allocation1 + $0x4] ss:$9 sm:$0xff] %v6117_v22  ;;  %v8742_v22 = vld [vmem:[#allocation5_spill] sm:$0xff] }
 0x45d   : > { %4318 = vst [vmem:[#allocation1 + $0x5] ss:$9 sm:$0xff] %v6121_v46  ;;  %v8743_v46 = vld [vmem:[#allocation6_spill] sm:$0xff] }
 0x45e   : > { %4320 = vst [vmem:[#allocation1 + $0x6] ss:$9 sm:$0xff] %v6125_v29  ;;  %v8744_v29 = vld [vmem:[#allocation7_spill] sm:$0xff] }
 0x45f   : > { %4322 = vst [vmem:[#allocation1 + $0x7] ss:$9 sm:$0xff] %v6129_v11 }
 0x460   : > { %4307 = vst.msk [vmem:[%s6556_s22 + $0x310] sm:$0x1] %vm4258_vm5, %v4204_v15  ;;  %v8773_v15 = vld [vmem:[#allocation36_spill] sm:$0xff] }
 0x466   : > { %v4323_v61 = vld [vmem:[#allocation1] sm:$0xff] }
 0x467   : > { %4324 = vst [vmem:[#allocation1] ss:$9 sm:$0xff] %v6141_v7  ;;  %4655 = vrot.lane.b32.xlu0 %v4323_v61, %s5235_s6  ;;  %v8745_v7 = vld [vmem:[#allocation8_spill] sm:$0xff]  ;;  %v8774_v61 = vld [vmem:[#allocation37_spill] sm:$0xff] }
 0x468   : > { %4325 = vst [vmem:[#allocation1 + $0x1] ss:$9 sm:$0xff] %v6145_v4  ;;  %v8746_v4 = vld [vmem:[#allocation9_spill] sm:$0xff] }
 0x469   : > { %4326 = vst [vmem:[#allocation1 + $0x2] ss:$9 sm:$0xff] %v6151_v21  ;;  %v8747_v21 = vld [vmem:[#allocation10_spill] sm:$0xff] }
 0x46a   : > { %4327 = vst [vmem:[#allocation1 + $0x3] ss:$9 sm:$0xff] %v6156_v6  ;;  %v8748_v6 = vld [vmem:[#allocation11_spill] sm:$0xff] }
 0x46b   : > { %4328 = vst [vmem:[#allocation1 + $0x4] ss:$9 sm:$0xff] %v6160_v24  ;;  %v8749_v24 = vld [vmem:[#allocation12_spill] sm:$0xff] }
 0x46c   : > { %4329 = vst [vmem:[#allocation1 + $0x5] ss:$9 sm:$0xff] %v6164_v5  ;;  %v8750_v5 = vld [vmem:[#allocation13_spill] sm:$0xff] }
 0x46d   : > { %4330 = vst [vmem:[#allocation1 + $0x6] ss:$9 sm:$0xff] %v6168_v41  ;;  %v8751_v41 = vld [vmem:[#allocation14_spill] sm:$0xff] }
 0x46e   : > { %4331 = vst [vmem:[#allocation1 + $0x7] ss:$9 sm:$0xff] %v6172_v27  ;;  %v8752_v27 = vld [vmem:[#allocation15_spill] sm:$0xff] }
 0x475   : > { %v4332_v1 = vld [vmem:[#allocation1] sm:$0xff] }
 0x476   : > { %4333 = vst [vmem:[#allocation1] ss:$9 sm:$0xff] %v6179_v43  ;;  %4657 = vrot.lane.b32.xlu1 %v4332_v1, %s5235_s6  ;;  %v8775_v1 = vld [vmem:[#allocation38_spill] sm:$0xff] }
 0x47d   : > { %v4334_v36 = vld [vmem:[#allocation1] sm:$0xff] }
 0x47e   : > { %4335 = vst [vmem:[#allocation1] ss:$9 sm:$0xff] %v6190_v47  ;;  %4659 = vrot.lane.b32.xlu2 %v4334_v36, %s5235_s6  ;;  %v8753_v47 = vld [vmem:[#allocation16_spill] sm:$0xff]  ;;  %v8776_v36 = vld [vmem:[#allocation39_spill] sm:$0xff] }
 0x47f   : > { %4336 = vst [vmem:[#allocation1 + $0x1] ss:$9 sm:$0xff] %v6194_v63 }
 0x480   : > { %4337 = vst [vmem:[#allocation1 + $0x2] ss:$9 sm:$0xff] %v8739_v50  ;;  %v8777_v50 = vld [vmem:[#allocation40_spill] sm:$0xff] }
 0x481   : > { %4338 = vst [vmem:[#allocation1 + $0x3] ss:$9 sm:$0xff] %v8740_v39  ;;  %v8778_v39 = vld [vmem:[#allocation41_spill] sm:$0xff] }
 0x482   : > { %4339 = vst [vmem:[#allocation1 + $0x4] ss:$9 sm:$0xff] %v8741_v2 }
 0x483   : > { %4340 = vst [vmem:[#allocation1 + $0x5] ss:$9 sm:$0xff] %v8742_v22  ;;  %v8779_v22 = vld [vmem:[#allocation42_spill] sm:$0xff] }
 0x484   : > { %4341 = vst [vmem:[#allocation1 + $0x6] ss:$9 sm:$0xff] %v8743_v46  ;;  %v8780_v46 = vld [vmem:[#allocation43_spill] sm:$0xff] }
 0x485   : > { %4342 = vst [vmem:[#allocation1 + $0x7] ss:$9 sm:$0xff] %v8744_v29  ;;  %v8781_v29 = vld [vmem:[#allocation44_spill] sm:$0xff] }
 0x48c   : > { %v4343_v11 = vld [vmem:[#allocation1] sm:$0xff] }
 0x48d   : > { %4344 = vst [vmem:[#allocation1] ss:$9 sm:$0xff] %v8745_v7  ;;  %4661 = vrot.lane.b32.xlu0 %v4343_v11, %s5235_s6  ;;  %v8782_v11 = vld [vmem:[#allocation45_spill] sm:$0xff]  ;;  %v8783_v7 = vld [vmem:[#allocation46_spill] sm:$0xff] }
 0x48e   : > { %4345 = vst [vmem:[#allocation1 + $0x1] ss:$9 sm:$0xff] %v8746_v4  ;;  %v8784_v4 = vld [vmem:[#allocation47_spill] sm:$0xff] }
 0x48f   : > { %4346 = vst [vmem:[#allocation1 + $0x2] ss:$9 sm:$0xff] %v8747_v21  ;;  %v8785_v21 = vld [vmem:[#allocation48_spill] sm:$0xff] }
 0x490   : > { %4347 = vst [vmem:[#allocation1 + $0x3] ss:$9 sm:$0xff] %v8748_v6  ;;  %v8786_v6 = vld [vmem:[#allocation49_spill] sm:$0xff] }
 0x491   : > { %4348 = vst [vmem:[#allocation1 + $0x4] ss:$9 sm:$0xff] %v8749_v24 }
 0x492   : > { %4349 = vst [vmem:[#allocation1 + $0x5] ss:$9 sm:$0xff] %v8750_v5  ;;  %v8787_v5 = vld [vmem:[#allocation50_spill] sm:$0xff] }
 0x493   : > { %4350 = vst [vmem:[#allocation1 + $0x6] ss:$9 sm:$0xff] %v8751_v41 }
 0x494   : > { %4351 = vst [vmem:[#allocation1 + $0x7] ss:$9 sm:$0xff] %v8752_v27 }
 0x49b   : > { %v4352_v43 = vld [vmem:[#allocation1] sm:$0xff] }
 0x49c   : > { %4353 = vst [vmem:[#allocation1] ss:$9 sm:$0xff] %v8753_v47  ;;  %4663 = vrot.lane.b32.xlu1 %v4352_v43, %s5235_s6  ;;  %v8788_v43 = vld [vmem:[#allocation51_spill] sm:$0xff]  ;;  %v8789_v47 = vld [vmem:[#allocation52_spill] sm:$0xff] }
 0x4a3   : > { %v4354_v63 = vld [vmem:[#allocation1] sm:$0xff] }
 0x4a4   : > { %4355 = vst [vmem:[#allocation1] ss:$9 sm:$0xff] %v8754_v20  ;;  %4665 = vrot.lane.b32.xlu2 %v4354_v63, %s5235_s6  ;;  %v8790_v63 = vld [vmem:[#allocation53_spill] sm:$0xff]  ;;  %v8791_v20 = vld [vmem:[#allocation54_spill] sm:$0xff] }
 0x4a5   : > { %4356 = vst [vmem:[#allocation1 + $0x1] ss:$9 sm:$0xff] %v8755_v51  ;;  %v8792_v51 = vld [vmem:[#allocation55_spill] sm:$0xff] }
 0x4a6   : > { %4357 = vst [vmem:[#allocation1 + $0x2] ss:$9 sm:$0xff] %v8756_v40  ;;  %v8793_v40 = vld [vmem:[#allocation56_spill] sm:$0xff] }
 0x4a7   : > { %4358 = vst [vmem:[#allocation1 + $0x3] ss:$9 sm:$0xff] %v8757_v55  ;;  %v8794_v55 = vld [vmem:[#allocation57_spill] sm:$0xff] }
 0x4a8   : > { %4359 = vst [vmem:[#allocation1 + $0x4] ss:$9 sm:$0xff] %v8758_v33  ;;  %v8795_v33 = vld [vmem:[#allocation58_spill] sm:$0xff] }
 0x4a9   : > { %4360 = vst [vmem:[#allocation1 + $0x5] ss:$9 sm:$0xff] %v8759_v26 }
 0x4aa   : > { %4361 = vst [vmem:[#allocation1 + $0x6] ss:$9 sm:$0xff] %v8760_v53 }
 0x4ab   : > { %4362 = vst [vmem:[#allocation1 + $0x7] ss:$9 sm:$0xff] %v8761_v16  ;;  %v8796_v16 = vld [vmem:[#allocation59_spill] sm:$0xff] }
 0x4b2   : > { %v4363_v8 = vld [vmem:[#allocation1] sm:$0xff] }
 0x4b3   : > { %4364 = vst [vmem:[#allocation1] ss:$9 sm:$0xff] %v8762_v60  ;;  %4667 = vrot.lane.b32.xlu0 %v4363_v8, %s5235_s6  ;;  %v8797_v8 = vld [vmem:[#allocation60_spill] sm:$0xff]  ;;  %v8798_v60 = vld [vmem:[#allocation61_spill] sm:$0xff] }
 0x4b4   : > { %4365 = vst [vmem:[#allocation1 + $0x1] ss:$9 sm:$0xff] %v8763_v30  ;;  %v8799_v30 = vld [vmem:[#allocation62_spill] sm:$0xff] }
 0x4b5   : > { %4366 = vst [vmem:[#allocation1 + $0x2] ss:$9 sm:$0xff] %v8764_v3  ;;  %v8800_v3 = vld [vmem:[#allocation63_spill] sm:$0xff] }
 0x4b6   : > { %4367 = vst [vmem:[#allocation1 + $0x3] ss:$9 sm:$0xff] %v8765_v57  ;;  %v8801_v57 = vld [vmem:[#allocation64_spill] sm:$0xff] }
 0x4b7   : > { %4368 = vst [vmem:[#allocation1 + $0x4] ss:$9 sm:$0xff] %v8766_v28  ;;  %v8802_v28 = vld [vmem:[#allocation65_spill] sm:$0xff] }
 0x4b8   : > { %4369 = vst [vmem:[#allocation1 + $0x5] ss:$9 sm:$0xff] %v8767_v34  ;;  %v8803_v34 = vld [vmem:[#allocation66_spill] sm:$0xff] }
 0x4b9   : > { %4370 = vst [vmem:[#allocation1 + $0x6] ss:$9 sm:$0xff] %v8768_v54 }
 0x4ba   : > { %4371 = vst [vmem:[#allocation1 + $0x7] ss:$9 sm:$0xff] %v8769_v48 }
 0x4c1   : > { %v4372_v56 = vld [vmem:[#allocation1] sm:$0xff] }
 0x4c2   : > { %4373 = vst [vmem:[#allocation1] ss:$9 sm:$0xff] %v8770_v32  ;;  %4669 = vrot.lane.b32.xlu1 %v4372_v56, %s5235_s6  ;;  %v8804_v56 = vld [vmem:[#allocation67_spill] sm:$0xff] }
 0x4c9   : > { %v4374_v52 = vld [vmem:[#allocation1] sm:$0xff] }
 0x4ca   : > { %4375 = vst [vmem:[#allocation1] ss:$9 sm:$0xff] %v8771_v59  ;;  %4671 = vrot.lane.b32.xlu2 %v4374_v52, %s5235_s6  ;;  %v8805_v59 = vld [vmem:[#allocation68_spill] sm:$0xff] }
 0x4cb   : > { %4376 = vst [vmem:[#allocation1 + $0x1] ss:$9 sm:$0xff] %v8772_v62  ;;  %v8806_v62 = vld [vmem:[#allocation69_spill] sm:$0xff] }
 0x4cc   : > { %4377 = vst [vmem:[#allocation1 + $0x2] ss:$9 sm:$0xff] %v8773_v15  ;;  %v8807_v15 = vld [vmem:[#allocation70_spill] sm:$0xff] }
 0x4cd   : > { %4378 = vst [vmem:[#allocation1 + $0x3] ss:$9 sm:$0xff] %v8774_v61  ;;  %v8808_v61 = vld [vmem:[#allocation71_spill] sm:$0xff] }
 0x4ce   : > { %4379 = vst [vmem:[#allocation1 + $0x4] ss:$9 sm:$0xff] %v8775_v1 }
 0x4cf   : > { %4380 = vst [vmem:[#allocation1 + $0x5] ss:$9 sm:$0xff] %v8776_v36 }
 0x4d0   : > { %4381 = vst [vmem:[#allocation1 + $0x6] ss:$9 sm:$0xff] %v8777_v50  ;;  %v8813_v50 = vld [vmem:[#allocation76_spill] sm:$0xff] }
 0x4d1   : > { %4382 = vst [vmem:[#allocation1 + $0x7] ss:$9 sm:$0xff] %v8778_v39  ;;  %v8814_v39 = vld [vmem:[#allocation77_spill] sm:$0xff] }
 0x4d8   : > { %v4383_v2 = vld [vmem:[#allocation1] sm:$0xff]  ;;  %v4660_v41 = vpop.permute.xlu2 %4659 }
 0x4d9   : > { %4673 = vrot.lane.b32.xlu0 %v4383_v2, %s5235_s6  ;;  %4384 = vst [vmem:[#allocation1] ss:$9 sm:$0xff] %v8779_v22  ;;  %v4656_v26 = vpop.permute.xlu0 %4655  ;;  %v8815_v2 = vld [vmem:[#allocation78_spill] sm:$0xff]  ;;  %v8816_v22 = vld [vmem:[#allocation79_spill] sm:$0xff] }
 0x4da   : > { %4385 = vst [vmem:[#allocation1 + $0x1] ss:$9 sm:$0xff] %v8780_v46 }
 0x4db   : > { %4386 = vst [vmem:[#allocation1 + $0x2] ss:$9 sm:$0xff] %v8781_v29 }
 0x4dc   : > { %4387 = vst [vmem:[#allocation1 + $0x3] ss:$9 sm:$0xff] %v8782_v11  ;;  %v8817_v11 = vld [vmem:[#allocation80_spill] sm:$0xff] }
 0x4dd   : > { %4388 = vst [vmem:[#allocation1 + $0x4] ss:$9 sm:$0xff] %v8783_v7 }
 0x4de   : > { %4389 = vst [vmem:[#allocation1 + $0x5] ss:$9 sm:$0xff] %v8784_v4 }
 0x4df   : > { %4390 = vst [vmem:[#allocation1 + $0x6] ss:$9 sm:$0xff] %v8785_v21  ;;  %v8818_v21 = vld [vmem:[#allocation81_spill] sm:$0xff] }
 0x4e0   : > { %4391 = vst [vmem:[#allocation1 + $0x7] ss:$9 sm:$0xff] %v8786_v6  ;;  %v8819_v6 = vld [vmem:[#allocation82_spill] sm:$0xff] }
 0x4e1   : > { %5065 = vst.msk [vmem:[%s6556_s22 + $0x28] sm:$0x1] %vm4258_vm5, %v4660_v41  ;;  %v8822_v41 = vld [vmem:[#allocation85_spill] sm:$0xff] }
 0x4e2   : > { %5063 = vst.msk [vmem:[%s6556_s22 + $0x18] sm:$0xff] %vm2273_vm4, %v4656_v26  ;;  %v8830_v26 = vld [vmem:[#allocation93_spill] sm:$0xff] }
 0x4e7   : > { %v4392_v24 = vld [vmem:[#allocation1] sm:$0xff] }
 0x4e8   : > { %4675 = vrot.lane.b32.xlu1 %v4392_v24, %s5235_s6  ;;  %4393 = vst [vmem:[#allocation1] ss:$9 sm:$0xff] %v8787_v5  ;;  %v4658_v54 = vpop.permute.xlu1 %4657  ;;  %v8820_v24 = vld [vmem:[#allocation83_spill] sm:$0xff]  ;;  %v8821_v5 = vld [vmem:[#allocation84_spill] sm:$0xff] }
 0x4e9   : > { %5064 = vst.msk [vmem:[%s6556_s22 + $0x20] sm:$0xff] %vm2273_vm4, %v4658_v54  ;;  %v8836_v54 = vld [vmem:[#allocation99_spill] sm:$0xff] }
 0x4ef   : > { %v4394_v27 = vld [vmem:[#allocation1] sm:$0xff] }
 0x4f0   : > { %4677 = vrot.lane.b32.xlu2 %v4394_v27, %s5235_s6  ;;  %4395 = vst [vmem:[#allocation1] ss:$9 sm:$0xff] %v8788_v43  ;;  %v8823_v27 = vld [vmem:[#allocation86_spill] sm:$0xff]  ;;  %v8824_v43 = vld [vmem:[#allocation87_spill] sm:$0xff] }
 0x4f1   : > { %4396 = vst [vmem:[#allocation1 + $0x1] ss:$9 sm:$0xff] %v8789_v47  ;;  %v8825_v47 = vld [vmem:[#allocation88_spill] sm:$0xff] }
 0x4f2   : > { %4397 = vst [vmem:[#allocation1 + $0x2] ss:$9 sm:$0xff] %v8790_v63 }
 0x4f3   : > { %4398 = vst [vmem:[#allocation1 + $0x3] ss:$9 sm:$0xff] %v8791_v20 }
 0x4f4   : > { %4399 = vst [vmem:[#allocation1 + $0x4] ss:$9 sm:$0xff] %v8792_v51  ;;  %v8826_v51 = vld [vmem:[#allocation89_spill] sm:$0xff] }
 0x4f5   : > { %4400 = vst [vmem:[#allocation1 + $0x5] ss:$9 sm:$0xff] %v8793_v40  ;;  %v8827_v40 = vld [vmem:[#allocation90_spill] sm:$0xff] }
 0x4f6   : > { %4401 = vst [vmem:[#allocation1 + $0x6] ss:$9 sm:$0xff] %v8794_v55  ;;  %v8828_v55 = vld [vmem:[#allocation91_spill] sm:$0xff] }
 0x4f7   : > { %4402 = vst [vmem:[#allocation1 + $0x7] ss:$9 sm:$0xff] %v8795_v33  ;;  %v8829_v33 = vld [vmem:[#allocation92_spill] sm:$0xff] }
 0x4fe   : > { %v4403_v53 = vld [vmem:[#allocation1] sm:$0xff]  ;;  %v4666_v32 = vpop.permute.xlu2 %4665 }
 0x4ff   : > { %4679 = vrot.lane.b32.xlu0 %v4403_v53, %s5235_s6  ;;  %4404 = vst [vmem:[#allocation1] ss:$9 sm:$0xff] %v8796_v16  ;;  %v4662_v1 = vpop.permute.xlu0 %4661  ;;  %v8831_v53 = vld [vmem:[#allocation94_spill] sm:$0xff]  ;;  %v8832_v16 = vld [vmem:[#allocation95_spill] sm:$0xff] }
 0x500   : > { %4405 = vst [vmem:[#allocation1 + $0x1] ss:$9 sm:$0xff] %v8797_v8  ;;  %v8833_v8 = vld [vmem:[#allocation96_spill] sm:$0xff] }
 0x501   : > { %4406 = vst [vmem:[#allocation1 + $0x2] ss:$9 sm:$0xff] %v8798_v60 }
 0x502   : > { %4407 = vst [vmem:[#allocation1 + $0x3] ss:$9 sm:$0xff] %v8799_v30 }
 0x503   : > { %4408 = vst [vmem:[#allocation1 + $0x4] ss:$9 sm:$0xff] %v8800_v3  ;;  %v8834_v3 = vld [vmem:[#allocation97_spill] sm:$0xff] }
 0x504   : > { %4409 = vst [vmem:[#allocation1 + $0x5] ss:$9 sm:$0xff] %v8801_v57 }
 0x505   : > { %4410 = vst [vmem:[#allocation1 + $0x6] ss:$9 sm:$0xff] %v8802_v28 }
 0x506   : > { %4411 = vst [vmem:[#allocation1 + $0x7] ss:$9 sm:$0xff] %v8803_v34  ;;  %v8835_v34 = vld [vmem:[#allocation98_spill] sm:$0xff] }
 0x507   : > { %5068 = vst.msk [vmem:[%s6556_s22 + $0x58] sm:$0x1] %vm4258_vm5, %v4666_v32  ;;  %v8839_v32 = vld [vmem:[#allocation102_spill] sm:$0xff] }
 0x508   : > { %5066 = vst.msk [vmem:[%s6556_s22 + $0x48] sm:$0xff] %vm2273_vm4, %v4662_v1  ;;  %v8843_v1 = vld [vmem:[#allocation106_spill] sm:$0xff] }
 0x50d   : > { %v4412_v48 = vld [vmem:[#allocation1] sm:$0xff] }
 0x50e   : > { %4681 = vrot.lane.b32.xlu1 %v4412_v48, %s5235_s6  ;;  %4413 = vst [vmem:[#allocation1] ss:$9 sm:$0xff] %v8804_v56  ;;  %v4664_v46 = vpop.permute.xlu1 %4663  ;;  %v8837_v48 = vld [vmem:[#allocation100_spill] sm:$0xff]  ;;  %v8838_v56 = vld [vmem:[#allocation101_spill] sm:$0xff] }
 0x50f   : > { %5067 = vst.msk [vmem:[%s6556_s22 + $0x50] sm:$0xff] %vm2273_vm4, %v4664_v46 }
 0x515   : > { %v4414_v52 = vld [vmem:[#allocation1] sm:$0xff] }
 0x516   : > { %4683 = vrot.lane.b32.xlu2 %v4414_v52, %s5235_s6  ;;  %4415 = vst [vmem:[#allocation1] ss:$9 sm:$0xff] %v6559_v58  ;;  %v8809_v58 = vld [vmem:[#allocation72_spill] sm:$0xff]  ;;  %v8840_v52 = vld [vmem:[#allocation103_spill] sm:$0xff] }
 0x517   : > { %4416 = vst [vmem:[#allocation1 + $0x1] ss:$9 sm:$0xff] %v6566_v35  ;;  %v8811_v35 = vld [vmem:[#allocation74_spill] sm:$0xff] }
 0x518   : > { %4417 = vst [vmem:[#allocation1 + $0x2] ss:$9 sm:$0xff] %v6575_v49  ;;  %v8810_v49 = vld [vmem:[#allocation73_spill] sm:$0xff] }
 0x519   : > { %4418 = vst [vmem:[#allocation1 + $0x3] ss:$9 sm:$0xff] %v6581_v37  ;;  %v8812_v37 = vld [vmem:[#allocation75_spill] sm:$0xff] }
 0x51a   : > { %4419 = vst [vmem:[#allocation1 + $0x4] ss:$9 sm:$0xff] %v8805_v59  ;;  %v8841_v59 = vld [vmem:[#allocation104_spill] sm:$0xff] }
 0x51b   : > { %4420 = vst [vmem:[#allocation1 + $0x5] ss:$9 sm:$0xff] %v8806_v62  ;;  %v8842_v62 = vld [vmem:[#allocation105_spill] sm:$0xff] }
 0x51c   : > { %4421 = vst [vmem:[#allocation1 + $0x6] ss:$9 sm:$0xff] %v8807_v15 }
 0x51d   : > { %4422 = vst [vmem:[#allocation1 + $0x7] ss:$9 sm:$0xff] %v8808_v61 }
 0x524   : > { %v4423_v36 = vld [vmem:[#allocation1] sm:$0xff]  ;;  %v4672_v7 = vpop.permute.xlu2 %4671 }
 0x525   : > { %4685 = vrot.lane.b32.xlu0 %v4423_v36, %s5235_s6  ;;  %4424 = vst [vmem:[#allocation1] ss:$9 sm:$0xff] %v8809_v58  ;;  %v4668_v63 = vpop.permute.xlu0 %4667  ;;  %v8844_v36 = vld [vmem:[#allocation107_spill] sm:$0xff]  ;;  %v8845_v58 = vld [vmem:[#allocation108_spill] sm:$0xff] }
 0x526   : > { %4425 = vst [vmem:[#allocation1 + $0x1] ss:$9 sm:$0xff] %v8810_v49  ;;  %v8846_v49 = vld [vmem:[#allocation109_spill] sm:$0xff] }
 0x527   : > { %4426 = vst [vmem:[#allocation1 + $0x2] ss:$9 sm:$0xff] %v8811_v35  ;;  %v8847_v35 = vld [vmem:[#allocation110_spill] sm:$0xff] }
 0x528   : > { %4427 = vst [vmem:[#allocation1 + $0x3] ss:$9 sm:$0xff] %v8812_v37  ;;  %v8848_v37 = vld [vmem:[#allocation111_spill] sm:$0xff] }
 0x529   : > { %4428 = vst [vmem:[#allocation1 + $0x4] ss:$9 sm:$0xff] %v8813_v50  ;;  %v8849_v50 = vld [vmem:[#allocation112_spill] sm:$0xff] }
 0x52a   : > { %4429 = vst [vmem:[#allocation1 + $0x5] ss:$9 sm:$0xff] %v8814_v39 }
 0x52b   : > { %4430 = vst [vmem:[#allocation1 + $0x6] ss:$9 sm:$0xff] %v8815_v2 }
 0x52c   : > { %4431 = vst [vmem:[#allocation1 + $0x7] ss:$9 sm:$0xff] %v8816_v22 }
 0x52d   : > { %5071 = vst.msk [vmem:[%s6556_s22 + $0x88] sm:$0x1] %vm4258_vm5, %v4672_v7  ;;  %v8853_v7 = vld [vmem:[#allocation116_spill] sm:$0xff] }
 0x52e   : > { %5069 = vst.msk [vmem:[%s6556_s22 + $0x78] sm:$0xff] %vm2273_vm4, %v4668_v63  ;;  %v8861_v63 = vld [vmem:[#allocation124_spill] sm:$0xff] }
 0x533   : > { %v4432_v29 = vld [vmem:[#allocation1] sm:$0xff] }
 0x534   : > { %4687 = vrot.lane.b32.xlu1 %v4432_v29, %s5235_s6  ;;  %4433 = vst [vmem:[#allocation1] ss:$9 sm:$0xff] %v8817_v11  ;;  %v4670_v60 = vpop.permute.xlu1 %4669  ;;  %v8851_v29 = vld [vmem:[#allocation114_spill] sm:$0xff]  ;;  %v8852_v11 = vld [vmem:[#allocation115_spill] sm:$0xff] }
 0x535   : > { %5070 = vst.msk [vmem:[%s6556_s22 + $0x80] sm:$0xff] %vm2273_vm4, %v4670_v60 }
 0x53b   : > { %v4434_v4 = vld [vmem:[#allocation1] sm:$0xff] }
 0x53c   : > { %4689 = vrot.lane.b32.xlu2 %v4434_v4, %s5235_s6  ;;  %4435 = vst [vmem:[#allocation1] ss:$9 sm:$0xff] %v8818_v21  ;;  %v8854_v4 = vld [vmem:[#allocation117_spill] sm:$0xff]  ;;  %v8855_v21 = vld [vmem:[#allocation118_spill] sm:$0xff] }
 0x53d   : > { %4436 = vst [vmem:[#allocation1 + $0x1] ss:$9 sm:$0xff] %v8819_v6  ;;  %v8856_v6 = vld [vmem:[#allocation119_spill] sm:$0xff] }
 0x53e   : > { %4437 = vst [vmem:[#allocation1 + $0x2] ss:$9 sm:$0xff] %v8820_v24  ;;  %v8857_v24 = vld [vmem:[#allocation120_spill] sm:$0xff] }
 0x53f   : > { %4438 = vst [vmem:[#allocation1 + $0x3] ss:$9 sm:$0xff] %v8821_v5  ;;  %v8858_v5 = vld [vmem:[#allocation121_spill] sm:$0xff] }
 0x540   : > { %4439 = vst [vmem:[#allocation1 + $0x4] ss:$9 sm:$0xff] %v8822_v41 }
 0x541   : > { %4440 = vst [vmem:[#allocation1 + $0x5] ss:$9 sm:$0xff] %v8823_v27 }
 0x542   : > { %4441 = vst [vmem:[#allocation1 + $0x6] ss:$9 sm:$0xff] %v8824_v43  ;;  %v8859_v43 = vld [vmem:[#allocation122_spill] sm:$0xff] }
 0x543   : > { %4442 = vst [vmem:[#allocation1 + $0x7] ss:$9 sm:$0xff] %v8825_v47  ;;  %v8860_v47 = vld [vmem:[#allocation123_spill] sm:$0xff] }
 0x54a   : > { %v4443_v20 = vld [vmem:[#allocation1] sm:$0xff]  ;;  %v4678_v57 = vpop.permute.xlu2 %4677 }
 0x54b   : > { %4691 = vrot.lane.b32.xlu0 %v4443_v20, %s5235_s6  ;;  %4444 = vst [vmem:[#allocation1] ss:$9 sm:$0xff] %v8826_v51  ;;  %v4674_v15 = vpop.permute.xlu0 %4673  ;;  %v8862_v20 = vld [vmem:[#allocation125_spill] sm:$0xff]  ;;  %v8863_v51 = vld [vmem:[#allocation126_spill] sm:$0xff] }
 0x54c   : > { %4445 = vst [vmem:[#allocation1 + $0x1] ss:$9 sm:$0xff] %v8827_v40  ;;  %v8864_v40 = vld [vmem:[#allocation127_spill] sm:$0xff] }
 0x54d   : > { %4446 = vst [vmem:[#allocation1 + $0x2] ss:$9 sm:$0xff] %v8828_v55  ;;  %v8865_v55 = vld [vmem:[#allocation128_spill] sm:$0xff] }
 0x54e   : > { %4447 = vst [vmem:[#allocation1 + $0x3] ss:$9 sm:$0xff] %v8829_v33  ;;  %v8866_v33 = vld [vmem:[#allocation129_spill] sm:$0xff] }
 0x54f   : > { %4448 = vst [vmem:[#allocation1 + $0x4] ss:$9 sm:$0xff] %v8830_v26 }
 0x550   : > { %4449 = vst [vmem:[#allocation1 + $0x5] ss:$9 sm:$0xff] %v8831_v53 }
 0x551   : > { %4450 = vst [vmem:[#allocation1 + $0x6] ss:$9 sm:$0xff] %v8832_v16  ;;  %v8867_v16 = vld [vmem:[#allocation130_spill] sm:$0xff] }
 0x552   : > { %4451 = vst [vmem:[#allocation1 + $0x7] ss:$9 sm:$0xff] %v8833_v8 }
 0x553   : > { %5074 = vst.msk [vmem:[%s6556_s22 + $0xb8] sm:$0x1] %vm4258_vm5, %v4678_v57  ;;  %v8870_v57 = vld [vmem:[#allocation133_spill] sm:$0xff] }
 0x554   : > { %5072 = vst.msk [vmem:[%s6556_s22 + $0xa8] sm:$0xff] %vm2273_vm4, %v4674_v15  ;;  %v8878_v15 = vld [vmem:[#allocation141_spill] sm:$0xff] }
 0x559   : > { %v4452_v30 = vld [vmem:[#allocation1] sm:$0xff] }
 0x55a   : > { %4693 = vrot.lane.b32.xlu1 %v4452_v30, %s5235_s6  ;;  %4453 = vst [vmem:[#allocation1] ss:$9 sm:$0xff] %v8834_v3  ;;  %v4676_v39 = vpop.permute.xlu1 %4675  ;;  %v8868_v30 = vld [vmem:[#allocation131_spill] sm:$0xff]  ;;  %v8869_v3 = vld [vmem:[#allocation132_spill] sm:$0xff] }
 0x55b   : > { %5073 = vst.msk [vmem:[%s6556_s22 + $0xb0] sm:$0xff] %vm2273_vm4, %v4676_v39 }
 0x561   : > { %v4454_v28 = vld [vmem:[#allocation1] sm:$0xff] }
 0x562   : > { %4695 = vrot.lane.b32.xlu2 %v4454_v28, %s5235_s6  ;;  %4455 = vst [vmem:[#allocation1] ss:$9 sm:$0xff] %v8835_v34  ;;  %v8871_v28 = vld [vmem:[#allocation134_spill] sm:$0xff]  ;;  %v8872_v34 = vld [vmem:[#allocation135_spill] sm:$0xff] }
 0x563   : > { %4456 = vst [vmem:[#allocation1 + $0x1] ss:$9 sm:$0xff] %v8836_v54  ;;  %v8873_v54 = vld [vmem:[#allocation136_spill] sm:$0xff] }
 0x564   : > { %4457 = vst [vmem:[#allocation1 + $0x2] ss:$9 sm:$0xff] %v8837_v48  ;;  %v8874_v48 = vld [vmem:[#allocation137_spill] sm:$0xff] }
 0x565   : > { %4458 = vst [vmem:[#allocation1 + $0x3] ss:$9 sm:$0xff] %v8838_v56  ;;  %v8875_v56 = vld [vmem:[#allocation138_spill] sm:$0xff] }
 0x566   : > { %4459 = vst [vmem:[#allocation1 + $0x4] ss:$9 sm:$0xff] %v8839_v32 }
 0x567   : > { %4460 = vst [vmem:[#allocation1 + $0x5] ss:$9 sm:$0xff] %v8840_v52 }
 0x568   : > { %4461 = vst [vmem:[#allocation1 + $0x6] ss:$9 sm:$0xff] %v8841_v59  ;;  %v8876_v59 = vld [vmem:[#allocation139_spill] sm:$0xff] }
 0x569   : > { %4462 = vst [vmem:[#allocation1 + $0x7] ss:$9 sm:$0xff] %v8842_v62  ;;  %v8877_v62 = vld [vmem:[#allocation140_spill] sm:$0xff] }
 0x570   : > { %v4463_v61 = vld [vmem:[#allocation1] sm:$0xff]  ;;  %v4684_v22 = vpop.permute.xlu2 %4683 }
 0x571   : > { %4697 = vrot.lane.b32.xlu0 %v4463_v61, %s5235_s6  ;;  %4464 = vst [vmem:[#allocation1] ss:$9 sm:$0xff] %v6823_v42  ;;  %v8850_v42 = vld [vmem:[#allocation113_spill] sm:$0xff]  ;;  %v4680_v41 = vpop.permute.xlu0 %4679  ;;  %v8879_v61 = vld [vmem:[#allocation142_spill] sm:$0xff] }
 0x572   : > { %4465 = vst [vmem:[#allocation1 + $0x1] ss:$9 sm:$0xff] %v8843_v1  ;;  %v8880_v1 = vld [vmem:[#allocation143_spill] sm:$0xff] }
 0x573   : > { %4466 = vst [vmem:[#allocation1 + $0x2] ss:$9 sm:$0xff] %v8844_v36  ;;  %v8881_v36 = vld [vmem:[#allocation144_spill] sm:$0xff] }
 0x574   : > { %4467 = vst [vmem:[#allocation1 + $0x3] ss:$9 sm:$0xff] %v8845_v58  ;;  %v8882_v58 = vld [vmem:[#allocation145_spill] sm:$0xff] }
 0x575   : > { %4468 = vst [vmem:[#allocation1 + $0x4] ss:$9 sm:$0xff] %v8846_v49  ;;  %v8883_v49 = vld [vmem:[#allocation146_spill] sm:$0xff] }
 0x576   : > { %4469 = vst [vmem:[#allocation1 + $0x5] ss:$9 sm:$0xff] %v8847_v35 }
 0x577   : > { %4470 = vst [vmem:[#allocation1 + $0x6] ss:$9 sm:$0xff] %v8848_v37 }
 0x578   : > { %4471 = vst [vmem:[#allocation1 + $0x7] ss:$9 sm:$0xff] %v8849_v50  ;;  %v8884_v50 = vld [vmem:[#allocation147_spill] sm:$0xff] }
 0x579   : > { %5077 = vst.msk [vmem:[%s6556_s22 + $0xe8] sm:$0x1] %vm4258_vm5, %v4684_v22  ;;  %v8886_v22 = vld [vmem:[#allocation149_spill] sm:$0xff] }
 0x57a   : > { %5075 = vst.msk [vmem:[%s6556_s22 + $0xd8] sm:$0xff] %vm2273_vm4, %v4680_v41  ;;  %v8894_v41 = vld [vmem:[#allocation157_spill] sm:$0xff] }
 0x57f   : > { %v4472_v2 = vld [vmem:[#allocation1] sm:$0xff] }
 0x580   : > { %4699 = vrot.lane.b32.xlu1 %v4472_v2, %s5235_s6  ;;  %4473 = vst [vmem:[#allocation1] ss:$9 sm:$0xff] %v8850_v42  ;;  %v4682_v26 = vpop.permute.xlu1 %4681  ;;  %v8885_v42 = vld [vmem:[#allocation148_spill] sm:$0xff] }
 0x581   : > { %5076 = vst.msk [vmem:[%s6556_s22 + $0xe0] sm:$0xff] %vm2273_vm4, %v4682_v26 }
 0x587   : > { %v4474_v46 = vld [vmem:[#allocation1] sm:$0xff] }
 0x588   : > { %4701 = vrot.lane.b32.xlu2 %v4474_v46, %s5235_s6  ;;  %4475 = vst [vmem:[#allocation1] ss:$9 sm:$0xff] %v8851_v29  ;;  %v8887_v46 = vld [vmem:[#allocation150_spill] sm:$0xff]  ;;  %v8888_v29 = vld [vmem:[#allocation151_spill] sm:$0xff] }
 0x589   : > { %4476 = vst [vmem:[#allocation1 + $0x1] ss:$9 sm:$0xff] %v8852_v11  ;;  %v8889_v11 = vld [vmem:[#allocation152_spill] sm:$0xff] }
 0x58a   : > { %4477 = vst [vmem:[#allocation1 + $0x2] ss:$9 sm:$0xff] %v8853_v7  ;;  %v8890_v7 = vld [vmem:[#allocation153_spill] sm:$0xff] }
 0x58b   : > { %4478 = vst [vmem:[#allocation1 + $0x3] ss:$9 sm:$0xff] %v8854_v4  ;;  %v8891_v4 = vld [vmem:[#allocation154_spill] sm:$0xff] }
 0x58c   : > { %4479 = vst [vmem:[#allocation1 + $0x4] ss:$9 sm:$0xff] %v8855_v21  ;;  %v8892_v21 = vld [vmem:[#allocation155_spill] sm:$0xff] }
 0x58d   : > { %4480 = vst [vmem:[#allocation1 + $0x5] ss:$9 sm:$0xff] %v8856_v6 }
 0x58e   : > { %4481 = vst [vmem:[#allocation1 + $0x6] ss:$9 sm:$0xff] %v8857_v24 }
 0x58f   : > { %4482 = vst [vmem:[#allocation1 + $0x7] ss:$9 sm:$0xff] %v8858_v5  ;;  %v8893_v5 = vld [vmem:[#allocation156_spill] sm:$0xff] }
 0x596   : > { %v4483_v27 = vld [vmem:[#allocation1] sm:$0xff]  ;;  %v4690_v8 = vpop.permute.xlu2 %4689 }
 0x597   : > { %4703 = vrot.lane.b32.xlu0 %v4483_v27, %s5235_s6  ;;  %4484 = vst [vmem:[#allocation1] ss:$9 sm:$0xff] %v8859_v43  ;;  %v4686_v32 = vpop.permute.xlu0 %4685  ;;  %v8895_v27 = vld [vmem:[#allocation158_spill] sm:$0xff]  ;;  %v8896_v43 = vld [vmem:[#allocation159_spill] sm:$0xff] }
 0x598   : > { %4485 = vst [vmem:[#allocation1 + $0x1] ss:$9 sm:$0xff] %v8860_v47  ;;  %v8897_v47 = vld [vmem:[#allocation160_spill] sm:$0xff] }
 0x599   : > { %4486 = vst [vmem:[#allocation1 + $0x2] ss:$9 sm:$0xff] %v8861_v63  ;;  %v8898_v63 = vld [vmem:[#allocation161_spill] sm:$0xff] }
 0x59a   : > { %4487 = vst [vmem:[#allocation1 + $0x3] ss:$9 sm:$0xff] %v8862_v20  ;;  %v8899_v20 = vld [vmem:[#allocation162_spill] sm:$0xff] }
 0x59b   : > { %4488 = vst [vmem:[#allocation1 + $0x4] ss:$9 sm:$0xff] %v8863_v51  ;;  %v8900_v51 = vld [vmem:[#allocation163_spill] sm:$0xff] }
 0x59c   : > { %4489 = vst [vmem:[#allocation1 + $0x5] ss:$9 sm:$0xff] %v8864_v40 }
 0x59d   : > { %4490 = vst [vmem:[#allocation1 + $0x6] ss:$9 sm:$0xff] %v8865_v55 }
 0x59e   : > { %4491 = vst [vmem:[#allocation1 + $0x7] ss:$9 sm:$0xff] %v8866_v33  ;;  %v8901_v33 = vld [vmem:[#allocation164_spill] sm:$0xff] }
 0x59f   : > { %5080 = vst.msk [vmem:[%s6556_s22 + $0x118] sm:$0x1] %vm4258_vm5, %v4690_v8  ;;  %v8903_v8 = vld [vmem:[#allocation166_spill] sm:$0xff] }
 0x5a0   : > { %5078 = vst.msk [vmem:[%s6556_s22 + $0x108] sm:$0xff] %vm2273_vm4, %v4686_v32  ;;  %v8911_v32 = vld [vmem:[#allocation174_spill] sm:$0xff] }
 0x5a5   : > { %v4492_v53 = vld [vmem:[#allocation1] sm:$0xff] }
 0x5a6   : > { %4705 = vrot.lane.b32.xlu1 %v4492_v53, %s5235_s6  ;;  %4493 = vst [vmem:[#allocation1] ss:$9 sm:$0xff] %v8867_v16  ;;  %v4688_v35 = vpop.permute.xlu1 %4687  ;;  %v8902_v16 = vld [vmem:[#allocation165_spill] sm:$0xff] }
 0x5a7   : > { %5079 = vst.msk [vmem:[%s6556_s22 + $0x110] sm:$0xff] %vm2273_vm4, %v4688_v35  ;;  %v8918_v35 = vld [vmem:[#allocation181_spill] sm:$0xff] }
 0x5ad   : > { %v4494_v60 = vld [vmem:[#allocation1] sm:$0xff] }
 0x5ae   : > { %4707 = vrot.lane.b32.xlu2 %v4494_v60, %s5235_s6  ;;  %4495 = vst [vmem:[#allocation1] ss:$9 sm:$0xff] %v8868_v30  ;;  %v8904_v60 = vld [vmem:[#allocation167_spill] sm:$0xff]  ;;  %v8905_v30 = vld [vmem:[#allocation168_spill] sm:$0xff] }
 0x5af   : > { %4496 = vst [vmem:[#allocation1 + $0x1] ss:$9 sm:$0xff] %v8869_v3  ;;  %v8906_v3 = vld [vmem:[#allocation169_spill] sm:$0xff] }
 0x5b0   : > { %4497 = vst [vmem:[#allocation1 + $0x2] ss:$9 sm:$0xff] %v8870_v57  ;;  %v8907_v57 = vld [vmem:[#allocation170_spill] sm:$0xff] }
 0x5b1   : > { %4498 = vst [vmem:[#allocation1 + $0x3] ss:$9 sm:$0xff] %v8871_v28  ;;  %v8908_v28 = vld [vmem:[#allocation171_spill] sm:$0xff] }
 0x5b2   : > { %4499 = vst [vmem:[#allocation1 + $0x4] ss:$9 sm:$0xff] %v8872_v34  ;;  %v8909_v34 = vld [vmem:[#allocation172_spill] sm:$0xff] }
 0x5b3   : > { %4500 = vst [vmem:[#allocation1 + $0x5] ss:$9 sm:$0xff] %v8873_v54 }
 0x5b4   : > { %4501 = vst [vmem:[#allocation1 + $0x6] ss:$9 sm:$0xff] %v8874_v48 }
 0x5b5   : > { %4502 = vst [vmem:[#allocation1 + $0x7] ss:$9 sm:$0xff] %v8875_v56  ;;  %v8910_v56 = vld [vmem:[#allocation173_spill] sm:$0xff] }
 0x5bc   : > { %v4503_v52 = vld [vmem:[#allocation1] sm:$0xff]  ;;  %v4696_v39 = vpop.permute.xlu2 %4695 }
 0x5bd   : > { %4709 = vrot.lane.b32.xlu0 %v4503_v52, %s5235_s6  ;;  %4504 = vst [vmem:[#allocation1] ss:$9 sm:$0xff] %v8876_v59  ;;  %v4692_v6 = vpop.permute.xlu0 %4691  ;;  %v8912_v52 = vld [vmem:[#allocation175_spill] sm:$0xff]  ;;  %v8913_v59 = vld [vmem:[#allocation176_spill] sm:$0xff] }
 0x5be   : > { %4505 = vst [vmem:[#allocation1 + $0x1] ss:$9 sm:$0xff] %v8877_v62  ;;  %v8914_v62 = vld [vmem:[#allocation177_spill] sm:$0xff] }
 0x5bf   : > { %4506 = vst [vmem:[#allocation1 + $0x2] ss:$9 sm:$0xff] %v8878_v15  ;;  %v8915_v15 = vld [vmem:[#allocation178_spill] sm:$0xff] }
 0x5c0   : > { %4507 = vst [vmem:[#allocation1 + $0x3] ss:$9 sm:$0xff] %v8879_v61  ;;  %v8916_v61 = vld [vmem:[#allocation179_spill] sm:$0xff] }
 0x5c1   : > { %4508 = vst [vmem:[#allocation1 + $0x4] ss:$9 sm:$0xff] %v8880_v1 }
 0x5c2   : > { %4509 = vst [vmem:[#allocation1 + $0x5] ss:$9 sm:$0xff] %v8881_v36 }
 0x5c3   : > { %4510 = vst [vmem:[#allocation1 + $0x6] ss:$9 sm:$0xff] %v8882_v58 }
 0x5c4   : > { %4511 = vst [vmem:[#allocation1 + $0x7] ss:$9 sm:$0xff] %v8883_v49 }
 0x5c5   : > { %5083 = vst.msk [vmem:[%s6556_s22 + $0x148] sm:$0x1] %vm4258_vm5, %v4696_v39  ;;  %v8921_v39 = vld [vmem:[#allocation184_spill] sm:$0xff] }
 0x5c6   : > { %5081 = vst.msk [vmem:[%s6556_s22 + $0x138] sm:$0xff] %vm2273_vm4, %v4692_v6  ;;  %v8929_v6 = vld [vmem:[#allocation192_spill] sm:$0xff] }
 0x5cb   : > { %v4512_v37 = vld [vmem:[#allocation1] sm:$0xff] }
 0x5cc   : > { %4711 = vrot.lane.b32.xlu1 %v4512_v37, %s5235_s6  ;;  %4513 = vst [vmem:[#allocation1] ss:$9 sm:$0xff] %v8884_v50  ;;  %v4694_v40 = vpop.permute.xlu1 %4693  ;;  %v8919_v37 = vld [vmem:[#allocation182_spill] sm:$0xff]  ;;  %v8920_v50 = vld [vmem:[#allocation183_spill] sm:$0xff] }
 0x5cd   : > { %5082 = vst.msk [vmem:[%s6556_s22 + $0x140] sm:$0xff] %vm2273_vm4, %v4694_v40  ;;  %v8935_v40 = vld [vmem:[#allocation198_spill] sm:$0xff] }
 0x5d3   : > { %v4514_v2 = vld [vmem:[#allocation1] sm:$0xff] }
 0x5d4   : > { %4713 = vrot.lane.b32.xlu2 %v4514_v2, %s5235_s6  ;;  %4515 = vst [vmem:[#allocation1] ss:$9 sm:$0xff] %v8885_v42  ;;  %v8922_v2 = vld [vmem:[#allocation185_spill] sm:$0xff]  ;;  %v8923_v42 = vld [vmem:[#allocation186_spill] sm:$0xff] }
 0x5d5   : > { %4516 = vst [vmem:[#allocation1 + $0x1] ss:$9 sm:$0xff] %v8886_v22  ;;  %v8924_v22 = vld [vmem:[#allocation187_spill] sm:$0xff] }
 0x5d6   : > { %4517 = vst [vmem:[#allocation1 + $0x2] ss:$9 sm:$0xff] %v8887_v46  ;;  %v8925_v46 = vld [vmem:[#allocation188_spill] sm:$0xff] }
 0x5d7   : > { %4518 = vst [vmem:[#allocation1 + $0x3] ss:$9 sm:$0xff] %v8888_v29 }
 0x5d8   : > { %4519 = vst [vmem:[#allocation1 + $0x4] ss:$9 sm:$0xff] %v8889_v11 }
 0x5d9   : > { %4520 = vst [vmem:[#allocation1 + $0x5] ss:$9 sm:$0xff] %v8890_v7  ;;  %v8926_v7 = vld [vmem:[#allocation189_spill] sm:$0xff] }
 0x5da   : > { %4521 = vst [vmem:[#allocation1 + $0x6] ss:$9 sm:$0xff] %v8891_v4  ;;  %v8927_v4 = vld [vmem:[#allocation190_spill] sm:$0xff] }
 0x5db   : > { %4522 = vst [vmem:[#allocation1 + $0x7] ss:$9 sm:$0xff] %v8892_v21  ;;  %v8928_v21 = vld [vmem:[#allocation191_spill] sm:$0xff] }
 0x5e2   : > { %v4523_v24 = vld [vmem:[#allocation1] sm:$0xff]  ;;  %v4702_v26 = vpop.permute.xlu2 %4701 }
 0x5e3   : > { %4715 = vrot.lane.b32.xlu0 %v4523_v24, %s5235_s6  ;;  %4524 = vst [vmem:[#allocation1] ss:$9 sm:$0xff] %v8893_v5  ;;  %v4698_v54 = vpop.permute.xlu0 %4697  ;;  %v8930_v24 = vld [vmem:[#allocation193_spill] sm:$0xff]  ;;  %v8931_v5 = vld [vmem:[#allocation194_spill] sm:$0xff] }
 0x5e4   : > { %4525 = vst [vmem:[#allocation1 + $0x1] ss:$9 sm:$0xff] %v8894_v41  ;;  %v8932_v41 = vld [vmem:[#allocation195_spill] sm:$0xff] }
 0x5e5   : > { %4526 = vst [vmem:[#allocation1 + $0x2] ss:$9 sm:$0xff] %v8895_v27  ;;  %v8933_v27 = vld [vmem:[#allocation196_spill] sm:$0xff] }
 0x5e6   : > { %4527 = vst [vmem:[#allocation1 + $0x3] ss:$9 sm:$0xff] %v8896_v43 }
 0x5e7   : > { %4528 = vst [vmem:[#allocation1 + $0x4] ss:$9 sm:$0xff] %v8897_v47 }
 0x5e8   : > { %4529 = vst [vmem:[#allocation1 + $0x5] ss:$9 sm:$0xff] %v8898_v63  ;;  %v8934_v63 = vld [vmem:[#allocation197_spill] sm:$0xff] }
 0x5e9   : > { %4530 = vst [vmem:[#allocation1 + $0x6] ss:$9 sm:$0xff] %v8899_v20 }
 0x5ea   : > { %4531 = vst [vmem:[#allocation1 + $0x7] ss:$9 sm:$0xff] %v8900_v51 }
 0x5eb   : > { %5086 = vst.msk [vmem:[%s6556_s22 + $0x178] sm:$0x1] %vm4258_vm5, %v4702_v26  ;;  %v8938_v26 = vld [vmem:[#allocation201_spill] sm:$0xff] }
 0x5ec   : > { %5084 = vst.msk [vmem:[%s6556_s22 + $0x168] sm:$0xff] %vm2273_vm4, %v4698_v54  ;;  %v8946_v54 = vld [vmem:[#allocation209_spill] sm:$0xff] }
 0x5f1   : > { %v4532_v55 = vld [vmem:[#allocation1] sm:$0xff] }
 0x5f2   : > { %4717 = vrot.lane.b32.xlu1 %v4532_v55, %s5235_s6  ;;  %4533 = vst [vmem:[#allocation1] ss:$9 sm:$0xff] %v8901_v33  ;;  %v4700_v1 = vpop.permute.xlu1 %4699  ;;  %v8936_v55 = vld [vmem:[#allocation199_spill] sm:$0xff]  ;;  %v8937_v33 = vld [vmem:[#allocation200_spill] sm:$0xff] }
 0x5f3   : > { %5085 = vst.msk [vmem:[%s6556_s22 + $0x170] sm:$0xff] %vm2273_vm4, %v4700_v1 }
 0x5f9   : > { %v4534_v53 = vld [vmem:[#allocation1] sm:$0xff] }
 0x5fa   : > { %4719 = vrot.lane.b32.xlu2 %v4534_v53, %s5235_s6  ;;  %4535 = vst [vmem:[#allocation1] ss:$9 sm:$0xff] %v8902_v16  ;;  %v8939_v53 = vld [vmem:[#allocation202_spill] sm:$0xff]  ;;  %v8940_v16 = vld [vmem:[#allocation203_spill] sm:$0xff] }
 0x5fb   : > { %4536 = vst [vmem:[#allocation1 + $0x1] ss:$9 sm:$0xff] %v8903_v8  ;;  %v8941_v8 = vld [vmem:[#allocation204_spill] sm:$0xff] }
 0x5fc   : > { %4537 = vst [vmem:[#allocation1 + $0x2] ss:$9 sm:$0xff] %v8904_v60  ;;  %v8942_v60 = vld [vmem:[#allocation205_spill] sm:$0xff] }
 0x5fd   : > { %4538 = vst [vmem:[#allocation1 + $0x3] ss:$9 sm:$0xff] %v8905_v30 }
 0x5fe   : > { %4539 = vst [vmem:[#allocation1 + $0x4] ss:$9 sm:$0xff] %v8906_v3 }
 0x5ff   : > { %4540 = vst [vmem:[#allocation1 + $0x5] ss:$9 sm:$0xff] %v8907_v57  ;;  %v8943_v57 = vld [vmem:[#allocation206_spill] sm:$0xff] }
 0x600   : > { %4541 = vst [vmem:[#allocation1 + $0x6] ss:$9 sm:$0xff] %v8908_v28  ;;  %v8944_v28 = vld [vmem:[#allocation207_spill] sm:$0xff] }
 0x601   : > { %4542 = vst [vmem:[#allocation1 + $0x7] ss:$9 sm:$0xff] %v8909_v34  ;;  %v8945_v34 = vld [vmem:[#allocation208_spill] sm:$0xff] }
 0x608   : > { %v4543_v48 = vld [vmem:[#allocation1] sm:$0xff]  ;;  %v4708_v58 = vpop.permute.xlu2 %4707 }
 0x609   : > { %4721 = vrot.lane.b32.xlu0 %v4543_v48, %s5235_s6  ;;  %4544 = vst [vmem:[#allocation1] ss:$9 sm:$0xff] %v7223_v17  ;;  %v8917_v17 = vld [vmem:[#allocation180_spill] sm:$0xff]  ;;  %v4704_v29 = vpop.permute.xlu0 %4703  ;;  %v8947_v48 = vld [vmem:[#allocation210_spill] sm:$0xff] }
 0x60a   : > { %4545 = vst [vmem:[#allocation1 + $0x1] ss:$9 sm:$0xff] %v8910_v56  ;;  %v8948_v56 = vld [vmem:[#allocation211_spill] sm:$0xff] }
 0x60b   : > { %4546 = vst [vmem:[#allocation1 + $0x2] ss:$9 sm:$0xff] %v8911_v32  ;;  %v8949_v32 = vld [vmem:[#allocation212_spill] sm:$0xff] }
 0x60c   : > { %4547 = vst [vmem:[#allocation1 + $0x3] ss:$9 sm:$0xff] %v8912_v52  ;;  %v8950_v52 = vld [vmem:[#allocation213_spill] sm:$0xff] }
 0x60d   : > { %4548 = vst [vmem:[#allocation1 + $0x4] ss:$9 sm:$0xff] %v8913_v59 }
 0x60e   : > { %4549 = vst [vmem:[#allocation1 + $0x5] ss:$9 sm:$0xff] %v8914_v62 }
 0x60f   : > { %4550 = vst [vmem:[#allocation1 + $0x6] ss:$9 sm:$0xff] %v8915_v15  ;;  %v8951_v15 = vld [vmem:[#allocation214_spill] sm:$0xff] }
 0x610   : > { %4551 = vst [vmem:[#allocation1 + $0x7] ss:$9 sm:$0xff] %v8916_v61 }
 0x611   : > { %5089 = vst.msk [vmem:[%s6556_s22 + $0x1a8] sm:$0x1] %vm4258_vm5, %v4708_v58  ;;  %v8954_v58 = vld [vmem:[#allocation217_spill] sm:$0xff] }
 0x612   : > { %5087 = vst.msk [vmem:[%s6556_s22 + $0x198] sm:$0xff] %vm2273_vm4, %v4704_v29  ;;  %v8963_v29 = vld [vmem:[#allocation226_spill] sm:$0xff] }
 0x617   : > { %v4552_v36 = vld [vmem:[#allocation1] sm:$0xff] }
 0x618   : > { %4723 = vrot.lane.b32.xlu1 %v4552_v36, %s5235_s6  ;;  %4553 = vst [vmem:[#allocation1] ss:$9 sm:$0xff] %v8917_v17  ;;  %v4706_v43 = vpop.permute.xlu1 %4705  ;;  %v8952_v36 = vld [vmem:[#allocation215_spill] sm:$0xff]  ;;  %v8953_v17 = vld [vmem:[#allocation216_spill] sm:$0xff] }
 0x619   : > { %5088 = vst.msk [vmem:[%s6556_s22 + $0x1a0] sm:$0xff] %vm2273_vm4, %v4706_v43  ;;  %v8970_v43 = vld [vmem:[#allocation233_spill] sm:$0xff] }
 0x61f   : > { %v4554_v49 = vld [vmem:[#allocation1] sm:$0xff] }
 0x620   : > { %4725 = vrot.lane.b32.xlu2 %v4554_v49, %s5235_s6  ;;  %4555 = vst [vmem:[#allocation1] ss:$9 sm:$0xff] %v8918_v35  ;;  %v8955_v49 = vld [vmem:[#allocation218_spill] sm:$0xff]  ;;  %v8956_v35 = vld [vmem:[#allocation219_spill] sm:$0xff] }
 0x621   : > { %4556 = vst [vmem:[#allocation1 + $0x1] ss:$9 sm:$0xff] %v8919_v37  ;;  %v8957_v37 = vld [vmem:[#allocation220_spill] sm:$0xff] }
 0x622   : > { %4557 = vst [vmem:[#allocation1 + $0x2] ss:$9 sm:$0xff] %v8920_v50  ;;  %v8958_v50 = vld [vmem:[#allocation221_spill] sm:$0xff] }
 0x623   : > { %4558 = vst [vmem:[#allocation1 + $0x3] ss:$9 sm:$0xff] %v8921_v39 }
 0x624   : > { %4559 = vst [vmem:[#allocation1 + $0x4] ss:$9 sm:$0xff] %v8922_v2 }
 0x625   : > { %4560 = vst [vmem:[#allocation1 + $0x5] ss:$9 sm:$0xff] %v8923_v42  ;;  %v8960_v42 = vld [vmem:[#allocation223_spill] sm:$0xff] }
 0x626   : > { %4561 = vst [vmem:[#allocation1 + $0x6] ss:$9 sm:$0xff] %v8924_v22  ;;  %v8961_v22 = vld [vmem:[#allocation224_spill] sm:$0xff] }
 0x627   : > { %4562 = vst [vmem:[#allocation1 + $0x7] ss:$9 sm:$0xff] %v8925_v46  ;;  %v8962_v46 = vld [vmem:[#allocation225_spill] sm:$0xff] }
 0x62e   : > { %v4563_v11 = vld [vmem:[#allocation1] sm:$0xff]  ;;  %v4714_v20 = vpop.permute.xlu2 %4713 }
 0x62f   : > { %4727 = vrot.lane.b32.xlu0 %v4563_v11, %s5235_s6  ;;  %4564 = vst [vmem:[#allocation1] ss:$9 sm:$0xff] %v8926_v7  ;;  %v4710_v30 = vpop.permute.xlu0 %4709  ;;  %v8964_v11 = vld [vmem:[#allocation227_spill] sm:$0xff]  ;;  %v8965_v7 = vld [vmem:[#allocation228_spill] sm:$0xff] }
 0x630   : > { %4565 = vst [vmem:[#allocation1 + $0x1] ss:$9 sm:$0xff] %v8927_v4 }
 0x631   : > { %4566 = vst [vmem:[#allocation1 + $0x2] ss:$9 sm:$0xff] %v8928_v21 }
 0x632   : > { %4567 = vst [vmem:[#allocation1 + $0x3] ss:$9 sm:$0xff] %v8929_v6 }
 0x633   : > { %4568 = vst [vmem:[#allocation1 + $0x4] ss:$9 sm:$0xff] %v8930_v24 }
 0x634   : > { %4569 = vst [vmem:[#allocation1 + $0x5] ss:$9 sm:$0xff] %v8931_v5  ;;  %v8967_v5 = vld [vmem:[#allocation230_spill] sm:$0xff] }
 0x635   : > { %4570 = vst [vmem:[#allocation1 + $0x6] ss:$9 sm:$0xff] %v8932_v41  ;;  %v8968_v41 = vld [vmem:[#allocation231_spill] sm:$0xff] }
 0x636   : > { %4571 = vst [vmem:[#allocation1 + $0x7] ss:$9 sm:$0xff] %v8933_v27  ;;  %v8969_v27 = vld [vmem:[#allocation232_spill] sm:$0xff] }
 0x637   : > { %5092 = vst.msk [vmem:[%s6556_s22 + $0x1d8] sm:$0x1] %vm4258_vm5, %v4714_v20  ;;  %v8973_v20 = vld [vmem:[#allocation236_spill] sm:$0xff] }
 0x638   : > { %5090 = vst.msk [vmem:[%s6556_s22 + $0x1c8] sm:$0xff] %vm2273_vm4, %v4710_v30 }
 0x63d   : > { %v4572_v47 = vld [vmem:[#allocation1] sm:$0xff] }
 0x63e   : > { %4729 = vrot.lane.b32.xlu1 %v4572_v47, %s5235_s6  ;;  %4573 = vst [vmem:[#allocation1] ss:$9 sm:$0xff] %v8934_v63  ;;  %v4712_v59 = vpop.permute.xlu1 %4711  ;;  %v8971_v47 = vld [vmem:[#allocation234_spill] sm:$0xff]  ;;  %v8972_v63 = vld [vmem:[#allocation235_spill] sm:$0xff] }
 0x63f   : > { %5091 = vst.msk [vmem:[%s6556_s22 + $0x1d0] sm:$0xff] %vm2273_vm4, %v4712_v59 }
 0x645   : > { %v4574_v51 = vld [vmem:[#allocation1] sm:$0xff] }
 0x646   : > { %4731 = vrot.lane.b32.xlu2 %v4574_v51, %s5235_s6  ;;  %4575 = vst [vmem:[#allocation1] ss:$9 sm:$0xff] %v8935_v40 }
 0x647   : > { %4576 = vst [vmem:[#allocation1 + $0x1] ss:$9 sm:$0xff] %v8936_v55  ;;  %v8975_v55 = vld [vmem:[#allocation238_spill] sm:$0xff] }
 0x648   : > { %4577 = vst [vmem:[#allocation1 + $0x2] ss:$9 sm:$0xff] %v8937_v33  ;;  %v8976_v33 = vld [vmem:[#allocation239_spill] sm:$0xff] }
 0x649   : > { %4578 = vst [vmem:[#allocation1 + $0x3] ss:$9 sm:$0xff] %v8938_v26  ;;  %v8977_v26 = vld [vmem:[#allocation240_spill] sm:$0xff] }
 0x64a   : > { %4579 = vst [vmem:[#allocation1 + $0x4] ss:$9 sm:$0xff] %v8939_v53  ;;  %v8978_v53 = vld [vmem:[#allocation241_spill] sm:$0xff] }
 0x64b   : > { %4580 = vst [vmem:[#allocation1 + $0x5] ss:$9 sm:$0xff] %v8940_v16  ;;  %v8979_v16 = vld [vmem:[#allocation242_spill] sm:$0xff] }
 0x64c   : > { %4581 = vst [vmem:[#allocation1 + $0x6] ss:$9 sm:$0xff] %v8941_v8  ;;  %v8980_v8 = vld [vmem:[#allocation243_spill] sm:$0xff] }
 0x64d   : > { %4582 = vst [vmem:[#allocation1 + $0x7] ss:$9 sm:$0xff] %v8942_v60  ;;  %v8981_v60 = vld [vmem:[#allocation244_spill] sm:$0xff] }
 0x654   : > { %v4583_v3 = vld [vmem:[#allocation1] sm:$0xff]  ;;  %v4720_v61 = vpop.permute.xlu2 %4719 }
 0x655   : > { %4733 = vrot.lane.b32.xlu0 %v4583_v3, %s5235_s6  ;;  %4584 = vst [vmem:[#allocation1] ss:$9 sm:$0xff] %v8943_v57  ;;  %v4716_v39 = vpop.permute.xlu0 %4715  ;;  %v8982_v57 = vld [vmem:[#allocation245_spill] sm:$0xff] }
 0x656   : > { %4585 = vst [vmem:[#allocation1 + $0x1] ss:$9 sm:$0xff] %v8944_v28 }
 0x657   : > { %4586 = vst [vmem:[#allocation1 + $0x2] ss:$9 sm:$0xff] %v8945_v34 }
 0x658   : > { %4587 = vst [vmem:[#allocation1 + $0x3] ss:$9 sm:$0xff] %v8946_v54  ;;  %v8983_v54 = vld [vmem:[#allocation246_spill] sm:$0xff] }
 0x659   : > { %4588 = vst [vmem:[#allocation1 + $0x4] ss:$9 sm:$0xff] %v8947_v48  ;;  %v8984_v48 = vld [vmem:[#allocation247_spill] sm:$0xff] }
 0x65a   : > { %4589 = vst [vmem:[#allocation1 + $0x5] ss:$9 sm:$0xff] %v8948_v56  ;;  %v8985_v56 = vld [vmem:[#allocation248_spill] sm:$0xff] }
 0x65b   : > { %4590 = vst [vmem:[#allocation1 + $0x6] ss:$9 sm:$0xff] %v8949_v32  ;;  %v8986_v32 = vld [vmem:[#allocation249_spill] sm:$0xff] }
 0x65c   : > { %4591 = vst [vmem:[#allocation1 + $0x7] ss:$9 sm:$0xff] %v8950_v52  ;;  %v8987_v52 = vld [vmem:[#allocation250_spill] sm:$0xff] }
 0x65d   : > { %5095 = vst.msk [vmem:[%s6556_s22 + $0x208] sm:$0x1] %vm4258_vm5, %v4720_v61 }
 0x65e   : > { %5093 = vst.msk [vmem:[%s6556_s22 + $0x1f8] sm:$0xff] %vm2273_vm4, %v4716_v39 }
 0x663   : > { %v4592_v62 = vld [vmem:[#allocation1] sm:$0xff] }
 0x664   : > { %4735 = vrot.lane.b32.xlu1 %v4592_v62, %s5235_s6  ;;  %4593 = vst [vmem:[#allocation1] ss:$9 sm:$0xff] %v8951_v15  ;;  %v4718_v4 = vpop.permute.xlu1 %4717  ;;  %v8988_v15 = vld [vmem:[#allocation251_spill] sm:$0xff] }
 0x665   : > { %5094 = vst.msk [vmem:[%s6556_s22 + $0x200] sm:$0xff] %vm2273_vm4, %v4718_v4 }
 0x66b   : > { %v4594_v1 = vld [vmem:[#allocation1] sm:$0xff] }
 0x66c   : > { %4737 = vrot.lane.b32.xlu2 %v4594_v1, %s5235_s6  ;;  %4595 = vst [vmem:[#allocation1] ss:$9 sm:$0xff] %v7469_v44  ;;  %v8959_v44 = vld [vmem:[#allocation222_spill] sm:$0xff] }
 0x66d   : > { %4596 = vst [vmem:[#allocation1 + $0x1] ss:$9 sm:$0xff] %v8952_v36 }
 0x66e   : > { %4597 = vst [vmem:[#allocation1 + $0x2] ss:$9 sm:$0xff] %v8953_v17 }
 0x66f   : > { %4598 = vst [vmem:[#allocation1 + $0x3] ss:$9 sm:$0xff] %v8954_v58 }
 0x670   : > { %4599 = vst [vmem:[#allocation1 + $0x4] ss:$9 sm:$0xff] %v8955_v49 }
 0x671   : > { %4600 = vst [vmem:[#allocation1 + $0x5] ss:$9 sm:$0xff] %v8956_v35 }
 0x672   : > { %4601 = vst [vmem:[#allocation1 + $0x6] ss:$9 sm:$0xff] %v8957_v37 }
 0x673   : > { %4602 = vst [vmem:[#allocation1 + $0x7] ss:$9 sm:$0xff] %v8958_v50 }
 0x67a   : > { %v4603_v2 = vld [vmem:[#allocation1] sm:$0xff]  ;;  %v4726_v6 = vpop.permute.xlu2 %4725 }
 0x67b   : > { %4739 = vrot.lane.b32.xlu0 %v4603_v2, %s5235_s6  ;;  %4604 = vst [vmem:[#allocation1] ss:$9 sm:$0xff] %v7519_v9  ;;  %v8966_v9 = vld [vmem:[#allocation229_spill] sm:$0xff]  ;;  %v4722_v51 = vpop.permute.xlu0 %4721 }
 0x67c   : > { %4605 = vst [vmem:[#allocation1 + $0x1] ss:$9 sm:$0xff] %v8959_v44 }
 0x67d   : > { %4606 = vst [vmem:[#allocation1 + $0x2] ss:$9 sm:$0xff] %v8960_v42 }
 0x67e   : > { %4607 = vst [vmem:[#allocation1 + $0x3] ss:$9 sm:$0xff] %v8961_v22 }
 0x67f   : > { %4608 = vst [vmem:[#allocation1 + $0x4] ss:$9 sm:$0xff] %v8962_v46 }
 0x680   : > { %4609 = vst [vmem:[#allocation1 + $0x5] ss:$9 sm:$0xff] %v8963_v29 }
 0x681   : > { %4610 = vst [vmem:[#allocation1 + $0x6] ss:$9 sm:$0xff] %v8964_v11 }
 0x682   : > { %4611 = vst [vmem:[#allocation1 + $0x7] ss:$9 sm:$0xff] %v8965_v7 }
 0x683   : > { %5098 = vst.msk [vmem:[%s6556_s22 + $0x238] sm:$0x1] %vm4258_vm5, %v4726_v6 }
 0x684   : > { %5096 = vst.msk [vmem:[%s6556_s22 + $0x228] sm:$0xff] %vm2273_vm4, %v4722_v51 }
 0x689   : > { %v4612_v21 = vld [vmem:[#allocation1] sm:$0xff] }
 0x68a   : > { %4741 = vrot.lane.b32.xlu1 %v4612_v21, %s5235_s6  ;;  %4613 = vst [vmem:[#allocation1] ss:$9 sm:$0xff] %v8966_v9  ;;  %v4724_v30 = vpop.permute.xlu1 %4723 }
 0x68b   : > { %5097 = vst.msk [vmem:[%s6556_s22 + $0x230] sm:$0xff] %vm2273_vm4, %v4724_v30 }
 0x691   : > { %v4614_v24 = vld [vmem:[#allocation1] sm:$0xff] }
 0x692   : > { %4743 = vrot.lane.b32.xlu2 %v4614_v24, %s5235_s6  ;;  %4615 = vst [vmem:[#allocation1] ss:$9 sm:$0xff] %v7577_v10  ;;  %v8974_v10 = vld [vmem:[#allocation237_spill] sm:$0xff] }
 0x693   : > { %4616 = vst [vmem:[#allocation1 + $0x1] ss:$9 sm:$0xff] %v8967_v5 }
 0x694   : > { %4617 = vst [vmem:[#allocation1 + $0x2] ss:$9 sm:$0xff] %v8968_v41 }
 0x695   : > { %4618 = vst [vmem:[#allocation1 + $0x3] ss:$9 sm:$0xff] %v8969_v27 }
 0x696   : > { %4619 = vst [vmem:[#allocation1 + $0x4] ss:$9 sm:$0xff] %v8970_v43 }
 0x697   : > { %4620 = vst [vmem:[#allocation1 + $0x5] ss:$9 sm:$0xff] %v8971_v47 }
 0x698   : > { %4621 = vst [vmem:[#allocation1 + $0x6] ss:$9 sm:$0xff] %v8972_v63 }
 0x699   : > { %4622 = vst [vmem:[#allocation1 + $0x7] ss:$9 sm:$0xff] %v8973_v20 }
 0x6a0   : > { %v4623_v40 = vld [vmem:[#allocation1] sm:$0xff]  ;;  %v4732_v28 = vpop.permute.xlu2 %4731 }
 0x6a1   : > { %4745 = vrot.lane.b32.xlu0 %v4623_v40, %s5235_s6  ;;  %4624 = vst [vmem:[#allocation1] ss:$9 sm:$0xff] %v8974_v10  ;;  %v4728_v59 = vpop.permute.xlu0 %4727 }
 0x6a2   : > { %4625 = vst [vmem:[#allocation1 + $0x1] ss:$9 sm:$0xff] %v8975_v55 }
 0x6a3   : > { %4626 = vst [vmem:[#allocation1 + $0x2] ss:$9 sm:$0xff] %v8976_v33 }
 0x6a4   : > { %4627 = vst [vmem:[#allocation1 + $0x3] ss:$9 sm:$0xff] %v8977_v26 }
 0x6a5   : > { %4628 = vst [vmem:[#allocation1 + $0x4] ss:$9 sm:$0xff] %v8978_v53 }
 0x6a6   : > { %4629 = vst [vmem:[#allocation1 + $0x5] ss:$9 sm:$0xff] %v8979_v16 }
 0x6a7   : > { %4630 = vst [vmem:[#allocation1 + $0x6] ss:$9 sm:$0xff] %v8980_v8 }
 0x6a8   : > { %4631 = vst [vmem:[#allocation1 + $0x7] ss:$9 sm:$0xff] %v8981_v60 }
 0x6a9   : > { %5101 = vst.msk [vmem:[%s6556_s22 + $0x268] sm:$0x1] %vm4258_vm5, %v4732_v28 }
 0x6aa   : > { %5099 = vst.msk [vmem:[%s6556_s22 + $0x258] sm:$0xff] %vm2273_vm4, %v4728_v59 }
 0x6af   : > { %v4632_v3 = vld [vmem:[#allocation1] sm:$0xff] }
 0x6b0   : > { %4747 = vrot.lane.b32.xlu1 %v4632_v3, %s5235_s6  ;;  %4633 = vst [vmem:[#allocation1] ss:$9 sm:$0xff] %v8982_v57  ;;  %v4730_v62 = vpop.permute.xlu1 %4729 }
 0x6b1   : > { %5100 = vst.msk [vmem:[%s6556_s22 + $0x260] sm:$0xff] %vm2273_vm4, %v4730_v62 }
 0x6b7   : > { %v4634_v34 = vld [vmem:[#allocation1] sm:$0xff] }
 0x6b8   : > { %4749 = vrot.lane.b32.xlu2 %v4634_v34, %s5235_s6  ;;  %4635 = vst [vmem:[#allocation1] ss:$9 sm:$0xff] %v7686_v45 }
 0x6b9   : > { %4636 = vst [vmem:[#allocation1 + $0x1] ss:$9 sm:$0xff] %v7690_v12 }
 0x6ba   : > { %4637 = vst [vmem:[#allocation1 + $0x2] ss:$9 sm:$0xff] %v8983_v54 }
 0x6bb   : > { %4638 = vst [vmem:[#allocation1 + $0x3] ss:$9 sm:$0xff] %v8984_v48 }
 0x6bc   : > { %4639 = vst [vmem:[#allocation1 + $0x4] ss:$9 sm:$0xff] %v8985_v56 }
 0x6bd   : > { %4640 = vst [vmem:[#allocation1 + $0x5] ss:$9 sm:$0xff] %v8986_v32 }
 0x6be   : > { %4641 = vst [vmem:[#allocation1 + $0x6] ss:$9 sm:$0xff] %v8987_v52 }
 0x6bf   : > { %4642 = vst [vmem:[#allocation1 + $0x7] ss:$9 sm:$0xff] %v8988_v15 }
 0x6c6   : > { %v4643_v12 = vld [vmem:[#allocation1] sm:$0xff]  ;;  %v4738_v45 = vpop.permute.xlu2 %4737 }
 0x6c7   : > { %4751 = vrot.lane.b32.xlu0 %v4643_v12, %s5235_s6  ;;  %4644 = vst [vmem:[#allocation1] ss:$9 sm:$0xff] %v7736_v13  ;;  %v4734_v61 = vpop.permute.xlu0 %4733 }
 0x6c8   : > { %4645 = vst [vmem:[#allocation1 + $0x1] ss:$9 sm:$0xff] %v7740_v14 }
 0x6c9   : > { %4646 = vst [vmem:[#allocation1 + $0x2] ss:$9 sm:$0xff] %v7744_v25 }
 0x6ca   : > { %4647 = vst [vmem:[#allocation1 + $0x3] ss:$9 sm:$0xff] %v7749_v38 }
 0x6cb   : > { %4648 = vst [vmem:[#allocation1 + $0x4] ss:$9 sm:$0xff] %v7753_v19 }
 0x6cc   : > { %4649 = vst [vmem:[#allocation1 + $0x5] ss:$9 sm:$0xff] %v7757_v0 }
 0x6cd   : > { %4650 = vst [vmem:[#allocation1 + $0x6] ss:$9 sm:$0xff] %v7761_v31 }
 0x6ce   : > { %4651 = vst [vmem:[#allocation1 + $0x7] ss:$9 sm:$0xff] %v7765_v23 }
 0x6cf   : > { %5104 = vst.msk [vmem:[%s6556_s22 + $0x298] sm:$0x1] %vm4258_vm5, %v4738_v45 }
 0x6d0   : > { %5102 = vst.msk [vmem:[%s6556_s22 + $0x288] sm:$0xff] %vm2273_vm4, %v4734_v61 }
 0x6d5   : > { %v4652_v14 = vld [vmem:[#allocation1] sm:$0xff] }
 0x6d6   : > { %4753 = vrot.lane.b32.xlu1 %v4652_v14, %s5235_s6  ;;  %4653 = vst [vmem:[#allocation1] ss:$9 sm:$0xff] %v7775_v18  ;;  %v4736_v13 = vpop.permute.xlu1 %4735 }
 0x6d7   : > { %5103 = vst.msk [vmem:[%s6556_s22 + $0x290] sm:$0xff] %vm2273_vm4, %v4736_v13 }
 0x6dd   : > { %v4654_v25 = vld [vmem:[#allocation1] sm:$0xff] }
 0x6de   : > { %4755 = vrot.lane.b32.xlu2 %v4654_v25, %s5235_s6 }
 0x6ec   : > { %v4744_v38 = vpop.permute.xlu2 %4743 }
 0x6ed   : > { %5107 = vst.msk [vmem:[%s6556_s22 + $0x2c8] sm:$0x1] %vm4258_vm5, %v4744_v38  ;;  %v4740_v19 = vpop.permute.xlu0 %4739 }
 0x6ee   : > { %5105 = vst.msk [vmem:[%s6556_s22 + $0x2b8] sm:$0xff] %vm2273_vm4, %v4740_v19 }
 0x6fc   : > { %v4742_v0 = vpop.permute.xlu1 %4741 }
 0x6fd   : > { %5106 = vst.msk [vmem:[%s6556_s22 + $0x2c0] sm:$0xff] %vm2273_vm4, %v4742_v0 }
 0x712   : > { %v4750_v31 = vpop.permute.xlu2 %4749 }
 0x713   : > { %5110 = vst.msk [vmem:[%s6556_s22 + $0x2f8] sm:$0x1] %vm4258_vm5, %v4750_v31  ;;  %v4746_v23 = vpop.permute.xlu0 %4745 }
 0x714   : > { %5108 = vst.msk [vmem:[%s6556_s22 + $0x2e8] sm:$0xff] %vm2273_vm4, %v4746_v23 }
 0x722   : > { %v4748_v18 = vpop.permute.xlu1 %4747 }
 0x723   : > { %5109 = vst.msk [vmem:[%s6556_s22 + $0x2f0] sm:$0xff] %vm2273_vm4, %v4748_v18 }
 0x738   : > { %v4756_v1 = vpop.permute.xlu2 %4755 }
 0x739   : > { %5113 = vst.msk [vmem:[%s6556_s22 + $0x328] sm:$0x1] %vm4258_vm5, %v4756_v1  ;;  %v4752_v36 = vpop.permute.xlu0 %4751 }
 0x73a   : > { %5111 = vst.msk [vmem:[%s6556_s22 + $0x318] sm:$0xff] %vm2273_vm4, %v4752_v36 }
 0x748   : > { %v4754_v17 = vpop.permute.xlu1 %4753 }
 0x749   : > { %5112 = vst.msk [vmem:[%s6556_s22 + $0x320] sm:$0xff] %vm2273_vm4, %v4754_v17 }
 0x74a PF: > { %s15_s20 = sadd.s32 1, %s5230_s20   ;;  %s8989_s18 = smov %s5226_s19 }
 0x74b   : > { %p12_p6 = scmp.ge.s32.totalorder %s15_s20, 4   ;;  %s8990_s19 = smov %s8992_s21 }
 0x74d   :  { %14 = sbr.rel (!%p12_p6) target bundleno = 2 (0x2), region = 95 }

</bundles_post_ra>
